<compile_context>
chip_gen: v7x
topology: tpu7x:2x2x1
jax: 0.10.0
libtpu: 0.0.40
codegen_flags: <defaults>
</compile_context>

<pallas_src>
import jax
import jax.numpy as jnp
from jax.experimental import pallas as pl
from jax.experimental.pallas import tpu as pltpu

EPS = 1e-5
LANE = 128


def _round_up(x, m):
    return (x + m - 1) // m * m


# ----------------------------------------------------------------------------
# Fused BasicBlock kernel (built per geometry, constants closed over)
# ----------------------------------------------------------------------------
def _make_kernel(R, R_ext, CP, Wp, Hp, H, W, M, P):
    """R     : rows of the flat padded output grid (N*Hp*Wp)
       R_ext : rows of the y1 scratch grid (halo + R + halo, 8-aligned)
       CP    : channel/lane width (multiple of 128)
       Wp,Hp : padded width/height (row stride of the flat grid)
       M     : number of valid output pixels (N*H*W) -> BN population
       P     : 8-aligned scratch row where y1's pixel (0,0,0) is stored
    """
    inv_m = 1.0 / float(M)
    inv_img = 1.0 / float(Hp * Wp)
    inv_wp = 1.0 / float(Wp)
    # conv2 stencil offsets into the scratch, dy-major dx-minor (matches w2)
    offs = [P + (dy - 1) * Wp + (dx - 1) for dy in range(3) for dx in range(3)]
    top_halo = P
    bot_halo = R_ext - P - R

    def kernel(x_ref, w1_ref, w2_ref, bn_ref, o_ref, y1_ref):
        bnv = bn_ref[...]                       # (8, CP) f32
        g1, b1 = bnv[0:1, :], bnv[1:2, :]
        g2, b2 = bnv[2:3, :], bnv[3:4, :]

        # ---- valid-pixel mask generated in-kernel (no HBM mask tensor) ------
        # row r of the flat padded grid is pixel (n, h, w); valid iff h<H, w<W.
        r = jax.lax.broadcasted_iota(jnp.int32, (R, CP), 0).astype(jnp.float32)
        j = r - jnp.floor((r + 0.5) * inv_img) * float(Hp * Wp)   # r mod Hp*Wp
        h = jnp.floor((j + 0.5) * inv_wp)
        w = j - h * float(Wp)
        mask = jnp.where((h < H) & (w < W), 1.0, 0.0)             # (R, CP) f32

        # ---- conv1: ONE packed-K (R,CP)@(CP,CP) bf16 MXU matmul -------------
        acc1 = jnp.dot(x_ref[...], w1_ref[...],
                       preferred_element_type=jnp.float32)

        # ---- bn1 (training-mode batch stats, one-pass sum/sumsq) + relu -----
        # invalid im2col rows are exact zeros -> no mask needed in the sums.
        mean1 = jnp.sum(acc1, axis=0, keepdims=True) * inv_m
        var1 = jnp.sum(acc1 * acc1, axis=0, keepdims=True) * inv_m - mean1 * mean1
        y1 = (acc1 - mean1) * jax.lax.rsqrt(var1 + EPS) * g1 + b1
        # masking also supplies conv2's zero padding on the border rows
        y1 = jnp.maximum(y1, 0.0) * mask

        # ---- stage y1 as a flat padded grid in VMEM (halo-only zero fill) ---
        y1_ref[pl.ds(0, top_halo), :] = jnp.zeros((top_halo, CP), jnp.float32)
        y1_ref[pl.ds(P + R, bot_halo), :] = jnp.zeros((bot_halo, CP), jnp.float32)
        y1_ref[pl.ds(P, R), :] = y1                 # 8-aligned store offset

        # ---- conv2: 9 shifted bf16 matmuls, f32 accumulate ------------------
        # (bias omitted: a constant immediately before train-mode BN cancels)
        acc2 = jnp.dot(y1_ref[pl.ds(offs[0], R), :].astype(jnp.bfloat16),
                       w2_ref[pl.ds(0, CP), :],
                       preferred_element_type=jnp.float32)
        for k in range(1, 9):
            acc2 = acc2 + jnp.dot(
                y1_ref[pl.ds(offs[k], R), :].astype(jnp.bfloat16),
                w2_ref[pl.ds(k * CP, CP), :],
                preferred_element_type=jnp.float32)

        # ---- bn2 (masked one-pass stats) + identity residual + relu ---------
        am = acc2 * mask
        mean2 = jnp.sum(am, axis=0, keepdims=True) * inv_m
        var2 = jnp.sum(am * acc2, axis=0, keepdims=True) * inv_m - mean2 * mean2
        y2 = (acc2 - mean2) * jax.lax.rsqrt(var2 + EPS) * g2 + b2
        # residual: the center tap of the im2col input sits at lanes [0, Cin)
        # (garbage in the discarded lanes >= Cout is harmless).
        y2 = y2 + x_ref[...].astype(jnp.float32)
        o_ref[...] = jnp.maximum(y2, 0.0).astype(o_ref.dtype)

    return kernel


# ----------------------------------------------------------------------------
# Wrapper: layout plumbing (all plain JAX, no heavy compute)
# ----------------------------------------------------------------------------
def basic_block_forward(x_nchw, params):
    """BasicBlock(in_ch, out_ch, stride=1, downsample=None).forward, NCHW io."""
    x = jnp.transpose(x_nchw, (0, 2, 3, 1)).astype(jnp.float32)   # -> NHWC
    N, H, W, Cin = x.shape
    Cout = params["w1"].shape[0]
    assert Cin == Cout, "identity residual requires in_channel == out_channel"
    CP = _round_up(max(Cin, Cout), LANE)
    assert 9 * Cin <= CP, "packed-K conv1 path requires 9*Cin <= 128"

    Hp, Wp = H + 2, W + 2
    R = N * Hp * Wp                       # rows of the flat padded grid
    M = N * H * W                         # valid output pixels (BN population)
    P = _round_up(Wp + 1, 8)              # aligned scratch offset of pixel 0
    R_ext = _round_up(P + R + Wp + 2, 8)  # scratch rows (+ halos)

    # --- conv1 im2col: 9 taps packed along lanes, CENTER TAP FIRST ----------
    taps = [(1, 1)] + [(dy, dx) for dy in range(3) for dx in range(3)
                       if (dy, dx) != (1, 1)]
    x_pad = jnp.pad(x, ((0, 0), (1, 1), (1, 1), (0, 0)))          # (N,H+2,W+2,C)
    cols = jnp.concatenate(
        [x_pad[:, dy:dy + H, dx:dx + W, :] for dy, dx in taps], axis=-1)
    grid_full = jnp.zeros((N, Hp, Wp, CP), jnp.float32)
    grid_full = grid_full.at[:, :H, :W, :9 * Cin].set(cols)       # invalid rows stay 0
    x_in = grid_full.reshape(R, CP).astype(jnp.bfloat16)

    # --- conv1 packed weights: rows t*Cin..t*Cin+Cin-1 = tap t (Cin,Cout) ---
    w1 = params["w1"].astype(jnp.float32)                         # (Cout,Cin,3,3)
    w1p = jnp.zeros((CP, CP), jnp.float32)
    for t, (dy, dx) in enumerate(taps):
        w1p = w1p.at[t * Cin:(t + 1) * Cin, :Cout].set(w1[:, :, dy, dx].T)
    w1p = w1p.astype(jnp.bfloat16)

    # --- conv2 weights stacked per tap along rows (dy-major, dx-minor) ------
    w2 = jnp.transpose(params["w2"].astype(jnp.float32), (2, 3, 1, 0))
    w2 = w2.reshape(9, Cin, Cout)
    w2s = jnp.zeros((9, CP, CP), jnp.float32).at[:, :Cin, :Cout].set(w2)
    w2s = w2s.reshape(9 * CP, CP).astype(jnp.bfloat16)

    # --- bn affine params packed into one (8, CP) block ---------------------
    bn = jnp.zeros((8, CP), jnp.float32)
    bn = bn.at[0, :Cout].set(params["g1"].astype(jnp.float32))
    bn = bn.at[1, :Cout].set(params["b1"].astype(jnp.float32))
    bn = bn.at[2, :Cout].set(params["g2"].astype(jnp.float32))
    bn = bn.at[3, :Cout].set(params["b2"].astype(jnp.float32))
    # params["bias2"] is intentionally NOT fed to the kernel: a per-channel
    # bias directly before a training-mode BatchNorm is removed by the mean
    # subtraction, so the block output is unchanged.

    kernel = _make_kernel(R, R_ext, CP, Wp, Hp, H, W, M, P)

    out_flat = pl.pallas_call(
        kernel,
        out_shape=jax.ShapeDtypeStruct((R, CP), jnp.float32),
        grid=(1,),
        in_specs=[
            pl.BlockSpec((R, CP), lambda i: (0, 0)),       # packed im2col (bf16)
            pl.BlockSpec((CP, CP), lambda i: (0, 0)),      # conv1 packed weights
            pl.BlockSpec((9 * CP, CP), lambda i: (0, 0)),  # conv2 weight stack
            pl.BlockSpec((8, CP), lambda i: (0, 0)),       # bn gamma/beta pack
        ],
        out_specs=pl.BlockSpec((R, CP), lambda i: (0, 0)),
        scratch_shapes=[pltpu.VMEM((R_ext, CP), jnp.float32)],   # y1 grid
        compiler_params=pltpu.CompilerParams(
            dimension_semantics=("arbitrary",),
            vmem_limit_bytes=32 * 1024 * 1024),
    )(x_in, w1p, w2s, bn)

    out = out_flat.reshape(N, Hp, Wp, CP)[:, :H, :W, :Cout]
    return jnp.transpose(out, (0, 3, 1, 2))                  # back to NCHW


# ----------------------------------------------------------------------------
# Pure-JAX reference (for the correctness check only)
# ----------------------------------------------------------------------------
def _ref_conv(x_nhwc, w_oihw):
    w_hwio = jnp.transpose(w_oihw, (2, 3, 1, 0))
    return jax.lax.conv_general_dilated(
        x_nhwc, w_hwio, window_strides=(1, 1), padding="SAME",
        dimension_numbers=("NHWC", "HWIO", "NHWC"))


def _ref_bn_train(y, gamma, beta):
    mean = jnp.mean(y, axis=(0, 1, 2), keepdims=True)
    var = jnp.mean((y - mean) ** 2, axis=(0, 1, 2), keepdims=True)
    return (y - mean) * jax.lax.rsqrt(var + EPS) * gamma + beta


def ref_forward(x_nchw, params):
    x = jnp.transpose(x_nchw, (0, 2, 3, 1)).astype(jnp.float32)
    y = _ref_conv(x, params["w1"])
    y = _ref_bn_train(y, params["g1"], params["b1"])
    y = jnp.maximum(y, 0.0)
    y = _ref_conv(y, params["w2"]) + params["bias2"]
    y = _ref_bn_train(y, params["g2"], params["b2"])
    y = y + x
    y = jnp.maximum(y, 0.0)
    return jnp.transpose(y, (0, 3, 1, 2))


# ----------------------------------------------------------------------------
if __name__ == "__main__":
    # BasicBlock(in_channel=8, out_channel=8, stride=1, downsample=None)
    N, C, H, W = 2, 8, 16, 16
    key = jax.random.PRNGKey(0)
    k = jax.random.split(key, 8)

    x = jax.random.normal(k[0], (N, C, H, W), jnp.float32)

    params = {
        # conv1: Conv2d(C, C, 3, stride=1, padding=1, bias=False)
        "w1": jax.random.normal(k[1], (C, C, 3, 3), jnp.float32) * 0.1,
        # bn1
        "g1": 1.0 + 0.1 * jax.random.normal(k[2], (C,), jnp.float32),
        "b1": 0.1 * jax.random.normal(k[3], (C,), jnp.float32),
        # conv2: Conv2d(C, C, 3, stride=1, padding=1, bias=True)
        "w2": jax.random.normal(k[4], (C, C, 3, 3), jnp.float32) * 0.1,
        "bias2": 0.1 * jax.random.normal(k[5], (C,), jnp.float32),
        # bn2
        "g2": 1.0 + 0.1 * jax.random.normal(k[6], (C,), jnp.float32),
        "b2": 0.1 * jax.random.normal(k[7], (C,), jnp.float32),
    }

    out = jax.jit(basic_block_forward)(x, params)
    out = jax.block_until_ready(out)

    ref = jax.block_until_ready(ref_forward(x, params))
    assert out.shape == (N, C, H, W)
    # bf16 matmul operands -> slightly looser tolerance than the pure-f32 path
    assert jnp.allclose(out, ref, atol=5e-2, rtol=5e-2), (
        f"max abs err {jnp.max(jnp.abs(out - ref))}")

    print("KERNEL_OK")
</pallas_src>

<mosaic_0001>
module attributes {stable_mosaic.version = 11 : i64} {
  func.func @kernel(%arg0: i32, %arg1: memref<648x128xbf16, #tpu.memory_space<vmem>>, %arg2: memref<128x128xbf16, #tpu.memory_space<vmem>>, %arg3: memref<1152x128xbf16, #tpu.memory_space<vmem>>, %arg4: memref<8x128xf32, #tpu.memory_space<vmem>>, %arg5: memref<648x128xf32, #tpu.memory_space<vmem>>, %arg6: memref<696x128xf32, #tpu.memory_space<vmem>>) attributes {dimension_semantics = [#tpu.dimension_semantics<arbitrary>], iteration_bounds = array<i64: 1>, scalar_prefetch = 0 : i64, scratch_operands = 1 : i64, tpu.core_type = #tpu.core_type<tc>, window_params = [{pipeline_mode = #tpu.pipeline_mode<synchronous>, transform_indices = @transform_0, window_bounds = array<i64: 648, 128>}, {pipeline_mode = #tpu.pipeline_mode<synchronous>, transform_indices = @transform_1, window_bounds = array<i64: 128, 128>}, {pipeline_mode = #tpu.pipeline_mode<synchronous>, transform_indices = @transform_2, window_bounds = array<i64: 1152, 128>}, {pipeline_mode = #tpu.pipeline_mode<synchronous>, transform_indices = @transform_3, window_bounds = array<i64: 8, 128>}, {pipeline_mode = #tpu.pipeline_mode<synchronous>, transform_indices = @transform_4, window_bounds = array<i64: 648, 128>}]} {
    %c0 = arith.constant 0 : index
    %c0_0 = arith.constant 0 : index
    %0 = vector.load %arg4[%c0, %c0_0] : memref<8x128xf32, #tpu.memory_space<vmem>>, vector<8x128xf32>
    %1 = vector.extract_strided_slice %0 {offsets = [0, 0], sizes = [1, 128], strides = [1, 1]} : vector<8x128xf32> to vector<1x128xf32>
    %2 = vector.extract_strided_slice %0 {offsets = [1, 0], sizes = [1, 128], strides = [1, 1]} : vector<8x128xf32> to vector<1x128xf32>
    %3 = vector.extract_strided_slice %0 {offsets = [2, 0], sizes = [1, 128], strides = [1, 1]} : vector<8x128xf32> to vector<1x128xf32>
    %4 = vector.extract_strided_slice %0 {offsets = [3, 0], sizes = [1, 128], strides = [1, 1]} : vector<8x128xf32> to vector<1x128xf32>
    %5 = tpu.iota {dimensions = array<i32: 0>} : vector<648x128xi32>
    %6 = arith.sitofp %5 : vector<648x128xi32> to vector<648x128xf32>
    %cst = arith.constant 5.000000e-01 : f32
    %7 = vector.broadcast %cst : f32 to vector<648x128xf32>
    %8 = arith.addf %6, %7 : vector<648x128xf32>
    %cst_1 = arith.constant 0.00308641978 : f32
    %9 = vector.broadcast %cst_1 : f32 to vector<648x128xf32>
    %10 = arith.mulf %8, %9 : vector<648x128xf32>
    %11 = math.floor %10 : vector<648x128xf32>
    %cst_2 = arith.constant 3.240000e+02 : f32
    %12 = vector.broadcast %cst_2 : f32 to vector<648x128xf32>
    %13 = arith.mulf %11, %12 : vector<648x128xf32>
    %14 = arith.subf %6, %13 : vector<648x128xf32>
    %cst_3 = arith.constant 5.000000e-01 : f32
    %15 = vector.broadcast %cst_3 : f32 to vector<648x128xf32>
    %16 = arith.addf %14, %15 : vector<648x128xf32>
    %cst_4 = arith.constant 0.055555556 : f32
    %17 = vector.broadcast %cst_4 : f32 to vector<648x128xf32>
    %18 = arith.mulf %16, %17 : vector<648x128xf32>
    %19 = math.floor %18 : vector<648x128xf32>
    %cst_5 = arith.constant 1.800000e+01 : f32
    %20 = vector.broadcast %cst_5 : f32 to vector<648x128xf32>
    %21 = arith.mulf %19, %20 : vector<648x128xf32>
    %22 = arith.subf %14, %21 : vector<648x128xf32>
    %cst_6 = arith.constant 1.600000e+01 : f32
    %23 = vector.broadcast %cst_6 : f32 to vector<648x128xf32>
    %24 = arith.cmpf olt, %19, %23 : vector<648x128xf32>
    %cst_7 = arith.constant 1.600000e+01 : f32
    %25 = vector.broadcast %cst_7 : f32 to vector<648x128xf32>
    %26 = arith.cmpf olt, %22, %25 : vector<648x128xf32>
    %27 = arith.andi %24, %26 : vector<648x128xi1>
    %cst_8 = arith.constant 1.000000e+00 : f32
    %cst_9 = arith.constant 0.000000e+00 : f32
    %28 = vector.broadcast %cst_8 : f32 to vector<648x128xf32>
    %29 = vector.broadcast %cst_9 : f32 to vector<648x128xf32>
    %30 = arith.select %27, %28, %29 : vector<648x128xi1>, vector<648x128xf32>
    %c0_10 = arith.constant 0 : index
    %c0_11 = arith.constant 0 : index
    %31 = vector.load %arg1[%c0_10, %c0_11] : memref<648x128xbf16, #tpu.memory_space<vmem>>, vector<648x128xbf16>
    %c0_12 = arith.constant 0 : index
    %c0_13 = arith.constant 0 : index
    %32 = vector.load %arg2[%c0_12, %c0_13] : memref<128x128xbf16, #tpu.memory_space<vmem>>, vector<128x128xbf16>
    %cst_14 = arith.constant dense<0.000000e+00> : vector<648x128xf32>
    %33 = tpu.matmul %31, %32, %cst_14 {dimension_numbers = #tpu.dot_dimension_numbers<[1], [0], [0], [1], [0, 0, 1, 1], [], []>} : vector<648x128xbf16>, vector<128x128xbf16>, vector<648x128xf32> -> vector<648x128xf32>
    %cst_15 = arith.constant dense<0.000000e+00> : vector<128xf32>
    %34 = vector.multi_reduction <add>, %33, %cst_15 [0] : vector<648x128xf32> to vector<128xf32>
    %35 = vector.shape_cast %34 : vector<128xf32> to vector<1x128xf32>
    %cst_16 = arith.constant 0.001953125 : f32
    %36 = vector.broadcast %cst_16 : f32 to vector<1x128xf32>
    %37 = arith.mulf %35, %36 : vector<1x128xf32>
    %38 = arith.mulf %33, %33 : vector<648x128xf32>
    %cst_17 = arith.constant dense<0.000000e+00> : vector<128xf32>
    %39 = vector.multi_reduction <add>, %38, %cst_17 [0] : vector<648x128xf32> to vector<128xf32>
    %40 = vector.shape_cast %39 : vector<128xf32> to vector<1x128xf32>
    %cst_18 = arith.constant 0.001953125 : f32
    %41 = vector.broadcast %cst_18 : f32 to vector<1x128xf32>
    %42 = arith.mulf %40, %41 : vector<1x128xf32>
    %43 = arith.mulf %37, %37 : vector<1x128xf32>
    %44 = arith.subf %42, %43 : vector<1x128xf32>
    %45 = vector.broadcast %37 : vector<1x128xf32> to vector<648x128xf32>
    %46 = arith.subf %33, %45 : vector<648x128xf32>
    %cst_19 = arith.constant 9.99999974E-6 : f32
    %47 = vector.broadcast %cst_19 : f32 to vector<1x128xf32>
    %48 = arith.addf %44, %47 : vector<1x128xf32>
    %49 = math.rsqrt %48 : vector<1x128xf32>
    %50 = vector.broadcast %49 : vector<1x128xf32> to vector<648x128xf32>
    %51 = arith.mulf %46, %50 : vector<648x128xf32>
    %52 = vector.broadcast %1 : vector<1x128xf32> to vector<648x128xf32>
    %53 = arith.mulf %51, %52 : vector<648x128xf32>
    %54 = vector.broadcast %2 : vector<1x128xf32> to vector<648x128xf32>
    %55 = arith.addf %53, %54 : vector<648x128xf32>
    %cst_20 = arith.constant 0.000000e+00 : f32
    %56 = vector.broadcast %cst_20 : f32 to vector<648x128xf32>
    %57 = arith.maximumf %55, %56 : vector<648x128xf32>
    %58 = arith.mulf %57, %30 : vector<648x128xf32>
    %cst_21 = arith.constant 0.000000e+00 : f32
    %59 = vector.broadcast %cst_21 : f32 to vector<24x128xf32>
    %c0_22 = arith.constant 0 : index
    %c0_23 = arith.constant 0 : index
    %60 = vector.load %arg6[%c0_22, %c0_23] : memref<696x128xf32, #tpu.memory_space<vmem>>, vector<24x128xf32>
    tpu.vector_store %arg6[%c0_22, %c0_23], %59 {strides = array<i32>} : memref<696x128xf32, #tpu.memory_space<vmem>>, vector<24x128xf32>,
    %cst_24 = arith.constant 0.000000e+00 : f32
    %61 = vector.broadcast %cst_24 : f32 to vector<24x128xf32>
    %c672 = arith.constant 672 : index
    %c0_25 = arith.constant 0 : index
    %62 = vector.load %arg6[%c672, %c0_25] : memref<696x128xf32, #tpu.memory_space<vmem>>, vector<24x128xf32>
    tpu.vector_store %arg6[%c672, %c0_25], %61 {strides = array<i32>} : memref<696x128xf32, #tpu.memory_space<vmem>>, vector<24x128xf32>,
    %c24 = arith.constant 24 : index
    %c0_26 = arith.constant 0 : index
    %63 = vector.load %arg6[%c24, %c0_26] : memref<696x128xf32, #tpu.memory_space<vmem>>, vector<648x128xf32>
    tpu.vector_store %arg6[%c24, %c0_26], %58 {strides = array<i32>} : memref<696x128xf32, #tpu.memory_space<vmem>>, vector<648x128xf32>,
    %c5 = arith.constant 5 : index
    %c0_27 = arith.constant 0 : index
    %64 = vector.load %arg6[%c5, %c0_27] : memref<696x128xf32, #tpu.memory_space<vmem>>, vector<648x128xf32>
    %65 = arith.truncf %64 : vector<648x128xf32> to vector<648x128xbf16>
    %c0_28 = arith.constant 0 : index
    %c0_29 = arith.constant 0 : index
    %66 = vector.load %arg3[%c0_28, %c0_29] : memref<1152x128xbf16, #tpu.memory_space<vmem>>, vector<128x128xbf16>
    %cst_30 = arith.constant dense<0.000000e+00> : vector<648x128xf32>
    %67 = tpu.matmul %65, %66, %cst_30 {dimension_numbers = #tpu.dot_dimension_numbers<[1], [0], [0], [1], [0, 0, 1, 1], [], []>} : vector<648x128xbf16>, vector<128x128xbf16>, vector<648x128xf32> -> vector<648x128xf32>
    %c6 = arith.constant 6 : index
    %c0_31 = arith.constant 0 : index
    %68 = vector.load %arg6[%c6, %c0_31] : memref<696x128xf32, #tpu.memory_space<vmem>>, vector<648x128xf32>
    %69 = arith.truncf %68 : vector<648x128xf32> to vector<648x128xbf16>
    %c128 = arith.constant 128 : index
    %c0_32 = arith.constant 0 : index
    %70 = vector.load %arg3[%c128, %c0_32] : memref<1152x128xbf16, #tpu.memory_space<vmem>>, vector<128x128xbf16>
    %cst_33 = arith.constant dense<0.000000e+00> : vector<648x128xf32>
    %71 = tpu.matmul %69, %70, %cst_33 {dimension_numbers = #tpu.dot_dimension_numbers<[1], [0], [0], [1], [0, 0, 1, 1], [], []>} : vector<648x128xbf16>, vector<128x128xbf16>, vector<648x128xf32> -> vector<648x128xf32>
    %72 = arith.addf %67, %71 : vector<648x128xf32>
    %c7 = arith.constant 7 : index
    %c0_34 = arith.constant 0 : index
    %73 = vector.load %arg6[%c7, %c0_34] : memref<696x128xf32, #tpu.memory_space<vmem>>, vector<648x128xf32>
    %74 = arith.truncf %73 : vector<648x128xf32> to vector<648x128xbf16>
    %c256 = arith.constant 256 : index
    %c0_35 = arith.constant 0 : index
    %75 = vector.load %arg3[%c256, %c0_35] : memref<1152x128xbf16, #tpu.memory_space<vmem>>, vector<128x128xbf16>
    %cst_36 = arith.constant dense<0.000000e+00> : vector<648x128xf32>
    %76 = tpu.matmul %74, %75, %cst_36 {dimension_numbers = #tpu.dot_dimension_numbers<[1], [0], [0], [1], [0, 0, 1, 1], [], []>} : vector<648x128xbf16>, vector<128x128xbf16>, vector<648x128xf32> -> vector<648x128xf32>
    %77 = arith.addf %72, %76 : vector<648x128xf32>
    %c23 = arith.constant 23 : index
    %c0_37 = arith.constant 0 : index
    %78 = vector.load %arg6[%c23, %c0_37] : memref<696x128xf32, #tpu.memory_space<vmem>>, vector<648x128xf32>
    %79 = arith.truncf %78 : vector<648x128xf32> to vector<648x128xbf16>
    %c384 = arith.constant 384 : index
    %c0_38 = arith.constant 0 : index
    %80 = vector.load %arg3[%c384, %c0_38] : memref<1152x128xbf16, #tpu.memory_space<vmem>>, vector<128x128xbf16>
    %cst_39 = arith.constant dense<0.000000e+00> : vector<648x128xf32>
    %81 = tpu.matmul %79, %80, %cst_39 {dimension_numbers = #tpu.dot_dimension_numbers<[1], [0], [0], [1], [0, 0, 1, 1], [], []>} : vector<648x128xbf16>, vector<128x128xbf16>, vector<648x128xf32> -> vector<648x128xf32>
    %82 = arith.addf %77, %81 : vector<648x128xf32>
    %c24_40 = arith.constant 24 : index
    %c0_41 = arith.constant 0 : index
    %83 = vector.load %arg6[%c24_40, %c0_41] : memref<696x128xf32, #tpu.memory_space<vmem>>, vector<648x128xf32>
    %84 = arith.truncf %83 : vector<648x128xf32> to vector<648x128xbf16>
    %c512 = arith.constant 512 : index
    %c0_42 = arith.constant 0 : index
    %85 = vector.load %arg3[%c512, %c0_42] : memref<1152x128xbf16, #tpu.memory_space<vmem>>, vector<128x128xbf16>
    %cst_43 = arith.constant dense<0.000000e+00> : vector<648x128xf32>
    %86 = tpu.matmul %84, %85, %cst_43 {dimension_numbers = #tpu.dot_dimension_numbers<[1], [0], [0], [1], [0, 0, 1, 1], [], []>} : vector<648x128xbf16>, vector<128x128xbf16>, vector<648x128xf32> -> vector<648x128xf32>
    %87 = arith.addf %82, %86 : vector<648x128xf32>
    %c25 = arith.constant 25 : index
    %c0_44 = arith.constant 0 : index
    %88 = vector.load %arg6[%c25, %c0_44] : memref<696x128xf32, #tpu.memory_space<vmem>>, vector<648x128xf32>
    %89 = arith.truncf %88 : vector<648x128xf32> to vector<648x128xbf16>
    %c640 = arith.constant 640 : index
    %c0_45 = arith.constant 0 : index
    %90 = vector.load %arg3[%c640, %c0_45] : memref<1152x128xbf16, #tpu.memory_space<vmem>>, vector<128x128xbf16>
    %cst_46 = arith.constant dense<0.000000e+00> : vector<648x128xf32>
    %91 = tpu.matmul %89, %90, %cst_46 {dimension_numbers = #tpu.dot_dimension_numbers<[1], [0], [0], [1], [0, 0, 1, 1], [], []>} : vector<648x128xbf16>, vector<128x128xbf16>, vector<648x128xf32> -> vector<648x128xf32>
    %92 = arith.addf %87, %91 : vector<648x128xf32>
    %c41 = arith.constant 41 : index
    %c0_47 = arith.constant 0 : index
    %93 = vector.load %arg6[%c41, %c0_47] : memref<696x128xf32, #tpu.memory_space<vmem>>, vector<648x128xf32>
    %94 = arith.truncf %93 : vector<648x128xf32> to vector<648x128xbf16>
    %c768 = arith.constant 768 : index
    %c0_48 = arith.constant 0 : index
    %95 = vector.load %arg3[%c768, %c0_48] : memref<1152x128xbf16, #tpu.memory_space<vmem>>, vector<128x128xbf16>
    %cst_49 = arith.constant dense<0.000000e+00> : vector<648x128xf32>
    %96 = tpu.matmul %94, %95, %cst_49 {dimension_numbers = #tpu.dot_dimension_numbers<[1], [0], [0], [1], [0, 0, 1, 1], [], []>} : vector<648x128xbf16>, vector<128x128xbf16>, vector<648x128xf32> -> vector<648x128xf32>
    %97 = arith.addf %92, %96 : vector<648x128xf32>
    %c42 = arith.constant 42 : index
    %c0_50 = arith.constant 0 : index
    %98 = vector.load %arg6[%c42, %c0_50] : memref<696x128xf32, #tpu.memory_space<vmem>>, vector<648x128xf32>
    %99 = arith.truncf %98 : vector<648x128xf32> to vector<648x128xbf16>
    %c896 = arith.constant 896 : index
    %c0_51 = arith.constant 0 : index
    %100 = vector.load %arg3[%c896, %c0_51] : memref<1152x128xbf16, #tpu.memory_space<vmem>>, vector<128x128xbf16>
    %cst_52 = arith.constant dense<0.000000e+00> : vector<648x128xf32>
    %101 = tpu.matmul %99, %100, %cst_52 {dimension_numbers = #tpu.dot_dimension_numbers<[1], [0], [0], [1], [0, 0, 1, 1], [], []>} : vector<648x128xbf16>, vector<128x128xbf16>, vector<648x128xf32> -> vector<648x128xf32>
    %102 = arith.addf %97, %101 : vector<648x128xf32>
    %c43 = arith.constant 43 : index
    %c0_53 = arith.constant 0 : index
    %103 = vector.load %arg6[%c43, %c0_53] : memref<696x128xf32, #tpu.memory_space<vmem>>, vector<648x128xf32>
    %104 = arith.truncf %103 : vector<648x128xf32> to vector<648x128xbf16>
    %c1024 = arith.constant 1024 : index
    %c0_54 = arith.constant 0 : index
    %105 = vector.load %arg3[%c1024, %c0_54] : memref<1152x128xbf16, #tpu.memory_space<vmem>>, vector<128x128xbf16>
    %cst_55 = arith.constant dense<0.000000e+00> : vector<648x128xf32>
    %106 = tpu.matmul %104, %105, %cst_55 {dimension_numbers = #tpu.dot_dimension_numbers<[1], [0], [0], [1], [0, 0, 1, 1], [], []>} : vector<648x128xbf16>, vector<128x128xbf16>, vector<648x128xf32> -> vector<648x128xf32>
    %107 = arith.addf %102, %106 : vector<648x128xf32>
    %108 = arith.mulf %107, %30 : vector<648x128xf32>
    %cst_56 = arith.constant dense<0.000000e+00> : vector<128xf32>
    %109 = vector.multi_reduction <add>, %108, %cst_56 [0] : vector<648x128xf32> to vector<128xf32>
    %110 = vector.shape_cast %109 : vector<128xf32> to vector<1x128xf32>
    %cst_57 = arith.constant 0.001953125 : f32
    %111 = vector.broadcast %cst_57 : f32 to vector<1x128xf32>
    %112 = arith.mulf %110, %111 : vector<1x128xf32>
    %113 = arith.mulf %108, %107 : vector<648x128xf32>
    %cst_58 = arith.constant dense<0.000000e+00> : vector<128xf32>
    %114 = vector.multi_reduction <add>, %113, %cst_58 [0] : vector<648x128xf32> to vector<128xf32>
    %115 = vector.shape_cast %114 : vector<128xf32> to vector<1x128xf32>
    %cst_59 = arith.constant 0.001953125 : f32
    %116 = vector.broadcast %cst_59 : f32 to vector<1x128xf32>
    %117 = arith.mulf %115, %116 : vector<1x128xf32>
    %118 = arith.mulf %112, %112 : vector<1x128xf32>
    %119 = arith.subf %117, %118 : vector<1x128xf32>
    %120 = vector.broadcast %112 : vector<1x128xf32> to vector<648x128xf32>
    %121 = arith.subf %107, %120 : vector<648x128xf32>
    %cst_60 = arith.constant 9.99999974E-6 : f32
    %122 = vector.broadcast %cst_60 : f32 to vector<1x128xf32>
    %123 = arith.addf %119, %122 : vector<1x128xf32>
    %124 = math.rsqrt %123 : vector<1x128xf32>
    %125 = vector.broadcast %124 : vector<1x128xf32> to vector<648x128xf32>
    %126 = arith.mulf %121, %125 : vector<648x128xf32>
    %127 = vector.broadcast %3 : vector<1x128xf32> to vector<648x128xf32>
    %128 = arith.mulf %126, %127 : vector<648x128xf32>
    %129 = vector.broadcast %4 : vector<1x128xf32> to vector<648x128xf32>
    %130 = arith.addf %128, %129 : vector<648x128xf32>
    %c0_61 = arith.constant 0 : index
    %c0_62 = arith.constant 0 : index
    %131 = vector.load %arg1[%c0_61, %c0_62] : memref<648x128xbf16, #tpu.memory_space<vmem>>, vector<648x128xbf16>
    %132 = arith.extf %131 : vector<648x128xbf16> to vector<648x128xf32>
    %133 = arith.addf %130, %132 : vector<648x128xf32>
    %cst_63 = arith.constant 0.000000e+00 : f32
    %134 = vector.broadcast %cst_63 : f32 to vector<648x128xf32>
    %135 = arith.maximumf %133, %134 : vector<648x128xf32>
    %c0_64 = arith.constant 0 : index
    %c0_65 = arith.constant 0 : index
    %136 = vector.load %arg5[%c0_64, %c0_65] : memref<648x128xf32, #tpu.memory_space<vmem>>, vector<648x128xf32>
    tpu.vector_store %arg5[%c0_64, %c0_65], %135 {strides = array<i32>} : memref<648x128xf32, #tpu.memory_space<vmem>>, vector<648x128xf32>,
    return
  }
  func.func @transform_0(%arg0: i32) -> (i32, i32) {
    %c0_i32 = arith.constant 0 : i32
    %c0_i32_0 = arith.constant 0 : i32
    %c0_i32_1 = arith.constant 0 : i32
    return %c0_i32, %c0_i32_0 : i32, i32
  }
  func.func @transform_1(%arg0: i32) -> (i32, i32) {
    %c0_i32 = arith.constant 0 : i32
    %c0_i32_0 = arith.constant 0 : i32
    %c0_i32_1 = arith.constant 0 : i32
    return %c0_i32, %c0_i32_0 : i32, i32
  }
  func.func @transform_2(%arg0: i32) -> (i32, i32) {
    %c0_i32 = arith.constant 0 : i32
    %c0_i32_0 = arith.constant 0 : i32
    %c0_i32_1 = arith.constant 0 : i32
    return %c0_i32, %c0_i32_0 : i32, i32
  }
  func.func @transform_3(%arg0: i32) -> (i32, i32) {
    %c0_i32 = arith.constant 0 : i32
    %c0_i32_0 = arith.constant 0 : i32
    %c0_i32_1 = arith.constant 0 : i32
    return %c0_i32, %c0_i32_0 : i32, i32
  }
  func.func @transform_4(%arg0: i32) -> (i32, i32) {
    %c0_i32 = arith.constant 0 : i32
    %c0_i32_0 = arith.constant 0 : i32
    %c0_i32_1 = arith.constant 0 : i32
    return %c0_i32, %c0_i32_0 : i32, i32
  }
}

</mosaic_0001>

<bundles_post_ra>
// kernel: basic_block_forward.1
= control target key start
LH: loop header
LB: loop body
LE: loop exit
PB: predicated region body
PF: predicated region fallthrough
CT: control target
= control target key end

     0   :  { %v13442_v0 = vmov 0.0   ;;  %vm23352_vm0 = vmmov 0   ;;  %v19_v28 = vlaneseq  ;;  %s23138_s1 = inlined_call_operand.vmem [shape: bf16[128,128], index: 1, kind: input, shape index: {}]   ;;  %s23139_s0 = inlined_call_operand.vmem [shape: bf16[648,128], index: 0, kind: input, shape index: {}]   ;;  %s23140_s2 = inlined_call_operand.vmem [shape: bf16[1152,128], index: 2, kind: input, shape index: {}]   ;;  %s23141_s3 = inlined_call_operand.vmem [shape: f32[8,128], index: 3, kind: input, shape index: {}]   ;;  %s23142_s4 = inlined_call_operand.vmem [shape: f32[648,128], index: 4, kind: output, shape index: {}]  }
   0x1   :  { %10277 = vmatprep.subr.bf16.mxu0 %v13442_v0  ;;  %2818 = vst [vmem:[#allocation2] sm:$0xff] %v13442_v0  ;;  %2819 = vst [vmem:[#allocation2 + $0x8] sm:$0xff] %v13442_v0  ;;  %v13308_v1 = vld [vmem:[%s23138_s1] sm:$0xff]   ;;  %10293 = vmatprep.mubr.msk.bf16.mxu0 %vm23352_vm0, %v13442_v0  ;;  %v13309_v2 = vld [vmem:[%s23138_s1 + $0x8] sm:$0xff]  }
   0x2   :  { %2820 = vst [vmem:[#allocation2 + $0x10] sm:$0xff] %v13442_v0  ;;  %2821 = vst [vmem:[#allocation2 + $0x2a0] sm:$0xff] %v13442_v0  ;;  %11177 = vmatprep.subr.bf16.mxu1 %v13442_v0  ;;  %11193 = vmatprep.mubr.msk.bf16.mxu1 %vm23352_vm0, %v13442_v0  ;;  %v13310_v3 = vld [vmem:[%s23138_s1 + $0x10] sm:$0xff]   ;;  %v13311_v4 = vld [vmem:[%s23138_s1 + $0x18] sm:$0xff]   ;;  %v13606_v29 = vshrl.u32 %v19_v28, 7 }
   0x3   :  { %2822 = vst [vmem:[#allocation2 + $0x2a8] sm:$0xff] %v13442_v0  ;;  %2823 = vst [vmem:[#allocation2 + $0x2b0] sm:$0xff] %v13442_v0  ;;  %10278 = vmatpush3.bf16.msra.mxu0 %v13308_v1  ;;  %v13312_v5 = vld [vmem:[%s23138_s1 + $0x20] sm:$0xff]   ;;  %v13313_v6 = vld [vmem:[%s23138_s1 + $0x28] sm:$0xff]  }
   0x4   :  { %10279 = vmatprep.subr.bf16.mxu0 %v13442_v0  ;;  %v13314_v7 = vld [vmem:[%s23138_s1 + $0x30] sm:$0xff]   ;;  %v13315_v8 = vld [vmem:[%s23138_s1 + $0x38] sm:$0xff]   ;;  %v13316_v9 = vld [vmem:[%s23139_s0] sm:$0xff]   ;;  %23655 = vst [vmem:[#allocation3_spill] sm:$0xff] %v13606_v29  ;;  %v21_v31 = vadd.s32 8, %v13606_v29  ;;  %v22_v32 = vadd.s32 16, %v13606_v29  ;;  %v101_v33 = vcvt.s32.f32 %v13606_v29 }
   0x5   :  { %v13317_v10 = vld [vmem:[%s23139_s0 + $0x8] sm:$0xff]   ;;  %v13318_v11 = vld [vmem:[%s23139_s0 + $0x10] sm:$0xff]   ;;  %v13319_v12 = vld [vmem:[%s23139_s0 + $0x18] sm:$0xff]   ;;  %v23_v34 = vadd.s32 24, %v13606_v29  ;;  %v24_v39 = vadd.s32 32, %v13606_v29  ;;  %v13624_v46 = vadd.s32 40, %v13606_v29 }
   0x6   :  { %v13320_v13 = vld [vmem:[%s23139_s0 + $0x20] sm:$0xff]   ;;  %v13321_v14 = vld [vmem:[%s23139_s0 + $0x28] sm:$0xff]   ;;  %v13322_v15 = vld [vmem:[%s23139_s0 + $0x30] sm:$0xff]   ;;  %v102_v35 = vcvt.s32.f32 %v21_v31  ;;  %v103_v36 = vcvt.s32.f32 %v22_v32  ;;  %v182_v37 = vadd.f32 0.5, %v101_v33  ;;  %v13629_v51 = vadd.s32 48, %v13606_v29 }
   0x7   :  { %10280 = vmatpush3.bf16.msra.mxu0 %v13309_v2  ;;  %v13323_v16 = vld [vmem:[%s23139_s0 + $0x38] sm:$0xff]   ;;  %v13324_v17 = vld [vmem:[%s23139_s0 + $0x40] sm:$0xff]   ;;  %v13325_v18 = vld [vmem:[%s23139_s0 + $0x48] sm:$0xff]   ;;  %v104_v38 = vcvt.s32.f32 %v23_v34  ;;  %v105_v45 = vcvt.s32.f32 %v24_v39  ;;  %v106_v53 = vcvt.s32.f32 %v13624_v46  ;;  %v13636_v56 = vadd.s32 56, %v13606_v29 }
   0x8   :  { %10281 = vmatprep.subr.bf16.mxu0 %v13442_v0  ;;  %v13326_v19 = vld [vmem:[%s23139_s0 + $0x50] sm:$0xff]   ;;  %v13327_v20 = vld [vmem:[%s23139_s0 + $0x58] sm:$0xff]   ;;  %v13328_v21 = vld [vmem:[%s23139_s0 + $0x60] sm:$0xff]   ;;  %v183_v41 = vadd.f32 0.5, %v102_v35  ;;  %v184_v42 = vadd.f32 0.5, %v103_v36  ;;  %v107_v60 = vcvt.s32.f32 %v13629_v51  ;;  %v13641_v2 = vadd.s32 64, %v13606_v29 }
   0x9   :  { %v13329_v22 = vld [vmem:[%s23139_s0 + $0x68] sm:$0xff]   ;;  %v13330_v23 = vld [vmem:[%s23139_s0 + $0x70] sm:$0xff]   ;;  %v13331_v24 = vld [vmem:[%s23139_s0 + $0x78] sm:$0xff]   ;;  %v263_v43 = vmul.f32 0.0030864198, %v182_v37  ;;  %v185_v44 = vadd.f32 0.5, %v104_v38  ;;  %v108_v1 = vcvt.s32.f32 %v13636_v56 }
   0xa   :  { %v13332_v25 = vld [vmem:[%s23139_s0 + $0x80] sm:$0xff]   ;;  %v13333_v26 = vld [vmem:[%s23139_s0 + $0x88] sm:$0xff]   ;;  %v13334_v27 = vld [vmem:[%s23139_s0 + $0x90] sm:$0xff]   ;;  %v264_v47 = vmul.f32 0.0030864198, %v183_v41  ;;  %v186_v52 = vadd.f32 0.5, %v105_v45 }
   0xb   :  { %10282 = vmatpush3.bf16.msra.mxu0 %v13310_v3  ;;  %v13335_v30 = vld [vmem:[%s23139_s0 + $0x98] sm:$0xff]   ;;  %v13336_v40 = vld [vmem:[%s23139_s0 + $0xa0] sm:$0xff]   ;;  %v265_v48 = vmul.f32 0.0030864198, %v184_v42  ;;  %v344_v49 = vfloor.f32 %v263_v43  ;;  %v266_v50 = vmul.f32 0.0030864198, %v185_v44 }
   0xc   :  { %10283 = vmatprep.subr.bf16.mxu0 %v13442_v0  ;;  %v13337_v54 = vld [vmem:[%s23139_s0 + $0xa8] sm:$0xff]   ;;  %v345_v55 = vfloor.f32 %v264_v47  ;;  %v267_v61 = vmul.f32 0.0030864198, %v186_v52  ;;  %v187_v62 = vadd.f32 0.5, %v106_v53  ;;  %v13676_v31 = vadd.s32 88, %v13606_v29  ;;  %v13339_v32 = vld [vmem:[%s23139_s0 + $0xb8] sm:$0xff]  }
   0xd   :  { %v346_v57 = vfloor.f32 %v265_v48  ;;  %v425_v58 = vmul.f32 324.0, %v344_v49  ;;  %v347_v59 = vfloor.f32 %v266_v50 }
   0xe   :  { %v426_v63 = vmul.f32 324.0, %v345_v55  ;;  %v112_v44 = vcvt.s32.f32 %v13676_v31 }
   0xf   :  { %10284 = vmatpush3.bf16.msra.mxu0 %v13311_v4  ;;  %v427_v3 = vmul.f32 324.0, %v346_v57  ;;  %v13645_v4 = vsub.f32 %v101_v33, %v425_v58 }
  0x10   :  { %10285 = vmatprep.subr.bf16.mxu0 %v13442_v0  ;;  %v193_v58 = vadd.f32 0.5, %v112_v44 }
  0x13   :  { %10286 = vmatpush3.bf16.msra.mxu0 %v13312_v5  ;;  %v428_v5 = vmul.f32 324.0, %v347_v59  ;;  %v13340_v59 = vld [vmem:[%s23139_s0 + $0xc0] sm:$0xff]  }
  0x14   :  { %10287 = vmatprep.subr.bf16.mxu0 %v13442_v0 }
  0x17   :  { %10288 = vmatpush3.bf16.msra.mxu0 %v13313_v6  ;;  %v188_v6 = vadd.f32 0.5, %v107_v60 }
  0x18   :  { %10289 = vmatprep.subr.bf16.mxu0 %v13442_v0 }
  0x1b   :  { %10290 = vmatpush3.bf16.msra.mxu0 %v13314_v7  ;;  %v348_v7 = vfloor.f32 %v267_v61 }
  0x1c   :  { %10291 = vmatprep.subr.bf16.mxu0 %v13442_v0 }
  0x1f   :  { %10292 = vmatpush3.bf16.msra.mxu0 %v13315_v8  ;;  %v268_v8 = vmul.f32 0.0030864198, %v187_v62 }
  0x20   :  { %10457 = vmatprep.subr.bf16.mxu0 %v13442_v0 }
  0x22   :  { %10294 = vmatmul.mubr.bf16.vlgmr.msra.gmra.mrb[0].mxu0 %v13316_v9  ;;  %v13338_v9 = vld [vmem:[%s23139_s0 + $0xb0] sm:$0xff]  }
  0x23   :  { %10297 = vmatprep.mubr.msk.bf16.mxu0 %vm23352_vm0, %v13442_v0 }
  0x2a   :  { %10298 = vmatmul.mubr.bf16.gmra.mrb[4].mxu0 %v13317_v10  ;;  %v13650_v10 = vsub.f32 %v102_v35, %v426_v63 }
  0x2b   :  { %10301 = vmatprep.mubr.msk.bf16.mxu0 %vm23352_vm0, %v13442_v0 }
  0x32   :  { %10302 = vmatmul.mubr.bf16.gmra.mrb[8].mxu0 %v13318_v11  ;;  %v189_v11 = vadd.f32 0.5, %v108_v1 }
  0x33   :  { %10305 = vmatprep.mubr.msk.bf16.mxu0 %vm23352_vm0, %v13442_v0 }
  0x3a   :  { %10306 = vmatmul.mubr.bf16.gmra.mrb[12].mxu0 %v13319_v12  ;;  %v109_v12 = vcvt.s32.f32 %v13641_v2 }
  0x3b   :  { %10309 = vmatprep.mubr.msk.bf16.mxu0 %vm23352_vm0, %v13442_v0 }
  0x42   :  { %10310 = vmatmul.mubr.bf16.gmra.mrb[16].mxu0 %v13320_v13  ;;  %v13655_v13 = vsub.f32 %v103_v36, %v427_v3 }
  0x43   :  { %10313 = vmatprep.mubr.msk.bf16.mxu0 %vm23352_vm0, %v13442_v0 }
  0x4a   :  { %10314 = vmatmul.mubr.bf16.gmra.mrb[20].mxu0 %v13321_v14  ;;  %v587_v14 = vadd.f32 0.5, %v13645_v4 }
  0x4b   :  { %10317 = vmatprep.mubr.msk.bf16.mxu0 %vm23352_vm0, %v13442_v0 }
  0x52   :  { %10318 = vmatmul.mubr.bf16.gmra.mrb[24].mxu0 %v13322_v15  ;;  %v13658_v15 = vsub.f32 %v104_v38, %v428_v5 }
  0x53   :  { %10321 = vmatprep.mubr.msk.bf16.mxu0 %vm23352_vm0, %v13442_v0 }
  0x5a   :  { %10322 = vmatmul.mubr.bf16.gmra.mrb[28].mxu0 %v13323_v16  ;;  %v269_v16 = vmul.f32 0.0030864198, %v188_v6 }
  0x5b   :  { %10325 = vmatprep.mubr.msk.bf16.mxu0 %vm23352_vm0, %v13442_v0 }
  0x62   :  { %10326 = vmatmul.mubr.bf16.gmra.mrb[32].mxu0 %v13324_v17  ;;  %v429_v17 = vmul.f32 324.0, %v348_v7 }
  0x63   :  { %10329 = vmatprep.mubr.msk.bf16.mxu0 %vm23352_vm0, %v13442_v0 }
  0x64   :  { %v13673_v28 = vsub.f32 %v105_v45, %v429_v17 }
  0x66   :  { %v591_v42 = vadd.f32 0.5, %v13673_v28 }
  0x68   :  { %v13701_v55 = vmul.f32 0.055555556, %v591_v42 }
  0x6a   :  { %10330 = vmatmul.mubr.bf16.gmra.mrb[36].mxu0 %v13325_v18  ;;  %v349_v18 = vfloor.f32 %v268_v8 }
  0x6b   :  { %10333 = vmatprep.mubr.msk.bf16.mxu0 %vm23352_vm0, %v13442_v0 }
  0x72   :  { %10334 = vmatmul.mubr.bf16.gmra.mrb[40].mxu0 %v13326_v19  ;;  %v588_v19 = vadd.f32 0.5, %v13650_v10 }
  0x73   :  { %10337 = vmatprep.mubr.msk.bf16.mxu0 %vm23352_vm0, %v13442_v0 }
  0x74   :  { %v669_v33 = vmul.f32 0.055555556, %v588_v19 }
  0x76   :  { %v750_v45 = vfloor.f32 %v669_v33  ;;  %v13341_v33 = vld [vmem:[%s23139_s0 + $0xc8] sm:$0xff]  }
  0x78   :  { %v831_v61 = vmul.f32 18.0, %v750_v45  ;;  %vm13734_vm2 = vcmp.lt.f32.partialorder %v750_v45, 16.0 }
  0x7a   :  { %10338 = vmatmul.mubr.bf16.gmra.mrb[44].mxu0 %v13327_v20  ;;  %v270_v20 = vmul.f32 0.0030864198, %v189_v11  ;;  %v912_v17 = vsub.f32 %v13650_v10, %v831_v61 }
  0x7b   :  { %10341 = vmatprep.mubr.msk.bf16.mxu0 %vm23352_vm0, %v13442_v0 }
  0x7c   :  { %v351_v34 = vfloor.f32 %v270_v20  ;;  %vm13756_vm4 = vcmp.lt.f32.partialorder %v912_v17, 16.0 }
  0x7d   :  { %vm1155_vm10 = vmand %vm13734_vm2, %vm13756_vm4 }
  0x7e   :  { %v432_v46 = vmul.f32 324.0, %v351_v34  ;;  %v13853_v31 = vsel %vm1155_vm10, 1.0, %v13442_v0  ;;  %v13891_v34 = vadd.s32 136, %v13606_v29 }
  0x7f   :  { %23677 = vst [vmem:[#allocation5_spill] sm:$0xff] %v13853_v31 }
  0x80   :  { %v13711_v62 = vsub.f32 %v108_v1, %v432_v46  ;;  %v274_v1 = vmul.f32 0.0030864198, %v193_v58 }
  0x82   :  { %10342 = vmatmul.mubr.bf16.gmra.mrb[48].mxu0 %v13328_v21  ;;  %v190_v21 = vadd.f32 0.5, %v109_v12 }
  0x83   :  { %10345 = vmatprep.mubr.msk.bf16.mxu0 %vm23352_vm0, %v13442_v0 }
  0x84   :  { %v271_v35 = vmul.f32 0.0030864198, %v190_v21 }
  0x86   :  { %v352_v47 = vfloor.f32 %v271_v35 }
  0x8a   :  { %10346 = vmatmul.mubr.bf16.gmra.mrb[52].mxu0 %v13329_v22  ;;  %v13664_v22 = vadd.s32 72, %v13606_v29 }
  0x8b   :  { %10349 = vmatprep.mubr.msk.bf16.mxu0 %vm23352_vm0, %v13442_v0 }
  0x8c   :  { %v110_v36 = vcvt.s32.f32 %v13664_v22 }
  0x8e   :  { %v191_v48 = vadd.f32 0.5, %v110_v36 }
  0x90   :  { %v272_v63 = vmul.f32 0.0030864198, %v191_v48 }
  0x92   :  { %10350 = vmatmul.mubr.bf16.gmra.mrb[56].mxu0 %v13330_v23  ;;  %v589_v23 = vadd.f32 0.5, %v13655_v13  ;;  %v353_v19 = vfloor.f32 %v272_v63 }
  0x93   :  { %10353 = vmatprep.mubr.msk.bf16.mxu0 %vm23352_vm0, %v13442_v0 }
  0x94   :  { %v670_v37 = vmul.f32 0.055555556, %v589_v23 }
  0x96   :  { %v751_v49 = vfloor.f32 %v670_v37  ;;  %v434_v37 = vmul.f32 324.0, %v353_v19 }
  0x98   :  { %v832_v5 = vmul.f32 18.0, %v751_v49  ;;  %vm13763_vm5 = vcmp.lt.f32.partialorder %v751_v49, 16.0  ;;  %v13793_v58 = vsub.f32 %v110_v36, %v434_v37  ;;  %v13344_v37 = vld [vmem:[%s23139_s0 + $0xe0] sm:$0xff]  }
  0x9a   :  { %10354 = vmatmul.mubr.bf16.gmra.mrb[60].mxu0 %v13331_v24  ;;  %v13670_v24 = vadd.s32 80, %v13606_v29  ;;  %v913_v21 = vsub.f32 %v13655_v13, %v832_v5 }
  0x9b   :  { %10357 = vmatprep.mubr.msk.bf16.mxu0 %vm23352_vm0, %v13442_v0 }
  0x9c   :  { %v111_v38 = vcvt.s32.f32 %v13670_v24  ;;  %vm13767_vm6 = vcmp.lt.f32.partialorder %v913_v21, 16.0  ;;  %v118_v24 = vcvt.s32.f32 %v13891_v34 }
  0x9d   :  { %vm1156_vm11 = vmand %vm13763_vm5, %vm13767_vm6 }
  0x9e   :  { %v192_v50 = vadd.f32 0.5, %v111_v38 }
  0xa0   :  { %v273_v6 = vmul.f32 0.0030864198, %v192_v50 }
  0xa2   :  { %10358 = vmatmul.mubr.bf16.gmra.mrb[64].mxu0 %v13332_v25  ;;  %v668_v25 = vmul.f32 0.055555556, %v587_v14  ;;  %v753_v14 = vfloor.f32 %v13701_v55  ;;  %v354_v23 = vfloor.f32 %v273_v6 }
  0xa3   :  { %10361 = vmatprep.mubr.msk.bf16.mxu0 %vm23352_vm0, %v13442_v0 }
  0xa4   :  { %v749_v39 = vfloor.f32 %v668_v25  ;;  %v13740_v25 = vadd.s32 112, %v13606_v29  ;;  %vm13824_vm12 = vcmp.lt.f32.partialorder %v753_v14, 16.0 }
  0xa6   :  { %v830_v51 = vmul.f32 18.0, %v749_v39  ;;  %vm13713_vm1 = vcmp.lt.f32.partialorder %v749_v39, 16.0  ;;  %v115_v42 = vcvt.s32.f32 %v13740_v25 }
  0xa8   :  { %v911_v7 = vsub.f32 %v13645_v4, %v830_v51  ;;  %v196_v36 = vadd.f32 0.5, %v115_v42 }
  0xaa   :  { %10362 = vmatmul.mubr.bf16.gmra.mrb[68].mxu0 %v13333_v26  ;;  %v590_v26 = vadd.f32 0.5, %v13658_v15  ;;  %vm13742_vm3 = vcmp.lt.f32.partialorder %v911_v7, 16.0  ;;  %v277_v17 = vmul.f32 0.0030864198, %v196_v36 }
  0xab   :  { %10365 = vmatprep.mubr.msk.bf16.mxu0 %vm23352_vm0, %v13442_v0  ;;  %vm1154_vm9 = vmand %vm13713_vm1, %vm13742_vm3 }
  0xb2   :  { %10366 = vmatmul.mubr.bf16.gmra.mrb[72].mxu0 %v13334_v27  ;;  %v350_v27 = vfloor.f32 %v269_v16  ;;  %v13724_v16 = vadd.s32 104, %v13606_v29 }
  0xb3   :  { %10369 = vmatprep.mubr.msk.bf16.mxu0 %vm23352_vm0, %v13442_v0 }
  0xb4   :  { %v431_v41 = vmul.f32 324.0, %v350_v27  ;;  %v834_v27 = vmul.f32 18.0, %v753_v14  ;;  %v114_v13 = vcvt.s32.f32 %v13724_v16 }
  0xb6   :  { %v915_v49 = vsub.f32 %v13673_v28, %v834_v27 }
  0xb8   :  { %vm13832_vm14 = vcmp.lt.f32.partialorder %v915_v49, 16.0  ;;  %v13343_v49 = vld [vmem:[%s23139_s0 + $0xd8] sm:$0xff]  }
  0xb9   :  { %vm1158_vm1 = vmand %vm13824_vm12, %vm13832_vm14 }
  0xba   :  { %10370 = vmatmul.mubr.bf16.gmra.mrb[76].mxu0 %v13335_v30  ;;  %v430_v30 = vmul.f32 324.0, %v349_v18  ;;  %v594_v18 = vadd.f32 0.5, %v13711_v62 }
  0xbb   :  { %10373 = vmatprep.mubr.msk.bf16.mxu0 %vm23352_vm0, %v13442_v0 }
  0xbc   :  { %v13686_v43 = vsub.f32 %v106_v53, %v430_v30  ;;  %v13696_v53 = vsub.f32 %v107_v60, %v431_v41  ;;  %v433_v60 = vmul.f32 324.0, %v352_v47  ;;  %v435_v41 = vmul.f32 324.0, %v354_v23 }
  0xbd   :  { %v199_v23 = vadd.f32 0.5, %v118_v24 }
  0xbe   :  { %v592_v57 = vadd.f32 0.5, %v13686_v43  ;;  %v13730_v4 = vsub.f32 %v109_v12, %v433_v60  ;;  %v13808_v22 = vsub.f32 %v111_v38, %v435_v41  ;;  %v13818_v60 = vsel %vm1154_vm9, 1.0, %v13442_v0 }
  0xbf   :  { %23672 = vst [vmem:[#allocation4_spill] sm:$0xff] %v13818_v60 }
  0xc0   :  { %v13721_v56 = vmul.f32 0.055555556, %v592_v57  ;;  %v595_v35 = vadd.f32 0.5, %v13730_v4 }
  0xc2   :  { %10374 = vmatmul.mubr.bf16.gmra.mrb[80].mxu0 %v13336_v40  ;;  %v13683_v40 = vmul.f32 0.055555556, %v590_v26  ;;  %v754_v30 = vfloor.f32 %v13721_v56  ;;  %v13789_v57 = vmul.f32 0.055555556, %v595_v35  ;;  %v596_v56 = vadd.f32 0.5, %v13793_v58 }
  0xc3   :  { %10377 = vmatprep.mubr.msk.bf16.mxu0 %vm23352_vm0, %v13442_v0 }
  0xc4   :  { %v752_v52 = vfloor.f32 %v13683_v40  ;;  %v835_v50 = vmul.f32 18.0, %v754_v30  ;;  %v757_v14 = vfloor.f32 %v13789_v57  ;;  %vm13862_vm15 = vcmp.lt.f32.partialorder %v754_v30, 16.0 }
  0xc5   :  { %v13882_v27 = vmul.f32 0.055555556, %v596_v56 }
  0xc6   :  { %v833_v8 = vmul.f32 18.0, %v752_v52  ;;  %vm13772_vm7 = vcmp.lt.f32.partialorder %v752_v52, 16.0  ;;  %v195_v52 = vadd.f32 0.5, %v114_v13  ;;  %v916_v5 = vsub.f32 %v13686_v43, %v835_v50 }
  0xc7   :  { %v13856_v43 = vsel %vm1156_vm11, 1.0, %v13442_v0  ;;  %v758_v50 = vfloor.f32 %v13882_v27  ;;  %vm13991_vm10 = vcmp.lt.f32.partialorder %v757_v14, 16.0 }
  0xc8   :  { %v914_v2 = vsub.f32 %v13658_v15, %v833_v8  ;;  %v13760_v15 = vmul.f32 0.055555556, %v594_v18  ;;  %v276_v7 = vmul.f32 0.0030864198, %v195_v52  ;;  %v13342_v8 = vld [vmem:[%s23139_s0 + $0xd0] sm:$0xff]   ;;  %23678 = vst [vmem:[#allocation6_spill] sm:$0xff] %v13856_v43 }
  0xc9   :  { %vm13871_vm2 = vcmp.lt.f32.partialorder %v916_v5, 16.0  ;;  %vm14026_vm12 = vcmp.lt.f32.partialorder %v758_v50, 16.0 }
  0xca   :  { %10378 = vmatmul.mubr.bf16.gmra.mrb[84].mxu0 %v13337_v54  ;;  %v13699_v54 = vadd.s32 96, %v13606_v29  ;;  %vm13776_vm8 = vcmp.lt.f32.partialorder %v914_v2, 16.0  ;;  %v756_v55 = vfloor.f32 %v13760_v15  ;;  %v357_v2 = vfloor.f32 %v276_v7  ;;  %vm1159_vm6 = vmand %vm13862_vm15, %vm13871_vm2 }
  0xcb   :  { %10381 = vmatprep.mubr.msk.bf16.mxu0 %vm23352_vm0, %v13442_v0  ;;  %vm1157_vm13 = vmand %vm13772_vm7, %vm13776_vm8  ;;  %v13894_v15 = vadd.s32 144, %v13606_v29 }
  0xcc   :  { %v113_v11 = vcvt.s32.f32 %v13699_v54  ;;  %v13860_v18 = vsel %vm1157_vm13, 1.0, %v13442_v0  ;;  %vm13913_vm5 = vcmp.lt.f32.partialorder %v756_v55, 16.0  ;;  %v438_v46 = vmul.f32 324.0, %v357_v2 }
  0xcd   :  { %23679 = vst [vmem:[#allocation7_spill] sm:$0xff] %v13860_v18  ;;  %v280_v54 = vmul.f32 0.0030864198, %v199_v23 }
  0xce   :  { %v194_v26 = vadd.f32 0.5, %v113_v11  ;;  %v13964_v56 = vsub.f32 %v114_v13, %v438_v46 }
  0xd0   :  { %v275_v48 = vmul.f32 0.0030864198, %v194_v26 }
  0xd2   :  { %10382 = vmatmul.mubr.bf16.gmra.mrb[88].mxu0 %v13338_v9  ;;  %v593_v9 = vadd.f32 0.5, %v13696_v53  ;;  %v356_v63 = vfloor.f32 %v275_v48 }
  0xd3   :  { %10385 = vmatprep.mubr.msk.bf16.mxu0 %vm23352_vm0, %v13442_v0 }
  0xd4   :  { %v13747_v12 = vmul.f32 0.055555556, %v593_v9  ;;  %v837_v9 = vmul.f32 18.0, %v756_v55  ;;  %v437_v21 = vmul.f32 324.0, %v356_v63 }
  0xd6   :  { %v755_v47 = vfloor.f32 %v13747_v12  ;;  %v13877_v12 = vadd.s32 128, %v13606_v29  ;;  %v918_v26 = vsub.f32 %v13711_v62, %v837_v9  ;;  %v13897_v62 = vsel %vm1158_vm1, 1.0, %v13442_v0 }
  0xd7   :  { %23684 = vst [vmem:[#allocation8_spill] sm:$0xff] %v13897_v62  ;;  %v13909_v39 = vsub.f32 %v113_v11, %v437_v21 }
  0xd8   :  { %v836_v38 = vmul.f32 18.0, %v755_v47  ;;  %vm13899_vm3 = vcmp.lt.f32.partialorder %v755_v47, 16.0  ;;  %v117_v47 = vcvt.s32.f32 %v13877_v12  ;;  %vm13927_vm7 = vcmp.lt.f32.partialorder %v918_v26, 16.0 }
  0xd9   :  { %v599_v7 = vadd.f32 0.5, %v13909_v39  ;;  %vm1161_vm9 = vmand %vm13913_vm5, %vm13927_vm7 }
  0xda   :  { %10386 = vmatmul.mubr.bf16.gmra.mrb[92].mxu0 %v13339_v32  ;;  %v355_v32 = vfloor.f32 %v274_v1  ;;  %v917_v20 = vsub.f32 %v13696_v53, %v836_v38  ;;  %v838_v53 = vmul.f32 18.0, %v757_v14  ;;  %v119_v38 = vcvt.s32.f32 %v13894_v15 }
  0xdb   :  { %10389 = vmatprep.mubr.msk.bf16.mxu0 %vm23352_vm0, %v13442_v0  ;;  %v13987_v2 = vsel %vm1161_vm9, 1.0, %v13442_v0  ;;  %v13999_v25 = vmul.f32 0.055555556, %v599_v7 }
  0xdc   :  { %v436_v51 = vmul.f32 324.0, %v355_v32  ;;  %vm13903_vm4 = vcmp.lt.f32.partialorder %v917_v20, 16.0  ;;  %v919_v11 = vsub.f32 %v13730_v4, %v838_v53  ;;  %v839_v20 = vmul.f32 18.0, %v758_v50  ;;  %23695 = vst [vmem:[#allocation11_spill] sm:$0xff] %v13987_v2 }
  0xdd   :  { %vm1160_vm8 = vmand %vm13899_vm3, %vm13903_vm4  ;;  %v14043_v50 = vadd.s32 160, %v13606_v29 }
  0xde   :  { %v13839_v6 = vsub.f32 %v112_v44, %v436_v51  ;;  %v597_v44 = vadd.f32 0.5, %v13808_v22  ;;  %v13974_v19 = vsel %vm1160_vm8, 1.0, %v13442_v0  ;;  %vm13995_vm11 = vcmp.lt.f32.partialorder %v919_v11, 16.0 }
  0xdf   :  { %23694 = vst [vmem:[#allocation10_spill] sm:$0xff] %v13974_v19  ;;  %v920_v41 = vsub.f32 %v13793_v58, %v839_v20  ;;  %vm1162_vm3 = vmand %vm13991_vm10, %vm13995_vm11  ;;  %v121_v53 = vcvt.s32.f32 %v14043_v50 }
  0xe0   :  { %v598_v10 = vadd.f32 0.5, %v13839_v6  ;;  %v13888_v32 = vmul.f32 0.055555556, %v597_v44  ;;  %v198_v44 = vadd.f32 0.5, %v117_v47 }
  0xe1   :  { %vm14045_vm14 = vcmp.lt.f32.partialorder %v920_v41, 16.0 }
  0xe2   :  { %10390 = vmatmul.mubr.bf16.gmra.mrb[96].mxu0 %v13340_v59  ;;  %v13796_v59 = vadd.s32 120, %v13606_v29  ;;  %v13917_v45 = vmul.f32 0.055555556, %v598_v10  ;;  %v759_v55 = vfloor.f32 %v13888_v32  ;;  %v200_v10 = vadd.f32 0.5, %v119_v38  ;;  %vm1163_vm4 = vmand %vm14026_vm12, %vm14045_vm14 }
  0xe3   :  { %10393 = vmatprep.mubr.msk.bf16.mxu0 %vm23352_vm0, %v13442_v0  ;;  %v279_v32 = vmul.f32 0.0030864198, %v198_v44 }
  0xe4   :  { %v116_v1 = vcvt.s32.f32 %v13796_v59  ;;  %v760_v9 = vfloor.f32 %v13917_v45  ;;  %v840_v16 = vmul.f32 18.0, %v759_v55  ;;  %v281_v11 = vmul.f32 0.0030864198, %v200_v10 }
  0xe5   :  { %v360_v7 = vfloor.f32 %v279_v32  ;;  %vm14030_vm13 = vcmp.lt.f32.partialorder %v759_v55, 16.0  ;;  %v202_v59 = vadd.f32 0.5, %v121_v53 }
  0xe6   :  { %v197_v30 = vadd.f32 0.5, %v116_v1  ;;  %v841_v27 = vmul.f32 18.0, %v760_v9  ;;  %v362_v23 = vfloor.f32 %v281_v11  ;;  %vm14053_vm1 = vcmp.lt.f32.partialorder %v760_v9, 16.0 }
  0xe7   :  { %v441_v32 = vmul.f32 324.0, %v360_v7 }
  0xe8   :  { %v278_v51 = vmul.f32 0.0030864198, %v197_v30  ;;  %v600_v30 = vadd.f32 0.5, %v13964_v56  ;;  %v922_v58 = vsub.f32 %v13839_v6, %v841_v27  ;;  %v443_v11 = vmul.f32 324.0, %v362_v23  ;;  %v14134_v27 = vld [vmem:[#allocation2] sm:$0xff] }
  0xea   :  { %10394 = vmatmul.mubr.bf16.gmra.mrb[100].mxu0 %v13341_v33  ;;  %v358_v33 = vfloor.f32 %v277_v17  ;;  %v359_v21 = vfloor.f32 %v278_v51  ;;  %vm14059_vm2 = vcmp.lt.f32.partialorder %v922_v58, 16.0  ;;  %v14093_v58 = vsel %vm1162_vm3, 1.0, %v13442_v0 }
  0xeb   :  { %10397 = vmatprep.mubr.msk.bf16.mxu0 %vm23352_vm0, %v13442_v0  ;;  %23712 = vst [vmem:[#allocation12_spill] sm:$0xff] %v14093_v58  ;;  %v14130_v10 = vsub.f32 %v119_v38, %v443_v11 }
  0xec   :  { %v439_v36 = vmul.f32 324.0, %v358_v33  ;;  %v14005_v33 = vadd.s32 152, %v13606_v29  ;;  %v440_v45 = vmul.f32 324.0, %v359_v21 }
  0xee   :  { %v13980_v13 = vsub.f32 %v115_v42, %v439_v36  ;;  %v14036_v21 = vsub.f32 %v116_v1, %v440_v45  ;;  %v14078_v45 = vadd.s32 168, %v13606_v29 }
  0xf0   :  { %v602_v41 = vadd.f32 0.5, %v14036_v21  ;;  %v23144_v12 = vcvt.s32.f32 %v14078_v45 }
  0xf2   :  { %10398 = vmatmul.mubr.bf16.gmra.mrb[104].mxu0 %v13342_v8  ;;  %v13955_v8 = vsel %vm1159_vm6, 1.0, %v13442_v0  ;;  %vm1165_vm6 = vmand %vm14053_vm1, %vm14059_vm2 }
  0xf3   :  { %10401 = vmatprep.mubr.msk.bf16.mxu0 %vm23352_vm0, %v13442_v0  ;;  %23693 = vst [vmem:[#allocation9_spill] sm:$0xff] %v13955_v8 }
  0xf5   :  { %v13911_v40 = vpop.f32.mrb[0].mxu0 }
  0xf6   :  { %v10295_v48 = vpop.f32.mrb[1].mxu0  ;;  %v2152_v4 = vmul.f32 %v13911_v40, %v13911_v40 }
  0xf7   :  { %v13933_v52 = vpop.f32.mrb[2].mxu0  ;;  %v921_v48 = vsub.f32 %v13808_v22, %v840_v16  ;;  %v120_v22 = vcvt.s32.f32 %v14005_v33  ;;  %v361_v16 = vfloor.f32 %v280_v54 }
  0xf8   :  { %v2065_v63 = vadd.f32 %v13933_v52, %v13911_v40  ;;  %v2153_v3 = vmul.f32 %v13933_v52, %v13933_v52  ;;  %v10296_v5 = vpop.f32.mrb[3].mxu0 }
  0xf9   :  { %v14023_v5 = vmul.f32 0.055555556, %v600_v30  ;;  %vm14049_vm15 = vcmp.lt.f32.partialorder %v921_v48, 16.0  ;;  %v442_v54 = vmul.f32 324.0, %v361_v16 }
  0xfa   :  { %v2233_v17 = vadd.f32 %v2153_v3, %v2152_v4  ;;  %10402 = vmatmul.mubr.bf16.gmra.mrb[108].mxu0 %v13343_v49  ;;  %v601_v49 = vadd.f32 0.5, %v13980_v13  ;;  %v761_v3 = vfloor.f32 %v13999_v25  ;;  %vm1164_vm5 = vmand %vm14030_vm13, %vm14049_vm15 }
  0xfb   :  { %10405 = vmatprep.mubr.msk.bf16.mxu0 %vm23352_vm0, %v13442_v0  ;;  %v762_v30 = vfloor.f32 %v14023_v5  ;;  %v14126_v20 = vsub.f32 %v118_v24, %v442_v54  ;;  %v14153_v24 = vadd.s32 176, %v13606_v29 }
  0xfc   :  { %v14040_v6 = vmul.f32 0.055555556, %v601_v49  ;;  %v842_v1 = vmul.f32 18.0, %v761_v3  ;;  %vm14144_vm7 = vcmp.lt.f32.partialorder %v761_v3, 16.0 }
  0xfd   :  { %v14001_v42 = vpop.f32.mrb[4].mxu0  ;;  %v843_v7 = vmul.f32 18.0, %v762_v30  ;;  %v604_v11 = vadd.f32 0.5, %v14126_v20  ;;  %vm14186_vm10 = vcmp.lt.f32.partialorder %v762_v30, 16.0 }
  0xfe   :  { %v2066_v57 = vadd.f32 %v2065_v63, %v14001_v42  ;;  %v2154_v14 = vmul.f32 %v14001_v42, %v14001_v42  ;;  %v10299_v35 = vpop.f32.mrb[5].mxu0  ;;  %v763_v49 = vfloor.f32 %v14040_v6 }
  0xff   :  { %v14014_v46 = vpop.f32.mrb[6].mxu0  ;;  %v924_v55 = vsub.f32 %v13964_v56, %v843_v7 }
 0x100   :  { %v2234_v51 = vadd.f32 %v2233_v17, %v2154_v14  ;;  %v2067_v36 = vadd.f32 %v2066_v57, %v14014_v46  ;;  %v2155_v4 = vmul.f32 %v14014_v46, %v14014_v46  ;;  %v10300_v63 = vpop.f32.mrb[7].mxu0  ;;  %v201_v57 = vadd.f32 0.5, %v120_v22 }
 0x101   :  { %v923_v63 = vsub.f32 %v13909_v39, %v842_v1  ;;  %v14111_v39 = vsel %vm1163_vm4, 1.0, %v13442_v0  ;;  %v14117_v1 = vmul.f32 0.055555556, %v602_v41  ;;  %v14158_v17 = vsel %vm1165_vm6, 1.0, %v14134_v27 }
 0x102   :  { %v2235_v44 = vadd.f32 %v2234_v51, %v2155_v4  ;;  %10406 = vmatmul.mubr.bf16.gmra.mrb[112].mxu0 %v13344_v37  ;;  %v13345_v37 = vld [vmem:[%s23139_s0 + $0xe8] sm:$0xff]   ;;  %v282_v16 = vmul.f32 0.0030864198, %v201_v57  ;;  %23713 = vst [vmem:[#allocation13_spill] sm:$0xff] %v14111_v39  ;;  %23719 = vst [vmem:[#allocation15_spill] sm:$0xff] %v14158_v17  ;;  %v203_v41 = vadd.f32 0.5, %v23144_v12 }
 0x103   :  { %10409 = vmatprep.mubr.msk.bf16.mxu0 %vm23352_vm0, %v13442_v0  ;;  %vm14148_vm8 = vcmp.lt.f32.partialorder %v923_v63, 16.0  ;;  %vm14214_vm11 = vcmp.lt.f32.partialorder %v924_v55, 16.0  ;;  %vm14220_vm12 = vcmp.lt.f32.partialorder %v763_v49, 16.0 }
 0x104   :  { %v363_v3 = vfloor.f32 %v282_v16  ;;  %vm1166_vm9 = vmand %vm14144_vm7, %vm14148_vm8  ;;  %v23143_v16 = vcvt.s32.f32 %v14153_v24  ;;  %v284_v30 = vmul.f32 0.0030864198, %v203_v41 }
 0x105   :  { %v14057_v25 = vpop.f32.mrb[8].mxu0  ;;  %vm1167_vm14 = vmand %vm14186_vm10, %vm14214_vm11 }
 0x106   :  { %v2068_v14 = vadd.f32 %v2067_v36, %v14057_v25  ;;  %v2156_v9 = vmul.f32 %v14057_v25, %v14057_v25  ;;  %v10303_v35 = vpop.f32.mrb[9].mxu0  ;;  %v365_v33 = vfloor.f32 %v284_v30  ;;  %v14276_v15 = vsel %vm1167_vm14, 1.0, %v14134_v27 }
 0x107   :  { %v14080_v48 = vpop.f32.mrb[10].mxu0  ;;  %v13346_v35 = vld [vmem:[%s23139_s0 + $0xf0] sm:$0xff]   ;;  %23729 = vst [vmem:[#allocation17_spill] sm:$0xff] %v14276_v15 }
 0x108   :  { %v2236_v26 = vadd.f32 %v2235_v44, %v2156_v9  ;;  %v2069_v51 = vadd.f32 %v2068_v14, %v14080_v48  ;;  %v2157_v36 = vmul.f32 %v14080_v48, %v14080_v48  ;;  %v10304_v4 = vpop.f32.mrb[11].mxu0  ;;  %v14103_v44 = vsub.f32 %v117_v47, %v441_v32 }
 0x109   :  { %v844_v47 = vmul.f32 18.0, %v763_v49  ;;  %v14239_v49 = vadd.s32 200, %v13606_v29  ;;  %v446_v41 = vmul.f32 324.0, %v365_v33 }
 0x10a   :  { %v2237_v23 = vadd.f32 %v2236_v26, %v2157_v36  ;;  %10410 = vmatmul.mubr.bf16.gmra.mrb[116].mxu0 %v13345_v37  ;;  %v603_v32 = vadd.f32 0.5, %v14103_v44  ;;  %v764_v37 = vfloor.f32 %v14117_v1  ;;  %v605_v26 = vadd.f32 0.5, %v14130_v10 }
 0x10b   :  { %10413 = vmatprep.mubr.msk.bf16.mxu0 %vm23352_vm0, %v13442_v0  ;;  %v14142_v0 = vsel %vm1164_vm5, 1.0, %v14134_v27  ;;  %v925_v56 = vsub.f32 %v13980_v13, %v844_v47  ;;  %v444_v47 = vmul.f32 324.0, %v363_v3 }
 0x10c   :  { %23714 = vst [vmem:[#allocation14_spill] sm:$0xff] %v14142_v0  ;;  %v14190_v13 = vmul.f32 0.055555556, %v603_v32  ;;  %v845_v5 = vmul.f32 18.0, %v764_v37  ;;  %v14207_v32 = vmul.f32 0.055555556, %v604_v11 }
 0x10d   :  { %v14155_v38 = vpop.f32.mrb[12].mxu0  ;;  %v14209_v3 = vmul.f32 0.055555556, %v605_v26  ;;  %vm14224_vm13 = vcmp.lt.f32.partialorder %v925_v56, 16.0  ;;  %v204_v11 = vadd.f32 0.5, %v23143_v16  ;;  %vm14296_vm1 = vcmp.lt.f32.partialorder %v764_v37, 16.0 }
 0x10e   :  { %v2070_v57 = vadd.f32 %v2069_v51, %v14155_v38  ;;  %v2158_v14 = vmul.f32 %v14155_v38, %v14155_v38  ;;  %v10307_v9 = vpop.f32.mrb[13].mxu0  ;;  %v283_v51 = vmul.f32 0.0030864198, %v202_v59  ;;  %v14193_v59 = vadd.s32 184, %v13606_v29  ;;  %vm1168_vm15 = vmand %vm14220_vm12, %vm14224_vm13 }
 0x10f   :  { %v14171_v54 = vpop.f32.mrb[14].mxu0  ;;  %v23148_v55 = vfloor.f32 %v14190_v13  ;;  %v926_v61 = vsub.f32 %v14036_v21, %v845_v5  ;;  %v285_v30 = vmul.f32 0.0030864198, %v204_v11  ;;  %v14279_v11 = vadd.s32 208, %v13606_v29 }
 0x110   :  { %v2238_v36 = vadd.f32 %v2237_v23, %v2158_v14  ;;  %v2071_v4 = vadd.f32 %v2070_v57, %v14171_v54  ;;  %v2159_v63 = vmul.f32 %v14171_v54, %v14171_v54  ;;  %v10308_v7 = vpop.f32.mrb[15].mxu0  ;;  %v14201_v57 = vsel %vm1166_vm9, 1.0, %v14134_v27 }
 0x111   :  { %23722 = vst [vmem:[#allocation16_spill] sm:$0xff] %v14201_v57  ;;  %v364_v14 = vfloor.f32 %v283_v51  ;;  %v14235_v51 = vsub.f32 %v120_v22, %v444_v47  ;;  %v23145_v6 = vcvt.s32.f32 %v14193_v59  ;;  %v13347_v7 = vld [vmem:[%s23139_s0 + $0xf8] sm:$0xff]   ;;  %v23147_v47 = vfloor.f32 %v14209_v3 }
 0x112   :  { %v2239_v23 = vadd.f32 %v2238_v36, %v2159_v63  ;;  %10414 = vmatmul.mubr.bf16.gmra.mrb[120].mxu0 %v13346_v35  ;;  %v14212_v35 = vadd.s32 192, %v13606_v29  ;;  %v14292_v34 = vsel %vm1168_vm15, 1.0, %v14134_v27  ;;  %vm14300_vm2 = vcmp.lt.f32.partialorder %v926_v61, 16.0 }
 0x113   :  { %10417 = vmatprep.mubr.msk.bf16.mxu0 %vm23352_vm0, %v14134_v27  ;;  %v445_v28 = vmul.f32 324.0, %v364_v14  ;;  %v606_v14 = vadd.f32 0.5, %v14235_v51  ;;  %23730 = vst [vmem:[#allocation18_spill] sm:$0xff] %v14292_v34  ;;  %v14332_v0 = vadd.s32 216, %v13606_v29  ;;  %vm1169_vm6 = vmand %vm14296_vm1, %vm14300_vm2 }
 0x115   :  { %v14230_v26 = vpop.f32.mrb[16].mxu0 }
 0x116   :  { %v2072_v56 = vadd.f32 %v2071_v4, %v14230_v26  ;;  %v2160_v36 = vmul.f32 %v14230_v26, %v14230_v26  ;;  %v10311_v63 = vpop.f32.mrb[17].mxu0  ;;  %v766_v4 = vfloor.f32 %v14207_v32  ;;  %v846_v32 = vmul.f32 18.0, %v23148_v55 }
 0x117   :  { %v14248_v22 = vpop.f32.mrb[18].mxu0  ;;  %v23146_v63 = vcvt.s32.f32 %v14212_v35  ;;  %v23735_v55 = vcvt.s32.f32 %v14078_v45 }
 0x118   :  { %v2240_v16 = vadd.f32 %v2239_v23, %v2160_v36  ;;  %v2073_v12 = vadd.f32 %v2072_v56, %v14248_v22  ;;  %v2161_v21 = vmul.f32 %v14248_v22, %v14248_v22  ;;  %v10312_v5 = vpop.f32.mrb[19].mxu0  ;;  %v205_v23 = vadd.f32 0.5, %v23145_v6 }
 0x119   :  { %v23150_v56 = vcvt.s32.f32 %v14239_v49  ;;  %v847_v5 = vmul.f32 18.0, %v766_v4  ;;  %v206_v9 = vadd.f32 0.5, %v23146_v63  ;;  %v366_v6 = vfloor.f32 %v285_v30  ;;  %v13348_v30 = vld [vmem:[%s23139_s0 + $0x100] sm:$0xff]  }
 0x11a   :  { %v2241_v36 = vadd.f32 %v2240_v16, %v2161_v21  ;;  %10418 = vmatmul.mubr.bf16.gmra.mrb[124].mxu0 %v13347_v7  ;;  %v848_v16 = vmul.f32 18.0, %v23147_v47  ;;  %v14287_v7 = vsub.f32 %v121_v53, %v445_v28  ;;  %v927_v28 = vsub.f32 %v14103_v44, %v846_v32 }
 0x11b   :  { %10421 = vmatprep.mubr.msk.bf16.mxu0 %vm23352_vm0, %v14134_v27  ;;  %v14307_v53 = vmul.f32 0.055555556, %v606_v14  ;;  %v286_v63 = vmul.f32 0.0030864198, %v205_v23  ;;  %v207_v47 = vadd.f32 0.5, %v23150_v56  ;;  %v14319_v34 = vsub.f32 %v23735_v55, %v446_v41 }
 0x11c   :  { %v928_v14 = vsub.f32 %v14126_v20, %v847_v5  ;;  %v607_v23 = vadd.f32 0.5, %v14287_v7  ;;  %v287_v56 = vmul.f32 0.0030864198, %v206_v9  ;;  %v447_v55 = vmul.f32 324.0, %v366_v6 }
 0x11d   :  { %v14304_v50 = vpop.f32.mrb[20].mxu0  ;;  %v768_v41 = vfloor.f32 %v14307_v53  ;;  %v367_v44 = vfloor.f32 %v286_v63  ;;  %v288_v17 = vmul.f32 0.0030864198, %v207_v47  ;;  %v608_v5 = vadd.f32 0.5, %v14319_v34 }
 0x11e   :  { %v2074_v1 = vadd.f32 %v2073_v12, %v14304_v50  ;;  %v2162_v37 = vmul.f32 %v14304_v50, %v14304_v50  ;;  %v10315_v61 = vpop.f32.mrb[21].mxu0  ;;  %v929_v12 = vsub.f32 %v14130_v10, %v848_v16  ;;  %v23736_v10 = vfloor.f32 %v14190_v13 }
 0x11f   :  { %v14322_v32 = vpop.f32.mrb[22].mxu0  ;;  %v23739_v16 = vcvt.s32.f32 %v14279_v11  ;;  %vm14345_vm4 = vcmp.lt.f32.partialorder %v927_v28, 16.0  ;;  %vm14349_vm5 = vcmp.lt.f32.partialorder %v766_v4, 16.0  ;;  %v14353_v13 = vmul.f32 0.055555556, %v607_v23 }
 0x120   :  { %v2242_v61 = vadd.f32 %v2241_v36, %v2162_v37  ;;  %v2075_v15 = vadd.f32 %v2074_v1, %v14322_v32  ;;  %v2163_v57 = vmul.f32 %v14322_v32, %v14322_v32  ;;  %v10316_v45 = vpop.f32.mrb[23].mxu0  ;;  %vm14336_vm3 = vcmp.lt.f32.partialorder %v23736_v10, 16.0  ;;  %v13349_v10 = vld [vmem:[%s23139_s0 + $0x108] sm:$0xff]  }
 0x121   :  { %v208_v6 = vadd.f32 0.5, %v23739_v16  ;;  %v368_v63 = vfloor.f32 %v287_v56  ;;  %vm14359_vm7 = vcmp.lt.f32.partialorder %v928_v14, 16.0  ;;  %v23746_v28 = vfloor.f32 %v14209_v3  ;;  %vm1170_vm10 = vmand %vm14336_vm3, %vm14345_vm4 }
 0x122   :  { %v2243_v20 = vadd.f32 %v2242_v61, %v2163_v57  ;;  %10422 = vmatmul.mubr.bf16.gmra.mrb[128].mxu0 %v13348_v30  ;;  %vm14369_vm9 = vcmp.lt.f32.partialorder %v929_v12, 16.0  ;;  %v23751_v56 = vcvt.s32.f32 %v14153_v24  ;;  %v849_v30 = vmul.f32 18.0, %v768_v41  ;;  %vm1171_vm11 = vmand %vm14349_vm5, %vm14359_vm7 }
 0x123   :  { %10425 = vmatprep.mubr.msk.bf16.mxu0 %vm23352_vm0, %v14134_v27  ;;  %vm14365_vm8 = vcmp.lt.f32.partialorder %v23746_v28, 16.0  ;;  %v448_v14 = vmul.f32 324.0, %v367_v44  ;;  %v369_v23 = vfloor.f32 %v288_v17  ;;  %v23155_v61 = vcvt.s32.f32 %v14332_v0 }
 0x124   :  { %v14375_v1 = vsub.f32 %v23751_v56, %v447_v55  ;;  %v14386_v24 = vmul.f32 0.055555556, %v608_v5  ;;  %v289_v55 = vmul.f32 0.0030864198, %v208_v6  ;;  %v14396_v17 = vsel %vm1169_vm6, 1.0, %v14134_v27  ;;  %vm1172_vm12 = vmand %vm14365_vm8, %vm14369_vm9 }
 0x125   :  { %v14377_v37 = vpop.f32.mrb[24].mxu0  ;;  %23752 = vst [vmem:[#allocation19_spill] sm:$0xff] %v14396_v17  ;;  %v449_v44 = vmul.f32 324.0, %v368_v63  ;;  %v14404_v5 = vadd.s32 224, %v13606_v29  ;;  %v14442_v36 = vadd.s32 232, %v13606_v29  ;;  %v14450_v47 = vsel %vm1171_vm11, 1.0, %v14134_v27 }
 0x126   :  { %v2076_v3 = vadd.f32 %v2075_v15, %v14377_v37  ;;  %v2164_v45 = vmul.f32 %v14377_v37, %v14377_v37  ;;  %v10319_v12 = vpop.f32.mrb[25].mxu0  ;;  %v769_v15 = vfloor.f32 %v14353_v13  ;;  %v609_v56 = vadd.f32 0.5, %v14375_v1  ;;  %23756 = vst [vmem:[#allocation21_spill] sm:$0xff] %v14450_v47 }
 0x127   :  { %v14388_v16 = vpop.f32.mrb[26].mxu0  ;;  %v23753_v13 = vcvt.s32.f32 %v14193_v59  ;;  %vm14460_vm13 = vcmp.lt.f32.partialorder %v768_v41, 16.0  ;;  %v23762_v53 = vcvt.s32.f32 %v14239_v49 }
 0x128   :  { %v2244_v6 = vadd.f32 %v2243_v20, %v2164_v45  ;;  %v2077_v28 = vadd.f32 %v2076_v3, %v14388_v16  ;;  %v2165_v33 = vmul.f32 %v14388_v16, %v14388_v16  ;;  %v10320_v21 = vpop.f32.mrb[27].mxu0  ;;  %v930_v20 = vsub.f32 %v14235_v51, %v849_v30 }
 0x129   :  { %v14421_v63 = vsub.f32 %v23753_v13, %v448_v14  ;;  %v450_v3 = vmul.f32 324.0, %v369_v23  ;;  %v209_v45 = vadd.f32 0.5, %v23155_v61  ;;  %v14431_v21 = vsel %vm1170_vm10, 1.0, %v14134_v27 }
 0x12a   :  { %v2245_v12 = vadd.f32 %v2244_v6, %v2165_v33  ;;  %10426 = vmatmul.mubr.bf16.gmra.mrb[132].mxu0 %v13349_v10  ;;  %23754 = vst [vmem:[#allocation20_spill] sm:$0xff] %v14431_v21  ;;  %v770_v51 = vfloor.f32 %v14386_v24  ;;  %v370_v30 = vfloor.f32 %v289_v55  ;;  %v850_v59 = vmul.f32 18.0, %v769_v15 }
 0x12b   :  { %10429 = vmatprep.mubr.msk.bf16.mxu0 %vm23352_vm0, %v14134_v27  ;;  %v23755_v14 = vcvt.s32.f32 %v14212_v35  ;;  %v14458_v35 = vsel %vm1172_vm12, 1.0, %v14134_v27  ;;  %v14464_v55 = vmul.f32 0.055555556, %v609_v56  ;;  %vm14468_vm14 = vcmp.lt.f32.partialorder %v930_v20, 16.0  ;;  %v13350_v20 = vld [vmem:[%s23139_s0 + $0x110] sm:$0xff]  }
 0x12c   :  { %23757 = vst [vmem:[#allocation22_spill] sm:$0xff] %v14458_v35  ;;  %v14475_v4 = vsub.f32 %v23762_v53, %v450_v3  ;;  %v290_v6 = vmul.f32 0.0030864198, %v209_v45  ;;  %v851_v13 = vmul.f32 18.0, %v770_v51  ;;  %v931_v10 = vsub.f32 %v14287_v7, %v850_v59  ;;  %vm1173_vm15 = vmand %vm14460_vm13, %vm14468_vm14 }
 0x12d   :  { %v14438_v23 = vsub.f32 %v23755_v14, %v449_v44  ;;  %v14466_v57 = vpop.f32.mrb[28].mxu0  ;;  %v610_v44 = vadd.f32 0.5, %v14421_v63  ;;  %v451_v14 = vmul.f32 324.0, %v370_v30  ;;  %v23763_v3 = vcvt.s32.f32 %v14404_v5 }
 0x12e   :  { %v2078_v41 = vadd.f32 %v2077_v28, %v14466_v57  ;;  %v2166_v33 = vmul.f32 %v14466_v57, %v14466_v57  ;;  %v10323_v56 = vpop.f32.mrb[29].mxu0  ;;  %v23158_v28 = vcvt.s32.f32 %v14442_v36  ;;  %v771_v30 = vfloor.f32 %v14464_v55 }
 0x12f   :  { %v14483_v61 = vpop.f32.mrb[30].mxu0  ;;  %v611_v49 = vadd.f32 0.5, %v14438_v23  ;;  %v210_v45 = vadd.f32 0.5, %v23763_v3  ;;  %v14498_v7 = vmul.f32 0.055555556, %v610_v44  ;;  %v612_v59 = vadd.f32 0.5, %v14475_v4 }
 0x130   :  { %v2246_v53 = vadd.f32 %v2245_v12, %v2166_v33  ;;  %v2079_v56 = vadd.f32 %v2078_v41, %v14483_v61  ;;  %v2167_v35 = vmul.f32 %v14483_v61, %v14483_v61  ;;  %v10324_v47 = vpop.f32.mrb[31].mxu0  ;;  %v371_v3 = vfloor.f32 %v290_v6 }
 0x131   :  { %v14502_v12 = vadd.s32 240, %v13606_v29  ;;  %vm14504_vm1 = vcmp.lt.f32.partialorder %v769_v15, 16.0  ;;  %v932_v47 = vsub.f32 %v14319_v34, %v851_v13  ;;  %v23766_v55 = vcvt.s32.f32 %v14279_v11 }
 0x132   :  { %v2247_v41 = vadd.f32 %v2246_v53, %v2167_v35  ;;  %10430 = vmatmul.mubr.bf16.gmra.mrb[136].mxu0 %v13350_v20  ;;  %v14515_v9 = vmul.f32 0.055555556, %v611_v49  ;;  %v291_v44 = vmul.f32 0.0030864198, %v210_v45  ;;  %v211_v35 = vadd.f32 0.5, %v23158_v28 }
 0x133   :  { %v14511_v24 = vsub.f32 %v23766_v55, %v451_v14  ;;  %10433 = vmatprep.mubr.msk.bf16.mxu0 %vm23352_vm0, %v14134_v27  ;;  %v14520_v15 = vadd.s32 248, %v13606_v29  ;;  %v14523_v6 = vsel %vm1173_vm15, 1.0, %v14134_v27  ;;  %vm14525_vm2 = vcmp.lt.f32.partialorder %v931_v10, 16.0 }
 0x134   :  { %23767 = vst [vmem:[#allocation23_spill] sm:$0xff] %v14523_v6  ;;  %vm14529_vm3 = vcmp.lt.f32.partialorder %v770_v51, 16.0  ;;  %v852_v20 = vmul.f32 18.0, %v771_v30  ;;  %v772_v14 = vfloor.f32 %v14498_v7  ;;  %v14536_v49 = vmul.f32 0.055555556, %v612_v59  ;;  %v13351_v51 = vld [vmem:[%s23139_s0 + $0x118] sm:$0xff]   ;;  %vm1174_vm5 = vmand %vm14504_vm1, %vm14525_vm2 }
 0x135   :  { %v14533_v13 = vpop.f32.mrb[32].mxu0  ;;  %v452_v45 = vmul.f32 324.0, %v371_v3  ;;  %vm14545_vm4 = vcmp.lt.f32.partialorder %v932_v47, 16.0  ;;  %v613_v7 = vadd.f32 0.5, %v14511_v24  ;;  %v292_v3 = vmul.f32 0.0030864198, %v211_v35 }
 0x136   :  { %v2080_v55 = vadd.f32 %v2079_v56, %v14533_v13  ;;  %v2168_v10 = vmul.f32 %v14533_v13, %v14533_v13  ;;  %v10327_v28 = vpop.f32.mrb[33].mxu0  ;;  %v773_v56 = vfloor.f32 %v14515_v9  ;;  %v23165_v53 = vcvt.s32.f32 %v14520_v15  ;;  %vm1175_vm6 = vmand %vm14529_vm3, %vm14545_vm4 }
 0x137   :  { %v14550_v59 = vpop.f32.mrb[34].mxu0  ;;  %v372_v28 = vfloor.f32 %v291_v44  ;;  %v933_v58 = vsub.f32 %v14375_v1, %v852_v20  ;;  %v853_v2 = vmul.f32 18.0, %v772_v14  ;;  %v774_v9 = vfloor.f32 %v14536_v49 }
 0x138   :  { %v2248_v21 = vadd.f32 %v2247_v41, %v2168_v10  ;;  %v2081_v47 = vadd.f32 %v2080_v55, %v14550_v59  ;;  %v2169_v17 = vmul.f32 %v14550_v59, %v14550_v59  ;;  %v10328_v39 = vpop.f32.mrb[35].mxu0  ;;  %v23774_v44 = vcvt.s32.f32 %v14332_v0 }
 0x139   :  { %v23775_v41 = vcvt.s32.f32 %v14502_v12  ;;  %v14579_v39 = vsel %vm1174_vm5, 1.0, %v14134_v27  ;;  %v14581_v1 = vmul.f32 0.055555556, %v613_v7  ;;  %v14584_v6 = vadd.s32 256, %v13606_v29 }
 0x13a   :  { %v14569_v35 = vsub.f32 %v23774_v44, %v452_v45  ;;  %v2249_v10 = vadd.f32 %v2248_v21, %v2169_v17  ;;  %10434 = vmatmul.mubr.bf16.gmra.mrb[140].mxu0 %v13351_v51  ;;  %23776 = vst [vmem:[#allocation24_spill] sm:$0xff] %v14579_v39  ;;  %v854_v0 = vmul.f32 18.0, %v773_v56  ;;  %v453_v11 = vmul.f32 324.0, %v372_v28 }
 0x13b   :  { %v212_v55 = vadd.f32 0.5, %v23775_v41  ;;  %10437 = vmatprep.mubr.msk.bf16.mxu0 %vm23352_vm0, %v14134_v27  ;;  %v373_v17 = vfloor.f32 %v292_v3  ;;  %v213_v21 = vadd.f32 0.5, %v23165_v53  ;;  %v14591_v33 = vsel %vm1175_vm6, 1.0, %v14134_v27  ;;  %v13352_v41 = vld [vmem:[%s23139_s0 + $0x120] sm:$0xff]  }
 0x13c   :  { %23777 = vst [vmem:[#allocation25_spill] sm:$0xff] %v14591_v33  ;;  %vm14593_vm7 = vcmp.lt.f32.partialorder %v771_v30, 16.0  ;;  %vm14597_vm8 = vcmp.lt.f32.partialorder %v933_v58, 16.0  ;;  %v14602_v49 = vadd.s32 264, %v13606_v29  ;;  %v934_v51 = vsub.f32 %v14421_v63, %v853_v2 }
 0x13d   :  { %v14604_v45 = vpop.f32.mrb[36].mxu0  ;;  %v855_v7 = vmul.f32 18.0, %v774_v9  ;;  %v614_v28 = vadd.f32 0.5, %v14569_v35  ;;  %v293_v3 = vmul.f32 0.0030864198, %v212_v55  ;;  %v775_v53 = vfloor.f32 %v14581_v1  ;;  %vm1176_vm15 = vmand %vm14593_vm7, %vm14597_vm8 }
 0x13e   :  { %23782 = vst [vmem:[#allocation26_spill] sm:$0xff] %v14604_v45  ;;  %v2082_v30 = vadd.f32 %v2081_v47, %v14604_v45  ;;  %v2170_v44 = vmul.f32 %v14604_v45, %v14604_v45  ;;  %v10331_v58 = vpop.f32.mrb[37].mxu0  ;;  %v935_v2 = vsub.f32 %v14438_v23, %v854_v0  ;;  %v23784_v63 = vcvt.s32.f32 %v14404_v5 }
 0x13f   :  { %v14616_v39 = vpop.f32.mrb[38].mxu0  ;;  %v454_v47 = vmul.f32 324.0, %v373_v17  ;;  %v294_v19 = vmul.f32 0.0030864198, %v213_v21  ;;  %v23172_v1 = vcvt.s32.f32 %v14602_v49  ;;  %vm14627_vm9 = vcmp.lt.f32.partialorder %v772_v14, 16.0 }
 0x140   :  { %23783 = vst [vmem:[#allocation27_spill] sm:$0xff] %v14616_v39  ;;  %v14621_v55 = vsub.f32 %v23784_v63, %v453_v11  ;;  %v2250_v8 = vadd.f32 %v2249_v10, %v2170_v44  ;;  %v2083_v58 = vadd.f32 %v2082_v30, %v14616_v39  ;;  %v2171_v62 = vmul.f32 %v14616_v39, %v14616_v39  ;;  %v10332_v18 = vpop.f32.mrb[39].mxu0 }
 0x141   :  { %v936_v23 = vsub.f32 %v14475_v4, %v855_v7  ;;  %v14632_v5 = vmul.f32 0.055555556, %v614_v28  ;;  %v374_v0 = vfloor.f32 %v293_v3  ;;  %vm14634_vm10 = vcmp.lt.f32.partialorder %v773_v56, 16.0 }
 0x142   :  { %v2251_v11 = vadd.f32 %v2250_v8, %v2171_v62  ;;  %10438 = vmatmul.mubr.bf16.gmra.mrb[144].mxu0 %v13352_v41  ;;  %v856_v17 = vmul.f32 18.0, %v775_v53  ;;  %v23789_v18 = vcvt.s32.f32 %v14584_v6  ;;  %v615_v14 = vadd.f32 0.5, %v14621_v55 }
 0x143   :  { %10441 = vmatprep.mubr.msk.bf16.mxu0 %vm23352_vm0, %v14134_v27  ;;  %v23790_v4 = vcvt.s32.f32 %v14442_v36  ;;  %v375_v28 = vfloor.f32 %v294_v19  ;;  %v14648_v62 = vadd.s32 272, %v13606_v29  ;;  %vm14650_vm11 = vcmp.lt.f32.partialorder %v934_v51, 16.0 }
 0x144   :  { %v214_v21 = vadd.f32 0.5, %v23789_v18  ;;  %vm14654_vm12 = vcmp.lt.f32.partialorder %v935_v2, 16.0  ;;  %vm14658_vm13 = vcmp.lt.f32.partialorder %v774_v9, 16.0  ;;  %v215_v36 = vadd.f32 0.5, %v23172_v1  ;;  %vm1177_vm1 = vmand %vm14627_vm9, %vm14650_vm11 }
 0x145   :  { %v14645_v7 = vsub.f32 %v23790_v4, %v454_v47  ;;  %v14664_v30 = vpop.f32.mrb[40].mxu0  ;;  %vm14666_vm14 = vcmp.lt.f32.partialorder %v936_v23, 16.0  ;;  %v455_v44 = vmul.f32 324.0, %v374_v0  ;;  %v14672_v41 = vadd.s32 280, %v13606_v29  ;;  %v13353_v47 = vld [vmem:[%s23139_s0 + $0x128] sm:$0xff]   ;;  %vm1178_vm2 = vmand %vm14634_vm10, %vm14654_vm12 }
 0x146   :  { %23797 = vst [vmem:[#allocation28_spill] sm:$0xff] %v14664_v30  ;;  %v2084_v9 = vadd.f32 %v2083_v58, %v14664_v30  ;;  %v2172_v2 = vmul.f32 %v14664_v30, %v14664_v30  ;;  %v10335_v63 = vpop.f32.mrb[41].mxu0  ;;  %v937_v23 = vsub.f32 %v14511_v24, %v856_v17  ;;  %v295_v18 = vmul.f32 0.0030864198, %v214_v21  ;;  %vm1179_vm4 = vmand %vm14658_vm13, %vm14666_vm14 }
 0x147   :  { %v14681_v4 = vpop.f32.mrb[42].mxu0  ;;  %v14687_v0 = vmul.f32 0.055555556, %v615_v14  ;;  %v616_v58 = vadd.f32 0.5, %v14645_v7  ;;  %v456_v1 = vmul.f32 324.0, %v375_v28  ;;  %vm14702_vm3 = vcmp.lt.f32.partialorder %v775_v53, 16.0 }
 0x148   :  { %23800 = vst [vmem:[#allocation29_spill] sm:$0xff] %v14681_v4  ;;  %v2252_v51 = vadd.f32 %v2251_v11, %v2172_v2  ;;  %v2085_v43 = vadd.f32 %v2084_v9, %v14681_v4  ;;  %v2173_v24 = vmul.f32 %v14681_v4, %v14681_v4  ;;  %v10336_v17 = vpop.f32.mrb[43].mxu0  ;;  %v296_v21 = vmul.f32 0.0030864198, %v215_v36 }
 0x149   :  { %v23803_v11 = vfloor.f32 %v14632_v5  ;;  %v23804_v9 = vcvt.s32.f32 %v14502_v12  ;;  %v23174_v17 = vcvt.s32.f32 %v14672_v41  ;;  %vm14717_vm5 = vcmp.lt.f32.partialorder %v937_v23, 16.0 }
 0x14a   :  { %v2253_v63 = vadd.f32 %v2252_v51, %v2173_v24  ;;  %10442 = vmatmul.mubr.bf16.gmra.mrb[148].mxu0 %v13353_v47  ;;  %v376_v36 = vfloor.f32 %v295_v18  ;;  %v777_v12 = vfloor.f32 %v14687_v0  ;;  %v14727_v51 = vmul.f32 0.055555556, %v616_v58  ;;  %v13354_v24 = vld [vmem:[%s23139_s0 + $0x130] sm:$0xff]   ;;  %vm1180_vm6 = vmand %vm14702_vm3, %vm14717_vm5 }
 0x14b   :  { %v857_v28 = vmul.f32 18.0, %v23803_v11  ;;  %v14710_v2 = vsub.f32 %v23804_v9, %v455_v44  ;;  %v14722_v11 = vadd.s32 288, %v13606_v29  ;;  %10445 = vmatprep.mubr.msk.bf16.mxu0 %vm23352_vm0, %v14134_v27  ;;  %v23807_v19 = vcvt.s32.f32 %v14520_v15 }
 0x14c   :  { %v23808_v3 = vcvt.s32.f32 %v14648_v62  ;;  %v14741_v23 = vsel %vm1176_vm15, 1.0, %v14134_v27  ;;  %v14749_v15 = vsel %vm1177_vm1, 1.0, %v14134_v27  ;;  %v14757_v34 = vsel %vm1178_vm2, 1.0, %v14134_v27 }
 0x14d   :  { %v14731_v44 = vsub.f32 %v23807_v19, %v456_v1  ;;  %23809 = vst [vmem:[#allocation30_spill] sm:$0xff] %v14741_v23  ;;  %23810 = vst [vmem:[#allocation31_spill] sm:$0xff] %v14749_v15  ;;  %v377_v20 = vfloor.f32 %v296_v21  ;;  %v14759_v1 = vpop.f32.mrb[44].mxu0  ;;  %v14762_v18 = vsel %vm1179_vm4, 1.0, %v14134_v27  ;;  %v938_v33 = vsub.f32 %v14569_v35, %v857_v28 }
 0x14e   :  { %v216_v47 = vadd.f32 0.5, %v23808_v3  ;;  %23811 = vst [vmem:[#allocation32_spill] sm:$0xff] %v14757_v34  ;;  %23812 = vst [vmem:[#allocation33_spill] sm:$0xff] %v14759_v1  ;;  %v617_v8 = vadd.f32 0.5, %v14710_v2  ;;  %v217_v0 = vadd.f32 0.5, %v23174_v17  ;;  %v2086_v10 = vadd.f32 %v2085_v43, %v14759_v1  ;;  %v10339_v58 = vpop.f32.mrb[45].mxu0 }
 0x14f   :  { %23813 = vst [vmem:[#allocation34_spill] sm:$0xff] %v14762_v18  ;;  %v2174_v56 = vmul.f32 %v14759_v1, %v14759_v1  ;;  %v457_v35 = vmul.f32 324.0, %v376_v36  ;;  %v14779_v28 = vpop.f32.mrb[46].mxu0  ;;  %v858_v9 = vmul.f32 18.0, %v777_v12  ;;  %v618_v19 = vadd.f32 0.5, %v14731_v44 }
 0x150   :  { %23814 = vst [vmem:[#allocation35_spill] sm:$0xff] %v14779_v28  ;;  %v297_v3 = vmul.f32 0.0030864198, %v216_v47  ;;  %v2087_v17 = vadd.f32 %v2086_v10, %v14779_v28  ;;  %v2175_v53 = vmul.f32 %v14779_v28, %v14779_v28  ;;  %v10340_v18 = vpop.f32.mrb[47].mxu0  ;;  %v458_v14 = vmul.f32 324.0, %v377_v20 }
 0x151   :  { %v2254_v58 = vadd.f32 %v2253_v63, %v2174_v56  ;;  %v14787_v36 = vsel %vm1180_vm6, 1.0, %v14134_v27  ;;  %v14789_v21 = vmul.f32 0.055555556, %v617_v8  ;;  %v298_v34 = vmul.f32 0.0030864198, %v217_v0 }
 0x152   :  { %23815 = vst [vmem:[#allocation36_spill] sm:$0xff] %v14787_v36  ;;  %v14792_v15 = vadd.s32 296, %v13606_v29  ;;  %10446 = vmatmul.mubr.bf16.gmra.mrb[152].mxu0 %v13354_v24  ;;  %v23816_v63 = vfloor.f32 %v14632_v5  ;;  %v23819_v18 = vcvt.s32.f32 %v14584_v6  ;;  %v23820_v10 = vcvt.s32.f32 %v14722_v11 }
 0x153   :  { %v2255_v43 = vadd.f32 %v2254_v58, %v2175_v53  ;;  %10449 = vmatprep.mubr.msk.bf16.mxu0 %vm23352_vm0, %v14134_v27  ;;  %v23821_v0 = vfloor.f32 %v14727_v51  ;;  %v14810_v24 = vmul.f32 0.055555556, %v618_v19  ;;  %v378_v5 = vfloor.f32 %v297_v3 }
 0x154   :  { %vm14796_vm7 = vcmp.lt.f32.partialorder %v23816_v63, 16.0  ;;  %v14802_v20 = vsub.f32 %v23819_v18, %v457_v35  ;;  %v218_v8 = vadd.f32 0.5, %v23820_v10  ;;  %v14813_v58 = vadd.s32 304, %v13606_v29 }
 0x155   :  { %v859_v56 = vmul.f32 18.0, %v23821_v0  ;;  %vm14815_vm8 = vcmp.lt.f32.partialorder %v938_v33, 16.0  ;;  %v939_v6 = vsub.f32 %v14621_v55, %v858_v9  ;;  %vm14820_vm9 = vcmp.lt.f32.partialorder %v777_v12, 16.0  ;;  %v14828_v19 = vpop.f32.mrb[48].mxu0 }
 0x156   :  { %v23826_v63 = vcvt.s32.f32 %v14602_v49  ;;  %23827 = vst [vmem:[#allocation37_spill] sm:$0xff] %v14828_v19  ;;  %v379_v10 = vfloor.f32 %v298_v34  ;;  %v14833_v0 = vadd.s32 312, %v13606_v29  ;;  %v2088_v55 = vadd.f32 %v2087_v17, %v14828_v19  ;;  %v10343_v9 = vpop.f32.mrb[49].mxu0  ;;  %v13355_v49 = vld [vmem:[%s23139_s0 + $0x138] sm:$0xff]   ;;  %vm1181_vm10 = vmand %vm14796_vm7, %vm14815_vm8 }
 0x157   :  { %v2176_v12 = vmul.f32 %v14828_v19, %v14828_v19  ;;  %v14842_v3 = vpop.f32.mrb[50].mxu0  ;;  %v940_v34 = vsub.f32 %v14645_v7, %v859_v56  ;;  %v23184_v33 = vfloor.f32 %v14810_v24  ;;  %v459_v36 = vmul.f32 324.0, %v378_v5 }
 0x158   :  { %v14826_v18 = vsub.f32 %v23826_v63, %v458_v14  ;;  %v619_v14 = vadd.f32 0.5, %v14802_v20  ;;  %v299_v63 = vmul.f32 0.0030864198, %v218_v8  ;;  %23828 = vst [vmem:[#allocation38_spill] sm:$0xff] %v14842_v3  ;;  %v2089_v31 = vadd.f32 %v2088_v55, %v14842_v3  ;;  %v10344_v60 = vpop.f32.mrb[51].mxu0 }
 0x159   :  { %v2256_v23 = vadd.f32 %v2255_v43, %v2176_v12  ;;  %v2177_v9 = vmul.f32 %v14842_v3, %v14842_v3  ;;  %v23829_v7 = vfloor.f32 %v14789_v21  ;;  %v460_v56 = vmul.f32 324.0, %v379_v10 }
 0x15a   :  { %v620_v19 = vadd.f32 0.5, %v14826_v18  ;;  %v23830_v5 = vcvt.s32.f32 %v14792_v15  ;;  %10450 = vmatmul.mubr.bf16.gmra.mrb[156].mxu0 %v13355_v49  ;;  %vm14860_vm11 = vcmp.lt.f32.partialorder %v939_v6, 16.0  ;;  %v14864_v17 = vmul.f32 0.055555556, %v619_v14 }
 0x15b   :  { %v860_v8 = vmul.f32 18.0, %v23829_v7  ;;  %v2257_v12 = vadd.f32 %v2256_v23, %v2177_v9  ;;  %v380_v53 = vfloor.f32 %v299_v63  ;;  %10453 = vmatprep.mubr.msk.bf16.mxu0 %vm23352_vm0, %v14134_v27  ;;  %v861_v47 = vmul.f32 18.0, %v23184_v33  ;;  %vm1182_vm14 = vmand %vm14820_vm9, %vm14860_vm11 }
 0x15c   :  { %v219_v43 = vadd.f32 0.5, %v23830_v5  ;;  %v23833_v10 = vcvt.s32.f32 %v14648_v62  ;;  %v23834_v23 = vcvt.s32.f32 %v14813_v58  ;;  %v14877_v6 = vadd.s32 320, %v13606_v29 }
 0x15d   :  { %v14880_v14 = vsel %vm1181_vm10, 1.0, %v14134_v27  ;;  %v23836_v63 = vfloor.f32 %v14727_v51  ;;  %vm14888_vm13 = vcmp.lt.f32.partialorder %v940_v34, 16.0  ;;  %v14892_v62 = vmul.f32 0.055555556, %v620_v19  ;;  %v13356_v19 = vld [vmem:[%s23139_s0 + $0x140] ss:$0 sps:$4 sm:$0xff]  }
 0x15e   :  { %v14872_v7 = vsub.f32 %v23833_v10, %v459_v36  ;;  %v220_v49 = vadd.f32 0.5, %v23834_v23  ;;  %23835 = vst [vmem:[#allocation39_spill] sm:$0xff] %v14880_v14  ;;  %v14894_v36 = vpop.f32.mrb[52].mxu0  ;;  %v941_v10 = vsub.f32 %v14710_v2, %v860_v8  ;;  %v23842_v23 = vcvt.s32.f32 %v14672_v41 }
 0x15f   :  { %vm14884_vm12 = vcmp.lt.f32.partialorder %v23836_v63, 16.0  ;;  %23841 = vst [vmem:[#allocation40_spill] sm:$0xff] %v14894_v36  ;;  %v300_v55 = vmul.f32 0.0030864198, %v219_v43  ;;  %v23843_v51 = vcvt.s32.f32 %v14833_v0  ;;  %v2090_v14 = vadd.f32 %v2089_v31, %v14894_v36  ;;  %v10347_v3 = vpop.f32.mrb[53].mxu0 }
 0x160   :  { %v14899_v33 = vsub.f32 %v23842_v23, %v460_v56  ;;  %v2178_v34 = vmul.f32 %v14894_v36, %v14894_v36  ;;  %v781_v41 = vfloor.f32 %v14864_v17  ;;  %v461_v2 = vmul.f32 324.0, %v380_v53  ;;  %v14914_v8 = vpop.f32.mrb[54].mxu0  ;;  %vm1183_vm15 = vmand %vm14884_vm12, %vm14888_vm13 }
 0x161   :  { %v221_v63 = vadd.f32 0.5, %v23843_v51  ;;  %23844 = vst [vmem:[#allocation41_spill] sm:$0xff] %v14914_v8  ;;  %v942_v31 = vsub.f32 %v14731_v44, %v861_v47  ;;  %v621_v56 = vadd.f32 0.5, %v14872_v7  ;;  %v301_v43 = vmul.f32 0.0030864198, %v220_v49  ;;  %v10348_v35 = vpop.f32.mrb[55].mxu0 }
 0x162   :  { %v2258_v23 = vadd.f32 %v2257_v12, %v2178_v34  ;;  %v2091_v51 = vadd.f32 %v2090_v14, %v14914_v8  ;;  %v2179_v60 = vmul.f32 %v14914_v8, %v14914_v8  ;;  %v782_v17 = vfloor.f32 %v14892_v62  ;;  %10454 = vmatmul.mubr.bf16.gmra.mrb[160].mxu0 %v13356_v19 }
 0x163   :  { %v14928_v44 = vsel %vm1182_vm14, 1.0, %v14134_v27  ;;  %v622_v53 = vadd.f32 0.5, %v14899_v33  ;;  %v381_v47 = vfloor.f32 %v300_v55  ;;  %v302_v12 = vmul.f32 0.0030864198, %v221_v63  ;;  %10473 = vmatprep.mubr.msk.bf16.mxu0 %vm23352_vm0, %v14134_v27 }
 0x164   :  { %23845 = vst [vmem:[#allocation42_spill] sm:$0xff] %v14928_v44  ;;  %v2259_v49 = vadd.f32 %v2258_v23, %v2179_v60  ;;  %v23846_v14 = vfloor.f32 %v14789_v21  ;;  %v862_v5 = vmul.f32 18.0, %v781_v41  ;;  %v23849_v9 = vcvt.s32.f32 %v14722_v11 }
 0x165   :  { %v14942_v62 = vsel %vm1183_vm15, 1.0, %v14134_v27  ;;  %v14944_v3 = vmul.f32 0.055555556, %v621_v56  ;;  %v382_v55 = vfloor.f32 %v301_v43  ;;  %v23851_v63 = vcvt.s32.f32 %v14877_v6  ;;  %v14964_v23 = vpop.f32.mrb[56].mxu0 }
 0x166   :  { %vm14933_vm1 = vcmp.lt.f32.partialorder %v23846_v14, 16.0  ;;  %v14939_v35 = vsub.f32 %v23849_v9, %v461_v2  ;;  %23850 = vst [vmem:[#allocation43_spill] sm:$0xff] %v14942_v62  ;;  %vm14950_vm2 = vcmp.lt.f32.partialorder %v941_v10, 16.0  ;;  %v23854_v11 = vfloor.f32 %v14810_v24  ;;  %23859 = vst [vmem:[#allocation44_spill] sm:$0xff] %v14964_v23 }
 0x167   :  { %v222_v19 = vadd.f32 0.5, %v23851_v63  ;;  %vm14960_vm4 = vcmp.lt.f32.partialorder %v942_v31, 16.0  ;;  %v863_v43 = vmul.f32 18.0, %v782_v17  ;;  %v14966_v60 = vmul.f32 0.055555556, %v622_v53  ;;  %vm1184_vm5 = vmand %vm14933_vm1, %vm14950_vm2 }
 0x168   :  { %vm14956_vm3 = vcmp.lt.f32.partialorder %v23854_v11, 16.0  ;;  %v462_v14 = vmul.f32 324.0, %v381_v47  ;;  %v383_v10 = vfloor.f32 %v302_v12  ;;  %v14969_v9 = vadd.s32 328, %v13606_v29  ;;  %v10351_v11 = vpop.f32.mrb[57].mxu0 }
 0x169   :  { %v2092_v24 = vadd.f32 %v2091_v51, %v14964_v23  ;;  %v2180_v63 = vmul.f32 %v14964_v23, %v14964_v23  ;;  %v943_v31 = vsub.f32 %v14802_v20, %v862_v5  ;;  %v623_v62 = vadd.f32 0.5, %v14939_v35  ;;  %v14976_v44 = vpop.f32.mrb[58].mxu0  ;;  %vm1185_vm7 = vmand %vm14956_vm3, %vm14960_vm4 }
 0x16a   :  { %23860 = vst [vmem:[#allocation45_spill] sm:$0xff] %v14976_v44  ;;  %v783_v53 = vfloor.f32 %v14944_v3  ;;  %v463_v47 = vmul.f32 324.0, %v382_v55  ;;  %v303_v12 = vmul.f32 0.0030864198, %v222_v19  ;;  %v14984_v51 = vadd.s32 336, %v13606_v29  ;;  %v10352_v5 = vpop.f32.mrb[59].mxu0 }
 0x16b   :  { %v2260_v23 = vadd.f32 %v2259_v49, %v2180_v63  ;;  %v2093_v11 = vadd.f32 %v2092_v24, %v14976_v44  ;;  %v2181_v20 = vmul.f32 %v14976_v44, %v14976_v44  ;;  %v944_v8 = vsub.f32 %v14826_v18, %v863_v43 }
 0x16c   :  { %v784_v21 = vfloor.f32 %v14966_v60  ;;  %v23861_v34 = vcvt.s32.f32 %v14792_v15  ;;  %v464_v3 = vmul.f32 324.0, %v383_v10  ;;  %v23196_v55 = vcvt.s32.f32 %v14969_v9 }
 0x16d   :  { %v2261_v19 = vadd.f32 %v2260_v23, %v2181_v20  ;;  %v14997_v49 = vsel %vm1184_vm5, 1.0, %v14134_v27  ;;  %v14999_v24 = vmul.f32 0.055555556, %v623_v62  ;;  %v15002_v63 = vadd.s32 344, %v13606_v29  ;;  %v15029_v10 = vpop.f32.mrb[60].mxu0 }
 0x16e   :  { %v14993_v36 = vsub.f32 %v23861_v34, %v462_v14  ;;  %23862 = vst [vmem:[#allocation46_spill] sm:$0xff] %v14997_v49  ;;  %vm15004_vm6 = vcmp.lt.f32.partialorder %v781_v41, 16.0  ;;  %v23865_v15 = vcvt.s32.f32 %v14813_v58  ;;  %v384_v60 = vfloor.f32 %v303_v12  ;;  %23872 = vst [vmem:[#allocation47_spill] sm:$0xff] %v15029_v10  ;;  %v10355_v20 = vpop.f32.mrb[61].mxu0 }
 0x16f   :  { %vm15017_vm8 = vcmp.lt.f32.partialorder %v943_v31, 16.0  ;;  %vm15021_vm9 = vcmp.lt.f32.partialorder %v782_v17, 16.0  ;;  %vm15025_vm10 = vcmp.lt.f32.partialorder %v944_v8, 16.0  ;;  %v864_v23 = vmul.f32 18.0, %v783_v53  ;;  %v15046_v14 = vpop.f32.mrb[62].mxu0 }
 0x170   :  { %v15010_v43 = vsub.f32 %v23865_v15, %v463_v47  ;;  %v865_v47 = vmul.f32 18.0, %v784_v21  ;;  %v624_v56 = vadd.f32 0.5, %v14993_v36  ;;  %v23873_v2 = vcvt.s32.f32 %v14833_v0  ;;  %23875 = vst [vmem:[#allocation49_spill] sm:$0xff] %v15046_v14  ;;  %vm1186_vm11 = vmand %vm15004_vm6, %vm15017_vm8 }
 0x171   :  { %v223_v17 = vadd.f32 0.5, %v23196_v55  ;;  %v2094_v12 = vadd.f32 %v2093_v11, %v15029_v10  ;;  %v2182_v8 = vmul.f32 %v15029_v10, %v15029_v10  ;;  %v785_v5 = vfloor.f32 %v14999_v24  ;;  %v10356_v55 = vpop.f32.mrb[63].mxu0  ;;  %vm1187_vm12 = vmand %vm15021_vm9, %vm15025_vm10 }
 0x172   :  { %v15034_v31 = vsub.f32 %v23873_v2, %v464_v3  ;;  %v15044_v15 = vsel %vm1185_vm7, 1.0, %v14134_v27  ;;  %v625_v0 = vadd.f32 0.5, %v15010_v43  ;;  %v465_v11 = vmul.f32 324.0, %v384_v60 }
 0x173   :  { %23874 = vst [vmem:[#allocation48_spill] sm:$0xff] %v15044_v15  ;;  %v23876_v3 = vcvt.s32.f32 %v14984_v51  ;;  %v2262_v20 = vadd.f32 %v2261_v19, %v2182_v8  ;;  %v2095_v24 = vadd.f32 %v2094_v12, %v15046_v14  ;;  %v2183_v27 = vmul.f32 %v15046_v14, %v15046_v14  ;;  %v15065_v8 = vld [vmem:[#allocation2] sm:$0xff] }
 0x174   :  { %v945_v34 = vsub.f32 %v14872_v7, %v864_v23  ;;  %v946_v15 = vsub.f32 %v14899_v33, %v865_v47  ;;  %v705_v60 = vmul.f32 0.055555556, %v624_v56  ;;  %v626_v49 = vadd.f32 0.5, %v15034_v31 }
 0x175   :  { %v224_v2 = vadd.f32 0.5, %v23876_v3  ;;  %v304_v3 = vmul.f32 0.0030864198, %v223_v17  ;;  %v2263_v19 = vadd.f32 %v2262_v20, %v2183_v27  ;;  %v15073_v7 = vsel %vm1186_vm11, 1.0, %v15065_v8 }
 0x176   :  { %23877 = vst [vmem:[#allocation50_spill] sm:$0xff] %v15073_v7  ;;  %v866_v55 = vmul.f32 18.0, %v785_v5  ;;  %v23878_v41 = vcvt.s32.f32 %v15002_v63  ;;  %v15077_v33 = vmul.f32 0.055555556, %v625_v0  ;;  %v23879_v23 = vcvt.s32.f32 %v14877_v6  ;;  %v15101_v6 = vpop.f32.mrb[64].mxu0 }
 0x177   :  { %v305_v56 = vmul.f32 0.0030864198, %v224_v2  ;;  %v15084_v17 = vadd.s32 352, %v13606_v29  ;;  %v15087_v18 = vsel %vm1187_vm12, 1.0, %v15065_v8  ;;  %vm15089_vm13 = vcmp.lt.f32.partialorder %v783_v53, 16.0  ;;  %23887 = vst [vmem:[#allocation52_spill] sm:$0xff] %v15101_v6 }
 0x178   :  { %v225_v58 = vadd.f32 0.5, %v23878_v41  ;;  %v15081_v47 = vsub.f32 %v23879_v23, %v465_v11  ;;  %23880 = vst [vmem:[#allocation51_spill] sm:$0xff] %v15087_v18  ;;  %vm15093_vm14 = vcmp.lt.f32.partialorder %v945_v34, 16.0  ;;  %vm15097_vm15 = vcmp.lt.f32.partialorder %v784_v21, 16.0  ;;  %v10359_v41 = vpop.f32.mrb[65].mxu0 }
 0x179   :  { %vm15103_vm1 = vcmp.lt.f32.partialorder %v946_v15, 16.0  ;;  %v786_v2 = vfloor.f32 %v705_v60  ;;  %v15107_v20 = vmul.f32 0.055555556, %v626_v49  ;;  %v385_v53 = vfloor.f32 %v304_v3  ;;  %v15113_v18 = vpop.f32.mrb[66].mxu0  ;;  %vm1188_vm2 = vmand %vm15089_vm13, %vm15093_vm14 }
 0x17a   :  { %v2096_v27 = vadd.f32 %v2095_v24, %v15101_v6  ;;  %v2184_v34 = vmul.f32 %v15101_v6, %v15101_v6  ;;  %v947_v21 = vsub.f32 %v14939_v35, %v866_v55  ;;  %v306_v23 = vmul.f32 0.0030864198, %v225_v58  ;;  %23890 = vst [vmem:[#allocation53_spill] sm:$0xff] %v15113_v18  ;;  %v10360_v6 = vpop.f32.mrb[67].mxu0  ;;  %vm1189_vm3 = vmand %vm15097_vm15, %vm15103_vm1 }
 0x17b   :  { %v787_v15 = vfloor.f32 %v15077_v33  ;;  %v627_v7 = vadd.f32 0.5, %v15081_v47  ;;  %v386_v14 = vfloor.f32 %v305_v56  ;;  %v23205_v49 = vcvt.s32.f32 %v15084_v17 }
 0x17c   :  { %v2264_v60 = vadd.f32 %v2263_v19, %v2184_v34  ;;  %v2097_v3 = vadd.f32 %v2096_v27, %v15113_v18  ;;  %v2185_v24 = vmul.f32 %v15113_v18, %v15113_v18  ;;  %v15126_v35 = vadd.s32 360, %v13606_v29 }
 0x17d   :  { %v867_v19 = vmul.f32 18.0, %v786_v2  ;;  %v788_v55 = vfloor.f32 %v15107_v20  ;;  %v466_v58 = vmul.f32 324.0, %v385_v53  ;;  %v15134_v33 = vadd.s32 368, %v13606_v29 }
 0x17e   :  { %v2265_v56 = vadd.f32 %v2264_v60, %v2185_v24  ;;  %vm15136_vm4 = vcmp.lt.f32.partialorder %v785_v5, 16.0  ;;  %vm15140_vm5 = vcmp.lt.f32.partialorder %v947_v21, 16.0  ;;  %v387_v6 = vfloor.f32 %v306_v23  ;;  %v15159_v21 = vpop.f32.mrb[68].mxu0 }
 0x17f   :  { %v868_v11 = vmul.f32 18.0, %v787_v15  ;;  %v15144_v0 = vmul.f32 0.055555556, %v627_v7  ;;  %v467_v27 = vmul.f32 324.0, %v386_v14  ;;  %v226_v20 = vadd.f32 0.5, %v23205_v49  ;;  %23899 = vst [vmem:[#allocation56_spill] sm:$0xff] %v15159_v21  ;;  %vm1190_vm7 = vmand %vm15136_vm4, %vm15140_vm5 }
 0x180   :  { %v15149_v53 = vsel %vm1188_vm2, 1.0, %v15065_v8  ;;  %v15152_v5 = vsel %vm1189_vm3, 1.0, %v15065_v8  ;;  %vm15154_vm6 = vcmp.lt.f32.partialorder %v786_v2, 16.0  ;;  %v948_v7 = vsub.f32 %v14993_v36, %v867_v19 }
 0x181   :  { %23895 = vst [vmem:[#allocation54_spill] sm:$0xff] %v15149_v53  ;;  %23896 = vst [vmem:[#allocation55_spill] sm:$0xff] %v15152_v5  ;;  %v869_v14 = vmul.f32 18.0, %v788_v55  ;;  %v23900_v23 = vcvt.s32.f32 %v14969_v9  ;;  %v2098_v49 = vadd.f32 %v2097_v3, %v15159_v21  ;;  %v2186_v2 = vmul.f32 %v15159_v21, %v15159_v21  ;;  %v10363_v5 = vpop.f32.mrb[69].mxu0 }
 0x182   :  { %v468_v41 = vmul.f32 324.0, %v387_v6  ;;  %v15175_v36 = vadd.s32 376, %v13606_v29  ;;  %v15177_v9 = vpop.f32.mrb[70].mxu0  ;;  %v949_v19 = vsub.f32 %v15010_v43, %v868_v11  ;;  %v23902_v3 = vcvt.s32.f32 %v14984_v51 }
 0x183   :  { %v15164_v60 = vsub.f32 %v23900_v23, %v466_v58  ;;  %23901 = vst [vmem:[#allocation57_spill] sm:$0xff] %v15177_v9  ;;  %v789_v58 = vfloor.f32 %v15144_v0  ;;  %v307_v5 = vmul.f32 0.0030864198, %v226_v20  ;;  %v2266_v24 = vadd.f32 %v2265_v56, %v2186_v2  ;;  %v10364_v6 = vpop.f32.mrb[71].mxu0 }
 0x184   :  { %v15183_v23 = vsub.f32 %v23902_v3, %v467_v27  ;;  %v2099_v62 = vadd.f32 %v2098_v49, %v15177_v9  ;;  %v2187_v12 = vmul.f32 %v15177_v9, %v15177_v9  ;;  %v23903_v53 = vcvt.s32.f32 %v15126_v35 }
 0x185   :  { %v15191_v18 = vsel %vm1190_vm7, 1.0, %v15065_v8  ;;  %v950_v43 = vsub.f32 %v15034_v31, %v869_v14  ;;  %v628_v51 = vadd.f32 0.5, %v15164_v60  ;;  %v23905_v11 = vcvt.s32.f32 %v15134_v33 }
 0x186   :  { %v227_v21 = vadd.f32 0.5, %v23903_v53  ;;  %23904 = vst [vmem:[#allocation58_spill] sm:$0xff] %v15191_v18  ;;  %v2267_v56 = vadd.f32 %v2266_v24, %v2187_v12  ;;  %vm15197_vm8 = vcmp.lt.f32.partialorder %v948_v7, 16.0  ;;  %v23908_v27 = vcvt.s32.f32 %v15002_v63  ;;  %v15222_v24 = vpop.f32.mrb[72].mxu0 }
 0x187   :  { %v228_v0 = vadd.f32 0.5, %v23905_v11  ;;  %v23213_v53 = vcvt.s32.f32 %v15175_v36  ;;  %v870_v2 = vmul.f32 18.0, %v789_v58  ;;  %v629_v3 = vadd.f32 0.5, %v15183_v23  ;;  %23915 = vst [vmem:[#allocation59_spill] sm:$0xff] %v15222_v24  ;;  %vm1191_vm13 = vmand %vm15154_vm6, %vm15197_vm8 }
 0x188   :  { %v15203_v20 = vsub.f32 %v23908_v27, %v468_v41  ;;  %v388_v31 = vfloor.f32 %v307_v5  ;;  %v15208_v14 = vadd.s32 384, %v13606_v29  ;;  %vm15210_vm9 = vcmp.lt.f32.partialorder %v787_v15, 16.0  ;;  %v10367_v27 = vpop.f32.mrb[73].mxu0 }
 0x189   :  { %vm15214_vm10 = vcmp.lt.f32.partialorder %v949_v19, 16.0  ;;  %vm15218_vm11 = vcmp.lt.f32.partialorder %v788_v55, 16.0  ;;  %v308_v41 = vmul.f32 0.0030864198, %v227_v21  ;;  %vm15224_vm12 = vcmp.lt.f32.partialorder %v950_v43, 16.0  ;;  %v15240_v43 = vpop.f32.mrb[74].mxu0 }
 0x18a   :  { %v15228_v12 = vmul.f32 0.055555556, %v628_v51  ;;  %v309_v15 = vmul.f32 0.0030864198, %v228_v0  ;;  %v2100_v11 = vadd.f32 %v2099_v62, %v15222_v24  ;;  %v2188_v19 = vmul.f32 %v15222_v24, %v15222_v24  ;;  %23918 = vst [vmem:[#allocation60_spill] sm:$0xff] %v15240_v43  ;;  %vm1192_vm14 = vmand %vm15210_vm9, %vm15214_vm10 }
 0x18b   :  { %v630_v55 = vadd.f32 0.5, %v15203_v20  ;;  %v229_v21 = vadd.f32 0.5, %v23213_v53  ;;  %v951_v62 = vsub.f32 %v15081_v47, %v870_v2  ;;  %v710_v51 = vmul.f32 0.055555556, %v629_v3  ;;  %v10368_v53 = vpop.f32.mrb[75].mxu0  ;;  %vm1193_vm15 = vmand %vm15218_vm11, %vm15224_vm12 }
 0x18c   :  { %v469_v0 = vmul.f32 324.0, %v388_v31  ;;  %v23218_v49 = vcvt.s32.f32 %v15208_v14  ;;  %v2268_v34 = vadd.f32 %v2267_v56, %v2188_v19  ;;  %v2101_v27 = vadd.f32 %v2100_v11, %v15240_v43 }
 0x18d   :  { %v2189_v18 = vmul.f32 %v15240_v43, %v15240_v43  ;;  %v389_v24 = vfloor.f32 %v308_v41  ;;  %v15252_v9 = vsel %vm1191_vm13, 1.0, %v15065_v8  ;;  %v790_v47 = vfloor.f32 %v15228_v12  ;;  %v15292_v19 = vpop.f32.mrb[76].mxu0 }
 0x18e   :  { %23919 = vst [vmem:[#allocation61_spill] sm:$0xff] %v15252_v9  ;;  %v390_v2 = vfloor.f32 %v309_v15  ;;  %v15260_v56 = vadd.s32 392, %v13606_v29  ;;  %v15268_v53 = vsel %vm1192_vm14, 1.0, %v15065_v8  ;;  %v15270_v31 = vmul.f32 0.055555556, %v630_v55  ;;  %23927 = vst [vmem:[#allocation64_spill] sm:$0xff] %v15292_v19 }
 0x18f   :  { %v2269_v3 = vadd.f32 %v2268_v34, %v2189_v18  ;;  %23920 = vst [vmem:[#allocation62_spill] sm:$0xff] %v15268_v53  ;;  %v310_v41 = vmul.f32 0.0030864198, %v229_v21  ;;  %v791_v63 = vfloor.f32 %v710_v51  ;;  %v23921_v5 = vcvt.s32.f32 %v15084_v17 }
 0x190   :  { %v230_v15 = vadd.f32 0.5, %v23218_v49  ;;  %v15279_v18 = vadd.s32 400, %v13606_v29  ;;  %v15282_v6 = vsel %vm1193_vm15, 1.0, %v15065_v8  ;;  %vm15284_vm1 = vcmp.lt.f32.partialorder %v789_v58, 16.0 }
 0x191   :  { %v15274_v12 = vsub.f32 %v23921_v5, %v469_v0  ;;  %23922 = vst [vmem:[#allocation63_spill] sm:$0xff] %v15282_v6  ;;  %vm15288_vm2 = vcmp.lt.f32.partialorder %v951_v62, 16.0  ;;  %v470_v17 = vmul.f32 324.0, %v389_v24  ;;  %v871_v55 = vmul.f32 18.0, %v790_v47  ;;  %v10371_v5 = vpop.f32.mrb[77].mxu0 }
 0x192   :  { %v471_v21 = vmul.f32 324.0, %v390_v2  ;;  %v15296_v0 = vadd.s32 408, %v13606_v29  ;;  %v2102_v34 = vadd.f32 %v2101_v27, %v15292_v19  ;;  %v2190_v58 = vmul.f32 %v15292_v19, %v15292_v19  ;;  %v15302_v6 = vpop.f32.mrb[78].mxu0  ;;  %vm1194_vm3 = vmand %vm15284_vm1, %vm15288_vm2 }
 0x193   :  { %v391_v49 = vfloor.f32 %v310_v41  ;;  %23928 = vst [vmem:[#allocation65_spill] sm:$0xff] %v15302_v6  ;;  %v872_v24 = vmul.f32 18.0, %v791_v63  ;;  %v631_v2 = vadd.f32 0.5, %v15274_v12  ;;  %v311_v51 = vmul.f32 0.0030864198, %v230_v15  ;;  %v10372_v41 = vpop.f32.mrb[79].mxu0 }
 0x194   :  { %v2270_v53 = vadd.f32 %v2269_v3, %v2190_v58  ;;  %v2103_v9 = vadd.f32 %v2102_v34, %v15302_v6  ;;  %v2191_v5 = vmul.f32 %v15302_v6, %v15302_v6  ;;  %v23929_v62 = vcvt.s32.f32 %v15126_v35 }
 0x195   :  { %v952_v7 = vsub.f32 %v15164_v60, %v871_v55  ;;  %v23930_v11 = vcvt.s32.f32 %v15134_v33  ;;  %v23931_v15 = vcvt.s32.f32 %v15260_v56  ;;  %v23233_v3 = vcvt.s32.f32 %v15296_v0 }
 0x196   :  { %v15315_v19 = vsub.f32 %v23929_v62, %v470_v17  ;;  %v2271_v34 = vadd.f32 %v2270_v53, %v2191_v5  ;;  %v15326_v58 = vsel %vm1194_vm3, 1.0, %v15065_v8  ;;  %v23933_v41 = vfloor.f32 %v15270_v31 }
 0x197   :  { %v15320_v43 = vsub.f32 %v23930_v11, %v471_v21  ;;  %v231_v27 = vadd.f32 0.5, %v23931_v15  ;;  %23932 = vst [vmem:[#allocation66_spill] sm:$0xff] %v15326_v58  ;;  %v472_v17 = vmul.f32 324.0, %v391_v49  ;;  %vm15330_vm4 = vcmp.lt.f32.partialorder %v790_v47, 16.0  ;;  %v15347_v47 = vpop.f32.mrb[80].mxu0 }
 0x198   :  { %v873_v35 = vmul.f32 18.0, %v23933_v41  ;;  %v392_v33 = vfloor.f32 %v311_v51  ;;  %v23936_v60 = vcvt.s32.f32 %v15279_v18  ;;  %v15337_v21 = vadd.s32 416, %v13606_v29  ;;  %23939 = vst [vmem:[#allocation67_spill] sm:$0xff] %v15347_v47 }
 0x199   :  { %v953_v53 = vsub.f32 %v15183_v23, %v872_v24  ;;  %vm15340_vm5 = vcmp.lt.f32.partialorder %v791_v63, 16.0  ;;  %v15344_v11 = vmul.f32 0.055555556, %v631_v2  ;;  %v632_v49 = vadd.f32 0.5, %v15315_v19  ;;  %v10375_v2 = vpop.f32.mrb[81].mxu0 }
 0x19a   :  { %v232_v55 = vadd.f32 0.5, %v23936_v60  ;;  %vm15349_vm6 = vcmp.lt.f32.partialorder %v952_v7, 16.0  ;;  %v633_v15 = vadd.f32 0.5, %v15320_v43  ;;  %v312_v41 = vmul.f32 0.0030864198, %v231_v27  ;;  %v15364_v6 = vpop.f32.mrb[82].mxu0 }
 0x19b   :  { %v233_v23 = vadd.f32 0.5, %v23233_v3  ;;  %v2104_v63 = vadd.f32 %v2103_v9, %v15347_v47  ;;  %v2192_v24 = vmul.f32 %v15347_v47, %v15347_v47  ;;  %v954_v60 = vsub.f32 %v15203_v20, %v873_v35  ;;  %23943 = vst [vmem:[#allocation68_spill] sm:$0xff] %v15364_v6  ;;  %v10376_v20 = vpop.f32.mrb[83].mxu0  ;;  %vm1195_vm7 = vmand %vm15330_vm4, %vm15349_vm6 }
 0x19c   :  { %v23942_v58 = vcvt.s32.f32 %v15175_v36  ;;  %v473_v10 = vmul.f32 324.0, %v392_v33  ;;  %v313_v44 = vmul.f32 0.0030864198, %v232_v55  ;;  %v23236_v27 = vcvt.s32.f32 %v15337_v21 }
 0x19d   :  { %v15368_v3 = vadd.s32 424, %v13606_v29  ;;  %v2272_v9 = vadd.f32 %v2271_v34, %v2192_v24  ;;  %v2105_v28 = vadd.f32 %v2104_v63, %v15364_v6  ;;  %v2193_v2 = vmul.f32 %v15364_v6, %v15364_v6 }
 0x19e   :  { %v15362_v7 = vsub.f32 %v23942_v58, %v472_v17  ;;  %v713_v35 = vmul.f32 0.055555556, %v632_v49  ;;  %v793_v36 = vfloor.f32 %v15344_v11  ;;  %v15378_v58 = vmul.f32 0.055555556, %v633_v15 }
 0x19f   :  { %v393_v17 = vfloor.f32 %v312_v41  ;;  %v314_v33 = vmul.f32 0.0030864198, %v233_v23  ;;  %v2273_v55 = vadd.f32 %v2272_v9, %v2193_v2  ;;  %vm15380_vm8 = vcmp.lt.f32.partialorder %v953_v53, 16.0 }
 0x1a0   :  { %v634_v63 = vadd.f32 0.5, %v15362_v7  ;;  %v15386_v49 = vadd.s32 432, %v13606_v29  ;;  %v23946_v51 = vcvt.s32.f32 %v15208_v14  ;;  %v394_v24 = vfloor.f32 %v313_v44  ;;  %v15408_v44 = vpop.f32.mrb[84].mxu0  ;;  %vm1196_vm11 = vmand %vm15340_vm5, %vm15380_vm8 }
 0x1a1   :  { %v234_v11 = vadd.f32 0.5, %v23236_v27  ;;  %v15396_v53 = vsel %vm1195_vm7, 1.0, %v15065_v8  ;;  %v23948_v41 = vfloor.f32 %v15270_v31  ;;  %vm15404_vm10 = vcmp.lt.f32.partialorder %v954_v60, 16.0  ;;  %23953 = vst [vmem:[#allocation70_spill] sm:$0xff] %v15408_v44 }
 0x1a2   :  { %v15390_v62 = vsub.f32 %v23946_v51, %v473_v10  ;;  %23947 = vst [vmem:[#allocation69_spill] sm:$0xff] %v15396_v53  ;;  %v794_v10 = vfloor.f32 %v713_v35  ;;  %v874_v14 = vmul.f32 18.0, %v793_v36  ;;  %v474_v20 = vmul.f32 324.0, %v393_v17 }
 0x1a3   :  { %vm15400_vm9 = vcmp.lt.f32.partialorder %v23948_v41, 16.0  ;;  %v395_v51 = vfloor.f32 %v314_v33  ;;  %v2106_v27 = vadd.f32 %v2105_v28, %v15408_v44  ;;  %v2194_v31 = vmul.f32 %v15408_v44, %v15408_v44  ;;  %v10379_v41 = vpop.f32.mrb[85].mxu0 }
 0x1a4   :  { %v15414_v15 = vmul.f32 0.055555556, %v634_v63  ;;  %v15421_v35 = vpop.f32.mrb[86].mxu0  ;;  %v635_v17 = vadd.f32 0.5, %v15390_v62  ;;  %v475_v33 = vmul.f32 324.0, %v394_v24  ;;  %v23955_v28 = vcvt.s32.f32 %v15368_v3  ;;  %vm1197_vm12 = vmand %vm15400_vm9, %vm15404_vm10 }
 0x1a5   :  { %23954 = vst [vmem:[#allocation71_spill] sm:$0xff] %v15421_v35  ;;  %v315_v2 = vmul.f32 0.0030864198, %v234_v11  ;;  %v2274_v44 = vadd.f32 %v2273_v55, %v2194_v31  ;;  %v2107_v63 = vadd.f32 %v2106_v27, %v15421_v35  ;;  %v2195_v41 = vmul.f32 %v15421_v35, %v15421_v35  ;;  %v10380_v60 = vpop.f32.mrb[87].mxu0 }
 0x1a6   :  { %v235_v53 = vadd.f32 0.5, %v23955_v28  ;;  %v875_v6 = vmul.f32 18.0, %v794_v10  ;;  %v23956_v47 = vfloor.f32 %v15378_v58  ;;  %v23957_v11 = vcvt.s32.f32 %v15260_v56 }
 0x1a7   :  { %v476_v55 = vmul.f32 324.0, %v395_v51  ;;  %v15440_v27 = vadd.s32 440, %v13606_v29  ;;  %v15448_v9 = vsel %vm1196_vm11, 1.0, %v15065_v8  ;;  %v2275_v23 = vadd.f32 %v2274_v44, %v2195_v41  ;;  %v15472_v41 = vpop.f32.mrb[88].mxu0 }
 0x1a8   :  { %v876_v24 = vmul.f32 18.0, %v23956_v47  ;;  %v15437_v1 = vsub.f32 %v23957_v11, %v474_v20  ;;  %23958 = vst [vmem:[#allocation72_spill] sm:$0xff] %v15448_v9  ;;  %v796_v31 = vfloor.f32 %v15414_v15  ;;  %v23959_v47 = vcvt.s32.f32 %v15386_v49  ;;  %23966 = vst [vmem:[#allocation74_spill] sm:$0xff] %v15472_v41 }
 0x1a9   :  { %vm15453_vm13 = vcmp.lt.f32.partialorder %v793_v36, 16.0  ;;  %v15457_v51 = vmul.f32 0.055555556, %v635_v17  ;;  %v23962_v60 = vcvt.s32.f32 %v15279_v18  ;;  %v396_v34 = vfloor.f32 %v315_v2 }
 0x1aa   :  { %v236_v56 = vadd.f32 0.5, %v23959_v47  ;;  %v316_v28 = vmul.f32 0.0030864198, %v235_v53  ;;  %v15464_v11 = vsel %vm1197_vm12, 1.0, %v15065_v8  ;;  %v955_v15 = vsub.f32 %v15274_v12, %v874_v14 }
 0x1ab   :  { %v15461_v5 = vsub.f32 %v23962_v60, %v475_v33  ;;  %23963 = vst [vmem:[#allocation73_spill] sm:$0xff] %v15464_v11  ;;  %v956_v44 = vsub.f32 %v15315_v19, %v875_v6  ;;  %vm15468_vm14 = vcmp.lt.f32.partialorder %v794_v10, 16.0  ;;  %v957_v17 = vsub.f32 %v15320_v43, %v876_v24  ;;  %v10383_v19 = vpop.f32.mrb[89].mxu0 }
 0x1ac   :  { %v636_v18 = vadd.f32 0.5, %v15437_v1  ;;  %v23967_v2 = vcvt.s32.f32 %v15296_v0  ;;  %v2108_v12 = vadd.f32 %v2107_v63, %v15472_v41  ;;  %v2196_v6 = vmul.f32 %v15472_v41, %v15472_v41  ;;  %v15484_v47 = vpop.f32.mrb[90].mxu0 }
 0x1ad   :  { %v877_v10 = vmul.f32 18.0, %v796_v31  ;;  %v317_v14 = vmul.f32 0.0030864198, %v236_v56  ;;  %23968 = vst [vmem:[#allocation75_spill] sm:$0xff] %v15484_v47  ;;  %v797_v43 = vfloor.f32 %v15457_v51  ;;  %v637_v24 = vadd.f32 0.5, %v15461_v5  ;;  %v10384_v33 = vpop.f32.mrb[91].mxu0 }
 0x1ae   :  { %v15478_v53 = vsub.f32 %v23967_v2, %v476_v55  ;;  %v477_v60 = vmul.f32 324.0, %v396_v34  ;;  %v397_v0 = vfloor.f32 %v316_v28  ;;  %v2276_v55 = vadd.f32 %v2275_v23, %v2196_v6 }
 0x1af   :  { %v2109_v2 = vadd.f32 %v2108_v12, %v15484_v47  ;;  %v2197_v63 = vmul.f32 %v15484_v47, %v15484_v47  ;;  %v15492_v11 = vadd.s32 448, %v13606_v29  ;;  %vm15494_vm15 = vcmp.lt.f32.partialorder %v955_v15, 16.0 }
 0x1b0   :  { %v15498_v19 = vmul.f32 0.055555556, %v636_v18  ;;  %v638_v51 = vadd.f32 0.5, %v15478_v53  ;;  %v23971_v34 = vcvt.s32.f32 %v15440_v27  ;;  %vm15503_vm1 = vcmp.lt.f32.partialorder %v956_v44, 16.0  ;;  %vm1198_vm5 = vmand %vm15453_vm13, %vm15494_vm15 }
 0x1b1   :  { %v2277_v12 = vadd.f32 %v2276_v55, %v2197_v63  ;;  %v958_v33 = vsub.f32 %v15362_v7, %v877_v10  ;;  %v398_v6 = vfloor.f32 %v317_v14  ;;  %v878_v9 = vmul.f32 18.0, %v797_v43  ;;  %vm1199_vm7 = vmand %vm15468_vm14, %vm15503_vm1 }
 0x1b2   :  { %v237_v23 = vadd.f32 0.5, %v23971_v34  ;;  %v15508_v15 = vmul.f32 0.055555556, %v637_v24  ;;  %v23974_v47 = vcvt.s32.f32 %v15337_v21  ;;  %v478_v41 = vmul.f32 324.0, %v397_v0  ;;  %v15529_v21 = vpop.f32.mrb[92].mxu0 }
 0x1b3   :  { %v23975_v35 = vfloor.f32 %v15378_v58  ;;  %vm15520_vm3 = vcmp.lt.f32.partialorder %v957_v17, 16.0  ;;  %vm15524_vm4 = vcmp.lt.f32.partialorder %v796_v31, 16.0  ;;  %v23254_v10 = vcvt.s32.f32 %v15492_v11  ;;  %23982 = vst [vmem:[#allocation76_spill] sm:$0xff] %v15529_v21  ;;  %v10387_v24 = vpop.f32.mrb[93].mxu0 }
 0x1b4   :  { %v15512_v18 = vsub.f32 %v23974_v47, %v477_v60  ;;  %v798_v14 = vfloor.f32 %v15498_v19  ;;  %v15532_v47 = vmul.f32 0.055555556, %v638_v51  ;;  %v318_v58 = vmul.f32 0.0030864198, %v237_v23  ;;  %v15552_v55 = vpop.f32.mrb[94].mxu0 }
 0x1b5   :  { %vm15516_vm2 = vcmp.lt.f32.partialorder %v23975_v35, 16.0  ;;  %v15535_v35 = vadd.s32 456, %v13606_v29  ;;  %v2110_v31 = vadd.f32 %v2109_v2, %v15529_v21  ;;  %v2198_v17 = vmul.f32 %v15529_v21, %v15529_v21  ;;  %23985 = vst [vmem:[#allocation77_spill] sm:$0xff] %v15552_v55 }
 0x1b6   :  { %vm15544_vm6 = vcmp.lt.f32.partialorder %v958_v33, 16.0  ;;  %v479_v0 = vmul.f32 324.0, %v398_v6  ;;  %v959_v63 = vsub.f32 %v15390_v62, %v878_v9  ;;  %v799_v2 = vfloor.f32 %v15508_v15  ;;  %vm1200_vm8 = vmand %vm15516_vm2, %vm15520_vm3  ;;  %v10388_v62 = vpop.f32.mrb[95].mxu0 }
 0x1b7   :  { %v639_v19 = vadd.f32 0.5, %v15512_v18  ;;  %v23986_v51 = vcvt.s32.f32 %v15368_v3  ;;  %v2278_v33 = vadd.f32 %v2277_v12, %v2198_v17  ;;  %v2111_v6 = vadd.f32 %v2110_v31, %v15552_v55  ;;  %vm1201_vm9 = vmand %vm15524_vm4, %vm15544_vm6 }
 0x1b8   :  { %v2199_v24 = vmul.f32 %v15552_v55, %v15552_v55  ;;  %v238_v9 = vadd.f32 0.5, %v23254_v10  ;;  %v879_v3 = vmul.f32 18.0, %v798_v14  ;;  %v399_v15 = vfloor.f32 %v318_v58 }
 0x1b9   :  { %v15559_v23 = vsub.f32 %v23986_v51, %v478_v41  ;;  %v800_v41 = vfloor.f32 %v15532_v47  ;;  %v23255_v12 = vcvt.s32.f32 %v15535_v35  ;;  %v15582_v34 = vsel %vm1198_vm5, 1.0, %v15065_v8 }
 0x1ba   :  { %23987 = vst [vmem:[#allocation78_spill] sm:$0xff] %v15582_v34  ;;  %v15590_v44 = vsel %vm1199_vm7, 1.0, %v15065_v8  ;;  %v2279_v7 = vadd.f32 %v2278_v33, %v2199_v24  ;;  %v23989_v47 = vcvt.s32.f32 %v15386_v49  ;;  %v15597_v20 = vsel %vm1200_vm8, 1.0, %v15065_v8 }
 0x1bb   :  { %23988 = vst [vmem:[#allocation79_spill] sm:$0xff] %v15590_v44  ;;  %23990 = vst [vmem:[#allocation80_spill] sm:$0xff] %v15597_v20  ;;  %v880_v56 = vmul.f32 18.0, %v799_v2  ;;  %v15599_v31 = vmul.f32 0.055555556, %v639_v19  ;;  %v640_v17 = vadd.f32 0.5, %v15559_v23  ;;  %v960_v51 = vsub.f32 %v15437_v1, %v879_v3 }
 0x1bc   :  { %v15594_v58 = vsub.f32 %v23989_v47, %v479_v0  ;;  %v15603_v36 = vsel %vm1201_vm9, 1.0, %v15065_v8  ;;  %vm15605_vm10 = vcmp.lt.f32.partialorder %v797_v43, 16.0  ;;  %vm15609_vm11 = vcmp.lt.f32.partialorder %v959_v63, 16.0  ;;  %v15613_v0 = vpop.f32.mrb[96].mxu0 }
 0x1bd   :  { %23991 = vst [vmem:[#allocation81_spill] sm:$0xff] %v15603_v36  ;;  %v319_v49 = vmul.f32 0.0030864198, %v238_v9  ;;  %23996 = vst [vmem:[#allocation82_spill] sm:$0xff] %v15613_v0  ;;  %v881_v19 = vmul.f32 18.0, %v800_v41  ;;  %v480_v33 = vmul.f32 324.0, %v399_v15  ;;  %v2112_v62 = vadd.f32 %v2111_v6, %v15613_v0 }
 0x1be   :  { %v239_v24 = vadd.f32 0.5, %v23255_v12  ;;  %v2200_v43 = vmul.f32 %v15613_v0, %v15613_v0  ;;  %v10391_v47 = vpop.f32.mrb[97].mxu0  ;;  %v641_v63 = vadd.f32 0.5, %v15594_v58  ;;  %v15623_v10 = vadd.s32 464, %v13606_v29  ;;  %vm1202_vm12 = vmand %vm15605_vm10, %vm15609_vm11 }
 0x1bf   :  { %v15625_v9 = vpop.f32.mrb[98].mxu0  ;;  %v961_v1 = vsub.f32 %v15461_v5, %v880_v56  ;;  %v801_v3 = vfloor.f32 %v15599_v31  ;;  %v15629_v15 = vmul.f32 0.055555556, %v640_v17  ;;  %v15632_v12 = vadd.s32 472, %v13606_v29 }
 0x1c0   :  { %23997 = vst [vmem:[#allocation83_spill] sm:$0xff] %v15625_v9  ;;  %v2280_v6 = vadd.f32 %v2279_v7, %v2200_v43  ;;  %v2113_v36 = vadd.f32 %v2112_v62, %v15625_v9  ;;  %v2201_v47 = vmul.f32 %v15625_v9, %v15625_v9  ;;  %v10392_v20 = vpop.f32.mrb[99].mxu0  ;;  %v400_v44 = vfloor.f32 %v319_v49 }
 0x1c1   :  { %vm15641_vm13 = vcmp.lt.f32.partialorder %v798_v14, 16.0  ;;  %v962_v56 = vsub.f32 %v15478_v53, %v881_v19  ;;  %v24000_v7 = vcvt.s32.f32 %v15440_v27  ;;  %v320_v17 = vmul.f32 0.0030864198, %v239_v24  ;;  %v15673_v24 = vpop.f32.mrb[100].mxu0 }
 0x1c2   :  { %vm15650_vm14 = vcmp.lt.f32.partialorder %v960_v51, 16.0  ;;  %v2281_v20 = vadd.f32 %v2280_v6, %v2201_v47  ;;  %v15654_v60 = vmul.f32 0.055555556, %v641_v63  ;;  %v23261_v28 = vcvt.s32.f32 %v15623_v10  ;;  %24008 = vst [vmem:[#allocation85_spill] sm:$0xff] %v15673_v24 }
 0x1c3   :  { %v15648_v31 = vsub.f32 %v24000_v7, %v480_v33  ;;  %v882_v14 = vmul.f32 18.0, %v801_v3  ;;  %v23271_v49 = vfloor.f32 %v15629_v15  ;;  %v15660_v53 = vadd.s32 480, %v13606_v29  ;;  %vm1203_vm4 = vmand %vm15641_vm13, %vm15650_vm14 }
 0x1c4   :  { %v15663_v27 = vsel %vm1202_vm12, 1.0, %v15065_v8  ;;  %vm15665_vm15 = vcmp.lt.f32.partialorder %v799_v2, 16.0  ;;  %vm15669_vm1 = vcmp.lt.f32.partialorder %v961_v1, 16.0  ;;  %v481_v33 = vmul.f32 324.0, %v400_v44  ;;  %v10395_v1 = vpop.f32.mrb[101].mxu0 }
 0x1c5   :  { %24003 = vst [vmem:[#allocation84_spill] sm:$0xff] %v15663_v27  ;;  %vm15675_vm2 = vcmp.lt.f32.partialorder %v800_v41, 16.0  ;;  %vm15679_vm3 = vcmp.lt.f32.partialorder %v962_v56, 16.0  ;;  %v642_v2 = vadd.f32 0.5, %v15648_v31  ;;  %v401_v47 = vfloor.f32 %v320_v17  ;;  %vm1204_vm5 = vmand %vm15665_vm15, %vm15669_vm1  ;;  %v15698_v17 = vpop.f32.mrb[102].mxu0 }
 0x1c6   :  { %v2114_v44 = vadd.f32 %v2113_v36, %v15673_v24  ;;  %v2202_v41 = vmul.f32 %v15673_v24, %v15673_v24  ;;  %v803_v7 = vfloor.f32 %v15654_v60  ;;  %v240_v56 = vadd.f32 0.5, %v23261_v28  ;;  %24013 = vst [vmem:[#allocation86_spill] sm:$0xff] %v15698_v17  ;;  %v10396_v9 = vpop.f32.mrb[103].mxu0  ;;  %vm1205_vm6 = vmand %vm15675_vm2, %vm15679_vm3 }
 0x1c7   :  { %v963_v43 = vsub.f32 %v15512_v18, %v882_v14  ;;  %v883_v36 = vmul.f32 18.0, %v23271_v49  ;;  %v24014_v27 = vcvt.s32.f32 %v15632_v12  ;;  %v23270_v60 = vcvt.s32.f32 %v15660_v53 }
 0x1c8   :  { %v2282_v34 = vadd.f32 %v2281_v20, %v2202_v41  ;;  %v2115_v28 = vadd.f32 %v2114_v44, %v15698_v17  ;;  %v2203_v24 = vmul.f32 %v15698_v17, %v15698_v17  ;;  %v24015_v0 = vcvt.s32.f32 %v15492_v11 }
 0x1c9   :  { %v241_v1 = vadd.f32 0.5, %v24014_v27  ;;  %v15719_v18 = vsel %vm1203_vm4, 1.0, %v15065_v8  ;;  %v723_v20 = vmul.f32 0.055555556, %v642_v2  ;;  %v482_v14 = vmul.f32 324.0, %v401_v47  ;;  %v15757_v47 = vpop.f32.mrb[104].mxu0 }
 0x1ca   :  { %v15711_v55 = vsub.f32 %v24015_v0, %v481_v33  ;;  %24016 = vst [vmem:[#allocation87_spill] sm:$0xff] %v15719_v18  ;;  %v15726_v9 = vadd.s32 488, %v13606_v29  ;;  %v15734_v11 = vsel %vm1204_vm5, 1.0, %v15065_v8  ;;  %v2283_v0 = vadd.f32 %v2282_v34, %v2203_v24  ;;  %24023 = vst [vmem:[#allocation90_spill] sm:$0xff] %v15757_v47 }
 0x1cb   :  { %24017 = vst [vmem:[#allocation88_spill] sm:$0xff] %v15734_v11  ;;  %v884_v5 = vmul.f32 18.0, %v803_v7  ;;  %v321_v62 = vmul.f32 0.0030864198, %v240_v56  ;;  %v322_v27 = vmul.f32 0.0030864198, %v241_v1  ;;  %v964_v24 = vsub.f32 %v15559_v23, %v883_v36 }
 0x1cc   :  { %v242_v33 = vadd.f32 0.5, %v23270_v60  ;;  %v15739_v63 = vadd.s32 496, %v13606_v29  ;;  %v15742_v6 = vadd.s32 504, %v13606_v29  ;;  %v15745_v51 = vsel %vm1205_vm6, 1.0, %v15065_v8  ;;  %v10399_v23 = vpop.f32.mrb[105].mxu0 }
 0x1cd   :  { %24018 = vst [vmem:[#allocation89_spill] sm:$0xff] %v15745_v51  ;;  %vm15747_vm7 = vcmp.lt.f32.partialorder %v801_v3, 16.0  ;;  %vm15751_vm8 = vcmp.lt.f32.partialorder %v963_v43, 16.0  ;;  %v643_v2 = vadd.f32 0.5, %v15711_v55  ;;  %v804_v44 = vfloor.f32 %v723_v20  ;;  %v15771_v51 = vpop.f32.mrb[106].mxu0 }
 0x1ce   :  { %v24024_v41 = vcvt.s32.f32 %v15535_v35  ;;  %v15765_v1 = vadd.s32 512, %v13606_v29  ;;  %v2116_v43 = vadd.f32 %v2115_v28, %v15757_v47  ;;  %v2204_v60 = vmul.f32 %v15757_v47, %v15757_v47  ;;  %24025 = vst [vmem:[#allocation91_spill] sm:$0xff] %v15771_v51  ;;  %v10400_v18 = vpop.f32.mrb[107].mxu0  ;;  %vm1206_vm14 = vmand %vm15747_vm7, %vm15751_vm8 }
 0x1cf   :  { %v965_v36 = vsub.f32 %v15594_v58, %v884_v5  ;;  %v402_v49 = vfloor.f32 %v321_v62  ;;  %v403_v20 = vfloor.f32 %v322_v27  ;;  %v323_v35 = vmul.f32 0.0030864198, %v242_v33 }
 0x1d0   :  { %v15761_v56 = vsub.f32 %v24024_v41, %v482_v14  ;;  %v23279_v14 = vcvt.s32.f32 %v15739_v63  ;;  %v2284_v3 = vadd.f32 %v2283_v0, %v2204_v60  ;;  %v2117_v11 = vadd.f32 %v2116_v43, %v15771_v51 }
 0x1d1   :  { %v2205_v28 = vmul.f32 %v15771_v51, %v15771_v51  ;;  %v15778_v47 = vmul.f32 0.055555556, %v643_v2  ;;  %v885_v23 = vmul.f32 18.0, %v804_v44  ;;  %v24026_v5 = vcvt.s32.f32 %v15726_v9 }
 0x1d2   :  { %v644_v58 = vadd.f32 0.5, %v15761_v56  ;;  %v24027_v33 = vfloor.f32 %v15629_v15  ;;  %vm15790_vm10 = vcmp.lt.f32.partialorder %v803_v7, 16.0  ;;  %v483_v18 = vmul.f32 324.0, %v402_v49 }
 0x1d3   :  { %v243_v62 = vadd.f32 0.5, %v24026_v5  ;;  %v2285_v0 = vadd.f32 %v2284_v3, %v2205_v28  ;;  %v484_v2 = vmul.f32 324.0, %v403_v20  ;;  %v404_v41 = vfloor.f32 %v323_v35  ;;  %v15811_v3 = vpop.f32.mrb[108].mxu0 }
 0x1d4   :  { %vm15786_vm9 = vcmp.lt.f32.partialorder %v24027_v33, 16.0  ;;  %v244_v51 = vadd.f32 0.5, %v23279_v14  ;;  %v24032_v5 = vcvt.s32.f32 %v15742_v6  ;;  %vm15798_vm11 = vcmp.lt.f32.partialorder %v964_v24, 16.0  ;;  %24039 = vst [vmem:[#allocation92_spill] sm:$0xff] %v15811_v3  ;;  %v10403_v14 = vpop.f32.mrb[109].mxu0 }
 0x1d5   :  { %vm15802_vm12 = vcmp.lt.f32.partialorder %v965_v36, 16.0  ;;  %vm15806_vm13 = vcmp.lt.f32.partialorder %v804_v44, 16.0  ;;  %v966_v20 = vsub.f32 %v15648_v31, %v885_v23  ;;  %v15814_v35 = vmul.f32 0.055555556, %v644_v58  ;;  %v15832_v31 = vpop.f32.mrb[110].mxu0  ;;  %vm1207_vm15 = vmand %vm15786_vm9, %vm15798_vm11 }
 0x1d6   :  { %v245_v27 = vadd.f32 0.5, %v24032_v5  ;;  %v324_v24 = vmul.f32 0.0030864198, %v243_v62  ;;  %v24040_v28 = vcvt.s32.f32 %v15765_v1  ;;  %v2118_v36 = vadd.f32 %v2117_v11, %v15811_v3  ;;  %24042 = vst [vmem:[#allocation93_spill] sm:$0xff] %v15832_v31  ;;  %vm1208_vm1 = vmand %vm15790_vm10, %vm15802_vm12 }
 0x1d7   :  { %v2206_v44 = vmul.f32 %v15811_v3, %v15811_v3  ;;  %v24041_v17 = vcvt.s32.f32 %v15623_v10  ;;  %v15826_v49 = vadd.s32 520, %v13606_v29  ;;  %v24043_v11 = vcvt.s32.f32 %v15632_v12 }
 0x1d8   :  { %v246_v5 = vadd.f32 0.5, %v24040_v28  ;;  %v485_v58 = vmul.f32 324.0, %v404_v41  ;;  %v325_v14 = vmul.f32 0.0030864198, %v244_v51  ;;  %v326_v62 = vmul.f32 0.0030864198, %v245_v27 }
 0x1d9   :  { %v15823_v21 = vsub.f32 %v24041_v17, %v483_v18  ;;  %v15836_v23 = vsub.f32 %v24043_v11, %v484_v2  ;;  %v2286_v10 = vadd.f32 %v2285_v0, %v2206_v44  ;;  %v2119_v17 = vadd.f32 %v2118_v36, %v15832_v31  ;;  %v10404_v28 = vpop.f32.mrb[111].mxu0 }
 0x1da   :  { %v2207_v18 = vmul.f32 %v15832_v31, %v15832_v31  ;;  %v24044_v3 = vfloor.f32 %v15778_v47  ;;  %v806_v51 = vfloor.f32 %v15814_v35  ;;  %v405_v41 = vfloor.f32 %v324_v24 }
 0x1db   :  { %v327_v27 = vmul.f32 0.0030864198, %v246_v5  ;;  %v15853_v0 = vadd.s32 528, %v13606_v29  ;;  %vm15855_vm2 = vcmp.lt.f32.partialorder %v966_v20, 16.0  ;;  %v645_v44 = vadd.f32 0.5, %v15823_v21 }
 0x1dc   :  { %v886_v12 = vmul.f32 18.0, %v24044_v3  ;;  %v2287_v36 = vadd.f32 %v2286_v10, %v2207_v18  ;;  %v23288_v3 = vcvt.s32.f32 %v15826_v49  ;;  %v646_v33 = vadd.f32 0.5, %v15836_v23  ;;  %vm1209_vm3 = vmand %vm15806_vm13, %vm15855_vm2 }
 0x1dd   :  { %v24047_v43 = vcvt.s32.f32 %v15660_v53  ;;  %v406_v35 = vfloor.f32 %v325_v14  ;;  %v407_v24 = vfloor.f32 %v326_v62  ;;  %v15872_v20 = vsel %vm1206_vm14, 1.0, %v15065_v8  ;;  %v15886_v14 = vpop.f32.mrb[112].mxu0 }
 0x1de   :  { %24048 = vst [vmem:[#allocation94_spill] sm:$0xff] %v15872_v20  ;;  %v15880_v5 = vsel %vm1207_vm15, 1.0, %v15065_v8  ;;  %v15883_v53 = vsel %vm1208_vm1, 1.0, %v15065_v8  ;;  %24051 = vst [vmem:[#allocation97_spill] sm:$0xff] %v15886_v14  ;;  %v15888_v19 = vmul.f32 18.0, %v806_v51  ;;  %v486_v34 = vmul.f32 324.0, %v405_v41 }
 0x1df   :  { %v15864_v11 = vsub.f32 %v24047_v43, %v485_v58  ;;  %24049 = vst [vmem:[#allocation95_spill] sm:$0xff] %v15880_v5  ;;  %24050 = vst [vmem:[#allocation96_spill] sm:$0xff] %v15883_v53  ;;  %v967_v58 = vsub.f32 %v15711_v55, %v886_v12  ;;  %v408_v62 = vfloor.f32 %v327_v27  ;;  %v2120_v60 = vadd.f32 %v2119_v17, %v15886_v14  ;;  %v10407_v18 = vpop.f32.mrb[113].mxu0 }
 0x1e0   :  { %v2208_v15 = vmul.f32 %v15886_v14, %v15886_v14  ;;  %v15898_v55 = vmul.f32 0.055555556, %v645_v44  ;;  %v247_v28 = vadd.f32 0.5, %v23288_v3  ;;  %v15902_v12 = vpop.f32.mrb[114].mxu0  ;;  %v15904_v41 = vmul.f32 0.055555556, %v646_v33 }
 0x1e1   :  { %24052 = vst [vmem:[#allocation98_spill] sm:$0xff] %v15902_v12  ;;  %v647_v27 = vadd.f32 0.5, %v15864_v11  ;;  %v487_v43 = vmul.f32 324.0, %v406_v35  ;;  %v488_v10 = vmul.f32 324.0, %v407_v24  ;;  %v2121_v17 = vadd.f32 %v2120_v60, %v15902_v12  ;;  %v10408_v18 = vpop.f32.mrb[115].mxu0  ;;  %v15989_v14 = vld [vmem:[#allocation2] sm:$0xff] }
 0x1e2   :  { %v2288_v53 = vadd.f32 %v2287_v36, %v2208_v15  ;;  %v2209_v5 = vmul.f32 %v15902_v12, %v15902_v12  ;;  %v15911_v44 = vadd.s32 536, %v13606_v29  ;;  %v15919_v33 = vsel %vm1209_vm3, 1.0, %v15065_v8 }
 0x1e3   :  { %24053 = vst [vmem:[#allocation99_spill] sm:$0xff] %v15919_v33  ;;  %v24054_v35 = vcvt.s32.f32 %v15726_v9  ;;  %v489_v24 = vmul.f32 324.0, %v408_v62  ;;  %v24055_v60 = vcvt.s32.f32 %v15853_v0  ;;  %v24056_v18 = vfloor.f32 %v15778_v47 }
 0x1e4   :  { %v2289_v7 = vadd.f32 %v2288_v53, %v2209_v5  ;;  %v807_v2 = vfloor.f32 %v15898_v55  ;;  %v328_v20 = vmul.f32 0.0030864198, %v247_v28  ;;  %v23293_v8 = vfloor.f32 %v15904_v41 }
 0x1e5   :  { %v15923_v36 = vsub.f32 %v24054_v35, %v486_v34  ;;  %v248_v15 = vadd.f32 0.5, %v24055_v60  ;;  %vm15929_vm4 = vcmp.lt.f32.partialorder %v24056_v18, 16.0  ;;  %v15935_v33 = vmul.f32 0.055555556, %v647_v27 }
 0x1e6   :  { %v24059_v9 = vcvt.s32.f32 %v15739_v63  ;;  %v24060_v62 = vcvt.s32.f32 %v15742_v6  ;;  %vm15945_vm5 = vcmp.lt.f32.partialorder %v967_v58, 16.0  ;;  %v968_v5 = vsub.f32 %v15761_v56, %v15888_v19  ;;  %v15956_v63 = vpop.f32.mrb[116].mxu0 }
 0x1e7   :  { %vm15951_vm6 = vcmp.lt.f32.partialorder %v806_v51, 16.0  ;;  %v23298_v55 = vcvt.s32.f32 %v15911_v44  ;;  %24065 = vst [vmem:[#allocation100_spill] sm:$0xff] %v15956_v63  ;;  %v648_v28 = vadd.f32 0.5, %v15923_v36  ;;  %v24066_v6 = vcvt.s32.f32 %v15765_v1  ;;  %v10411_v19 = vpop.f32.mrb[117].mxu0  ;;  %vm1210_vm7 = vmand %vm15929_vm4, %vm15945_vm5 }
 0x1e8   :  { %v15939_v34 = vsub.f32 %v24059_v9, %v487_v43  ;;  %v15943_v35 = vsub.f32 %v24060_v62, %v488_v10  ;;  %v329_v58 = vmul.f32 0.0030864198, %v248_v15  ;;  %v15964_v27 = vadd.s32 544, %v13606_v29 }
 0x1e9   :  { %v15961_v10 = vsub.f32 %v24066_v6, %v489_v24  ;;  %v888_v43 = vmul.f32 18.0, %v807_v2  ;;  %v2122_v56 = vadd.f32 %v2121_v17, %v15956_v63  ;;  %v2210_v51 = vmul.f32 %v15956_v63, %v15956_v63  ;;  %v15975_v24 = vpop.f32.mrb[118].mxu0 }
 0x1ea   :  { %v409_v60 = vfloor.f32 %v328_v20  ;;  %v889_v1 = vmul.f32 18.0, %v23293_v8  ;;  %24067 = vst [vmem:[#allocation101_spill] sm:$0xff] %v15975_v24  ;;  %v809_v15 = vfloor.f32 %v15935_v33  ;;  %v649_v18 = vadd.f32 0.5, %v15939_v34  ;;  %v10412_v6 = vpop.f32.mrb[119].mxu0 }
 0x1eb   :  { %v650_v17 = vadd.f32 0.5, %v15943_v35  ;;  %v2290_v9 = vadd.f32 %v2289_v7, %v2210_v51  ;;  %v2123_v62 = vadd.f32 %v2122_v56, %v15975_v24  ;;  %v2211_v20 = vmul.f32 %v15975_v24, %v15975_v24 }
 0x1ec   :  { %v249_v19 = vadd.f32 0.5, %v23298_v55  ;;  %v15985_v63 = vmul.f32 0.055555556, %v648_v28  ;;  %v651_v8 = vadd.f32 0.5, %v15961_v10  ;;  %v410_v12 = vfloor.f32 %v329_v58 }
 0x1ed   :  { %v15997_v7 = vsel %vm1210_vm7, 1.0, %v15989_v14  ;;  %v969_v56 = vsub.f32 %v15823_v21, %v888_v43  ;;  %v2291_v51 = vadd.f32 %v2290_v9, %v2211_v20  ;;  %v490_v28 = vmul.f32 324.0, %v409_v60  ;;  %v16016_v43 = vpop.f32.mrb[120].mxu0 }
 0x1ee   :  { %24068 = vst [vmem:[#allocation102_spill] sm:$0xff] %v15997_v7  ;;  %v890_v6 = vmul.f32 18.0, %v809_v15  ;;  %v16000_v55 = vmul.f32 0.055555556, %v649_v18  ;;  %v16002_v58 = vmul.f32 0.055555556, %v650_v17  ;;  %v970_v21 = vsub.f32 %v15836_v23, %v889_v1 }
 0x1ef   :  { %v16005_v33 = vadd.s32 552, %v13606_v29  ;;  %vm16007_vm8 = vcmp.lt.f32.partialorder %v968_v5, 16.0  ;;  %vm16011_vm9 = vcmp.lt.f32.partialorder %v807_v2, 16.0  ;;  %v330_v47 = vmul.f32 0.0030864198, %v249_v19  ;;  %24073 = vst [vmem:[#allocation103_spill] sm:$0xff] %v16016_v43 }
 0x1f0   :  { %v810_v60 = vfloor.f32 %v15985_v63  ;;  %v16019_v18 = vmul.f32 0.055555556, %v651_v8  ;;  %v491_v17 = vmul.f32 324.0, %v410_v12  ;;  %v24074_v9 = vcvt.s32.f32 %v15964_v27  ;;  %v10415_v1 = vpop.f32.mrb[121].mxu0  ;;  %vm1211_vm11 = vmand %vm15951_vm6, %vm16007_vm8 }
 0x1f1   :  { %vm16023_vm10 = vcmp.lt.f32.partialorder %v969_v56, 16.0  ;;  %v2124_v2 = vadd.f32 %v2123_v62, %v16016_v43  ;;  %v2212_v23 = vmul.f32 %v16016_v43, %v16016_v43  ;;  %v24077_v19 = vcvt.s32.f32 %v15826_v49  ;;  %v16039_v8 = vpop.f32.mrb[122].mxu0 }
 0x1f2   :  { %v250_v5 = vadd.f32 0.5, %v24074_v9  ;;  %v971_v12 = vsub.f32 %v15864_v11, %v890_v6  ;;  %24078 = vst [vmem:[#allocation104_spill] sm:$0xff] %v16039_v8  ;;  %v811_v63 = vfloor.f32 %v16000_v55  ;;  %v812_v62 = vfloor.f32 %v16002_v58  ;;  %v10416_v1 = vpop.f32.mrb[123].mxu0  ;;  %vm1212_vm12 = vmand %vm16011_vm9, %vm16023_vm10 }
 0x1f3   :  { %v16032_v7 = vsub.f32 %v24077_v19, %v490_v28  ;;  %v23302_v56 = vcvt.s32.f32 %v16005_v33  ;;  %v2292_v9 = vadd.f32 %v2291_v51, %v2212_v23  ;;  %v2125_v49 = vadd.f32 %v2124_v2, %v16039_v8 }
 0x1f4   :  { %v2213_v28 = vmul.f32 %v16039_v8, %v16039_v8  ;;  %v411_v19 = vfloor.f32 %v330_v47  ;;  %v891_v11 = vmul.f32 18.0, %v810_v60  ;;  %v813_v55 = vfloor.f32 %v16019_v18 }
 0x1f5   :  { %v24079_v6 = vcvt.s32.f32 %v15853_v0  ;;  %v331_v51 = vmul.f32 0.0030864198, %v250_v5  ;;  %v16062_v47 = vsel %vm1211_vm11, 1.0, %v15989_v14  ;;  %v24081_v20 = vfloor.f32 %v15904_v41 }
 0x1f6   :  { %24080 = vst [vmem:[#allocation105_spill] sm:$0xff] %v16062_v47  ;;  %v2293_v18 = vadd.f32 %v2292_v9, %v2213_v28  ;;  %v652_v0 = vadd.f32 0.5, %v16032_v7  ;;  %vm16071_vm14 = vcmp.lt.f32.partialorder %v970_v21, 16.0  ;;  %v892_v5 = vmul.f32 18.0, %v811_v63  ;;  %v16089_v28 = vpop.f32.mrb[124].mxu0 }
 0x1f7   :  { %v16054_v58 = vsub.f32 %v24079_v6, %v491_v17  ;;  %vm16066_vm13 = vcmp.lt.f32.partialorder %v24081_v20, 16.0  ;;  %v893_v53 = vmul.f32 18.0, %v812_v62  ;;  %v251_v24 = vadd.f32 0.5, %v23302_v56  ;;  %24091 = vst [vmem:[#allocation107_spill] sm:$0xff] %v16089_v28 }
 0x1f8   :  { %v16078_v2 = vsel %vm1212_vm12, 1.0, %v15989_v14  ;;  %vm16080_vm15 = vcmp.lt.f32.partialorder %v809_v15, 16.0  ;;  %vm16084_vm1 = vcmp.lt.f32.partialorder %v971_v12, 16.0  ;;  %v492_v21 = vmul.f32 324.0, %v411_v19  ;;  %vm1213_vm2 = vmand %vm16066_vm13, %vm16071_vm14 }
 0x1f9   :  { %24086 = vst [vmem:[#allocation106_spill] sm:$0xff] %v16078_v2  ;;  %v972_v9 = vsub.f32 %v15923_v36, %v891_v11  ;;  %v894_v1 = vmul.f32 18.0, %v813_v55  ;;  %v653_v6 = vadd.f32 0.5, %v16054_v58  ;;  %v412_v20 = vfloor.f32 %v331_v51  ;;  %v10419_v2 = vpop.f32.mrb[125].mxu0  ;;  %vm1214_vm4 = vmand %vm16080_vm15, %vm16084_vm1 }
 0x1fa   :  { %v2126_v56 = vadd.f32 %v2125_v49, %v16089_v28  ;;  %v2214_v15 = vmul.f32 %v16089_v28, %v16089_v28  ;;  %v16095_v47 = vmul.f32 0.055555556, %v652_v0  ;;  %v16098_v12 = vadd.s32 560, %v13606_v29  ;;  %v16110_v11 = vpop.f32.mrb[126].mxu0 }
 0x1fb   :  { %vm16104_vm3 = vcmp.lt.f32.partialorder %v810_v60, 16.0  ;;  %v973_v49 = vsub.f32 %v15939_v34, %v892_v5  ;;  %v974_v19 = vsub.f32 %v15943_v35, %v893_v53  ;;  %24094 = vst [vmem:[#allocation108_spill] sm:$0xff] %v16110_v11  ;;  %v332_v51 = vmul.f32 0.0030864198, %v251_v24  ;;  %v10420_v28 = vpop.f32.mrb[127].mxu0 }
 0x1fc   :  { %v2294_v0 = vadd.f32 %v2293_v18, %v2214_v15  ;;  %v2127_v2 = vadd.f32 %v2126_v56, %v16110_v11  ;;  %v2215_v60 = vmul.f32 %v16110_v11, %v16110_v11  ;;  %v24095_v8 = vcvt.s32.f32 %v15911_v44 }
 0x1fd   :  { %vm16123_vm5 = vcmp.lt.f32.partialorder %v972_v9, 16.0  ;;  %v975_v5 = vsub.f32 %v15961_v10, %v894_v1  ;;  %v734_v53 = vmul.f32 0.055555556, %v653_v6  ;;  %v493_v24 = vmul.f32 324.0, %v412_v20  ;;  %v16173_v1 = vpop.f32.mrb[128].mxu0 }
 0x1fe   :  { %v16121_v34 = vsub.f32 %v24095_v8, %v492_v21  ;;  %v16134_v56 = vsel %vm1213_vm2, 1.0, %v15989_v14  ;;  %v2295_v18 = vadd.f32 %v2294_v0, %v2215_v60  ;;  %v814_v44 = vfloor.f32 %v16095_v47  ;;  %vm1215_vm7 = vmand %vm16104_vm3, %vm16123_vm5  ;;  %24112 = vst [vmem:[#allocation111_spill] sm:$0xff] %v16173_v1 }
 0x1ff   :  { %24098 = vst [vmem:[#allocation109_spill] sm:$0xff] %v16134_v56  ;;  %v23309_v8 = vcvt.s32.f32 %v16098_v12  ;;  %v16139_v41 = vsel %vm1214_vm4, 1.0, %v15989_v14  ;;  %vm16141_vm6 = vcmp.lt.f32.partialorder %v811_v63, 16.0  ;;  %v413_v23 = vfloor.f32 %v332_v51 }
 0x200   :  { %24099 = vst [vmem:[#allocation110_spill] sm:$0xff] %v16139_v41  ;;  %v16146_v3 = vadd.s32 568, %v13606_v29  ;;  %vm16152_vm8 = vcmp.lt.f32.partialorder %v973_v49, 16.0  ;;  %vm16156_vm9 = vcmp.lt.f32.partialorder %v812_v62, 16.0  ;;  %vm16160_vm10 = vcmp.lt.f32.partialorder %v974_v19, 16.0 }
 0x201   :  { %v654_v21 = vadd.f32 0.5, %v16121_v34  ;;  %vm16165_vm11 = vcmp.lt.f32.partialorder %v813_v55, 16.0  ;;  %vm16169_vm12 = vcmp.lt.f32.partialorder %v975_v5, 16.0  ;;  %v815_v62 = vfloor.f32 %v734_v53  ;;  %v10423_v55 = vpop.f32.mrb[129].mxu0  ;;  %vm1216_vm13 = vmand %vm16141_vm6, %vm16152_vm8 }
 0x202   :  { %v24113_v6 = vcvt.s32.f32 %v15964_v27  ;;  %v2128_v15 = vadd.f32 %v2127_v2, %v16173_v1  ;;  %v2216_v36 = vmul.f32 %v16173_v1, %v16173_v1  ;;  %v895_v49 = vmul.f32 18.0, %v814_v44  ;;  %v16191_v27 = vpop.f32.mrb[130].mxu0  ;;  %vm1217_vm14 = vmand %vm16156_vm9, %vm16160_vm10 }
 0x203   :  { %v252_v19 = vadd.f32 0.5, %v23309_v8  ;;  %v16185_v51 = vsel %vm1215_vm7, 1.0, %v15989_v14  ;;  %24115 = vst [vmem:[#allocation113_spill] sm:$0xff] %v16191_v27  ;;  %v494_v0 = vmul.f32 324.0, %v413_v23  ;;  %v23312_v2 = vcvt.s32.f32 %v16146_v3  ;;  %vm1218_vm15 = vmand %vm16165_vm11, %vm16169_vm12 }
 0x204   :  { %v16177_v20 = vsub.f32 %v24113_v6, %v493_v24  ;;  %24114 = vst [vmem:[#allocation112_spill] sm:$0xff] %v16185_v51  ;;  %v16195_v60 = vadd.s32 576, %v13606_v29  ;;  %v2296_v35 = vadd.f32 %v2295_v18, %v2216_v36  ;;  %v2129_v5 = vadd.f32 %v2128_v15, %v16191_v27  ;;  %v10424_v24 = vpop.f32.mrb[131].mxu0 }
 0x205   :  { %v2217_v53 = vmul.f32 %v16191_v27, %v16191_v27  ;;  %v16204_v6 = vmul.f32 0.055555556, %v654_v21  ;;  %v896_v23 = vmul.f32 18.0, %v815_v62  ;;  %v16212_v8 = vadd.s32 584, %v13606_v29 }
 0x206   :  { %v655_v55 = vadd.f32 0.5, %v16177_v20  ;;  %v16215_v18 = vadd.s32 592, %v13606_v29  ;;  %v16223_v21 = vsel %vm1216_vm13, 1.0, %v15989_v14  ;;  %v976_v9 = vsub.f32 %v16032_v7, %v895_v49 }
 0x207   :  { %24116 = vst [vmem:[#allocation114_spill] sm:$0xff] %v16223_v21  ;;  %v2297_v28 = vadd.f32 %v2296_v35, %v2217_v53  ;;  %v333_v15 = vmul.f32 0.0030864198, %v252_v19  ;;  %v24117_v36 = vcvt.s32.f32 %v16005_v33  ;;  %v253_v51 = vadd.f32 0.5, %v23312_v2 }
 0x208   :  { %v23315_v41 = vcvt.s32.f32 %v16195_v60  ;;  %v16234_v10 = vadd.s32 600, %v13606_v29  ;;  %v16242_v7 = vsel %vm1217_vm14, 1.0, %v15989_v14  ;;  %v16245_v33 = vsel %vm1218_vm15, 1.0, %v15989_v14 }
 0x209   :  { %v16228_v24 = vsub.f32 %v24117_v36, %v494_v0  ;;  %24118 = vst [vmem:[#allocation115_spill] sm:$0xff] %v16242_v7  ;;  %24119 = vst [vmem:[#allocation116_spill] sm:$0xff] %v16245_v33  ;;  %vm16247_vm1 = vcmp.lt.f32.partialorder %v814_v44, 16.0  ;;  %v977_v19 = vsub.f32 %v16054_v58, %v896_v23  ;;  %v16253_v0 = vpop.f32.mrb[132].mxu0  ;;  %v16255_v35 = vmul.f32 0.055555556, %v655_v55 }
 0x20a   :  { %24122 = vst [vmem:[#allocation117_spill] sm:$0xff] %v16253_v0  ;;  %vm16259_vm2 = vcmp.lt.f32.partialorder %v976_v9, 16.0  ;;  %vm16263_vm3 = vcmp.lt.f32.partialorder %v815_v62, 16.0  ;;  %v2130_v36 = vadd.f32 %v2129_v5, %v16253_v0  ;;  %v2218_v58 = vmul.f32 %v16253_v0, %v16253_v0  ;;  %v10427_v23 = vpop.f32.mrb[133].mxu0 }
 0x20b   :  { %v414_v55 = vfloor.f32 %v333_v15  ;;  %v16270_v2 = vpop.f32.mrb[134].mxu0  ;;  %v656_v49 = vadd.f32 0.5, %v16228_v24  ;;  %v334_v63 = vmul.f32 0.0030864198, %v253_v51  ;;  %v254_v9 = vadd.f32 0.5, %v23315_v41  ;;  %vm1219_vm4 = vmand %vm16247_vm1, %vm16259_vm2 }
 0x20c   :  { %24127 = vst [vmem:[#allocation118_spill] sm:$0xff] %v16270_v2  ;;  %v2298_v17 = vadd.f32 %v2297_v28, %v2218_v58  ;;  %v2131_v33 = vadd.f32 %v2130_v36, %v16270_v2  ;;  %v2219_v5 = vmul.f32 %v16270_v2, %v16270_v2  ;;  %v10428_v7 = vpop.f32.mrb[135].mxu0  ;;  %v16280_v23 = vadd.s32 608, %v13606_v29 }
 0x20d   :  { %v24128_v15 = vcvt.s32.f32 %v16212_v8  ;;  %v24129_v28 = vcvt.s32.f32 %v16215_v18  ;;  %v16292_v58 = vadd.s32 616, %v13606_v29  ;;  %v24130_v7 = vfloor.f32 %v16204_v6 }
 0x20e   :  { %v2299_v21 = vadd.f32 %v2298_v17, %v2219_v5  ;;  %v16299_v53 = vadd.s32 624, %v13606_v29  ;;  %v16302_v47 = vadd.s32 632, %v13606_v29  ;;  %v16304_v51 = vmul.f32 0.055555556, %v656_v49  ;;  %v16320_v49 = vpop.f32.mrb[136].mxu0 }
 0x20f   :  { %v255_v41 = vadd.f32 0.5, %v24128_v15  ;;  %v256_v36 = vadd.f32 0.5, %v24129_v28  ;;  %v16296_v62 = vmul.f32 18.0, %v24130_v7  ;;  %v495_v15 = vmul.f32 324.0, %v414_v55  ;;  %24136 = vst [vmem:[#allocation120_spill] sm:$0xff] %v16320_v49 }
 0x210   :  { %v415_v56 = vfloor.f32 %v334_v63  ;;  %v24131_v28 = vcvt.s32.f32 %v16234_v10  ;;  %v16309_v0 = vsel %vm1219_vm4, 1.0, %v15989_v14  ;;  %vm16311_vm5 = vcmp.lt.f32.partialorder %v977_v19, 16.0 }
 0x211   :  { %24132 = vst [vmem:[#allocation119_spill] sm:$0xff] %v16309_v0  ;;  %v335_v17 = vmul.f32 0.0030864198, %v254_v9  ;;  %v24135_v27 = vfloor.f32 %v16255_v35  ;;  %v336_v63 = vmul.f32 0.0030864198, %v255_v41  ;;  %v2132_v11 = vadd.f32 %v2131_v33, %v16320_v49  ;;  %v10431_v0 = vpop.f32.mrb[137].mxu0  ;;  %vm1220_vm6 = vmand %vm16263_vm3, %vm16311_vm5 }
 0x212   :  { %v257_v2 = vadd.f32 0.5, %v24131_v28  ;;  %v337_v55 = vmul.f32 0.0030864198, %v256_v36  ;;  %v2220_v19 = vmul.f32 %v16320_v49, %v16320_v49  ;;  %v24138_v31 = vcvt.s32.f32 %v16098_v12 }
 0x213   :  { %v16318_v1 = vmul.f32 18.0, %v24135_v27  ;;  %v16329_v27 = vpop.f32.mrb[138].mxu0  ;;  %v496_v36 = vmul.f32 324.0, %v415_v56  ;;  %v24139_v9 = vcvt.s32.f32 %v16280_v23  ;;  %v416_v12 = vfloor.f32 %v335_v17 }
 0x214   :  { %24137 = vst [vmem:[#allocation121_spill] sm:$0xff] %v16329_v27  ;;  %v16333_v41 = vsub.f32 %v24138_v31, %v495_v15  ;;  %v338_v28 = vmul.f32 0.0030864198, %v257_v2  ;;  %v2300_v4 = vadd.f32 %v2299_v21, %v2220_v19  ;;  %v2133_v33 = vadd.f32 %v2132_v11, %v16329_v27  ;;  %v10432_v49 = vpop.f32.mrb[139].mxu0 }
 0x215   :  { %v2221_v0 = vmul.f32 %v16329_v27, %v16329_v27  ;;  %v258_v5 = vadd.f32 0.5, %v24139_v9  ;;  %v417_v31 = vfloor.f32 %v336_v63  ;;  %v418_v15 = vfloor.f32 %v337_v55 }
 0x216   :  { %v24140_v56 = vcvt.s32.f32 %v16292_v58  ;;  %v978_v11 = vsub.f32 %v16121_v34, %v16296_v62  ;;  %v24141_v49 = vcvt.s32.f32 %v16299_v53  ;;  %v24142_v9 = vcvt.s32.f32 %v16302_v47 }
 0x217   :  { %v2301_v21 = vadd.f32 %v2300_v4, %v2221_v0  ;;  %v657_v7 = vadd.f32 0.5, %v16333_v41  ;;  %v24143_v44 = vcvt.s32.f32 %v16146_v3  ;;  %v419_v63 = vfloor.f32 %v338_v28  ;;  %v16375_v28 = vpop.f32.mrb[140].mxu0 }
 0x218   :  { %v259_v2 = vadd.f32 0.5, %v24140_v56  ;;  %v260_v19 = vadd.f32 0.5, %v24141_v49  ;;  %v261_v43 = vadd.f32 0.5, %v24142_v9  ;;  %v16358_v55 = vadd.s32 640, %v13606_v29  ;;  %24149 = vst [vmem:[#allocation123_spill] sm:$0xff] %v16375_v28 }
 0x219   :  { %v16355_v17 = vsub.f32 %v24143_v44, %v496_v36  ;;  %v16361_v56 = vsel %vm1220_vm6, 1.0, %v15989_v14  ;;  %v979_v4 = vsub.f32 %v16177_v20, %v16318_v1  ;;  %v24145_v34 = vfloor.f32 %v16304_v51  ;;  %v10435_v20 = vpop.f32.mrb[141].mxu0 }
 0x21a   :  { %24144 = vst [vmem:[#allocation122_spill] sm:$0xff] %v16361_v56  ;;  %v339_v0 = vmul.f32 0.0030864198, %v258_v5  ;;  %v24146_v49 = vfloor.f32 %v16204_v6  ;;  %v497_v36 = vmul.f32 324.0, %v416_v12  ;;  %v498_v9 = vmul.f32 324.0, %v417_v31 }
 0x21b   :  { %v16367_v62 = vmul.f32 18.0, %v24145_v34  ;;  %v499_v44 = vmul.f32 324.0, %v418_v15  ;;  %v340_v56 = vmul.f32 0.0030864198, %v259_v2  ;;  %v2134_v27 = vadd.f32 %v2133_v33, %v16375_v28 }
 0x21c   :  { %vm16371_vm7 = vcmp.lt.f32.partialorder %v24146_v49, 16.0  ;;  %v2222_v1 = vmul.f32 %v16375_v28, %v16375_v28  ;;  %v341_v34 = vmul.f32 0.0030864198, %v260_v19  ;;  %v342_v5 = vmul.f32 0.0030864198, %v261_v43  ;;  %v16381_v49 = vpop.f32.mrb[142].mxu0 }
 0x21d   :  { %v738_v30 = vmul.f32 0.055555556, %v657_v7  ;;  %v658_v6 = vadd.f32 0.5, %v16355_v17  ;;  %v500_v39 = vmul.f32 324.0, %v419_v63  ;;  %v23348_v45 = vcvt.s32.f32 %v16358_v55  ;;  %v10436_v15 = vpop.f32.mrb[143].mxu0 }
 0x21e   :  { %v2302_v12 = vadd.f32 %v2301_v21, %v2222_v1  ;;  %v2135_v31 = vadd.f32 %v2134_v27, %v16381_v49  ;;  %v2223_v33 = vmul.f32 %v16381_v49, %v16381_v49  ;;  %v420_v2 = vfloor.f32 %v339_v0 }
 0x21f   :  { %v24150_v20 = vcvt.s32.f32 %v16195_v60  ;;  %v24151_v43 = vcvt.s32.f32 %v16212_v8  ;;  %v24152_v63 = vcvt.s32.f32 %v16215_v18  ;;  %v421_v21 = vfloor.f32 %v340_v56 }
 0x220   :  { %vm16399_vm8 = vcmp.lt.f32.partialorder %v978_v11, 16.0  ;;  %v2303_v1 = vadd.f32 %v2302_v12, %v2223_v33  ;;  %v422_v15 = vfloor.f32 %v341_v34  ;;  %v423_v0 = vfloor.f32 %v342_v5 }
 0x221   :  { %v16389_v19 = vsub.f32 %v24150_v20, %v497_v36  ;;  %v16393_v7 = vsub.f32 %v24151_v43, %v498_v9  ;;  %v16397_v28 = vsub.f32 %v24152_v63, %v499_v44  ;;  %v24155_v60 = vfloor.f32 %v16255_v35  ;;  %vm1221_vm12 = vmand %vm16371_vm7, %vm16399_vm8 }
 0x222   :  { %v819_v8 = vfloor.f32 %v738_v30  ;;  %v24158_v9 = vcvt.s32.f32 %v16234_v10  ;;  %v262_v11 = vadd.f32 0.5, %v23348_v45  ;;  %vm16415_vm10 = vcmp.lt.f32.partialorder %v979_v4, 16.0  ;;  %v16424_v30 = vpop.f32.mrb[144].mxu0 }
 0x223   :  { %vm16405_vm9 = vcmp.lt.f32.partialorder %v24155_v60, 16.0  ;;  %v980_v44 = vsub.f32 %v16228_v24, %v16367_v62  ;;  %v16421_v35 = vmul.f32 0.055555556, %v658_v6  ;;  %v501_v34 = vmul.f32 324.0, %v420_v2  ;;  %v10439_v20 = vpop.f32.mrb[145].mxu0 }
 0x224   :  { %v16411_v18 = vsub.f32 %v24158_v9, %v500_v39  ;;  %v659_v5 = vadd.f32 0.5, %v16389_v19  ;;  %v660_v39 = vadd.f32 0.5, %v16393_v7  ;;  %v661_v10 = vadd.f32 0.5, %v16397_v28  ;;  %v16437_v63 = vpop.f32.mrb[146].mxu0  ;;  %vm1222_vm13 = vmand %vm16405_vm9, %vm16415_vm10 }
 0x225   :  { %v502_v12 = vmul.f32 324.0, %v421_v21  ;;  %v2136_v4 = vadd.f32 %v2135_v31, %v16424_v30  ;;  %v2224_v33 = vmul.f32 %v16424_v30, %v16424_v30  ;;  %v503_v43 = vmul.f32 324.0, %v422_v15 }
 0x226   :  { %v504_v24 = vmul.f32 324.0, %v423_v0  ;;  %v24161_v62 = vfloor.f32 %v16304_v51  ;;  %v900_v2 = vmul.f32 18.0, %v819_v8  ;;  %v662_v60 = vadd.f32 0.5, %v16411_v18  ;;  %v10440_v0 = vpop.f32.mrb[147].mxu0 }
 0x227   :  { %v343_v21 = vmul.f32 0.0030864198, %v262_v11  ;;  %v2304_v31 = vadd.f32 %v2303_v1, %v2224_v33  ;;  %v2137_v15 = vadd.f32 %v2136_v4, %v16437_v63  ;;  %v2225_v51 = vmul.f32 %v16437_v63, %v16437_v63 }
 0x228   :  { %vm16433_vm11 = vcmp.lt.f32.partialorder %v24161_v62, 16.0  ;;  %v24164_v9 = vcvt.s32.f32 %v16280_v23  ;;  %v16455_v11 = vmul.f32 0.055555556, %v659_v5  ;;  %v16457_v62 = vmul.f32 0.055555556, %v660_v39 }
 0x229   :  { %v16459_v1 = vmul.f32 0.055555556, %v661_v10  ;;  %v24165_v4 = vcvt.s32.f32 %v16292_v58  ;;  %vm16465_vm14 = vcmp.lt.f32.partialorder %v980_v44, 16.0  ;;  %v2305_v23 = vadd.f32 %v2304_v31, %v2225_v51  ;;  %v13358_v51 = vld [vmem:[%s23140_s2 + $0x48] sm:$0xff]  }
 0x22a   :  { %v16449_v20 = vsub.f32 %v24164_v9, %v501_v34  ;;  %v24168_v56 = vcvt.s32.f32 %v16299_v53  ;;  %v24169_v36 = vcvt.s32.f32 %v16302_v47  ;;  %v981_v39 = vsub.f32 %v16333_v41, %v900_v2  ;;  %vm1223_vm1 = vmand %vm16433_vm11, %vm16465_vm14 }
 0x22b   :  { %v16463_v33 = vsub.f32 %v24165_v4, %v502_v12  ;;  %v820_v10 = vfloor.f32 %v16421_v35  ;;  %v16479_v58 = vmul.f32 0.055555556, %v662_v60  ;;  %v424_v12 = vfloor.f32 %v343_v21 }
 0x22c   :  { %v16471_v34 = vsub.f32 %v24168_v56, %v503_v43  ;;  %v16475_v5 = vsub.f32 %v24169_v36, %v504_v24  ;;  %v16487_v53 = vsel %vm1221_vm12, 1.0, %v15989_v14  ;;  %v16490_v44 = vsel %vm1222_vm13, 1.0, %v15989_v14  ;;  %v16500_v24 = vpop.f32.mrb[148].mxu0 }
 0x22d   :  { %24170 = vst [vmem:[#allocation124_spill] sm:$0xff] %v16487_v53  ;;  %24171 = vst [vmem:[#allocation125_spill] sm:$0xff] %v16490_v44  ;;  %vm16492_vm15 = vcmp.lt.f32.partialorder %v819_v8, 16.0  ;;  %v663_v41 = vadd.f32 0.5, %v16449_v20  ;;  %v821_v35 = vfloor.f32 %v16455_v11  ;;  %v822_v43 = vfloor.f32 %v16457_v62  ;;  %v10443_v60 = vpop.f32.mrb[149].mxu0 }
 0x22e   :  { %v664_v27 = vadd.f32 0.5, %v16463_v33  ;;  %v2138_v8 = vadd.f32 %v2137_v15, %v16500_v24  ;;  %v2226_v2 = vmul.f32 %v16500_v24, %v16500_v24  ;;  %v665_v21 = vadd.f32 0.5, %v16471_v34  ;;  %v16517_v62 = vpop.f32.mrb[150].mxu0 }
 0x22f   :  { %v666_v31 = vadd.f32 0.5, %v16475_v5  ;;  %vm16512_vm2 = vcmp.lt.f32.partialorder %v981_v39, 16.0  ;;  %v901_v9 = vmul.f32 18.0, %v820_v10  ;;  %v824_v11 = vfloor.f32 %v16479_v58  ;;  %v10444_v60 = vpop.f32.mrb[151].mxu0 }
 0x230   :  { %v505_v4 = vmul.f32 324.0, %v424_v12  ;;  %v2306_v56 = vadd.f32 %v2305_v23, %v2226_v2  ;;  %v2139_v15 = vadd.f32 %v2138_v8, %v16517_v62  ;;  %v2227_v36 = vmul.f32 %v16517_v62, %v16517_v62  ;;  %vm1224_vm3 = vmand %vm16492_vm15, %vm16512_vm2 }
 0x231   :  { %v16522_v45 = vmul.f32 0.055555556, %v663_v41  ;;  %v16530_v39 = vsel %vm1223_vm1, 1.0, %v15989_v14  ;;  %v902_v58 = vmul.f32 18.0, %v821_v35  ;;  %v903_v3 = vmul.f32 18.0, %v822_v43 }
 0x232   :  { %24176 = vst [vmem:[#allocation126_spill] sm:$0xff] %v16530_v39  ;;  %v24177_v23 = vfloor.f32 %v16459_v1  ;;  %v2307_v41 = vadd.f32 %v2306_v56, %v2227_v36  ;;  %v745_v8 = vmul.f32 0.055555556, %v664_v27  ;;  %v16538_v2 = vmul.f32 0.055555556, %v665_v21  ;;  %v16553_v21 = vpop.f32.mrb[152].mxu0 }
 0x233   :  { %v16540_v6 = vmul.f32 0.055555556, %v666_v31  ;;  %v905_v0 = vmul.f32 18.0, %v824_v11  ;;  %v24178_v60 = vcvt.s32.f32 %v16358_v55  ;;  %v982_v44 = vsub.f32 %v16355_v17, %v901_v9  ;;  %v13359_v55 = vld [vmem:[%s23140_s2 + $0x100] sm:$0xff]  }
 0x234   :  { %v904_v12 = vmul.f32 18.0, %v24177_v23  ;;  %v13357_v23 = vld [vmem:[%s23140_s2 + $0x40] sm:$0xff]   ;;  %v825_v53 = vfloor.f32 %v16522_v45  ;;  %v983_v56 = vsub.f32 %v16389_v19, %v902_v58  ;;  %v984_v27 = vsub.f32 %v16393_v7, %v903_v3  ;;  %v10447_v3 = vpop.f32.mrb[153].mxu0  ;;  %11178 = vmatpush3.bf16.msra.mxu1 %v13359_v55 }
 0x235   :  { %v16544_v39 = vsub.f32 %v24178_v60, %v505_v4  ;;  %10458 = vmatpush3.bf16.msra.mxu0 %v13357_v23  ;;  %v16564_v17 = vsel %vm1224_vm3, 1.0, %v15989_v14  ;;  %v2140_v19 = vadd.f32 %v2139_v15, %v16553_v21  ;;  %v2228_v7 = vmul.f32 %v16553_v21, %v16553_v21  ;;  %v16572_v9 = vpop.f32.mrb[154].mxu0  ;;  %11179 = vmatprep.subr.bf16.mxu1 %v15989_v14  ;;  %v13372_v60 = vld [vmem:[%s23140_s2 + $0x138] sm:$0xff]  }
 0x236   :  { %24179 = vst [vmem:[#allocation127_spill] sm:$0xff] %v16564_v17  ;;  %v985_v45 = vsub.f32 %v16397_v28, %v904_v12  ;;  %10459 = vmatprep.subr.bf16.mxu0 %v15989_v14  ;;  %v986_v31 = vsub.f32 %v16411_v18, %v905_v0  ;;  %v13361_v28 = vld [vmem:[%s23140_s2 + $0x108] sm:$0xff]   ;;  %vm16581_vm4 = vcmp.lt.f32.partialorder %v820_v10, 16.0  ;;  %vm16585_vm5 = vcmp.lt.f32.partialorder %v982_v44, 16.0  ;;  %v10448_v0 = vpop.f32.mrb[155].mxu0  ;;  %v18_v10 = vld [vmem:[%s23141_s3] sm:$0xff] }
 0x237   :  { %v667_v47 = vadd.f32 0.5, %v16544_v39  ;;  %v24182_v15 = vmov 0  ;;  %v906_v18 = vmul.f32 18.0, %v825_v53  ;;  %v2308_v36 = vadd.f32 %v2307_v41, %v2228_v7  ;;  %v13365_v0 = vld [vmem:[%s23140_s2 + $0x118] sm:$0xff]  }
 0x238   :  { %v24183_v15 = vsel %vm16585_vm5, 4294967295, %v24182_v15  ;;  %v2141_v58 = vadd.f32 %v2140_v19, %v16572_v9  ;;  %v2229_v12 = vmul.f32 %v16572_v9, %v16572_v9  ;;  %vm16593_vm6 = vcmp.lt.f32.partialorder %v821_v35, 16.0  ;;  %11180 = vmatpush3.bf16.msra.mxu1 %v13361_v28 }
 0x239   :  { %vm16597_vm7 = vcmp.lt.f32.partialorder %v983_v56, 16.0  ;;  %vm16601_vm8 = vcmp.lt.f32.partialorder %v822_v43, 16.0  ;;  %vm16605_vm9 = vcmp.lt.f32.partialorder %v984_v27, 16.0  ;;  %v826_v23 = vfloor.f32 %v745_v8  ;;  %10460 = vmatpush3.bf16.msra.mxu0 %v13358_v51  ;;  %11181 = vmatprep.subr.bf16.mxu1 %v15989_v14 }
 0x23a   :  { %v24192_v55 = vfloor.f32 %v16459_v1  ;;  %vm16615_vm11 = vcmp.lt.f32.partialorder %v985_v45, 16.0  ;;  %v2309_v43 = vadd.f32 %v2308_v36, %v2229_v12  ;;  %10461 = vmatprep.subr.bf16.mxu0 %v15989_v14  ;;  %vm16620_vm12 = vcmp.lt.f32.partialorder %v824_v11, 16.0  ;;  %v13360_v45 = vld [vmem:[%s23140_s2 + $0x50] sm:$0xff]  }
 0x23b   :  { %v24197_v27 = vmov 0  ;;  %vm16624_vm13 = vcmp.lt.f32.partialorder %v986_v31, 16.0  ;;  %v24199_v8 = vmov 0  ;;  %v827_v1 = vfloor.f32 %v16538_v2  ;;  %v13363_v11 = vld [vmem:[%s23140_s2 + $0x110] sm:$0xff]   ;;  %v16639_v31 = vpop.f32.mrb[156].mxu0 }
 0x23c   :  { %vm16611_vm10 = vcmp.lt.f32.partialorder %v24192_v55, 16.0  ;;  %v24198_v27 = vsel %vm16620_vm12, 4294967295, %v24197_v27  ;;  %v24200_v8 = vsel %vm16624_vm13, 4294967295, %v24199_v8  ;;  %v16629_v19 = vmul.f32 0.055555556, %v667_v47  ;;  %v10451_v28 = vpop.f32.mrb[157].mxu0  ;;  %11182 = vmatpush3.bf16.msra.mxu1 %v13363_v11 }
 0x23d   :  { %v987_v7 = vsub.f32 %v16449_v20, %v906_v18  ;;  %v907_v3 = vmul.f32 18.0, %v826_v23  ;;  %10462 = vmatpush3.bf16.msra.mxu0 %v13360_v45  ;;  %vm16641_vm14 = vcmp.lt.f32.partialorder %v825_v53, 16.0  ;;  %v24201_v2 = vmov 0  ;;  %v16654_v12 = vpop.f32.mrb[158].mxu0  ;;  %11183 = vmatprep.subr.bf16.mxu1 %v15989_v14 }
 0x23e   :  { %v24202_v2 = vsel %vm16641_vm14, 4294967295, %v24201_v2  ;;  %v2142_v47 = vadd.f32 %v2141_v58, %v16639_v31  ;;  %v2230_v51 = vmul.f32 %v16639_v31, %v16639_v31  ;;  %10463 = vmatprep.subr.bf16.mxu0 %v15989_v14  ;;  %vm16649_vm15 = vcmp.lt.f32.partialorder %v826_v23, 16.0  ;;  %v13362_v58 = vld [vmem:[%s23140_s2 + $0x58] sm:$0xff]  }
 0x23f   :  { %v24203_v20 = vmov 0  ;;  %v908_v18 = vmul.f32 18.0, %v827_v1  ;;  %v828_v36 = vfloor.f32 %v16540_v6  ;;  %v829_v53 = vfloor.f32 %v16629_v19  ;;  %v10452_v19 = vpop.f32.mrb[159].mxu0 }
 0x240   :  { %v24204_v20 = vsel %vm16649_vm15, 4294967295, %v24203_v20  ;;  %vm16663_vm1 = vcmp.lt.f32.partialorder %v987_v7, 16.0  ;;  %v24205_v23 = vmov 0  ;;  %v2310_v55 = vadd.f32 %v2309_v43, %v2230_v51  ;;  %v13364_v51 = vld [vmem:[%s23140_s2 + $0x60] sm:$0xff]   ;;  %11184 = vmatpush3.bf16.msra.mxu1 %v13365_v0 }
 0x241   :  { %v24206_v23 = vsel %vm16663_vm1, 4294967295, %v24205_v23  ;;  %v2143_v6 = vadd.f32 %v2142_v47, %v16654_v12  ;;  %v2231_v45 = vmul.f32 %v16654_v12, %v16654_v12  ;;  %v988_v28 = vsub.f32 %v16463_v33, %v907_v3  ;;  %10464 = vmatpush3.bf16.msra.mxu0 %v13362_v58  ;;  %v13367_v33 = vld [vmem:[%s23140_s2 + $0x120] sm:$0xff]   ;;  %11185 = vmatprep.subr.bf16.mxu1 %v15989_v14  ;;  %v16701_v3 = vpop.f32.mrb[160].mxu0 }
 0x242   :  { %10465 = vmatprep.subr.bf16.mxu0 %v15989_v14  ;;  %v989_v43 = vsub.f32 %v16471_v34, %v908_v18  ;;  %v909_v7 = vmul.f32 18.0, %v828_v36  ;;  %v910_v47 = vmul.f32 18.0, %v829_v53  ;;  %v24207_v34 = vmov 0 }
 0x243   :  { %v2311_v11 = vadd.f32 %v2310_v55, %v2231_v45  ;;  %vm16697_vm5 = vcmp.lt.f32.partialorder %v988_v28, 16.0  ;;  %vm16707_vm0 = vcmp.lt.f32.partialorder %v827_v1, 16.0  ;;  %v2144_v58 = vadd.f32 %v2143_v6, %v16701_v3  ;;  %v10455_v55 = vpop.f32.mrb[161].mxu0  ;;  %v13366_v1 = vld [vmem:[%s23140_s2 + $0x68] sm:$0xff]  }
 0x244   :  { %v24208_v34 = vsel %vm16697_vm5, 4294967295, %v24207_v34  ;;  %v2232_v0 = vmul.f32 %v16701_v3, %v16701_v3  ;;  %vm16715_vm2 = vcmp.lt.f32.partialorder %v989_v43, 16.0  ;;  %v24211_v45 = vmov 0  ;;  %v2062_v28 = vpop.f32.mrb[162].mxu0  ;;  %11186 = vmatpush3.bf16.msra.mxu1 %v13367_v33  ;;  %v13369_v6 = vld [vmem:[%s23140_s2 + $0x128] sm:$0xff]  }
 0x245   :  { %10466 = vmatpush3.bf16.msra.mxu0 %v13364_v51  ;;  %v24212_v45 = vsel %vm16715_vm2, 4294967295, %v24211_v45  ;;  %v990_v19 = vsub.f32 %v16475_v5, %v909_v7  ;;  %v991_v43 = vsub.f32 %v16544_v39, %v910_v47  ;;  %v2145_v51 = vrot.slane %v2144_v58, 4  ;;  %v10456_v5 = vpop.f32.mrb[163].mxu0  ;;  %11187 = vmatprep.subr.bf16.mxu1 %v15989_v14  ;;  %v13368_v47 = vld [vmem:[%s23140_s2 + $0x70] sm:$0xff]   ;;  %vm24224_vm2 = vmand %vm16593_vm6, %vm16597_vm7 }
 0x246   :  { %10467 = vmatprep.subr.bf16.mxu0 %v15989_v14  ;;  %v2312_v55 = vadd.f32 %v2311_v11, %v2232_v0  ;;  %vm16736_vm12 = vcmp.lt.f32.partialorder %v828_v36, 16.0  ;;  %vm16745_vm1 = vcmp.lt.f32.partialorder %v829_v53, 16.0  ;;  %v13371_v36 = vld [vmem:[%s23140_s2 + $0x130] sm:$0xff]   ;;  %vm24221_vm15 = vnez %v24183_v15  ;;  %vm24228_vm6 = vmand %vm16611_vm10, %vm16615_vm11  ;;  %v3043_v5 = vld [vmem:[#allocation2 + $0x6] sm:$0xff] }
 0x247   :  { %v2146_v33 = vadd.f32 %v2145_v51, %v2144_v58  ;;  %vm16741_vm3 = vcmp.lt.f32.partialorder %v990_v19, 16.0  ;;  %vm16759_vm5 = vcmp.lt.f32.partialorder %v991_v43, 16.0  ;;  %vm24222_vm14 = vmand %vm16581_vm4, %vm24221_vm15  ;;  %v16783_v4 = vsel %vm24224_vm2, 1.0, %v15989_v14  ;;  %v13370_v43 = vld [vmem:[%s23140_s2 + $0x78] sm:$0xff]   ;;  %v24300_v58 = vld [vmem:[#allocation113_spill] sm:$0xff] }
 0x248   :  { %v2313_v28 = vrot.slane %v2312_v55, 4  ;;  %11188 = vmatpush3.bf16.msra.mxu1 %v13369_v6  ;;  %v16770_v19 = vsel %vm24222_vm14, 1.0, %v15989_v14  ;;  %vm1233_vm13 = vmand %vm16736_vm12, %vm16741_vm3  ;;  %24225 = vst [vmem:[#allocation129_spill] sm:$0xff] %v16783_v4  ;;  %v16808_v44 = vsel %vm24228_vm6, 1.0, %v15989_v14  ;;  %vm24234_vm10 = vnez %v24202_v2 }
 0x249   :  { %10468 = vmatpush3.bf16.msra.mxu0 %v13366_v1  ;;  %v2147_v53 = vrot.slane %v2146_v33, 2  ;;  %11189 = vmatprep.subr.bf16.mxu1 %v15989_v14  ;;  %24223 = vst [vmem:[#allocation128_spill] sm:$0xff] %v16770_v19  ;;  %vm24226_vm4 = vmand %vm16601_vm8, %vm16605_vm9  ;;  %vm24230_vm8 = vnez %v24198_v27  ;;  %vm24231_vm9 = vnez %v24200_v8  ;;  %vm24235_vm11 = vnez %v24206_v23 }
 0x24a   :  { %10469 = vmatprep.subr.bf16.mxu0 %v15989_v14  ;;  %v2314_v0 = vadd.f32 %v2313_v28, %v2312_v55  ;;  %v16791_v15 = vsel %vm24226_vm4, 1.0, %v15989_v14  ;;  %24229 = vst [vmem:[#allocation131_spill] sm:$0xff] %v16808_v44  ;;  %vm1234_vm7 = vmand %vm16745_vm1, %vm16759_vm5  ;;  %v13436_v55 = vld [vmem:[#allocation2] sm:$0xff]  ;;  %vm24238_vm2 = vnez %v24204_v20  ;;  %vm24239_vm4 = vnez %v24208_v34 }
 0x24b   :  { %v2148_v1 = vadd.f32 %v2147_v53, %v2146_v33  ;;  %24227 = vst [vmem:[#allocation130_spill] sm:$0xff] %v16791_v15  ;;  %vm24232_vm14 = vmand %vm24230_vm8, %vm24231_vm9  ;;  %v3044_v33 = vld [vmem:[#allocation2 + $0xe] sm:$0xff]  ;;  %vm24242_vm8 = vnez %v24212_v45  ;;  %v16848_v20 = vsel %vm1233_vm13, 1.0, %v13436_v55  ;;  %v16855_v23 = vsel %vm1234_vm7, 1.0, %v13436_v55 }
 0x24c   :  { %v2315_v6 = vrot.slane %v2314_v0, 2  ;;  %11190 = vmatpush3.bf16.msra.mxu1 %v13371_v36  ;;  %v16820_v35 = vsel %vm24232_vm14, 1.0, %v13436_v55  ;;  %vm24236_vm15 = vmand %vm24234_vm10, %vm24235_vm11  ;;  %v3124_v28 = vpack.c.bf16 %v3044_v33, %v3043_v5  ;;  %24245 = vst [vmem:[#allocation136_spill] sm:$0xff] %v16848_v20  ;;  %v24247_v45 = vsub.s32 0, %v13606_v29  ;;  %v24260_v33 = vld [vmem:[#allocation40_spill] sm:$0xff]  ;;  %v24261_v5 = vld [vmem:[#allocation41_spill] sm:$0xff] }
 0x24d   :  { %10470 = vmatpush3.bf16.msra.mxu0 %v13368_v47  ;;  %v2149_v41 = vrot.slane %v2148_v1, 1  ;;  %11191 = vmatprep.subr.bf16.mxu1 %v15989_v14  ;;  %24233 = vst [vmem:[#allocation132_spill] sm:$0xff] %v16820_v35  ;;  %v16827_v56 = vsel %vm24236_vm15, 1.0, %v13436_v55  ;;  %vm24240_vm6 = vmand %vm24238_vm2, %vm24239_vm4  ;;  %v24249_v39 = vsub.s32 1, %v13606_v29  ;;  %v24299_v35 = vld [vmem:[#allocation111_spill] sm:$0xff]  ;;  %v24301_v29 = vld [vmem:[#allocation117_spill] sm:$0xff] }
 0x24e   :  { %10471 = vmatprep.subr.bf16.mxu0 %v15989_v14  ;;  %v2316_v51 = vadd.f32 %v2315_v6, %v2314_v0  ;;  %24237 = vst [vmem:[#allocation133_spill] sm:$0xff] %v16827_v56  ;;  %v16834_v14 = vsel %vm24240_vm6, 1.0, %v13436_v55  ;;  %vm24243_vm9 = vmand %vm16707_vm0, %vm24242_vm8  ;;  %v16861_v7 = vrot.slane %v18_v10, %v24247_v45  ;;  %vm24251_vm0 = vmmov 0   ;;  %v24255_v45 = vld [vmem:[#allocation29_spill] sm:$0xff]  ;;  %v24268_v6 = vld [vmem:[#allocation56_spill] sm:$0xff] }
 0x24f   :  { %24241 = vst [vmem:[#allocation134_spill] sm:$0xff] %v16834_v14  ;;  %v2150_v27 = vadd.f32 %v2149_v41, %v2148_v1  ;;  %v16841_v2 = vsel %vm24243_vm9, 1.0, %v13436_v55  ;;  %24246 = vst [vmem:[#allocation137_spill] sm:$0xff] %v16855_v23  ;;  %v16865_v47 = vrot.slane %v18_v10, %v24249_v39  ;;  %v24256_v39 = vld [vmem:[#allocation33_spill] sm:$0xff]  ;;  %v24264_v41 = vld [vmem:[#allocation47_spill] sm:$0xff] }
 0x250   :  { %v2317_v8 = vrot.slane %v2316_v51, 1  ;;  %24244 = vst [vmem:[#allocation135_spill] sm:$0xff] %v16841_v2  ;;  %11192 = vmatpush3.bf16.msra.mxu1 %v13372_v60  ;;  %24248 = vst [vmem:[#allocation138_spill] sm:$0xff] %v16861_v7  ;;  %v24265_v10 = vld [vmem:[#allocation49_spill] sm:$0xff]  ;;  %v24302_v20 = vld [vmem:[#allocation118_spill] sm:$0xff] }
 0x251   :  { %10472 = vmatpush3.bf16.msra.mxu0 %v13370_v43  ;;  %v16857_v34 = vmul.f32 0.001953125, %v2150_v27  ;;  %11357 = vmatprep.subr.bf16.mxu1 %v13436_v55  ;;  %24250 = vst [vmem:[#allocation139_spill] sm:$0xff] %v16865_v47  ;;  %v24266_v27 = vld [vmem:[#allocation52_spill] sm:$0xff]  ;;  %v24267_v43 = vld [vmem:[#allocation53_spill] sm:$0xff]  ;;  %v24305_v2 = vld [vmem:[#allocation123_spill] sm:$0xff] }
 0x252   :  { %10637 = vmatprep.subr.bf16.mxu0 %v13436_v55  ;;  %v2318_v18 = vadd.f32 %v2317_v8, %v2316_v51  ;;  %v24263_v51 = vld [vmem:[#allocation45_spill] sm:$0xff] }
 0x253   :  { %v2320_v36 = vmul.f32 %v16857_v34, %v16857_v34  ;;  %v24296_v17 = vsub.f32 %v16701_v3, %v16857_v34  ;;  %v24304_v0 = vld [vmem:[#allocation121_spill] sm:$0xff]  ;;  %v24306_v53 = vsub.f32 %v13911_v40, %v16857_v34  ;;  %v24308_v4 = vsub.f32 %v14001_v42, %v16857_v34 }
 0x254   :  { %10474 = vmatmul.mubr.bf16.vlgmr.msra.gmra.mrb[164].mxu0 %v3124_v28  ;;  %v2319_v11 = vmul.f32 0.001953125, %v2318_v18  ;;  %v24253_v28 = vld [vmem:[#allocation27_spill] sm:$0xff]  ;;  %v24254_v18 = vld [vmem:[#allocation28_spill] sm:$0xff]  ;;  %v24309_v3 = vsub.f32 %v14014_v46, %v16857_v34 }
 0x255   :  { %10477 = vmatprep.mubr.msk.bf16.mxu0 %vm24251_vm0, %v13436_v55  ;;  %v24262_v55 = vld [vmem:[#allocation44_spill] sm:$0xff] }
 0x256   :  { %v2321_v60 = vsub.f32 %v2319_v11, %v2320_v36  ;;  %v24257_v11 = vld [vmem:[#allocation35_spill] sm:$0xff]  ;;  %v24258_v36 = vld [vmem:[#allocation37_spill] sm:$0xff] }
 0x258   :  { %v2403_v8 = vadd.f32 1e-05, %v2321_v60  ;;  %v24252_v60 = vld [vmem:[#allocation26_spill] sm:$0xff] }
 0x25a   :  { %13429 = vrsqrt.f32 %v2403_v8  ;;  %v24259_v8 = vld [vmem:[#allocation38_spill] sm:$0xff] }
 0x264   :  { %v16988_v1 = vpop.eup %13429 }
 0x265   :  { %v2485_v14 = vmul.f32 %v16988_v1, %v24296_v17  ;;  %v24303_v17 = vld [vmem:[#allocation120_spill] sm:$0xff]  ;;  %v17056_v19 = vmul.f32 %v16988_v1, %v24308_v4  ;;  %v17062_v40 = vmul.f32 %v16988_v1, %v24309_v3  ;;  %v24312_v4 = vsub.f32 %v14155_v38, %v16857_v34 }
 0x266   :  { %v24314_v3 = vsub.f32 %v14230_v26, %v16857_v34  ;;  %v24317_v26 = vsub.f32 %v14322_v32, %v16857_v34 }
 0x267   :  { %v2570_v56 = vmul.f32 %v16861_v7, %v2485_v14  ;;  %v17044_v7 = vmul.f32 %v16988_v1, %v24306_v53  ;;  %v24310_v53 = vsub.f32 %v14057_v25, %v16857_v34  ;;  %v17080_v46 = vmul.f32 %v16988_v1, %v24312_v4 }
 0x269   :  { %v2655_v44 = vadd.f32 %v16865_v47, %v2570_v56  ;;  %v24307_v56 = vsub.f32 %v13933_v52, %v16857_v34  ;;  %v17068_v52 = vmul.f32 %v16988_v1, %v24310_v53  ;;  %v24315_v53 = vsub.f32 %v14248_v22, %v16857_v34 }
 0x26a   :  { %v24318_v22 = vsub.f32 %v14377_v37, %v16857_v34 }
 0x26b   :  { %v17050_v15 = vmul.f32 %v16988_v1, %v24307_v56  ;;  %v2736_v14 = vmax.f32 %v2655_v44, 0.0  ;;  %v24311_v56 = vsub.f32 %v14080_v48, %v16857_v34  ;;  %v24313_v44 = vsub.f32 %v14171_v54, %v16857_v34 }
 0x26c   :  { %v17092_v48 = vmul.f32 %v16988_v1, %v24314_v3  ;;  %v17098_v38 = vmul.f32 %v16988_v1, %v24315_v53  ;;  %v24316_v54 = vsub.f32 %v14304_v50, %v16857_v34  ;;  %v17117_v3 = vmul.f32 %v16988_v1, %v24318_v22 }
 0x26d   :  { %v17074_v42 = vmul.f32 %v16988_v1, %v24311_v56  ;;  %v17086_v25 = vmul.f32 %v16988_v1, %v24313_v44  ;;  %v2817_v56 = vmul.f32 %v2736_v14, %v16855_v23  ;;  %v17111_v44 = vmul.f32 %v16988_v1, %v24317_v26 }
 0x26e   :  { %v17105_v4 = vmul.f32 %v16988_v1, %v24316_v54  ;;  %v24319_v14 = vsub.f32 %v14388_v16, %v16857_v34  ;;  %v24320_v53 = vsub.f32 %v14466_v57, %v16857_v34  ;;  %v24321_v54 = vsub.f32 %v14483_v61, %v16857_v34 }
 0x26f   :  { %v24322_v26 = vsub.f32 %v14533_v13, %v16857_v34  ;;  %2904 = vst [vmem:[#allocation2 + $0x298] sm:$0xff] %v2817_v56  ;;  %v24323_v22 = vsub.f32 %v14550_v59, %v16857_v34  ;;  %v24326_v56 = vsub.f32 %v24254_v18, %v16857_v34 }
 0x270   :  { %v17123_v50 = vmul.f32 %v16988_v1, %v24319_v14  ;;  %v17129_v32 = vmul.f32 %v16988_v1, %v24320_v53  ;;  %v17135_v37 = vmul.f32 %v16988_v1, %v24321_v54  ;;  %v24324_v14 = vsub.f32 %v24252_v60, %v16857_v34 }
 0x271   :  { %v17141_v16 = vmul.f32 %v16988_v1, %v24322_v26  ;;  %v17147_v57 = vmul.f32 %v16988_v1, %v24323_v22  ;;  %v24325_v53 = vsub.f32 %v24253_v28, %v16857_v34  ;;  %v17165_v59 = vmul.f32 %v16988_v1, %v24326_v56 }
 0x272   :  { %v17153_v61 = vmul.f32 %v16988_v1, %v24324_v14  ;;  %v24327_v54 = vsub.f32 %v24255_v45, %v16857_v34  ;;  %v24328_v26 = vsub.f32 %v24256_v39, %v16857_v34  ;;  %v24329_v22 = vsub.f32 %v24257_v11, %v16857_v34 }
 0x273   :  { %v17159_v13 = vmul.f32 %v16988_v1, %v24325_v53  ;;  %v24330_v14 = vsub.f32 %v24258_v36, %v16857_v34  ;;  %v24331_v53 = vsub.f32 %v24259_v8, %v16857_v34  ;;  %v24332_v56 = vsub.f32 %v24260_v33, %v16857_v34 }
 0x274   :  { %v17171_v60 = vmul.f32 %v16988_v1, %v24327_v54  ;;  %v17177_v28 = vmul.f32 %v16988_v1, %v24328_v26  ;;  %v17183_v18 = vmul.f32 %v16988_v1, %v24329_v22  ;;  %v24333_v54 = vsub.f32 %v24261_v5, %v16857_v34 }
 0x275   :  { %v17189_v45 = vmul.f32 %v16988_v1, %v24330_v14  ;;  %v17195_v39 = vmul.f32 %v16988_v1, %v24331_v53  ;;  %v17201_v11 = vmul.f32 %v16988_v1, %v24332_v56  ;;  %v24334_v26 = vsub.f32 %v24262_v55, %v16857_v34 }
 0x276   :  { %v17207_v36 = vmul.f32 %v16988_v1, %v24333_v54  ;;  %v24335_v22 = vsub.f32 %v24263_v51, %v16857_v34  ;;  %v24336_v14 = vsub.f32 %v24264_v41, %v16857_v34  ;;  %v24337_v53 = vsub.f32 %v24265_v10, %v16857_v34 }
 0x277   :  { %v17213_v8 = vmul.f32 %v16988_v1, %v24334_v26  ;;  %v24338_v56 = vsub.f32 %v24266_v27, %v16857_v34  ;;  %v24339_v54 = vsub.f32 %v24267_v43, %v16857_v34  ;;  %v24340_v26 = vsub.f32 %v24268_v6, %v16857_v34 }
 0x278   :  { %v17219_v33 = vmul.f32 %v16988_v1, %v24335_v22  ;;  %v17225_v5 = vmul.f32 %v16988_v1, %v24336_v14  ;;  %v17231_v55 = vmul.f32 %v16988_v1, %v24337_v53  ;;  %v24341_v22 = vld [vmem:[#allocation57_spill] sm:$0xff]  ;;  %v24344_v53 = vld [vmem:[#allocation59_spill] sm:$0xff] }
 0x279   :  { %v17237_v51 = vmul.f32 %v16988_v1, %v24338_v56  ;;  %v17243_v41 = vmul.f32 %v16988_v1, %v24339_v54  ;;  %v17249_v10 = vmul.f32 %v16988_v1, %v24340_v26  ;;  %v24342_v14 = vsub.f32 %v24341_v22, %v16857_v34  ;;  %v24347_v54 = vld [vmem:[#allocation60_spill] sm:$0xff] }
 0x27a   :  { %v24345_v56 = vsub.f32 %v24344_v53, %v16857_v34  ;;  %v24348_v23 = vsub.f32 %v24347_v54, %v16857_v34  ;;  %v24350_v26 = vld [vmem:[#allocation64_spill] sm:$0xff] }
 0x27b   :  { %v17255_v27 = vmul.f32 %v16988_v1, %v24342_v14  ;;  %v24351_v47 = vsub.f32 %v24350_v26, %v16857_v34  ;;  %v24353_v14 = vld [vmem:[#allocation65_spill] sm:$0xff] }
 0x27c   :  { %v17261_v43 = vmul.f32 %v16988_v1, %v24345_v56  ;;  %v17267_v6 = vmul.f32 %v16988_v1, %v24348_v23  ;;  %v24356_v56 = vld [vmem:[#allocation67_spill] sm:$0xff]  ;;  %v24359_v23 = vld [vmem:[#allocation68_spill] sm:$0xff] }
 0x27d   :  { %24343 = vst [vmem:[#allocation26_spill] sm:$0xff] %v17255_v27  ;;  %v17273_v22 = vmul.f32 %v16988_v1, %v24351_v47  ;;  %v24354_v27 = vsub.f32 %v24353_v14, %v16857_v34  ;;  %v24362_v47 = vld [vmem:[#allocation70_spill] sm:$0xff] }
 0x27e   :  { %24346 = vst [vmem:[#allocation27_spill] sm:$0xff] %v17261_v43  ;;  %24349 = vst [vmem:[#allocation28_spill] sm:$0xff] %v17267_v6  ;;  %v24357_v43 = vsub.f32 %v24356_v56, %v16857_v34  ;;  %v24360_v6 = vsub.f32 %v24359_v23, %v16857_v34 }
 0x27f   :  { %24352 = vst [vmem:[#allocation29_spill] sm:$0xff] %v17273_v22  ;;  %v17279_v53 = vmul.f32 %v16988_v1, %v24354_v27  ;;  %v24363_v22 = vsub.f32 %v24362_v47, %v16857_v34  ;;  %v24365_v27 = vld [vmem:[#allocation71_spill] sm:$0xff] }
 0x280   :  { %v17285_v54 = vmul.f32 %v16988_v1, %v24357_v43  ;;  %v17291_v26 = vmul.f32 %v16988_v1, %v24360_v6  ;;  %v24368_v43 = vld [vmem:[#allocation74_spill] sm:$0xff]  ;;  %v24371_v6 = vld [vmem:[#allocation75_spill] sm:$0xff] }
 0x281   :  { %24355 = vst [vmem:[#allocation33_spill] sm:$0xff] %v17279_v53  ;;  %v17297_v14 = vmul.f32 %v16988_v1, %v24363_v22  ;;  %v24366_v53 = vsub.f32 %v24365_v27, %v16857_v34  ;;  %v24374_v22 = vld [vmem:[#allocation76_spill] sm:$0xff] }
 0x282   :  { %24358 = vst [vmem:[#allocation35_spill] sm:$0xff] %v17285_v54  ;;  %24361 = vst [vmem:[#allocation37_spill] sm:$0xff] %v17291_v26  ;;  %v24369_v54 = vsub.f32 %v24368_v43, %v16857_v34  ;;  %v24372_v26 = vsub.f32 %v24371_v6, %v16857_v34 }
 0x283   :  { %24364 = vst [vmem:[#allocation38_spill] sm:$0xff] %v17297_v14  ;;  %v17303_v56 = vmul.f32 %v16988_v1, %v24366_v53  ;;  %v24375_v14 = vsub.f32 %v24374_v22, %v16857_v34  ;;  %v24377_v53 = vld [vmem:[#allocation77_spill] sm:$0xff] }
 0x284   :  { %v17309_v23 = vmul.f32 %v16988_v1, %v24369_v54  ;;  %v17315_v47 = vmul.f32 %v16988_v1, %v24372_v26  ;;  %v24380_v54 = vld [vmem:[#allocation82_spill] sm:$0xff]  ;;  %v24383_v26 = vld [vmem:[#allocation83_spill] sm:$0xff] }
 0x285   :  { %24367 = vst [vmem:[#allocation40_spill] sm:$0xff] %v17303_v56  ;;  %v17321_v27 = vmul.f32 %v16988_v1, %v24375_v14  ;;  %v24378_v56 = vsub.f32 %v24377_v53, %v16857_v34  ;;  %v24386_v14 = vld [vmem:[#allocation85_spill] sm:$0xff] }
 0x286   :  { %24370 = vst [vmem:[#allocation41_spill] sm:$0xff] %v17309_v23  ;;  %24373 = vst [vmem:[#allocation44_spill] sm:$0xff] %v17315_v47  ;;  %v24381_v23 = vsub.f32 %v24380_v54, %v16857_v34  ;;  %v24384_v47 = vsub.f32 %v24383_v26, %v16857_v34 }
 0x287   :  { %24376 = vst [vmem:[#allocation45_spill] sm:$0xff] %v17321_v27  ;;  %v17327_v43 = vmul.f32 %v16988_v1, %v24378_v56  ;;  %v24387_v27 = vsub.f32 %v24386_v14, %v16857_v34  ;;  %v24389_v56 = vld [vmem:[#allocation86_spill] sm:$0xff] }
 0x288   :  { %v17333_v6 = vmul.f32 %v16988_v1, %v24381_v23  ;;  %v17339_v22 = vmul.f32 %v16988_v1, %v24384_v47  ;;  %v24392_v23 = vld [vmem:[#allocation90_spill] sm:$0xff]  ;;  %v24395_v47 = vld [vmem:[#allocation91_spill] sm:$0xff] }
 0x289   :  { %24379 = vst [vmem:[#allocation47_spill] sm:$0xff] %v17327_v43  ;;  %v17345_v53 = vmul.f32 %v16988_v1, %v24387_v27  ;;  %v24390_v43 = vsub.f32 %v24389_v56, %v16857_v34  ;;  %v24398_v27 = vld [vmem:[#allocation92_spill] sm:$0xff] }
 0x28a   :  { %24382 = vst [vmem:[#allocation49_spill] sm:$0xff] %v17333_v6  ;;  %24385 = vst [vmem:[#allocation52_spill] sm:$0xff] %v17339_v22  ;;  %v24393_v6 = vsub.f32 %v24392_v23, %v16857_v34  ;;  %v24396_v22 = vsub.f32 %v24395_v47, %v16857_v34 }
 0x28b   :  { %24388 = vst [vmem:[#allocation53_spill] sm:$0xff] %v17345_v53  ;;  %v17351_v54 = vmul.f32 %v16988_v1, %v24390_v43  ;;  %v24399_v53 = vsub.f32 %v24398_v27, %v16857_v34  ;;  %v24401_v43 = vld [vmem:[#allocation93_spill] sm:$0xff] }
 0x28c   :  { %v17357_v26 = vmul.f32 %v16988_v1, %v24393_v6  ;;  %v17363_v14 = vmul.f32 %v16988_v1, %v24396_v22  ;;  %v24404_v6 = vld [vmem:[#allocation97_spill] sm:$0xff]  ;;  %v24407_v22 = vld [vmem:[#allocation98_spill] sm:$0xff] }
 0x28d   :  { %24391 = vst [vmem:[#allocation56_spill] sm:$0xff] %v17351_v54  ;;  %v17369_v56 = vmul.f32 %v16988_v1, %v24399_v53  ;;  %v24402_v54 = vsub.f32 %v24401_v43, %v16857_v34  ;;  %v24410_v53 = vld [vmem:[#allocation100_spill] sm:$0xff] }
 0x28e   :  { %24394 = vst [vmem:[#allocation111_spill] sm:$0xff] %v17357_v26  ;;  %24397 = vst [vmem:[#allocation113_spill] sm:$0xff] %v17363_v14  ;;  %v24405_v26 = vsub.f32 %v24404_v6, %v16857_v34  ;;  %v24408_v14 = vsub.f32 %v24407_v22, %v16857_v34 }
 0x28f   :  { %24400 = vst [vmem:[#allocation117_spill] sm:$0xff] %v17369_v56  ;;  %v17375_v23 = vmul.f32 %v16988_v1, %v24402_v54  ;;  %v24411_v56 = vsub.f32 %v24410_v53, %v16857_v34  ;;  %v24413_v54 = vld [vmem:[#allocation101_spill] sm:$0xff] }
 0x290   :  { %v17381_v47 = vmul.f32 %v16988_v1, %v24405_v26  ;;  %v17387_v27 = vmul.f32 %v16988_v1, %v24408_v14  ;;  %v24416_v26 = vld [vmem:[#allocation103_spill] sm:$0xff]  ;;  %v24418_v14 = vld [vmem:[#allocation104_spill] sm:$0xff] }
 0x291   :  { %24403 = vst [vmem:[#allocation118_spill] sm:$0xff] %v17375_v23  ;;  %v17393_v43 = vmul.f32 %v16988_v1, %v24411_v56  ;;  %v24414_v23 = vsub.f32 %v24413_v54, %v16857_v34  ;;  %v24420_v56 = vld [vmem:[#allocation107_spill] sm:$0xff] }
 0x292   :  { %24406 = vst [vmem:[#allocation120_spill] sm:$0xff] %v17381_v47  ;;  %24409 = vst [vmem:[#allocation121_spill] sm:$0xff] %v17387_v27  ;;  %v24417_v47 = vsub.f32 %v24416_v26, %v16857_v34  ;;  %v24419_v27 = vsub.f32 %v24418_v14, %v16857_v34 }
 0x293   :  { %24412 = vst [vmem:[#allocation123_spill] sm:$0xff] %v17393_v43  ;;  %v17399_v6 = vmul.f32 %v16988_v1, %v24414_v23  ;;  %v24421_v43 = vsub.f32 %v24420_v56, %v16857_v34  ;;  %v24422_v23 = vld [vmem:[#allocation108_spill] sm:$0xff] }
 0x294   :  { %v17405_v22 = vmul.f32 %v16988_v1, %v24417_v47  ;;  %v17411_v53 = vmul.f32 %v16988_v1, %v24419_v27  ;;  %v24424_v47 = vsub.f32 %v24299_v35, %v16857_v34  ;;  %v24425_v27 = vsub.f32 %v24300_v58, %v16857_v34 }
 0x295   :  { %24415 = vst [vmem:[#allocation57_spill] sm:$0xff] %v17399_v6  ;;  %v17417_v54 = vmul.f32 %v16988_v1, %v24421_v43  ;;  %v24423_v6 = vsub.f32 %v24422_v23, %v16857_v34  ;;  %v24426_v43 = vsub.f32 %v24301_v29, %v16857_v34 }
 0x296   :  { %v17429_v14 = vmul.f32 %v16988_v1, %v24424_v47  ;;  %v17435_v56 = vmul.f32 %v16988_v1, %v24425_v27  ;;  %v24428_v47 = vsub.f32 %v24303_v17, %v16857_v34  ;;  %v24429_v27 = vsub.f32 %v24304_v0, %v16857_v34 }
 0x297   :  { %v17423_v26 = vmul.f32 %v16988_v1, %v24423_v6  ;;  %v17441_v23 = vmul.f32 %v16988_v1, %v24426_v43  ;;  %v24427_v6 = vsub.f32 %v24302_v20, %v16857_v34  ;;  %v24430_v43 = vsub.f32 %v24305_v2, %v16857_v34 }
 0x298   :  { %v17453_v58 = vmul.f32 %v16988_v1, %v24428_v47  ;;  %v17459_v29 = vmul.f32 %v16988_v1, %v24429_v27  ;;  %v24432_v47 = vsub.f32 %v16424_v30, %v16857_v34  ;;  %v24433_v27 = vsub.f32 %v16437_v63, %v16857_v34 }
 0x299   :  { %v17447_v35 = vmul.f32 %v16988_v1, %v24427_v6  ;;  %v17465_v20 = vmul.f32 %v16988_v1, %v24430_v43  ;;  %v24431_v6 = vsub.f32 %v16381_v49, %v16857_v34  ;;  %v24434_v43 = vsub.f32 %v16500_v24, %v16857_v34 }
 0x29a   :  { %v17477_v0 = vmul.f32 %v16988_v1, %v24432_v47  ;;  %v17483_v2 = vmul.f32 %v16988_v1, %v24433_v27  ;;  %v24436_v47 = vsub.f32 %v16553_v21, %v16857_v34  ;;  %v24438_v27 = vsub.f32 %v16572_v9, %v16857_v34 }
 0x29b   :  { %v17471_v17 = vmul.f32 %v16988_v1, %v24431_v6  ;;  %v17489_v49 = vmul.f32 %v16988_v1, %v24434_v43  ;;  %v24435_v6 = vsub.f32 %v16517_v62, %v16857_v34  ;;  %v24439_v43 = vsub.f32 %v16639_v31, %v16857_v34 }
 0x29c   :  { %v17501_v63 = vmul.f32 %v16988_v1, %v24436_v47  ;;  %v17507_v24 = vmul.f32 %v16988_v1, %v24438_v27  ;;  %v24441_v47 = vld [vmem:[#allocation138_spill] sm:$0xff] }
 0x29d   :  { %v17495_v30 = vmul.f32 %v16988_v1, %v24435_v6  ;;  %v17513_v62 = vmul.f32 %v16988_v1, %v24439_v43  ;;  %v24440_v6 = vsub.f32 %v16654_v12, %v16857_v34  ;;  %v17527_v9 = vmul.f32 %v24441_v47, %v17050_v15  ;;  %v24448_v43 = vld [vmem:[#allocation28_spill] sm:$0xff] }
 0x29e   :  { %24437 = vst [vmem:[#allocation59_spill] sm:$0xff] %v17501_v63  ;;  %v17523_v63 = vmul.f32 %v24441_v47, %v17044_v7  ;;  %v17531_v31 = vmul.f32 %v24441_v47, %v17056_v19  ;;  %v17535_v27 = vmul.f32 %v24441_v47, %v17062_v40  ;;  %v17539_v12 = vmul.f32 %v24441_v47, %v17068_v52 }
 0x29f   :  { %v17519_v21 = vmul.f32 %v16988_v1, %v24440_v6  ;;  %v17543_v34 = vmul.f32 %v24441_v47, %v17074_v42  ;;  %v17547_v15 = vmul.f32 %v24441_v47, %v17080_v46  ;;  %v17551_v19 = vmul.f32 %v24441_v47, %v17086_v25  ;;  %v24450_v6 = vld [vmem:[#allocation29_spill] sm:$0xff] }
 0x2a0   :  { %v17555_v7 = vmul.f32 %v24441_v47, %v17092_v48  ;;  %v17559_v1 = vmul.f32 %v24441_v47, %v17098_v38  ;;  %v17563_v40 = vmul.f32 %v24441_v47, %v17105_v4  ;;  %v17567_v52 = vmul.f32 %v24441_v47, %v17111_v44 }
 0x2a1   :  { %v17571_v42 = vmul.f32 %v24441_v47, %v17117_v3  ;;  %v17575_v46 = vmul.f32 %v24441_v47, %v17123_v50  ;;  %v17579_v25 = vmul.f32 %v24441_v47, %v17129_v32  ;;  %v17583_v48 = vmul.f32 %v24441_v47, %v17135_v37 }
 0x2a2   :  { %v17587_v38 = vmul.f32 %v24441_v47, %v17141_v16  ;;  %v17591_v4 = vmul.f32 %v24441_v47, %v17147_v57  ;;  %v17595_v44 = vmul.f32 %v24441_v47, %v17153_v61  ;;  %v17599_v3 = vmul.f32 %v24441_v47, %v17159_v13 }
 0x2a3   :  { %v17603_v50 = vmul.f32 %v24441_v47, %v17165_v59  ;;  %v17607_v32 = vmul.f32 %v24441_v47, %v17171_v60  ;;  %v17611_v37 = vmul.f32 %v24441_v47, %v17177_v28  ;;  %v17615_v16 = vmul.f32 %v24441_v47, %v17183_v18 }
 0x2a4   :  { %v17619_v57 = vmul.f32 %v24441_v47, %v17189_v45  ;;  %v17623_v61 = vmul.f32 %v24441_v47, %v17195_v39  ;;  %v17627_v13 = vmul.f32 %v24441_v47, %v17201_v11  ;;  %v17631_v59 = vmul.f32 %v24441_v47, %v17207_v36 }
 0x2a5   :  { %v17635_v60 = vmul.f32 %v24441_v47, %v17213_v8  ;;  %v17639_v28 = vmul.f32 %v24441_v47, %v17219_v33  ;;  %v17643_v18 = vmul.f32 %v24441_v47, %v17225_v5  ;;  %v17647_v45 = vmul.f32 %v24441_v47, %v17231_v55  ;;  %v24444_v8 = vld [vmem:[#allocation26_spill] sm:$0xff]  ;;  %v24446_v5 = vld [vmem:[#allocation27_spill] sm:$0xff] }
 0x2a6   :  { %v17651_v39 = vmul.f32 %v24441_v47, %v17237_v51  ;;  %v17655_v11 = vmul.f32 %v24441_v47, %v17243_v41  ;;  %v17659_v36 = vmul.f32 %v24441_v47, %v17249_v10  ;;  %v17663_v33 = vmul.f32 %v24441_v47, %v24444_v8 }
 0x2a7   :  { %v17667_v55 = vmul.f32 %v24441_v47, %v24446_v5  ;;  %v17671_v51 = vmul.f32 %v24441_v47, %v24448_v43  ;;  %v17675_v41 = vmul.f32 %v24441_v47, %v24450_v6 }
 0x2a8   :  { %24442 = vst [vmem:[#allocation60_spill] sm:$0xff] %v17655_v11  ;;  %24443 = vst [vmem:[#allocation64_spill] sm:$0xff] %v17659_v36  ;;  %v24452_v11 = vld [vmem:[#allocation33_spill] sm:$0xff]  ;;  %v24454_v36 = vld [vmem:[#allocation35_spill] sm:$0xff] }
 0x2a9   :  { %24445 = vst [vmem:[#allocation65_spill] sm:$0xff] %v17663_v33  ;;  %24447 = vst [vmem:[#allocation67_spill] sm:$0xff] %v17667_v55  ;;  %v17679_v10 = vmul.f32 %v24441_v47, %v24452_v11  ;;  %v17683_v8 = vmul.f32 %v24441_v47, %v24454_v36  ;;  %v24456_v33 = vld [vmem:[#allocation37_spill] sm:$0xff]  ;;  %v24458_v55 = vld [vmem:[#allocation38_spill] sm:$0xff] }
 0x2aa   :  { %24449 = vst [vmem:[#allocation68_spill] sm:$0xff] %v17671_v51  ;;  %24451 = vst [vmem:[#allocation70_spill] sm:$0xff] %v17675_v41  ;;  %v17687_v5 = vmul.f32 %v24441_v47, %v24456_v33  ;;  %v17691_v43 = vmul.f32 %v24441_v47, %v24458_v55  ;;  %v24460_v51 = vld [vmem:[#allocation40_spill] sm:$0xff]  ;;  %v24462_v41 = vld [vmem:[#allocation41_spill] sm:$0xff] }
 0x2ab   :  { %24453 = vst [vmem:[#allocation71_spill] sm:$0xff] %v17679_v10  ;;  %24455 = vst [vmem:[#allocation74_spill] sm:$0xff] %v17683_v8  ;;  %v17695_v6 = vmul.f32 %v24441_v47, %v24460_v51  ;;  %v17699_v11 = vmul.f32 %v24441_v47, %v24462_v41  ;;  %v24464_v10 = vld [vmem:[#allocation44_spill] sm:$0xff]  ;;  %v24466_v8 = vld [vmem:[#allocation45_spill] sm:$0xff] }
 0x2ac   :  { %24457 = vst [vmem:[#allocation75_spill] sm:$0xff] %v17687_v5  ;;  %24459 = vst [vmem:[#allocation76_spill] sm:$0xff] %v17691_v43  ;;  %v17703_v36 = vmul.f32 %v24441_v47, %v24464_v10  ;;  %v17707_v33 = vmul.f32 %v24441_v47, %v24466_v8  ;;  %v24468_v5 = vld [vmem:[#allocation47_spill] sm:$0xff]  ;;  %v24470_v43 = vld [vmem:[#allocation49_spill] sm:$0xff] }
 0x2ad   :  { %24461 = vst [vmem:[#allocation77_spill] sm:$0xff] %v17695_v6  ;;  %24463 = vst [vmem:[#allocation82_spill] sm:$0xff] %v17699_v11  ;;  %v17711_v55 = vmul.f32 %v24441_v47, %v24468_v5  ;;  %v17715_v51 = vmul.f32 %v24441_v47, %v24470_v43  ;;  %v24472_v6 = vld [vmem:[#allocation52_spill] sm:$0xff]  ;;  %v24474_v11 = vld [vmem:[#allocation53_spill] sm:$0xff] }
 0x2ae   :  { %24465 = vst [vmem:[#allocation83_spill] sm:$0xff] %v17703_v36  ;;  %24467 = vst [vmem:[#allocation85_spill] sm:$0xff] %v17707_v33  ;;  %v17719_v41 = vmul.f32 %v24441_v47, %v24472_v6  ;;  %v17723_v10 = vmul.f32 %v24441_v47, %v24474_v11  ;;  %v24476_v36 = vld [vmem:[#allocation56_spill] sm:$0xff]  ;;  %v24478_v33 = vld [vmem:[#allocation111_spill] sm:$0xff] }
 0x2af   :  { %24469 = vst [vmem:[#allocation86_spill] sm:$0xff] %v17711_v55  ;;  %24471 = vst [vmem:[#allocation90_spill] sm:$0xff] %v17715_v51  ;;  %v17727_v8 = vmul.f32 %v24441_v47, %v24476_v36  ;;  %v17731_v5 = vmul.f32 %v24441_v47, %v24478_v33  ;;  %v24480_v55 = vld [vmem:[#allocation113_spill] sm:$0xff] }
 0x2b0   :  { %24473 = vst [vmem:[#allocation91_spill] sm:$0xff] %v17719_v41  ;;  %24475 = vst [vmem:[#allocation92_spill] sm:$0xff] %v17723_v10  ;;  %v17735_v43 = vmul.f32 %v24441_v47, %v24480_v55  ;;  %v24482_v51 = vld [vmem:[#allocation117_spill] sm:$0xff]  ;;  %v24483_v41 = vld [vmem:[#allocation118_spill] sm:$0xff] }
 0x2b1   :  { %24477 = vst [vmem:[#allocation93_spill] sm:$0xff] %v17727_v8  ;;  %24479 = vst [vmem:[#allocation97_spill] sm:$0xff] %v17731_v5  ;;  %v17739_v6 = vmul.f32 %v24441_v47, %v24482_v51  ;;  %v17743_v11 = vmul.f32 %v24441_v47, %v24483_v41  ;;  %v24484_v10 = vld [vmem:[#allocation120_spill] sm:$0xff]  ;;  %v24485_v8 = vld [vmem:[#allocation121_spill] sm:$0xff]  ;;  %v17763_v41 = vmul.f32 %v24441_v47, %v17405_v22 }
 0x2b2   :  { %24481 = vst [vmem:[#allocation98_spill] sm:$0xff] %v17735_v43  ;;  %v17747_v36 = vmul.f32 %v24441_v47, %v24484_v10  ;;  %v17751_v33 = vmul.f32 %v24441_v47, %v24485_v8  ;;  %v24486_v5 = vld [vmem:[#allocation123_spill] sm:$0xff]  ;;  %v24487_v43 = vld [vmem:[#allocation57_spill] sm:$0xff]  ;;  %v17767_v10 = vmul.f32 %v24441_v47, %v17411_v53  ;;  %v17771_v8 = vmul.f32 %v24441_v47, %v17417_v54 }
 0x2b3   :  { %v17755_v55 = vmul.f32 %v24441_v47, %v24486_v5  ;;  %v17759_v51 = vmul.f32 %v24441_v47, %v24487_v43  ;;  %v17775_v5 = vmul.f32 %v24441_v47, %v17423_v26  ;;  %v17779_v43 = vmul.f32 %v24441_v47, %v17429_v14 }
 0x2b4   :  { %v17783_v22 = vmul.f32 %v24441_v47, %v17435_v56  ;;  %v17787_v53 = vmul.f32 %v24441_v47, %v17441_v23  ;;  %v17791_v54 = vmul.f32 %v24441_v47, %v17447_v35  ;;  %v17795_v26 = vmul.f32 %v24441_v47, %v17453_v58 }
 0x2b5   :  { %v17799_v14 = vmul.f32 %v24441_v47, %v17459_v29  ;;  %v17803_v56 = vmul.f32 %v24441_v47, %v17465_v20  ;;  %v17807_v23 = vmul.f32 %v24441_v47, %v17471_v17  ;;  %v17811_v35 = vmul.f32 %v24441_v47, %v17477_v0 }
 0x2b6   :  { %v17815_v58 = vmul.f32 %v24441_v47, %v17483_v2  ;;  %v17819_v29 = vmul.f32 %v24441_v47, %v17489_v49  ;;  %v17823_v20 = vmul.f32 %v24441_v47, %v17495_v30  ;;  %v17831_v0 = vmul.f32 %v24441_v47, %v17507_v24 }
 0x2b7   :  { %24488 = vst [vmem:[#allocation100_spill] sm:$0xff] %v17803_v56  ;;  %v24490_v56 = vld [vmem:[#allocation59_spill] sm:$0xff]  ;;  %v17835_v2 = vmul.f32 %v24441_v47, %v17513_v62  ;;  %v17839_v49 = vmul.f32 %v24441_v47, %v17519_v21 }
 0x2b8   :  { %24489 = vst [vmem:[#allocation101_spill] sm:$0xff] %v17819_v29  ;;  %v17827_v17 = vmul.f32 %v24441_v47, %v24490_v56  ;;  %v24491_v29 = vld [vmem:[#allocation139_spill] sm:$0xff] }
 0x2b9   :  { %v17843_v30 = vadd.f32 %v24491_v29, %v17523_v63  ;;  %v17847_v56 = vadd.f32 %v24491_v29, %v17527_v9  ;;  %v17851_v24 = vadd.f32 %v24491_v29, %v17531_v31  ;;  %v17855_v62 = vadd.f32 %v24491_v29, %v17535_v27 }
 0x2ba   :  { %v17859_v21 = vadd.f32 %v24491_v29, %v17539_v12  ;;  %v17863_v63 = vadd.f32 %v24491_v29, %v17543_v34  ;;  %v17867_v47 = vadd.f32 %v24491_v29, %v17547_v15  ;;  %v17871_v9 = vadd.f32 %v24491_v29, %v17551_v19 }
 0x2bb   :  { %v17875_v31 = vadd.f32 %v24491_v29, %v17555_v7  ;;  %v17879_v27 = vadd.f32 %v24491_v29, %v17559_v1  ;;  %v17883_v12 = vadd.f32 %v24491_v29, %v17563_v40  ;;  %v17887_v34 = vadd.f32 %v24491_v29, %v17567_v52 }
 0x2bc   :  { %v17891_v15 = vadd.f32 %v24491_v29, %v17571_v42  ;;  %v17895_v19 = vadd.f32 %v24491_v29, %v17575_v46  ;;  %v17899_v7 = vadd.f32 %v24491_v29, %v17579_v25  ;;  %v17903_v1 = vadd.f32 %v24491_v29, %v17583_v48 }
 0x2bd   :  { %v17907_v40 = vadd.f32 %v24491_v29, %v17587_v38  ;;  %v17911_v52 = vadd.f32 %v24491_v29, %v17591_v4  ;;  %v17915_v42 = vadd.f32 %v24491_v29, %v17595_v44  ;;  %v17919_v46 = vadd.f32 %v24491_v29, %v17599_v3 }
 0x2be   :  { %v17923_v25 = vadd.f32 %v24491_v29, %v17603_v50  ;;  %v17927_v48 = vadd.f32 %v24491_v29, %v17607_v32  ;;  %v17931_v38 = vadd.f32 %v24491_v29, %v17611_v37  ;;  %v17935_v4 = vadd.f32 %v24491_v29, %v17615_v16 }
 0x2bf   :  { %24492 = vst [vmem:[#allocation103_spill] sm:$0xff] %v17915_v42  ;;  %24493 = vst [vmem:[#allocation104_spill] sm:$0xff] %v17919_v46  ;;  %v17939_v44 = vadd.f32 %v24491_v29, %v17619_v57  ;;  %v17943_v3 = vadd.f32 %v24491_v29, %v17623_v61  ;;  %v17947_v50 = vadd.f32 %v24491_v29, %v17627_v13 }
 0x2c0   :  { %24494 = vst [vmem:[#allocation107_spill] sm:$0xff] %v17923_v25  ;;  %24495 = vst [vmem:[#allocation108_spill] sm:$0xff] %v17927_v48  ;;  %v17951_v32 = vadd.f32 %v24491_v29, %v17631_v59  ;;  %v17955_v37 = vadd.f32 %v24491_v29, %v17635_v60  ;;  %v17959_v16 = vadd.f32 %v24491_v29, %v17639_v28  ;;  %v24507_v59 = vld [vmem:[#allocation60_spill] sm:$0xff] }
 0x2c1   :  { %24496 = vst [vmem:[#allocation138_spill] sm:$0xff] %v17931_v38  ;;  %24497 = vst [vmem:[#allocation26_spill] sm:$0xff] %v17935_v4  ;;  %v17963_v57 = vadd.f32 %v24491_v29, %v17643_v18  ;;  %v17967_v61 = vadd.f32 %v24491_v29, %v17647_v45  ;;  %v17971_v13 = vadd.f32 %v24491_v29, %v17651_v39 }
 0x2c2   :  { %24498 = vst [vmem:[#allocation27_spill] sm:$0xff] %v17939_v44  ;;  %24499 = vst [vmem:[#allocation28_spill] sm:$0xff] %v17943_v3  ;;  %v17975_v60 = vadd.f32 %v24491_v29, %v24507_v59 }
 0x2c3   :  { %24500 = vst [vmem:[#allocation29_spill] sm:$0xff] %v17947_v50  ;;  %24501 = vst [vmem:[#allocation33_spill] sm:$0xff] %v17951_v32 }
 0x2c4   :  { %24502 = vst [vmem:[#allocation35_spill] sm:$0xff] %v17955_v37  ;;  %24503 = vst [vmem:[#allocation37_spill] sm:$0xff] %v17959_v16  ;;  %v24509_v37 = vld [vmem:[#allocation64_spill] sm:$0xff]  ;;  %v24511_v16 = vld [vmem:[#allocation65_spill] sm:$0xff] }
 0x2c5   :  { %24504 = vst [vmem:[#allocation38_spill] sm:$0xff] %v17963_v57  ;;  %24505 = vst [vmem:[#allocation40_spill] sm:$0xff] %v17967_v61  ;;  %v17979_v28 = vadd.f32 %v24491_v29, %v24509_v37  ;;  %v17983_v18 = vadd.f32 %v24491_v29, %v24511_v16  ;;  %v24513_v57 = vld [vmem:[#allocation67_spill] sm:$0xff]  ;;  %v24515_v61 = vld [vmem:[#allocation68_spill] sm:$0xff] }
 0x2c6   :  { %24506 = vst [vmem:[#allocation41_spill] sm:$0xff] %v17971_v13  ;;  %24508 = vst [vmem:[#allocation44_spill] sm:$0xff] %v17975_v60  ;;  %v17987_v45 = vadd.f32 %v24491_v29, %v24513_v57  ;;  %v17991_v39 = vadd.f32 %v24491_v29, %v24515_v61  ;;  %v24517_v13 = vld [vmem:[#allocation70_spill] sm:$0xff]  ;;  %v24519_v60 = vld [vmem:[#allocation71_spill] sm:$0xff] }
 0x2c7   :  { %24510 = vst [vmem:[#allocation45_spill] sm:$0xff] %v17979_v28  ;;  %24512 = vst [vmem:[#allocation47_spill] sm:$0xff] %v17983_v18  ;;  %v17995_v59 = vadd.f32 %v24491_v29, %v24517_v13  ;;  %v17999_v37 = vadd.f32 %v24491_v29, %v24519_v60  ;;  %v24521_v28 = vld [vmem:[#allocation74_spill] sm:$0xff]  ;;  %v24523_v18 = vld [vmem:[#allocation75_spill] sm:$0xff] }
 0x2c8   :  { %24514 = vst [vmem:[#allocation49_spill] sm:$0xff] %v17987_v45  ;;  %24516 = vst [vmem:[#allocation52_spill] sm:$0xff] %v17991_v39  ;;  %v18003_v16 = vadd.f32 %v24491_v29, %v24521_v28  ;;  %v18007_v57 = vadd.f32 %v24491_v29, %v24523_v18  ;;  %v24525_v45 = vld [vmem:[#allocation76_spill] sm:$0xff]  ;;  %v24527_v39 = vld [vmem:[#allocation77_spill] sm:$0xff] }
 0x2c9   :  { %24518 = vst [vmem:[#allocation53_spill] sm:$0xff] %v17995_v59  ;;  %24520 = vst [vmem:[#allocation56_spill] sm:$0xff] %v17999_v37  ;;  %v18011_v61 = vadd.f32 %v24491_v29, %v24525_v45  ;;  %v18015_v13 = vadd.f32 %v24491_v29, %v24527_v39  ;;  %v24529_v59 = vld [vmem:[#allocation82_spill] sm:$0xff]  ;;  %v24531_v37 = vld [vmem:[#allocation83_spill] sm:$0xff] }
 0x2ca   :  { %24522 = vst [vmem:[#allocation111_spill] sm:$0xff] %v18003_v16  ;;  %24524 = vst [vmem:[#allocation113_spill] sm:$0xff] %v18007_v57  ;;  %v18019_v60 = vadd.f32 %v24491_v29, %v24529_v59  ;;  %v18023_v28 = vadd.f32 %v24491_v29, %v24531_v37  ;;  %v24533_v16 = vld [vmem:[#allocation85_spill] sm:$0xff]  ;;  %v24535_v57 = vld [vmem:[#allocation86_spill] sm:$0xff] }
 0x2cb   :  { %24526 = vst [vmem:[#allocation117_spill] sm:$0xff] %v18011_v61  ;;  %24528 = vst [vmem:[#allocation118_spill] sm:$0xff] %v18015_v13  ;;  %v18027_v18 = vadd.f32 %v24491_v29, %v24533_v16  ;;  %v18031_v45 = vadd.f32 %v24491_v29, %v24535_v57  ;;  %v24537_v61 = vld [vmem:[#allocation90_spill] sm:$0xff]  ;;  %v24538_v13 = vld [vmem:[#allocation91_spill] sm:$0xff] }
 0x2cc   :  { %24530 = vst [vmem:[#allocation120_spill] sm:$0xff] %v18019_v60  ;;  %24532 = vst [vmem:[#allocation121_spill] sm:$0xff] %v18023_v28  ;;  %v18035_v39 = vadd.f32 %v24491_v29, %v24537_v61  ;;  %v18039_v59 = vadd.f32 %v24491_v29, %v24538_v13  ;;  %v24539_v60 = vld [vmem:[#allocation92_spill] sm:$0xff]  ;;  %v24540_v28 = vld [vmem:[#allocation93_spill] sm:$0xff]  ;;  %v18059_v13 = vadd.f32 %v24491_v29, %v17739_v6 }
 0x2cd   :  { %24534 = vst [vmem:[#allocation123_spill] sm:$0xff] %v18027_v18  ;;  %24536 = vst [vmem:[#allocation57_spill] sm:$0xff] %v18031_v45  ;;  %v18043_v37 = vadd.f32 %v24491_v29, %v24539_v60  ;;  %v18047_v16 = vadd.f32 %v24491_v29, %v24540_v28  ;;  %v24541_v18 = vld [vmem:[#allocation97_spill] sm:$0xff]  ;;  %v24542_v45 = vld [vmem:[#allocation98_spill] sm:$0xff]  ;;  %v18063_v60 = vadd.f32 %v24491_v29, %v17743_v11 }
 0x2ce   :  { %v18051_v57 = vadd.f32 %v24491_v29, %v24541_v18  ;;  %v18055_v61 = vadd.f32 %v24491_v29, %v24542_v45  ;;  %v18067_v28 = vadd.f32 %v24491_v29, %v17747_v36  ;;  %v18071_v18 = vadd.f32 %v24491_v29, %v17751_v33 }
 0x2cf   :  { %v18075_v45 = vadd.f32 %v24491_v29, %v17755_v55  ;;  %v18079_v6 = vadd.f32 %v24491_v29, %v17759_v51  ;;  %v18083_v11 = vadd.f32 %v24491_v29, %v17763_v41  ;;  %v18087_v36 = vadd.f32 %v24491_v29, %v17767_v10  ;;  %v24569_v50 = vld [vmem:[#allocation52_spill] sm:$0xff] }
 0x2d0   :  { %24543 = vst [vmem:[#allocation59_spill] sm:$0xff] %v18055_v61  ;;  %24544 = vst [vmem:[#allocation139_spill] sm:$0xff] %v18071_v18  ;;  %v18091_v33 = vadd.f32 %v24491_v29, %v17771_v8  ;;  %v18095_v55 = vadd.f32 %v24491_v29, %v17775_v5  ;;  %v18099_v51 = vadd.f32 %v24491_v29, %v17779_v43  ;;  %v24570_v32 = vld [vmem:[#allocation53_spill] sm:$0xff] }
 0x2d1   :  { %v18103_v41 = vadd.f32 %v24491_v29, %v17783_v22  ;;  %v18107_v10 = vadd.f32 %v24491_v29, %v17787_v53  ;;  %v18111_v8 = vadd.f32 %v24491_v29, %v17791_v54  ;;  %v18115_v5 = vadd.f32 %v24491_v29, %v17795_v26  ;;  %v24572_v42 = vld [vmem:[#allocation111_spill] sm:$0xff]  ;;  %v24573_v46 = vld [vmem:[#allocation113_spill] sm:$0xff] }
 0x2d2   :  { %24545 = vst [vmem:[#allocation60_spill] sm:$0xff] %v18095_v55  ;;  %24546 = vst [vmem:[#allocation64_spill] sm:$0xff] %v18099_v51  ;;  %v18119_v43 = vadd.f32 %v24491_v29, %v17799_v14  ;;  %v24552_v51 = vld [vmem:[#allocation100_spill] sm:$0xff]  ;;  %v18127_v53 = vadd.f32 %v24491_v29, %v17807_v23  ;;  %v18131_v54 = vadd.f32 %v24491_v29, %v17811_v35  ;;  %v24574_v25 = vld [vmem:[#allocation117_spill] sm:$0xff] }
 0x2d3   :  { %24547 = vst [vmem:[#allocation65_spill] sm:$0xff] %v18103_v41  ;;  %24548 = vst [vmem:[#allocation67_spill] sm:$0xff] %v18107_v10  ;;  %v18123_v22 = vadd.f32 %v24491_v29, %v24552_v51  ;;  %v18135_v26 = vadd.f32 %v24491_v29, %v17815_v58  ;;  %v18143_v51 = vadd.f32 %v24491_v29, %v17823_v20  ;;  %v24575_v48 = vld [vmem:[#allocation118_spill] sm:$0xff]  ;;  %v24576_v38 = vld [vmem:[#allocation120_spill] sm:$0xff] }
 0x2d4   :  { %24549 = vst [vmem:[#allocation68_spill] sm:$0xff] %v18111_v8  ;;  %24550 = vst [vmem:[#allocation70_spill] sm:$0xff] %v18115_v5  ;;  %v24554_v5 = vld [vmem:[#allocation101_spill] sm:$0xff]  ;;  %v18147_v23 = vadd.f32 %v24491_v29, %v17827_v17  ;;  %v18151_v35 = vadd.f32 %v24491_v29, %v17831_v0  ;;  %v18155_v58 = vadd.f32 %v24491_v29, %v17835_v2  ;;  %v24578_v44 = vld [vmem:[#allocation123_spill] sm:$0xff]  ;;  %v24590_v17 = vmax.f32 %v17847_v56, 0.0 }
 0x2d5   :  { %24551 = vst [vmem:[#allocation71_spill] sm:$0xff] %v18119_v43  ;;  %24553 = vst [vmem:[#allocation74_spill] sm:$0xff] %v18135_v26  ;;  %v18139_v14 = vadd.f32 %v24491_v29, %v24554_v5  ;;  %v18159_v5 = vadd.f32 %v24491_v29, %v17839_v49  ;;  %v24577_v4 = vld [vmem:[#allocation121_spill] sm:$0xff]  ;;  %v24583_v61 = vmov %v18143_v51  ;;  %v24587_v43 = vld [vmem:[#allocation4_spill] sm:$0xff]  ;;  %v24588_v49 = vmax.f32 %v17843_v30, 0.0 }
 0x2d6   :  { %24556 = vst [vmem:[#allocation76_spill] sm:$0xff] %v18143_v51  ;;  %24557 = vst [vmem:[#allocation77_spill] sm:$0xff] %v18147_v23  ;;  %v24579_v3 = vld [vmem:[#allocation57_spill] sm:$0xff]  ;;  %v24584_v41 = vmov %v18147_v23  ;;  %v24585_v10 = vmov %v18151_v35  ;;  %v24591_v23 = vld [vmem:[#allocation6_spill] sm:$0xff]  ;;  %v24592_v0 = vmax.f32 %v17851_v24, 0.0  ;;  %v24596_v30 = vmax.f32 %v17859_v21, 0.0 }
 0x2d7   :  { %24555 = vst [vmem:[#allocation75_spill] sm:$0xff] %v18139_v14  ;;  %24558 = vst [vmem:[#allocation82_spill] sm:$0xff] %v18151_v35  ;;  %v24571_v14 = vld [vmem:[#allocation56_spill] sm:$0xff]  ;;  %v18244_v20 = vmul.f32 %v24588_v49, %v24587_v43  ;;  %v24589_v51 = vld [vmem:[#allocation5_spill] sm:$0xff]  ;;  %v24598_v56 = vmax.f32 %v17863_v63, 0.0  ;;  %v24600_v24 = vmax.f32 %v17867_v47, 0.0 }
 0x2d8   :  { %24559 = vst [vmem:[#allocation83_spill] sm:$0xff] %v18155_v58  ;;  %v18249_v26 = vmul.f32 %v24590_v17, %v24589_v51  ;;  %v18254_v35 = vmul.f32 %v24592_v0, %v24591_v23  ;;  %v24593_v2 = vld [vmem:[#allocation7_spill] sm:$0xff]  ;;  %v24594_v58 = vmax.f32 %v17855_v62, 0.0  ;;  %v24595_v29 = vld [vmem:[#allocation8_spill] sm:$0xff]  ;;  %v24597_v43 = vld [vmem:[#allocation9_spill] sm:$0xff]  ;;  %v24603_v62 = vmax.f32 %v17871_v9, 0.0 }
 0x2d9   :  { %v18264_v49 = vmul.f32 %v24596_v30, %v24595_v29  ;;  %v18269_v17 = vmul.f32 %v24598_v56, %v24597_v43  ;;  %v24599_v51 = vld [vmem:[#allocation10_spill] sm:$0xff]  ;;  %v24602_v23 = vld [vmem:[#allocation11_spill] sm:$0xff]  ;;  %v24606_v21 = vmax.f32 %v17875_v31, 0.0  ;;  %2824 = vst [vmem:[#allocation2 + $0x18] sm:$0xff] %v18244_v20  ;;  %v24608_v63 = vld [vmem:[#allocation13_spill] sm:$0xff]  ;;  %v24609_v56 = vmax.f32 %v17879_v27, 0.0 }
 0x2da   :  { %v18259_v8 = vmul.f32 %v24594_v58, %v24593_v2  ;;  %v18274_v0 = vmul.f32 %v24600_v24, %v24599_v51  ;;  %v18279_v58 = vmul.f32 %v24603_v62, %v24602_v23  ;;  %v24605_v2 = vld [vmem:[#allocation12_spill] sm:$0xff]  ;;  %v24611_v47 = vld [vmem:[#allocation14_spill] sm:$0xff]  ;;  %v24612_v24 = vmax.f32 %v17883_v12, 0.0  ;;  %v24614_v9 = vld [vmem:[#allocation15_spill] sm:$0xff]  ;;  %2825 = vst [vmem:[#allocation2 + $0x20] sm:$0xff] %v18249_v26 }
 0x2db   :  { %v24581_v18 = vld [vmem:[#allocation70_spill] sm:$0xff]  ;;  %v18284_v30 = vmul.f32 %v24606_v21, %v24605_v2  ;;  %v18290_v43 = vmul.f32 %v24609_v56, %v24608_v63  ;;  %v24615_v62 = vmax.f32 %v17887_v34, 0.0  ;;  %v24617_v31 = vld [vmem:[#allocation16_spill] sm:$0xff]  ;;  %v24618_v21 = vmax.f32 %v17891_v15, 0.0  ;;  %2826 = vst [vmem:[#allocation2 + $0x28] sm:$0xff] %v18254_v35  ;;  %2828 = vst [vmem:[#allocation2 + $0x38] sm:$0xff] %v18264_v49 }
 0x2dc   :  { %24601 = vst [vmem:[#allocation85_spill] sm:$0xff] %v18274_v0  ;;  %24604 = vst [vmem:[#allocation86_spill] sm:$0xff] %v18279_v58  ;;  %v18295_v51 = vmul.f32 %v24612_v24, %v24611_v47  ;;  %v24620_v27 = vld [vmem:[#allocation17_spill] sm:$0xff]  ;;  %v24621_v12 = vmax.f32 %v17895_v19, 0.0  ;;  %v24623_v34 = vld [vmem:[#allocation18_spill] sm:$0xff]  ;;  %v24624_v24 = vmax.f32 %v17899_v7, 0.0 }
 0x2dd   :  { %24607 = vst [vmem:[#allocation90_spill] sm:$0xff] %v18284_v30  ;;  %24610 = vst [vmem:[#allocation91_spill] sm:$0xff] %v18290_v43  ;;  %v18300_v23 = vmul.f32 %v24615_v62, %v24614_v9  ;;  %v18305_v2 = vmul.f32 %v24618_v21, %v24617_v31  ;;  %v24626_v15 = vld [vmem:[#allocation19_spill] sm:$0xff]  ;;  %v24627_v21 = vmax.f32 %v17903_v1, 0.0  ;;  %v24629_v9 = vld [vmem:[#allocation20_spill] sm:$0xff]  ;;  %v24630_v47 = vmax.f32 %v17907_v40, 0.0 }
 0x2de   :  { %v24582_v55 = vld [vmem:[#allocation75_spill] sm:$0xff]  ;;  %24613 = vst [vmem:[#allocation92_spill] sm:$0xff] %v18295_v51  ;;  %2827 = vst [vmem:[#allocation2 + $0x30] sm:$0xff] %v18259_v8  ;;  %v18314_v56 = vmul.f32 %v24621_v12, %v24620_v27  ;;  %v18319_v62 = vmul.f32 %v24624_v24, %v24623_v34  ;;  %v24632_v19 = vld [vmem:[#allocation21_spill] sm:$0xff]  ;;  %v24633_v7 = vmax.f32 %v17911_v52, 0.0 }
 0x2df   :  { %24616 = vst [vmem:[#allocation93_spill] sm:$0xff] %v18300_v23  ;;  %24619 = vst [vmem:[#allocation97_spill] sm:$0xff] %v18305_v2  ;;  %v18324_v31 = vmul.f32 %v24627_v21, %v24626_v15  ;;  %v18329_v63 = vmul.f32 %v24630_v47, %v24629_v9  ;;  %v24635_v1 = vld [vmem:[#allocation22_spill] sm:$0xff]  ;;  %v24636_v24 = vld [vmem:[#allocation103_spill] sm:$0xff] }
 0x2e0   :  { %24622 = vst [vmem:[#allocation98_spill] sm:$0xff] %v18314_v56  ;;  %24625 = vst [vmem:[#allocation100_spill] sm:$0xff] %v18319_v62  ;;  %v18338_v12 = vmul.f32 %v24633_v7, %v24632_v19  ;;  %v24637_v21 = vmax.f32 %v24636_v24, 0.0  ;;  %v24639_v40 = vld [vmem:[#allocation23_spill] sm:$0xff]  ;;  %v24640_v47 = vld [vmem:[#allocation104_spill] sm:$0xff] }
 0x2e1   :  { %24628 = vst [vmem:[#allocation101_spill] sm:$0xff] %v18324_v31  ;;  %24631 = vst [vmem:[#allocation52_spill] sm:$0xff] %v18329_v63  ;;  %v24641_v9 = vmax.f32 %v24640_v47, 0.0  ;;  %v24643_v27 = vld [vmem:[#allocation24_spill] sm:$0xff]  ;;  %v24644_v29 = vld [vmem:[#allocation107_spill] sm:$0xff] }
 0x2e2   :  { %2829 = vst [vmem:[#allocation2 + $0x40] sm:$0xff] %v18269_v17  ;;  %2830 = vst [vmem:[#allocation2 + $0x48] sm:$0xff] %v18274_v0  ;;  %v18343_v15 = vmul.f32 %v24637_v21, %v24635_v1  ;;  %v24647_v52 = vld [vmem:[#allocation25_spill] sm:$0xff]  ;;  %v24648_v7 = vld [vmem:[#allocation108_spill] sm:$0xff] }
 0x2e3   :  { %2831 = vst [vmem:[#allocation2 + $0x50] sm:$0xff] %v18279_v58  ;;  %2832 = vst [vmem:[#allocation2 + $0x58] sm:$0xff] %v18284_v30  ;;  %v18348_v34 = vmul.f32 %v24641_v9, %v24639_v40  ;;  %v24645_v58 = vmax.f32 %v24644_v29, 0.0  ;;  %v24649_v24 = vmax.f32 %v24648_v7, 0.0  ;;  %v24651_v9 = vld [vmem:[#allocation30_spill] sm:$0xff]  ;;  %v24655_v29 = vld [vmem:[#allocation31_spill] sm:$0xff] }
 0x2e4   :  { %24634 = vst [vmem:[#allocation53_spill] sm:$0xff] %v18338_v12  ;;  %24638 = vst [vmem:[#allocation56_spill] sm:$0xff] %v18343_v15  ;;  %v24652_v47 = vld [vmem:[#allocation138_spill] sm:$0xff]  ;;  %v24663_v7 = vld [vmem:[#allocation28_spill] sm:$0xff] }
 0x2e5   :  { %24642 = vst [vmem:[#allocation111_spill] sm:$0xff] %v18348_v34  ;;  %v18353_v0 = vmul.f32 %v24645_v58, %v24643_v27  ;;  %2833 = vst [vmem:[#allocation2 + $0x60] sm:$0xff] %v18290_v43  ;;  %v18362_v21 = vmul.f32 %v24649_v24, %v24647_v52  ;;  %v24653_v40 = vmax.f32 %v24652_v47, 0.0  ;;  %v24656_v58 = vld [vmem:[#allocation26_spill] sm:$0xff]  ;;  %v24660_v43 = vld [vmem:[#allocation27_spill] sm:$0xff]  ;;  %v24664_v24 = vmax.f32 %v24663_v7, 0.0 }
 0x2e6   :  { %2834 = vst [vmem:[#allocation2 + $0x68] sm:$0xff] %v18295_v51  ;;  %2835 = vst [vmem:[#allocation2 + $0x70] sm:$0xff] %v18300_v23  ;;  %v24657_v27 = vmax.f32 %v24656_v58, 0.0  ;;  %v24659_v51 = vld [vmem:[#allocation32_spill] sm:$0xff]  ;;  %v24661_v23 = vmax.f32 %v24660_v43, 0.0  ;;  %v24666_v58 = vld [vmem:[#allocation29_spill] sm:$0xff] }
 0x2e7   :  { %24646 = vst [vmem:[#allocation113_spill] sm:$0xff] %v18353_v0  ;;  %2836 = vst [vmem:[#allocation2 + $0x78] sm:$0xff] %v18305_v2  ;;  %v18367_v1 = vmul.f32 %v24653_v40, %v24651_v9  ;;  %v24662_v40 = vld [vmem:[#allocation34_spill] sm:$0xff]  ;;  %v24668_v43 = vld [vmem:[#allocation39_spill] sm:$0xff] }
 0x2e8   :  { %24650 = vst [vmem:[#allocation117_spill] sm:$0xff] %v18362_v21  ;;  %v18372_v19 = vmul.f32 %v24657_v27, %v24655_v29  ;;  %v18377_v30 = vmul.f32 %v24661_v23, %v24659_v51  ;;  %2837 = vst [vmem:[#allocation2 + $0x80] sm:$0xff] %v18314_v56  ;;  %v18386_v47 = vmul.f32 %v24664_v24, %v24662_v40  ;;  %v24665_v27 = vld [vmem:[#allocation36_spill] sm:$0xff]  ;;  %v24667_v29 = vmax.f32 %v24666_v58, 0.0  ;;  %v24669_v23 = vld [vmem:[#allocation33_spill] sm:$0xff] }
 0x2e9   :  { %24654 = vst [vmem:[#allocation118_spill] sm:$0xff] %v18367_v1  ;;  %2838 = vst [vmem:[#allocation2 + $0x88] sm:$0xff] %v18319_v62  ;;  %v24670_v51 = vmax.f32 %v24669_v23, 0.0  ;;  %v24671_v62 = vld [vmem:[#allocation42_spill] sm:$0xff]  ;;  %v24672_v56 = vld [vmem:[#allocation35_spill] sm:$0xff] }
 0x2ea   :  { %24658 = vst [vmem:[#allocation120_spill] sm:$0xff] %v18372_v19  ;;  %2839 = vst [vmem:[#allocation2 + $0x90] sm:$0xff] %v18324_v31  ;;  %v18391_v9 = vmul.f32 %v24667_v29, %v24665_v27  ;;  %v24673_v31 = vmax.f32 %v24672_v56, 0.0  ;;  %v24674_v29 = vld [vmem:[#allocation43_spill] sm:$0xff]  ;;  %v24675_v7 = vld [vmem:[#allocation37_spill] sm:$0xff] }
 0x2eb   :  { %2840 = vst [vmem:[#allocation2 + $0x98] sm:$0xff] %v18329_v63  ;;  %v18396_v52 = vmul.f32 %v24670_v51, %v24668_v43  ;;  %2841 = vst [vmem:[#allocation2 + $0xa0] sm:$0xff] %v18338_v12  ;;  %v24676_v24 = vmax.f32 %v24675_v7, 0.0  ;;  %v24677_v51 = vld [vmem:[#allocation46_spill] sm:$0xff]  ;;  %v24681_v56 = vld [vmem:[#allocation40_spill] sm:$0xff] }
 0x2ec   :  { %v18401_v2 = vmul.f32 %v24673_v31, %v24671_v62  ;;  %2842 = vst [vmem:[#allocation2 + $0xa8] sm:$0xff] %v18343_v15  ;;  %2843 = vst [vmem:[#allocation2 + $0xb0] sm:$0xff] %v18348_v34  ;;  %v24678_v23 = vld [vmem:[#allocation38_spill] sm:$0xff]  ;;  %v24680_v31 = vld [vmem:[#allocation48_spill] sm:$0xff]  ;;  %v24682_v62 = vmax.f32 %v24681_v56, 0.0 }
 0x2ed   :  { %2844 = vst [vmem:[#allocation2 + $0xb8] sm:$0xff] %v18353_v0  ;;  %v18410_v58 = vmul.f32 %v24676_v24, %v24674_v29  ;;  %v24679_v43 = vmax.f32 %v24678_v23, 0.0  ;;  %v24683_v15 = vld [vmem:[#allocation50_spill] sm:$0xff]  ;;  %v24684_v12 = vld [vmem:[#allocation41_spill] sm:$0xff]  ;;  %2845 = vst [vmem:[#allocation2 + $0xc0] sm:$0xff] %v18362_v21 }
 0x2ee   :  { %v18420_v40 = vmul.f32 %v24682_v62, %v24680_v31  ;;  %v24685_v34 = vmax.f32 %v24684_v12, 0.0  ;;  %2846 = vst [vmem:[#allocation2 + $0xc8] sm:$0xff] %v18367_v1  ;;  %2847 = vst [vmem:[#allocation2 + $0xd0] sm:$0xff] %v18372_v19  ;;  %v24687_v7 = vld [vmem:[#allocation44_spill] sm:$0xff]  ;;  %v24689_v62 = vld [vmem:[#allocation54_spill] sm:$0xff] }
 0x2ef   :  { %v18415_v27 = vmul.f32 %v24679_v43, %v24677_v51  ;;  %2848 = vst [vmem:[#allocation2 + $0xd8] sm:$0xff] %v18377_v30  ;;  %v24686_v43 = vld [vmem:[#allocation51_spill] sm:$0xff]  ;;  %v24688_v24 = vmax.f32 %v24687_v7, 0.0  ;;  %v24690_v56 = vld [vmem:[#allocation45_spill] sm:$0xff]  ;;  %v24695_v1 = vld [vmem:[#allocation58_spill] sm:$0xff]  ;;  %v24699_v7 = vmax.f32 %v24569_v50, 0.0 }
 0x2f0   :  { %v18425_v63 = vmul.f32 %v24685_v34, %v24683_v15  ;;  %v24691_v31 = vmax.f32 %v24690_v56, 0.0  ;;  %v24692_v34 = vld [vmem:[#allocation55_spill] sm:$0xff]  ;;  %v24696_v21 = vld [vmem:[#allocation49_spill] sm:$0xff]  ;;  %2849 = vst [vmem:[#allocation2 + $0xe0] sm:$0xff] %v18386_v47  ;;  %2850 = vst [vmem:[#allocation2 + $0xe8] sm:$0xff] %v18391_v9  ;;  %v24701_v56 = vmax.f32 %v24570_v32, 0.0 }
 0x2f1   :  { %v18434_v23 = vmul.f32 %v24688_v24, %v24686_v43  ;;  %v24693_v12 = vld [vmem:[#allocation47_spill] sm:$0xff]  ;;  %v24697_v19 = vmax.f32 %v24696_v21, 0.0  ;;  %2851 = vst [vmem:[#allocation2 + $0xf0] sm:$0xff] %v18396_v52  ;;  %2852 = vst [vmem:[#allocation2 + $0xf8] sm:$0xff] %v18401_v2  ;;  %v24704_v21 = vmax.f32 %v24571_v14, 0.0  ;;  %v24709_v50 = vld [vmem:[#allocation69_spill] sm:$0xff] }
 0x2f2   :  { %v18439_v51 = vmul.f32 %v24691_v31, %v24689_v62  ;;  %v24694_v15 = vmax.f32 %v24693_v12, 0.0  ;;  %v24698_v31 = vld [vmem:[#allocation61_spill] sm:$0xff]  ;;  %v24707_v62 = vmax.f32 %v24572_v42, 0.0  ;;  %2853 = vst [vmem:[#allocation2 + $0x100] sm:$0xff] %v18410_v58  ;;  %2854 = vst [vmem:[#allocation2 + $0x108] sm:$0xff] %v18415_v27  ;;  %v24710_v32 = vmax.f32 %v24573_v46, 0.0 }
 0x2f3   :  { %v18449_v0 = vmul.f32 %v24697_v19, %v24695_v1  ;;  %v18458_v24 = vmul.f32 %v24699_v7, %v24698_v31  ;;  %v24703_v19 = vld [vmem:[#allocation63_spill] sm:$0xff]  ;;  %2855 = vst [vmem:[#allocation2 + $0x110] sm:$0xff] %v18420_v40  ;;  %2856 = vst [vmem:[#allocation2 + $0x118] sm:$0xff] %v18425_v63  ;;  %v24712_v14 = vld [vmem:[#allocation72_spill] sm:$0xff] }
 0x2f4   :  { %v18444_v29 = vmul.f32 %v24694_v15, %v24692_v34  ;;  %v24700_v15 = vld [vmem:[#allocation62_spill] sm:$0xff]  ;;  %v18468_v1 = vmul.f32 %v24704_v21, %v24703_v19  ;;  %v18482_v7 = vmul.f32 %v24710_v32, %v24709_v50  ;;  %v24715_v42 = vld [vmem:[#allocation73_spill] sm:$0xff]  ;;  %2857 = vst [vmem:[#allocation2 + $0x120] sm:$0xff] %v18434_v23  ;;  %2858 = vst [vmem:[#allocation2 + $0x128] sm:$0xff] %v18439_v51 }
 0x2f5   :  { %v18463_v12 = vmul.f32 %v24701_v56, %v24700_v15  ;;  %v24706_v34 = vld [vmem:[#allocation66_spill] sm:$0xff]  ;;  %v24713_v56 = vmax.f32 %v24574_v25, 0.0  ;;  %v24719_v15 = vmax.f32 %v24576_v38, 0.0  ;;  %2860 = vst [vmem:[#allocation2 + $0x138] sm:$0xff] %v18449_v0  ;;  %v24721_v46 = vld [vmem:[#allocation79_spill] sm:$0xff]  ;;  %v24722_v25 = vmax.f32 %v24577_v4, 0.0 }
 0x2f6   :  { %24705 = vst [vmem:[#allocation123_spill] sm:$0xff] %v18468_v1  ;;  %v18473_v43 = vmul.f32 %v24707_v62, %v24706_v34  ;;  %24711 = vst [vmem:[#allocation70_spill] sm:$0xff] %v18482_v7  ;;  %v24716_v62 = vmax.f32 %v24575_v48, 0.0  ;;  %v24718_v19 = vld [vmem:[#allocation78_spill] sm:$0xff]  ;;  %v24724_v48 = vld [vmem:[#allocation80_spill] sm:$0xff] }
 0x2f7   :  { %24702 = vst [vmem:[#allocation121_spill] sm:$0xff] %v18463_v12  ;;  %v18487_v21 = vmul.f32 %v24713_v56, %v24712_v14  ;;  %v18497_v31 = vmul.f32 %v24719_v15, %v24718_v19  ;;  %2859 = vst [vmem:[#allocation2 + $0x130] sm:$0xff] %v18444_v29  ;;  %v18506_v32 = vmul.f32 %v24722_v25, %v24721_v46  ;;  %v24725_v56 = vmax.f32 %v24578_v44, 0.0  ;;  %v24726_v38 = vld [vmem:[#allocation81_spill] sm:$0xff]  ;;  %v24732_v4 = vld [vmem:[#allocation87_spill] sm:$0xff] }
 0x2f8   :  { %24708 = vst [vmem:[#allocation57_spill] sm:$0xff] %v18473_v43  ;;  %v18492_v34 = vmul.f32 %v24716_v62, %v24715_v42  ;;  %v24727_v15 = vmax.f32 %v24579_v3, 0.0  ;;  %v24729_v42 = vld [vmem:[#allocation84_spill] sm:$0xff]  ;;  %v24730_v14 = vmax.f32 %v18035_v39, 0.0  ;;  %2861 = vst [vmem:[#allocation2 + $0x140] sm:$0xff] %v18458_v24  ;;  %v24733_v44 = vmax.f32 %v18039_v59, 0.0 }
 0x2f9   :  { %24714 = vst [vmem:[#allocation75_spill] sm:$0xff] %v18487_v21  ;;  %24720 = vst [vmem:[#allocation77_spill] sm:$0xff] %v18497_v31  ;;  %v18511_v62 = vmul.f32 %v24725_v56, %v24724_v48  ;;  %v24734_v3 = vld [vmem:[#allocation88_spill] sm:$0xff]  ;;  %v24735_v56 = vmax.f32 %v18043_v37, 0.0  ;;  %v24737_v39 = vld [vmem:[#allocation89_spill] sm:$0xff]  ;;  %v24741_v48 = vmax.f32 %v18051_v57, 0.0 }
 0x2fa   :  { %24717 = vst [vmem:[#allocation76_spill] sm:$0xff] %v18492_v34  ;;  %24723 = vst [vmem:[#allocation82_spill] sm:$0xff] %v18506_v32  ;;  %v18516_v19 = vmul.f32 %v24727_v15, %v24726_v38  ;;  %v18521_v50 = vmul.f32 %v24730_v14, %v24729_v42  ;;  %v18530_v25 = vmul.f32 %v24733_v44, %v24732_v4  ;;  %v24738_v14 = vmax.f32 %v18047_v16, 0.0  ;;  %v24740_v38 = vld [vmem:[#allocation94_spill] sm:$0xff]  ;;  %v24742_v59 = vld [vmem:[#allocation95_spill] sm:$0xff] }
 0x2fb   :  { %2862 = vst [vmem:[#allocation2 + $0x148] sm:$0xff] %v18463_v12  ;;  %2863 = vst [vmem:[#allocation2 + $0x150] sm:$0xff] %v18468_v1  ;;  %v18535_v15 = vmul.f32 %v24735_v56, %v24734_v3  ;;  %v18545_v46 = vmul.f32 %v24741_v48, %v24740_v38  ;;  %v24743_v37 = vld [vmem:[#allocation59_spill] sm:$0xff]  ;;  %v24746_v16 = vld [vmem:[#allocation96_spill] sm:$0xff]  ;;  %v24750_v48 = vmax.f32 %v18063_v60, 0.0  ;;  %v24753_v4 = vmax.f32 %v18067_v28, 0.0 }
 0x2fc   :  { %24728 = vst [vmem:[#allocation103_spill] sm:$0xff] %v18516_v19  ;;  %24731 = vst [vmem:[#allocation104_spill] sm:$0xff] %v18521_v50  ;;  %v18540_v42 = vmul.f32 %v24738_v14, %v24737_v39  ;;  %v24744_v44 = vmax.f32 %v24743_v37, 0.0  ;;  %v24747_v14 = vmax.f32 %v18059_v13, 0.0  ;;  %v24749_v57 = vld [vmem:[#allocation99_spill] sm:$0xff]  ;;  %v24752_v3 = vld [vmem:[#allocation102_spill] sm:$0xff] }
 0x2fd   :  { %2864 = vst [vmem:[#allocation2 + $0x158] sm:$0xff] %v18473_v43  ;;  %24736 = vst [vmem:[#allocation107_spill] sm:$0xff] %v18535_v15  ;;  %v18564_v38 = vmul.f32 %v24750_v48, %v24749_v57  ;;  %v24754_v13 = vld [vmem:[#allocation105_spill] sm:$0xff]  ;;  %v24755_v37 = vld [vmem:[#allocation139_spill] sm:$0xff]  ;;  %v24758_v48 = vmax.f32 %v18075_v45, 0.0 }
 0x2fe   :  { %24739 = vst [vmem:[#allocation108_spill] sm:$0xff] %v18540_v42  ;;  %2865 = vst [vmem:[#allocation2 + $0x160] sm:$0xff] %v18482_v7  ;;  %v18554_v56 = vmul.f32 %v24744_v44, %v24742_v59  ;;  %v18559_v39 = vmul.f32 %v24747_v14, %v24746_v16  ;;  %v24756_v44 = vmax.f32 %v24755_v37, 0.0  ;;  %v24757_v60 = vld [vmem:[#allocation106_spill] sm:$0xff]  ;;  %v24760_v28 = vld [vmem:[#allocation109_spill] sm:$0xff]  ;;  %v24764_v59 = vmax.f32 %v18083_v11, 0.0 }
 0x2ff   :  { %2866 = vst [vmem:[#allocation2 + $0x168] sm:$0xff] %v18487_v21  ;;  %2867 = vst [vmem:[#allocation2 + $0x170] sm:$0xff] %v18492_v34  ;;  %v18569_v34 = vmul.f32 %v24753_v4, %v24752_v3  ;;  %v18583_v57 = vmul.f32 %v24758_v48, %v24757_v60  ;;  %v24761_v4 = vmax.f32 %v18079_v6, 0.0  ;;  %v24763_v16 = vld [vmem:[#allocation110_spill] sm:$0xff]  ;;  %v24766_v45 = vld [vmem:[#allocation112_spill] sm:$0xff]  ;;  %v24767_v37 = vmax.f32 %v18087_v36, 0.0 }
 0x300   :  { %2868 = vst [vmem:[#allocation2 + $0x178] sm:$0xff] %v18497_v31  ;;  %24745 = vst [vmem:[#allocation138_spill] sm:$0xff] %v18554_v56  ;;  %v18578_v14 = vmul.f32 %v24756_v44, %v24754_v13  ;;  %v24768_v6 = vld [vmem:[#allocation114_spill] sm:$0xff]  ;;  %v24769_v48 = vmax.f32 %v18091_v33, 0.0  ;;  %v24771_v11 = vld [vmem:[#allocation115_spill] sm:$0xff] }
 0x301   :  { %24748 = vst [vmem:[#allocation26_spill] sm:$0xff] %v18559_v39  ;;  %24751 = vst [vmem:[#allocation27_spill] sm:$0xff] %v18564_v38  ;;  %v18588_v3 = vmul.f32 %v24761_v4, %v24760_v28  ;;  %v18602_v44 = vmul.f32 %v24767_v37, %v24766_v45  ;;  %v24774_v60 = vld [vmem:[#allocation116_spill] sm:$0xff]  ;;  %v24777_v36 = vld [vmem:[#allocation119_spill] sm:$0xff] }
 0x302   :  { %2869 = vst [vmem:[#allocation2 + $0x180] sm:$0xff] %v18506_v32  ;;  %2870 = vst [vmem:[#allocation2 + $0x188] sm:$0xff] %v18511_v62  ;;  %v18607_v4 = vmul.f32 %v24769_v48, %v24768_v6  ;;  %v24775_v13 = vld [vmem:[#allocation64_spill] sm:$0xff]  ;;  %v24778_v33 = vld [vmem:[#allocation65_spill] sm:$0xff] }
 0x303   :  { %2871 = vst [vmem:[#allocation2 + $0x190] sm:$0xff] %v18516_v19  ;;  %2872 = vst [vmem:[#allocation2 + $0x198] sm:$0xff] %v18521_v50  ;;  %v18593_v19 = vmul.f32 %v24764_v59, %v24763_v16  ;;  %v24772_v59 = vld [vmem:[#allocation60_spill] sm:$0xff]  ;;  %v24779_v37 = vmax.f32 %v24778_v33, 0.0 }
 0x304   :  { %24759 = vst [vmem:[#allocation28_spill] sm:$0xff] %v18583_v57  ;;  %24762 = vst [vmem:[#allocation29_spill] sm:$0xff] %v18588_v3  ;;  %v24773_v16 = vmax.f32 %v24772_v59, 0.0  ;;  %v24781_v59 = vld [vmem:[#allocation67_spill] sm:$0xff] }
 0x305   :  { %24765 = vst [vmem:[#allocation33_spill] sm:$0xff] %v18593_v19  ;;  %2873 = vst [vmem:[#allocation2 + $0x1a0] sm:$0xff] %v18530_v25  ;;  %v18626_v48 = vmul.f32 %v24779_v37, %v24777_v36  ;;  %v3046_v33 = vld [vmem:[#allocation2 + $0x1e] sm:$0xff]  ;;  %v24788_v37 = vld [vmem:[#allocation126_spill] sm:$0xff] }
 0x306   :  { %2874 = vst [vmem:[#allocation2 + $0x1a8] sm:$0xff] %v18535_v15  ;;  %2875 = vst [vmem:[#allocation2 + $0x1b0] sm:$0xff] %v18540_v42  ;;  %v18612_v28 = vmul.f32 %v24773_v16, %v24771_v11  ;;  %v24776_v42 = vmax.f32 %v24775_v13, 0.0  ;;  %v24780_v16 = vld [vmem:[#allocation122_spill] sm:$0xff]  ;;  %v24782_v11 = vmax.f32 %v24781_v59, 0.0  ;;  %v24784_v13 = vld [vmem:[#allocation68_spill] sm:$0xff] }
 0x307   :  { %2876 = vst [vmem:[#allocation2 + $0x1b8] sm:$0xff] %v18545_v46  ;;  %24770 = vst [vmem:[#allocation35_spill] sm:$0xff] %v18607_v4  ;;  %v24789_v59 = vld [vmem:[#allocation71_spill] sm:$0xff]  ;;  %v24835_v7 = vld [vmem:[#allocation138_spill] sm:$0xff] }
 0x308   :  { %v18617_v15 = vmul.f32 %v24776_v42, %v24774_v60  ;;  %2877 = vst [vmem:[#allocation2 + $0x1c0] sm:$0xff] %v18554_v56  ;;  %2878 = vst [vmem:[#allocation2 + $0x1c8] sm:$0xff] %v18559_v39  ;;  %v18631_v6 = vmul.f32 %v24782_v11, %v24780_v16  ;;  %v24783_v42 = vld [vmem:[#allocation124_spill] sm:$0xff]  ;;  %v24785_v60 = vmax.f32 %v24784_v13, 0.0  ;;  %v24786_v39 = vld [vmem:[#allocation125_spill] sm:$0xff]  ;;  %v24790_v13 = vmax.f32 %v24789_v59, 0.0 }
 0x309   :  { %2879 = vst [vmem:[#allocation2 + $0x1d0] sm:$0xff] %v18564_v38  ;;  %2880 = vst [vmem:[#allocation2 + $0x1d8] sm:$0xff] %v18569_v34  ;;  %v24787_v38 = vmax.f32 %v24581_v18, 0.0  ;;  %v3045_v11 = vld [vmem:[#allocation2 + $0x16] sm:$0xff]  ;;  %v24792_v18 = vmax.f32 %v18123_v22, 0.0  ;;  %v24794_v16 = vmax.f32 %v18127_v53, 0.0 }
 0x30a   :  { %v18636_v45 = vmul.f32 %v24785_v60, %v24783_v42  ;;  %2881 = vst [vmem:[#allocation2 + $0x1e0] sm:$0xff] %v18578_v14  ;;  %2882 = vst [vmem:[#allocation2 + $0x1e8] sm:$0xff] %v18583_v57  ;;  %v18650_v60 = vmul.f32 %v24790_v13, %v24788_v37  ;;  %v24791_v42 = vld [vmem:[#allocation127_spill] sm:$0xff]  ;;  %v24797_v22 = vld [vmem:[#allocation130_spill] sm:$0xff]  ;;  %v24805_v37 = vmax.f32 %v24584_v41, 0.0  ;;  %v24812_v41 = vmax.f32 %v18159_v5, 0.0 }
 0x30b   :  { %v18641_v56 = vmul.f32 %v24787_v38, %v24786_v39  ;;  %2883 = vst [vmem:[#allocation2 + $0x1f0] sm:$0xff] %v18588_v3  ;;  %2884 = vst [vmem:[#allocation2 + $0x1f8] sm:$0xff] %v18593_v19  ;;  %v18655_v38 = vmul.f32 %v24792_v18, %v24791_v42  ;;  %v24793_v39 = vld [vmem:[#allocation128_spill] sm:$0xff]  ;;  %v24795_v3 = vld [vmem:[#allocation129_spill] sm:$0xff]  ;;  %v24796_v19 = vmax.f32 %v18131_v54, 0.0  ;;  %v5332_v5 = vpack.c.bf16 %v18249_v26, %v18244_v20 }
 0x30c   :  { %v18660_v36 = vmul.f32 %v24794_v16, %v24793_v39  ;;  %2885 = vst [vmem:[#allocation2 + $0x200] sm:$0xff] %v18602_v44  ;;  %2886 = vst [vmem:[#allocation2 + $0x208] sm:$0xff] %v18607_v4  ;;  %v24798_v59 = vld [vmem:[#allocation74_spill] sm:$0xff]  ;;  %v24800_v53 = vld [vmem:[#allocation131_spill] sm:$0xff]  ;;  %v24801_v16 = vmax.f32 %v24582_v55, 0.0  ;;  %v24807_v55 = vmax.f32 %v24585_v10, 0.0 }
 0x30d   :  { %v18665_v57 = vmul.f32 %v24796_v19, %v24795_v3  ;;  %2887 = vst [vmem:[#allocation2 + $0x210] sm:$0xff] %v18612_v28  ;;  %2888 = vst [vmem:[#allocation2 + $0x218] sm:$0xff] %v18617_v15  ;;  %v24799_v13 = vmax.f32 %v24798_v59, 0.0  ;;  %v24802_v54 = vld [vmem:[#allocation132_spill] sm:$0xff]  ;;  %v24803_v19 = vmax.f32 %v24583_v61, 0.0  ;;  %v24804_v42 = vld [vmem:[#allocation133_spill] sm:$0xff]  ;;  %11194 = vmatmul.mubr.bf16.vlgmr.msra.gmra.mrb[0].mxu1 %v5332_v5 }
 0x30e   :  { %v2811_v39 = vmul.f32 %v24801_v16, %v24800_v53  ;;  %v2813_v4 = vmul.f32 %v24805_v37, %v24804_v42  ;;  %2889 = vst [vmem:[#allocation2 + $0x220] sm:$0xff] %v18626_v48  ;;  %2890 = vst [vmem:[#allocation2 + $0x228] sm:$0xff] %v18631_v6  ;;  %v24806_v59 = vld [vmem:[#allocation134_spill] sm:$0xff]  ;;  %v24808_v16 = vld [vmem:[#allocation135_spill] sm:$0xff]  ;;  %v3125_v42 = vpack.c.bf16 %v3046_v33, %v3045_v11 }
 0x30f   :  { %v18674_v18 = vmul.f32 %v24799_v13, %v24797_v22  ;;  %v2812_v3 = vmul.f32 %v24803_v19, %v24802_v54  ;;  %2891 = vst [vmem:[#allocation2 + $0x230] sm:$0xff] %v18636_v45  ;;  %2892 = vst [vmem:[#allocation2 + $0x238] sm:$0xff] %v18641_v56  ;;  %v2814_v13 = vmul.f32 %v24807_v55, %v24806_v59  ;;  %v24809_v53 = vld [vmem:[#allocation83_spill] sm:$0xff]  ;;  %v24811_v54 = vld [vmem:[#allocation136_spill] sm:$0xff] }
 0x310   :  { %v24810_v61 = vmax.f32 %v24809_v53, 0.0  ;;  %v2816_v37 = vmul.f32 %v24812_v41, %v24811_v54  ;;  %2893 = vst [vmem:[#allocation2 + $0x240] sm:$0xff] %v18650_v60  ;;  %2894 = vst [vmem:[#allocation2 + $0x248] sm:$0xff] %v18655_v38  ;;  %v13373_v10 = vld [vmem:[%s23140_s2 + $0x140] sm:$0xff]   ;;  %v5333_v53 = vpack.c.bf16 %v18259_v8, %v18254_v35  ;;  %10478 = vmatmul.mubr.bf16.gmra.mrb[168].mxu0 %v3125_v42  ;;  %v24814_v55 = vld [vmem:[#allocation86_spill] sm:$0xff] }
 0x311   :  { %2895 = vst [vmem:[#allocation2 + $0x250] sm:$0xff] %v18660_v36  ;;  %2896 = vst [vmem:[#allocation2 + $0x258] sm:$0xff] %v18665_v57  ;;  %v5334_v11 = vpack.c.bf16 %v18269_v17, %v18264_v49  ;;  %11358 = vmatpush3.bf16.msra.mxu1 %v13373_v10  ;;  %v13374_v49 = vld [vmem:[%s23140_s2 + $0x148] sm:$0xff]   ;;  %v24820_v42 = vld [vmem:[#allocation98_spill] sm:$0xff] }
 0x312   :  { %v2815_v19 = vmul.f32 %v24810_v61, %v24808_v16  ;;  %2897 = vst [vmem:[#allocation2 + $0x260] sm:$0xff] %v18674_v18  ;;  %2898 = vst [vmem:[#allocation2 + $0x268] sm:$0xff] %v2811_v39  ;;  %v18714_v39 = vld [vmem:[#allocation2] sm:$0xff]  ;;  %v3048_v41 = vld [vmem:[#allocation2 + $0x2e] sm:$0xff] }
 0x313   :  { %2899 = vst [vmem:[#allocation2 + $0x270] sm:$0xff] %v2812_v3  ;;  %2900 = vst [vmem:[#allocation2 + $0x278] sm:$0xff] %v2813_v4  ;;  %10481 = vmatprep.mubr.msk.bf16.mxu0 %vm24251_vm0, %v18714_v39  ;;  %11197 = vmatprep.mubr.msk.bf16.mxu1 %vm24251_vm0, %v18714_v39  ;;  %v24822_v5 = vld [vmem:[#allocation101_spill] sm:$0xff]  ;;  %v24823_v61 = vld [vmem:[#allocation52_spill] sm:$0xff] }
 0x314   :  { %2901 = vst [vmem:[#allocation2 + $0x280] sm:$0xff] %v2814_v13  ;;  %2902 = vst [vmem:[#allocation2 + $0x288] sm:$0xff] %v2815_v19  ;;  %v3047_v19 = vld [vmem:[#allocation2 + $0x26] sm:$0xff]  ;;  %11359 = vmatprep.subr.bf16.mxu1 %v18714_v39  ;;  %v24826_v16 = vld [vmem:[#allocation111_spill] sm:$0xff] }
 0x315   :  { %2903 = vst [vmem:[#allocation2 + $0x290] sm:$0xff] %v2816_v37  ;;  %v24821_v37 = vld [vmem:[#allocation100_spill] sm:$0xff]  ;;  %v24824_v4 = vld [vmem:[#allocation53_spill] sm:$0xff]  ;;  %v24829_v26 = vld [vmem:[#allocation118_spill] sm:$0xff]  ;;  %v3126_v17 = vpack.c.bf16 %v3048_v41, %v3047_v19  ;;  %11360 = vmatpush3.bf16.msra.mxu1 %v13374_v49 }
 0x316   :  { %v24825_v54 = vld [vmem:[#allocation56_spill] sm:$0xff]  ;;  %v24827_v22 = vld [vmem:[#allocation113_spill] sm:$0xff]  ;;  %v13375_v3 = vld [vmem:[%s23140_s2 + $0x150] sm:$0xff]   ;;  %11361 = vmatprep.subr.bf16.mxu1 %v18714_v39  ;;  %11198 = vmatmul.mubr.bf16.gmra.mrb[4].mxu1 %v5333_v53 }
 0x317   :  { %v24828_v8 = vld [vmem:[#allocation117_spill] sm:$0xff]  ;;  %v24830_v20 = vld [vmem:[#allocation120_spill] sm:$0xff]  ;;  %11201 = vmatprep.mubr.msk.bf16.mxu1 %vm24251_vm0, %v18714_v39  ;;  %v3049_v49 = vld [vmem:[#allocation2 + $0x36] sm:$0xff] }
 0x318   :  { %10482 = vmatmul.mubr.bf16.gmra.mrb[172].mxu0 %v3126_v17  ;;  %v13376_v17 = vld [vmem:[%s23140_s2 + $0x158] sm:$0xff]   ;;  %v24834_v35 = vld [vmem:[#allocation108_spill] sm:$0xff]  ;;  %v24836_v53 = vld [vmem:[#allocation26_spill] sm:$0xff] }
 0x319   :  { %10485 = vmatprep.mubr.msk.bf16.mxu0 %vm24251_vm0, %v18714_v39  ;;  %11362 = vmatpush3.bf16.msra.mxu1 %v13375_v3  ;;  %v3050_v13 = vld [vmem:[#allocation2 + $0x3e] sm:$0xff]  ;;  %v24839_v32 = vld [vmem:[#allocation29_spill] sm:$0xff] }
 0x31a   :  { %11363 = vmatprep.subr.bf16.mxu1 %v18714_v39  ;;  %v24832_v33 = vld [vmem:[#allocation103_spill] sm:$0xff]  ;;  %v3127_v1 = vpack.c.bf16 %v3050_v13, %v3049_v49  ;;  %v24838_v31 = vld [vmem:[#allocation28_spill] sm:$0xff]  ;;  %v24840_v3 = vld [vmem:[#allocation33_spill] sm:$0xff] }
 0x31b   :  { %v24837_v21 = vld [vmem:[#allocation27_spill] sm:$0xff]  ;;  %v3051_v19 = vld [vmem:[#allocation2 + $0x46] sm:$0xff]  ;;  %v3052_v10 = vld [vmem:[#allocation2 + $0x4e] sm:$0xff] }
 0x31c   :  { %v24841_v43 = vld [vmem:[#allocation35_spill] sm:$0xff]  ;;  %v3128_v50 = vpack.c.bf16 %v3052_v10, %v3051_v19  ;;  %v3056_v10 = vld [vmem:[#allocation2 + $0x6e] sm:$0xff] }
 0x31d   :  { %11364 = vmatpush3.bf16.msra.mxu1 %v13376_v17  ;;  %v3053_v17 = vld [vmem:[#allocation2 + $0x56] sm:$0xff]  ;;  %v3054_v49 = vld [vmem:[#allocation2 + $0x5e] sm:$0xff]  ;;  %v24847_v19 = vld [vmem:[#allocation93_spill] sm:$0xff] }
 0x31e   :  { %11365 = vmatprep.subr.bf16.mxu1 %v18714_v39  ;;  %11202 = vmatmul.mubr.bf16.gmra.mrb[8].mxu1 %v5334_v11  ;;  %v24842_v11 = vld [vmem:[#allocation85_spill] sm:$0xff]  ;;  %v3129_v59 = vpack.c.bf16 %v3054_v49, %v3053_v17  ;;  %v24844_v41 = vld [vmem:[#allocation91_spill] sm:$0xff] }
 0x31f   :  { %11205 = vmatprep.mubr.msk.bf16.mxu1 %vm24251_vm0, %v18714_v39  ;;  %v24843_v13 = vpack.c.bf16 %v24814_v55, %v24842_v11  ;;  %v3055_v55 = vld [vmem:[#allocation2 + $0x66] sm:$0xff]  ;;  %v3058_v49 = vld [vmem:[#allocation2 + $0x7e] sm:$0xff] }
 0x320   :  { %10486 = vmatmul.mubr.bf16.gmra.mrb[176].mxu0 %v3127_v1  ;;  %v24845_v1 = vld [vmem:[#allocation90_spill] sm:$0xff] }
 0x321   :  { %10489 = vmatprep.mubr.msk.bf16.mxu0 %vm24251_vm0, %v18714_v39  ;;  %v24846_v12 = vpack.c.bf16 %v24844_v41, %v24845_v1  ;;  %v24848_v41 = vld [vmem:[#allocation92_spill] sm:$0xff]  ;;  %v24850_v1 = vld [vmem:[#allocation97_spill] sm:$0xff] }
 0x322   :  { %v24851_v11 = vpack.c.bf16 %v24820_v42, %v24850_v1  ;;  %v3061_v42 = vld [vmem:[#allocation2 + $0x96] sm:$0xff] }
 0x326   :  { %11206 = vmatmul.mubr.bf16.gmra.mrb[12].mxu1 %v24843_v13  ;;  %v3057_v13 = vld [vmem:[#allocation2 + $0x76] sm:$0xff] }
 0x327   :  { %11209 = vmatprep.mubr.msk.bf16.mxu1 %vm24251_vm0, %v18714_v39  ;;  %v3131_v17 = vpack.c.bf16 %v3058_v49, %v3057_v13  ;;  %v24854_v49 = vpack.c.bf16 %v24826_v16, %v24825_v54  ;;  %v24855_v54 = vpack.c.bf16 %v24828_v8, %v24827_v22  ;;  %v3067_v16 = vld [vmem:[#allocation2 + $0xc6] sm:$0xff]  ;;  %v3069_v22 = vld [vmem:[#allocation2 + $0xd6] sm:$0xff]  ;;  %v3070_v8 = vld [vmem:[#allocation2 + $0xde] sm:$0xff] }
 0x328   :  { %10490 = vmatmul.mubr.bf16.gmra.mrb[180].mxu0 %v3128_v50  ;;  %v13377_v50 = vld [vmem:[%s23140_s2 + $0x160] sm:$0xff]  }
 0x329   :  { %10493 = vmatprep.mubr.msk.bf16.mxu0 %vm24251_vm0, %v18714_v39  ;;  %11366 = vmatpush3.bf16.msra.mxu1 %v13377_v50  ;;  %v3059_v50 = vld [vmem:[#allocation2 + $0x86] sm:$0xff] }
 0x32a   :  { %11367 = vmatprep.subr.bf16.mxu1 %v18714_v39 }
 0x32e   :  { %11210 = vmatmul.mubr.bf16.gmra.mrb[16].mxu1 %v24846_v12  ;;  %v24849_v12 = vpack.c.bf16 %v24847_v19, %v24848_v41  ;;  %v3062_v19 = vld [vmem:[#allocation2 + $0x9e] sm:$0xff] }
 0x32f   :  { %11213 = vmatprep.mubr.msk.bf16.mxu1 %vm24251_vm0, %v18714_v39  ;;  %v3133_v41 = vpack.c.bf16 %v3062_v19, %v3061_v42  ;;  %v24858_v19 = vpack.c.bf16 %v18396_v52, %v18391_v9  ;;  %v13379_v52 = vld [vmem:[%s23140_s2 + $0x170] sm:$0xff]   ;;  %v3075_v9 = vld [vmem:[#allocation2 + $0x106] sm:$0xff] }
 0x330   :  { %10494 = vmatmul.mubr.bf16.gmra.mrb[184].mxu0 %v3129_v59  ;;  %v3130_v59 = vpack.c.bf16 %v3056_v10, %v3055_v55  ;;  %v3060_v55 = vld [vmem:[#allocation2 + $0x8e] sm:$0xff] }
 0x331   :  { %10497 = vmatprep.mubr.msk.bf16.mxu0 %vm24251_vm0, %v18714_v39  ;;  %v3132_v10 = vpack.c.bf16 %v3060_v55, %v3059_v50  ;;  %v24856_v55 = vpack.c.bf16 %v24830_v20, %v24829_v26  ;;  %v3071_v26 = vld [vmem:[#allocation2 + $0xe6] sm:$0xff]  ;;  %v3072_v20 = vld [vmem:[#allocation2 + $0xee] sm:$0xff] }
 0x332   :  { %v3138_v42 = vpack.c.bf16 %v3072_v20, %v3071_v26  ;;  %v13381_v20 = vld [vmem:[%s23140_s2] sm:$0xff]  }
 0x333   :  { %10638 = vmatpush3.bf16.msra.mxu0 %v13381_v20  ;;  %v24882_v20 = vpack.c.bf16 %v24837_v21, %v24836_v53  ;;  %v3103_v21 = vld [vmem:[#allocation2 + $0x1e6] sm:$0xff]  ;;  %v3104_v53 = vld [vmem:[#allocation2 + $0x1ee] sm:$0xff] }
 0x334   :  { %10639 = vmatprep.subr.bf16.mxu0 %v18714_v39 }
 0x336   :  { %11214 = vmatmul.mubr.bf16.gmra.mrb[20].mxu1 %v24849_v12  ;;  %v24853_v12 = vpack.c.bf16 %v24824_v4, %v24823_v61  ;;  %v13378_v61 = vld [vmem:[%s23140_s2 + $0x168] sm:$0xff]   ;;  %v3065_v4 = vld [vmem:[#allocation2 + $0xb6] sm:$0xff] }
 0x337   :  { %11217 = vmatprep.mubr.msk.bf16.mxu1 %vm24251_vm0, %v18714_v39  ;;  %11368 = vmatpush3.bf16.msra.mxu1 %v13378_v61  ;;  %v24861_v61 = vpack.c.bf16 %v18434_v23, %v18425_v63  ;;  %v3081_v63 = vld [vmem:[#allocation2 + $0x136] sm:$0xff]  ;;  %v3082_v23 = vld [vmem:[#allocation2 + $0x13e] sm:$0xff] }
 0x338   :  { %10498 = vmatmul.mubr.bf16.gmra.mrb[188].mxu0 %v3130_v59  ;;  %v24852_v59 = vpack.c.bf16 %v24822_v5, %v24821_v37  ;;  %v3063_v37 = vld [vmem:[#allocation2 + $0xa6] sm:$0xff]  ;;  %v3064_v5 = vld [vmem:[#allocation2 + $0xae] sm:$0xff]  ;;  %11369 = vmatprep.subr.bf16.mxu1 %v18714_v39 }
 0x339   :  { %10501 = vmatprep.mubr.msk.bf16.mxu0 %vm24251_vm0, %v18714_v39  ;;  %v3134_v13 = vpack.c.bf16 %v3064_v5, %v3063_v37  ;;  %v3076_v37 = vld [vmem:[#allocation2 + $0x10e] sm:$0xff] }
 0x33a   :  { %v3140_v5 = vpack.c.bf16 %v3076_v37, %v3075_v9  ;;  %v13383_v9 = vld [vmem:[%s23140_s2 + $0x10] sm:$0xff]  }
 0x33b   :  { %11370 = vmatpush3.bf16.msra.mxu1 %v13379_v52  ;;  %v3089_v37 = vld [vmem:[#allocation2 + $0x176] sm:$0xff] }
 0x33c   :  { %11371 = vmatprep.subr.bf16.mxu1 %v18714_v39 }
 0x33e   :  { %11218 = vmatmul.mubr.bf16.gmra.mrb[24].mxu1 %v24851_v11  ;;  %v3068_v11 = vld [vmem:[#allocation2 + $0xce] sm:$0xff] }
 0x33f   :  { %11221 = vmatprep.mubr.msk.bf16.mxu1 %vm24251_vm0, %v18714_v39  ;;  %v3136_v50 = vpack.c.bf16 %v3068_v11, %v3067_v16  ;;  %v24864_v11 = vld [vmem:[#allocation123_spill] sm:$0xff] }
 0x340   :  { %10502 = vmatmul.mubr.bf16.gmra.mrb[192].mxu0 %v3131_v17  ;;  %v3066_v17 = vld [vmem:[#allocation2 + $0xbe] sm:$0xff] }
 0x341   :  { %10505 = vmatprep.mubr.msk.bf16.mxu0 %vm24251_vm0, %v18714_v39  ;;  %v3135_v1 = vpack.c.bf16 %v3066_v17, %v3065_v4  ;;  %v24862_v17 = vpack.c.bf16 %v18444_v29, %v18439_v51  ;;  %v3083_v29 = vld [vmem:[#allocation2 + $0x146] sm:$0xff]  ;;  %v3084_v51 = vld [vmem:[#allocation2 + $0x14e] sm:$0xff] }
 0x342   :  { %v3144_v16 = vpack.c.bf16 %v3084_v51, %v3083_v29  ;;  %v3094_v29 = vld [vmem:[#allocation2 + $0x19e] sm:$0xff] }
 0x343   :  { %v13388_v51 = vld [vmem:[%s23140_s2 + $0x38] sm:$0xff]  }
 0x346   :  { %11222 = vmatmul.mubr.bf16.gmra.mrb[28].mxu1 %v24852_v59  ;;  %v24857_v59 = vpack.c.bf16 %v18386_v47, %v18377_v30  ;;  %v3073_v30 = vld [vmem:[#allocation2 + $0xf6] sm:$0xff]  ;;  %v3074_v47 = vld [vmem:[#allocation2 + $0xfe] sm:$0xff] }
 0x347   :  { %11225 = vmatprep.mubr.msk.bf16.mxu1 %vm24251_vm0, %v18714_v39 }
 0x348   :  { %10506 = vmatmul.mubr.bf16.gmra.mrb[196].mxu0 %v3132_v10  ;;  %v3137_v10 = vpack.c.bf16 %v3070_v8, %v3069_v22  ;;  %v3086_v22 = vld [vmem:[#allocation2 + $0x15e] sm:$0xff] }
 0x349   :  { %10509 = vmatprep.mubr.msk.bf16.mxu0 %vm24251_vm0, %v18714_v39 }
 0x34e   :  { %11226 = vmatmul.mubr.bf16.gmra.mrb[32].mxu1 %v24853_v12  ;;  %v24859_v12 = vpack.c.bf16 %v18410_v58, %v18401_v2  ;;  %v24860_v2 = vpack.c.bf16 %v18420_v40, %v18415_v27  ;;  %v3077_v58 = vld [vmem:[#allocation2 + $0x116] sm:$0xff]  ;;  %v3079_v40 = vld [vmem:[#allocation2 + $0x126] sm:$0xff]  ;;  %v3080_v27 = vld [vmem:[#allocation2 + $0x12e] sm:$0xff] }
 0x34f   :  { %11229 = vmatprep.mubr.msk.bf16.mxu1 %vm24251_vm0, %v18714_v39  ;;  %v3142_v4 = vpack.c.bf16 %v3080_v27, %v3079_v40  ;;  %v13385_v40 = vld [vmem:[%s23140_s2 + $0x20] sm:$0xff]  }
 0x350   :  { %10510 = vmatmul.mubr.bf16.gmra.mrb[200].mxu0 %v3133_v41  ;;  %v3139_v41 = vpack.c.bf16 %v3074_v47, %v3073_v30  ;;  %v13382_v30 = vld [vmem:[%s23140_s2 + $0x8] sm:$0xff]  }
 0x351   :  { %10513 = vmatprep.mubr.msk.bf16.mxu0 %vm24251_vm0, %v18714_v39  ;;  %10640 = vmatpush3.bf16.msra.mxu0 %v13382_v30  ;;  %v3091_v27 = vld [vmem:[#allocation2 + $0x186] sm:$0xff]  ;;  %v3154_v30 = vpack.c.bf16 %v3104_v53, %v3103_v21 }
 0x352   :  { %10641 = vmatprep.subr.bf16.mxu0 %v18714_v39  ;;  %v2910_v21 = vld [vmem:[#allocation2 + $0x2d] sm:$0xff] }
 0x353   :  { %v5880_v53 = vld [vmem:[#allocation2 + $0x29] sm:$0xff] }
 0x355   :  { %10642 = vmatpush3.bf16.msra.mxu0 %v13383_v9  ;;  %v24886_v9 = vpack.c.bf16 %v18612_v28, %v24841_v43  ;;  %v3111_v43 = vld [vmem:[#allocation2 + $0x226] sm:$0xff]  ;;  %v3112_v28 = vld [vmem:[#allocation2 + $0x22e] sm:$0xff] }
 0x356   :  { %11230 = vmatmul.mubr.bf16.gmra.mrb[36].mxu1 %v24854_v49  ;;  %10643 = vmatprep.subr.bf16.mxu0 %v18714_v39 }
 0x357   :  { %11233 = vmatprep.mubr.msk.bf16.mxu1 %vm24251_vm0, %v18714_v39 }
 0x358   :  { %10514 = vmatmul.mubr.bf16.gmra.mrb[204].mxu0 %v3134_v13  ;;  %v3078_v13 = vld [vmem:[#allocation2 + $0x11e] sm:$0xff] }
 0x359   :  { %10517 = vmatprep.mubr.msk.bf16.mxu0 %vm24251_vm0, %v18714_v39  ;;  %v3141_v49 = vpack.c.bf16 %v3078_v13, %v3077_v58  ;;  %v24873_v13 = vld [vmem:[#allocation82_spill] sm:$0xff] }
 0x35e   :  { %11234 = vmatmul.mubr.bf16.gmra.mrb[40].mxu1 %v24855_v54  ;;  %v24863_v54 = vpack.c.bf16 %v18458_v24, %v18449_v0  ;;  %v13380_v0 = vld [vmem:[%s23140_s2 + $0x178] sm:$0xff]  }
 0x35f   :  { %11237 = vmatprep.mubr.msk.bf16.mxu1 %vm24251_vm0, %v18714_v39  ;;  %v3085_v24 = vld [vmem:[#allocation2 + $0x156] sm:$0xff]  ;;  %11372 = vmatpush3.bf16.msra.mxu1 %v13380_v0 }
 0x360   :  { %10518 = vmatmul.mubr.bf16.gmra.mrb[208].mxu0 %v3135_v1  ;;  %v3143_v1 = vpack.c.bf16 %v3082_v23, %v3081_v63  ;;  %11537 = vmatprep.subr.bf16.mxu1 %v18714_v39  ;;  %v3145_v8 = vpack.c.bf16 %v3086_v22, %v3085_v24  ;;  %v24876_v23 = vpack.c.bf16 %v24832_v33, %v18511_v62  ;;  %v24877_v33 = vld [vmem:[#allocation104_spill] sm:$0xff]  ;;  %v24879_v0 = vld [vmem:[#allocation107_spill] sm:$0xff] }
 0x361   :  { %10521 = vmatprep.mubr.msk.bf16.mxu0 %vm24251_vm0, %v18714_v39  ;;  %v24880_v24 = vpack.c.bf16 %v24834_v35, %v24879_v0  ;;  %v3098_v22 = vld [vmem:[#allocation2 + $0x1be] sm:$0xff]  ;;  %v3099_v35 = vld [vmem:[#allocation2 + $0x1c6] sm:$0xff] }
 0x362   :  { %v2905_v0 = vld [vmem:[#allocation2 + $0x5] sm:$0xff] }
 0x366   :  { %11238 = vmatmul.mubr.bf16.gmra.mrb[44].mxu1 %v24856_v55 }
 0x367   :  { %11241 = vmatprep.mubr.msk.bf16.mxu1 %vm24251_vm0, %v18714_v39 }
 0x368   :  { %10522 = vmatmul.mubr.bf16.gmra.mrb[212].mxu0 %v3136_v50  ;;  %v24865_v50 = vld [vmem:[#allocation121_spill] sm:$0xff] }
 0x369   :  { %10525 = vmatprep.mubr.msk.bf16.mxu0 %vm24251_vm0, %v18714_v39  ;;  %v24866_v55 = vpack.c.bf16 %v24864_v11, %v24865_v50  ;;  %v3095_v11 = vld [vmem:[#allocation2 + $0x1a6] sm:$0xff]  ;;  %v3096_v50 = vld [vmem:[#allocation2 + $0x1ae] sm:$0xff] }
 0x36e   :  { %11242 = vmatmul.mubr.bf16.gmra.mrb[48].mxu1 %v24857_v59  ;;  %v24868_v59 = vld [vmem:[#allocation57_spill] sm:$0xff] }
 0x36f   :  { %11245 = vmatprep.mubr.msk.bf16.mxu1 %vm24251_vm0, %v18714_v39 }
 0x370   :  { %10526 = vmatmul.mubr.bf16.gmra.mrb[216].mxu0 %v3137_v10  ;;  %v24867_v10 = vld [vmem:[#allocation70_spill] sm:$0xff] }
 0x371   :  { %10529 = vmatprep.mubr.msk.bf16.mxu0 %vm24251_vm0, %v18714_v39  ;;  %v24869_v26 = vpack.c.bf16 %v24867_v10, %v24868_v59  ;;  %v24881_v10 = vpack.c.bf16 %v24835_v7, %v18545_v46  ;;  %v3100_v59 = vld [vmem:[#allocation2 + $0x1ce] sm:$0xff]  ;;  %v3101_v7 = vld [vmem:[#allocation2 + $0x1d6] sm:$0xff]  ;;  %v3102_v46 = vld [vmem:[#allocation2 + $0x1de] sm:$0xff] }
 0x376   :  { %11246 = vmatmul.mubr.bf16.gmra.mrb[52].mxu1 %v24858_v19  ;;  %v3088_v19 = vld [vmem:[#allocation2 + $0x16e] sm:$0xff] }
 0x377   :  { %11249 = vmatprep.mubr.msk.bf16.mxu1 %vm24251_vm0, %v18714_v39 }
 0x378   :  { %10530 = vmatmul.mubr.bf16.gmra.mrb[220].mxu0 %v3138_v42  ;;  %v3087_v42 = vld [vmem:[#allocation2 + $0x166] sm:$0xff] }
 0x379   :  { %10533 = vmatprep.mubr.msk.bf16.mxu0 %vm24251_vm0, %v18714_v39  ;;  %v3146_v47 = vpack.c.bf16 %v3088_v19, %v3087_v42  ;;  %v3153_v42 = vpack.c.bf16 %v3102_v46, %v3101_v7  ;;  %v24883_v19 = vpack.c.bf16 %v18578_v14, %v18569_v34  ;;  %v3105_v34 = vld [vmem:[#allocation2 + $0x1f6] sm:$0xff]  ;;  %v3106_v14 = vld [vmem:[#allocation2 + $0x1fe] sm:$0xff] }
 0x37a   :  { %v13389_v7 = vld [vmem:[%s23140_s2 + $0x180] sm:$0xff]  }
 0x37e   :  { %11250 = vmatmul.mubr.bf16.gmra.mrb[56].mxu1 %v24859_v12  ;;  %v24871_v12 = vld [vmem:[#allocation75_spill] sm:$0xff] }
 0x37f   :  { %11253 = vmatprep.mubr.msk.bf16.mxu1 %vm24251_vm0, %v18714_v39 }
 0x380   :  { %10534 = vmatmul.mubr.bf16.gmra.mrb[224].mxu0 %v3139_v41  ;;  %v24870_v41 = vld [vmem:[#allocation76_spill] sm:$0xff] }
 0x381   :  { %10537 = vmatprep.mubr.msk.bf16.mxu0 %vm24251_vm0, %v18714_v39  ;;  %v24872_v52 = vpack.c.bf16 %v24870_v41, %v24871_v12  ;;  %v3155_v41 = vpack.c.bf16 %v3106_v14, %v3105_v34  ;;  %v24885_v12 = vpack.c.bf16 %v18602_v44, %v24840_v3  ;;  %v3109_v44 = vld [vmem:[#allocation2 + $0x216] sm:$0xff]  ;;  %v3110_v3 = vld [vmem:[#allocation2 + $0x21e] sm:$0xff] }
 0x382   :  { %v13391_v34 = vld [vmem:[%s23140_s2 + $0x190] sm:$0xff]  }
 0x386   :  { %11254 = vmatmul.mubr.bf16.gmra.mrb[60].mxu1 %v24860_v2  ;;  %v13384_v2 = vld [vmem:[%s23140_s2 + $0x18] sm:$0xff]  }
 0x387   :  { %11257 = vmatprep.mubr.msk.bf16.mxu1 %vm24251_vm0, %v18714_v39  ;;  %10644 = vmatpush3.bf16.msra.mxu0 %v13384_v2  ;;  %v3158_v2 = vpack.c.bf16 %v3112_v28, %v3111_v43  ;;  %v5885_v43 = vld [vmem:[#allocation2 + $0x51] sm:$0xff] }
 0x388   :  { %10538 = vmatmul.mubr.bf16.gmra.mrb[228].mxu0 %v3140_v5  ;;  %v3090_v5 = vld [vmem:[#allocation2 + $0x17e] sm:$0xff]  ;;  %10645 = vmatprep.subr.bf16.mxu0 %v18714_v39 }
 0x389   :  { %10541 = vmatprep.mubr.msk.bf16.mxu0 %vm24251_vm0, %v18714_v39  ;;  %v3147_v58 = vpack.c.bf16 %v3090_v5, %v3089_v37  ;;  %v3157_v37 = vpack.c.bf16 %v3110_v3, %v3109_v44  ;;  %v24887_v5 = vpack.c.bf16 %v18626_v48, %v18617_v15  ;;  %v3113_v15 = vld [vmem:[#allocation2 + $0x236] sm:$0xff]  ;;  %v3114_v48 = vld [vmem:[#allocation2 + $0x23e] sm:$0xff] }
 0x38a   :  { %v2913_v3 = vld [vmem:[#allocation2 + $0x45] sm:$0xff] }
 0x38b   :  { %10646 = vmatpush3.bf16.msra.mxu0 %v13385_v40  ;;  %v24890_v40 = vpack.c.bf16 %v18660_v36, %v18655_v38  ;;  %v3119_v36 = vld [vmem:[#allocation2 + $0x266] sm:$0xff]  ;;  %v3120_v38 = vld [vmem:[#allocation2 + $0x26e] sm:$0xff] }
 0x38c   :  { %10647 = vmatprep.subr.bf16.mxu0 %v18714_v39 }
 0x38e   :  { %11258 = vmatmul.mubr.bf16.gmra.mrb[64].mxu1 %v24861_v61 }
 0x38f   :  { %11261 = vmatprep.mubr.msk.bf16.mxu1 %vm24251_vm0, %v18714_v39 }
 0x390   :  { %10542 = vmatmul.mubr.bf16.gmra.mrb[232].mxu0 %v3141_v49  ;;  %v24874_v49 = vld [vmem:[#allocation77_spill] sm:$0xff] }
 0x391   :  { %10545 = vmatprep.mubr.msk.bf16.mxu0 %vm24251_vm0, %v18714_v39  ;;  %v24875_v61 = vpack.c.bf16 %v24873_v13, %v24874_v49  ;;  %v3159_v13 = vpack.c.bf16 %v3114_v48, %v3113_v15  ;;  %v24889_v49 = vpack.c.bf16 %v18650_v60, %v18641_v56  ;;  %v3117_v56 = vld [vmem:[#allocation2 + $0x256] sm:$0xff]  ;;  %v3118_v60 = vld [vmem:[#allocation2 + $0x25e] sm:$0xff] }
 0x392   :  { %v2916_v15 = vld [vmem:[#allocation2 + $0x5d] sm:$0xff] }
 0x393   :  { %v5886_v48 = vld [vmem:[#allocation2 + $0x59] sm:$0xff] }
 0x396   :  { %11262 = vmatmul.mubr.bf16.gmra.mrb[68].mxu1 %v24862_v17  ;;  %v13386_v17 = vld [vmem:[%s23140_s2 + $0x28] sm:$0xff]  }
 0x397   :  { %11265 = vmatprep.mubr.msk.bf16.mxu1 %vm24251_vm0, %v18714_v39  ;;  %10648 = vmatpush3.bf16.msra.mxu0 %v13386_v17  ;;  %v5325_v17 = vld [vmem:[#allocation2 + $0x268] sm:$0xff] }
 0x398   :  { %10546 = vmatmul.mubr.bf16.gmra.mrb[236].mxu0 %v3142_v4  ;;  %v3092_v4 = vld [vmem:[#allocation2 + $0x18e] sm:$0xff]  ;;  %10649 = vmatprep.subr.bf16.mxu0 %v18714_v39 }
 0x399   :  { %10549 = vmatprep.mubr.msk.bf16.mxu0 %vm24251_vm0, %v18714_v39  ;;  %v3148_v63 = vpack.c.bf16 %v3092_v4, %v3091_v27  ;;  %v3161_v27 = vpack.c.bf16 %v3118_v60, %v3117_v56  ;;  %v24891_v4 = vpack.c.bf16 %v18674_v18, %v18665_v57  ;;  %v3121_v57 = vld [vmem:[#allocation2 + $0x276] sm:$0xff]  ;;  %v3122_v18 = vld [vmem:[#allocation2 + $0x27e] sm:$0xff]  ;;  %v5888_v56 = vld [vmem:[#allocation2 + $0x69] sm:$0xff] }
 0x39a   :  { %v5889_v60 = vld [vmem:[#allocation2 + $0x71] sm:$0xff] }
 0x39e   :  { %11266 = vmatmul.mubr.bf16.gmra.mrb[72].mxu1 %v24863_v54  ;;  %v3093_v54 = vld [vmem:[#allocation2 + $0x196] sm:$0xff] }
 0x39f   :  { %11269 = vmatprep.mubr.msk.bf16.mxu1 %vm24251_vm0, %v18714_v39  ;;  %v3149_v62 = vpack.c.bf16 %v3094_v29, %v3093_v54  ;;  %v5327_v54 = vld [vmem:[#allocation2 + $0x278] sm:$0xff]  ;;  %v5328_v29 = vld [vmem:[#allocation2 + $0x280] sm:$0xff] }
 0x3a0   :  { %10550 = vmatmul.mubr.bf16.gmra.mrb[240].mxu0 %v3143_v1  ;;  %v13387_v1 = vld [vmem:[%s23140_s2 + $0x30] sm:$0xff]  }
 0x3a1   :  { %10553 = vmatprep.mubr.msk.bf16.mxu0 %vm24251_vm0, %v18714_v39  ;;  %10650 = vmatpush3.bf16.msra.mxu0 %v13387_v1 }
 0x3a2   :  { %10651 = vmatprep.subr.bf16.mxu0 %v18714_v39 }
 0x3a5   :  { %10652 = vmatpush3.bf16.msra.mxu0 %v13388_v51  ;;  %v3163_v51 = vpack.c.bf16 %v3122_v18, %v3121_v57  ;;  %v2921_v57 = vld [vmem:[#allocation2 + $0x85] sm:$0xff]  ;;  %v2922_v18 = vld [vmem:[#allocation2 + $0x8d] sm:$0xff] }
 0x3a6   :  { %11270 = vmatmul.mubr.bf16.gmra.mrb[76].mxu1 %v24866_v55  ;;  %10817 = vmatprep.subr.bf16.mxu0 %v18714_v39  ;;  %v3150_v55 = vpack.c.bf16 %v3096_v50, %v3095_v11  ;;  %v5330_v11 = vld [vmem:[#allocation2 + $0x290] sm:$0xff] }
 0x3a7   :  { %11273 = vmatprep.mubr.msk.bf16.mxu1 %vm24251_vm0, %v18714_v39 }
 0x3a8   :  { %10554 = vmatmul.mubr.bf16.gmra.mrb[244].mxu0 %v3144_v16  ;;  %v24878_v16 = vpack.c.bf16 %v18530_v25, %v24877_v33  ;;  %v3097_v25 = vld [vmem:[#allocation2 + $0x1b6] sm:$0xff]  ;;  %v3123_v33 = vld [vmem:[#allocation2 + $0x286] sm:$0xff] }
 0x3a9   :  { %10557 = vmatprep.mubr.msk.bf16.mxu0 %vm24251_vm0, %v18714_v39  ;;  %v3164_v50 = vpack.c.bf16 %v3123_v33, %v3123_v33  ;;  %v2923_v33 = vld [vmem:[#allocation2 + $0x95] sm:$0xff] }
 0x3ae   :  { %11274 = vmatmul.mubr.bf16.gmra.mrb[80].mxu1 %v24869_v26  ;;  %v3152_v26 = vpack.c.bf16 %v3100_v59, %v3099_v35  ;;  %v2908_v35 = vld [vmem:[#allocation2 + $0x1d] sm:$0xff] }
 0x3af   :  { %11277 = vmatprep.mubr.msk.bf16.mxu1 %vm24251_vm0, %v18714_v39  ;;  %v5878_v59 = vld [vmem:[#allocation2 + $0x19] sm:$0xff] }
 0x3b0   :  { %10558 = vmatmul.mubr.bf16.gmra.mrb[248].mxu0 %v3145_v8  ;;  %v3151_v8 = vpack.c.bf16 %v3098_v22, %v3097_v25  ;;  %v5331_v22 = vld [vmem:[#allocation2 + $0x298] sm:$0xff] }
 0x3b1   :  { %10561 = vmatprep.mubr.msk.bf16.mxu0 %vm24251_vm0, %v18714_v39 }
 0x3b6   :  { %11278 = vmatmul.mubr.bf16.gmra.mrb[84].mxu1 %v24872_v52 }
 0x3b7   :  { %11281 = vmatprep.mubr.msk.bf16.mxu1 %vm24251_vm0, %v18714_v39 }
 0x3b8   :  { %10562 = vmatmul.mubr.bf16.gmra.mrb[252].mxu0 %v3146_v47  ;;  %v24884_v47 = vpack.c.bf16 %v24839_v32, %v24838_v31  ;;  %v3107_v31 = vld [vmem:[#allocation2 + $0x206] sm:$0xff]  ;;  %v3108_v32 = vld [vmem:[#allocation2 + $0x20e] sm:$0xff] }
 0x3b9   :  { %10565 = vmatprep.mubr.msk.bf16.mxu0 %vm24251_vm0, %v18714_v39  ;;  %v3156_v52 = vpack.c.bf16 %v3108_v32, %v3107_v31  ;;  %v2912_v31 = vld [vmem:[#allocation2 + $0x3d] sm:$0xff] }
 0x3ba   :  { %v5882_v32 = vld [vmem:[#allocation2 + $0x39] sm:$0xff] }
 0x3be   :  { %11282 = vmatmul.mubr.bf16.gmra.mrb[88].mxu1 %v24875_v61 }
 0x3bf   :  { %11285 = vmatprep.mubr.msk.bf16.mxu1 %vm24251_vm0, %v18714_v39 }
 0x3c0   :  { %10566 = vmatmul.mubr.bf16.gmra.mrb[0].mxu0 %v3147_v58  ;;  %v24888_v58 = vpack.c.bf16 %v18636_v45, %v18631_v6  ;;  %v3115_v45 = vld [vmem:[#allocation2 + $0x246] sm:$0xff]  ;;  %v3116_v6 = vld [vmem:[#allocation2 + $0x24e] sm:$0xff] }
 0x3c1   :  { %10569 = vmatprep.mubr.msk.bf16.mxu0 %vm24251_vm0, %v18714_v39  ;;  %v3160_v61 = vpack.c.bf16 %v3116_v6, %v3115_v45  ;;  %v13393_v6 = vld [vmem:[%s23140_s2 + $0x1a0] sm:$0xff]  }
 0x3c6   :  { %11286 = vmatmul.mubr.bf16.gmra.mrb[92].mxu1 %v24876_v23  ;;  %v3162_v23 = vpack.c.bf16 %v3120_v38, %v3119_v36  ;;  %v2919_v36 = vld [vmem:[#allocation2 + $0x75] sm:$0xff]  ;;  %v2920_v38 = vld [vmem:[#allocation2 + $0x7d] sm:$0xff] }
 0x3c7   :  { %11289 = vmatprep.mubr.msk.bf16.mxu1 %vm24251_vm0, %v18714_v39 }
 0x3c8   :  { %10570 = vmatmul.mubr.bf16.gmra.mrb[4].mxu0 %v3148_v63  ;;  %v5326_v63 = vld [vmem:[#allocation2 + $0x270] sm:$0xff] }
 0x3c9   :  { %10573 = vmatprep.mubr.msk.bf16.mxu0 %vm24251_vm0, %v18714_v39  ;;  %v5369_v1 = vpack.c.bf16 %v5326_v63, %v5325_v17  ;;  %v5890_v17 = vld [vmem:[#allocation2 + $0x79] sm:$0xff]  ;;  %v5891_v63 = vld [vmem:[#allocation2 + $0x81] sm:$0xff] }
 0x3ce   :  { %11290 = vmatmul.mubr.bf16.gmra.mrb[96].mxu1 %v24878_v16  ;;  %v5329_v16 = vld [vmem:[#allocation2 + $0x288] sm:$0xff] }
 0x3cf   :  { %11293 = vmatprep.mubr.msk.bf16.mxu1 %vm24251_vm0, %v18714_v39 }
 0x3d0   :  { %10574 = vmatmul.mubr.bf16.gmra.mrb[8].mxu0 %v3149_v62  ;;  %v5370_v62 = vpack.c.bf16 %v5328_v29, %v5327_v54  ;;  %v5892_v54 = vld [vmem:[#allocation2 + $0x89] sm:$0xff]  ;;  %v5893_v29 = vld [vmem:[#allocation2 + $0x91] sm:$0xff] }
 0x3d1   :  { %10577 = vmatprep.mubr.msk.bf16.mxu0 %vm24251_vm0, %v18714_v39 }
 0x3d6   :  { %11294 = vmatmul.mubr.bf16.gmra.mrb[100].mxu1 %v24880_v24  ;;  %v2906_v24 = vld [vmem:[#allocation2 + $0xd] sm:$0xff] }
 0x3d7   :  { %11297 = vmatprep.mubr.msk.bf16.mxu1 %vm24251_vm0, %v18714_v39  ;;  %v2986_v25 = vpack.c.bf16 %v2906_v24, %v2905_v0  ;;  %v2925_v24 = vld [vmem:[#allocation2 + $0xa5] sm:$0xff] }
 0x3d8   :  { %10578 = vmatmul.mubr.bf16.gmra.mrb[12].mxu0 %v3150_v55  ;;  %v5371_v55 = vpack.c.bf16 %v5330_v11, %v5329_v16  ;;  %v2924_v16 = vld [vmem:[#allocation2 + $0x9d] sm:$0xff] }
 0x3d9   :  { %10581 = vmatprep.mubr.msk.bf16.mxu0 %vm24251_vm0, %v18714_v39  ;;  %v5894_v11 = vld [vmem:[#allocation2 + $0x99] sm:$0xff] }
 0x3de   :  { %11298 = vmatmul.mubr.bf16.gmra.mrb[104].mxu1 %v24881_v10  ;;  %v2907_v10 = vld [vmem:[#allocation2 + $0x15] sm:$0xff] }
 0x3df   :  { %11301 = vmatprep.mubr.msk.bf16.mxu1 %vm24251_vm0, %v18714_v39 }
 0x3e0   :  { %10582 = vmatmul.mubr.bf16.gmra.mrb[16].mxu0 %v3151_v8  ;;  %v5372_v8 = vpack.c.bf16 %v5331_v22, %v5331_v22  ;;  %v5896_v22 = vld [vmem:[#allocation2 + $0xa9] sm:$0xff] }
 0x3e1   :  { %10585 = vmatprep.mubr.msk.bf16.mxu0 %vm24251_vm0, %v18714_v39 }
 0x3e6   :  { %11302 = vmatmul.mubr.bf16.gmra.mrb[108].mxu1 %v24882_v20  ;;  %v2987_v20 = vpack.c.bf16 %v2908_v35, %v2907_v10 }
 0x3e7   :  { %11305 = vmatprep.mubr.msk.bf16.mxu1 %vm24251_vm0, %v18714_v39 }
 0x3e8   :  { %10586 = vmatmul.mubr.bf16.gmra.mrb[20].mxu0 %v3152_v26  ;;  %v5879_v26 = vld [vmem:[#allocation2 + $0x21] sm:$0xff] }
 0x3e9   :  { %10589 = vmatprep.mubr.msk.bf16.mxu0 %vm24251_vm0, %v18714_v39  ;;  %v5959_v46 = vpack.c.bf16 %v5879_v26, %v5878_v59  ;;  %v13394_v59 = vld [vmem:[%s23140_s2 + $0x1a8] sm:$0xff]   ;;  %v2927_v26 = vld [vmem:[#allocation2 + $0xb5] sm:$0xff] }
 0x3ee   :  { %11306 = vmatmul.mubr.bf16.gmra.mrb[112].mxu1 %v24883_v19  ;;  %v2909_v19 = vld [vmem:[#allocation2 + $0x25] sm:$0xff] }
 0x3ef   :  { %11309 = vmatprep.mubr.msk.bf16.mxu1 %vm24251_vm0, %v18714_v39 }
 0x3f0   :  { %10590 = vmatmul.mubr.bf16.gmra.mrb[24].mxu0 %v3153_v42  ;;  %v13390_v42 = vld [vmem:[%s23140_s2 + $0x188] sm:$0xff]  }
 0x3f1   :  { %10593 = vmatprep.mubr.msk.bf16.mxu0 %vm24251_vm0, %v18714_v39 }
 0x3f6   :  { %11310 = vmatmul.mubr.bf16.gmra.mrb[116].mxu1 %v24884_v47  ;;  %v2988_v47 = vpack.c.bf16 %v2910_v21, %v2909_v19  ;;  %v2929_v21 = vld [vmem:[#allocation2 + $0xc5] sm:$0xff] }
 0x3f7   :  { %11313 = vmatprep.mubr.msk.bf16.mxu1 %vm24251_vm0, %v18714_v39 }
 0x3f8   :  { %10594 = vmatmul.mubr.bf16.gmra.mrb[28].mxu0 %v3154_v30  ;;  %v5881_v30 = vld [vmem:[#allocation2 + $0x31] sm:$0xff] }
 0x3f9   :  { %10597 = vmatprep.mubr.msk.bf16.mxu0 %vm24251_vm0, %v18714_v39  ;;  %v19123_v14 = vpack.c.bf16 %v5881_v30, %v5880_v53  ;;  %v2930_v53 = vld [vmem:[#allocation2 + $0xcd] sm:$0xff] }
 0x3fa   :  { %v5900_v30 = vld [vmem:[#allocation2 + $0xc9] sm:$0xff] }
 0x3fe   :  { %11314 = vmatmul.mubr.bf16.gmra.mrb[120].mxu1 %v24885_v12  ;;  %v2911_v12 = vld [vmem:[#allocation2 + $0x35] sm:$0xff] }
 0x3ff   :  { %11317 = vmatprep.mubr.msk.bf16.mxu1 %vm24251_vm0, %v18714_v39 }
 0x400   :  { %10598 = vmatmul.mubr.bf16.gmra.mrb[32].mxu0 %v3155_v41  ;;  %v13392_v41 = vld [vmem:[%s23140_s2 + $0x198] sm:$0xff]  }
 0x401   :  { %10601 = vmatprep.mubr.msk.bf16.mxu0 %vm24251_vm0, %v18714_v39 }
 0x406   :  { %11318 = vmatmul.mubr.bf16.gmra.mrb[124].mxu1 %v24886_v9  ;;  %v2989_v9 = vpack.c.bf16 %v2912_v31, %v2911_v12  ;;  %v2931_v12 = vld [vmem:[#allocation2 + $0xd5] sm:$0xff]  ;;  %v2932_v31 = vld [vmem:[#allocation2 + $0xdd] sm:$0xff] }
 0x407   :  { %11321 = vmatprep.mubr.msk.bf16.mxu1 %vm24251_vm0, %v18714_v39 }
 0x408   :  { %10602 = vmatmul.mubr.bf16.gmra.mrb[36].mxu0 %v3156_v52  ;;  %v5883_v52 = vld [vmem:[#allocation2 + $0x41] sm:$0xff] }
 0x409   :  { %10605 = vmatprep.mubr.msk.bf16.mxu0 %vm24251_vm0, %v18714_v39  ;;  %v19135_v44 = vpack.c.bf16 %v5883_v52, %v5882_v32  ;;  %v5902_v32 = vld [vmem:[#allocation2 + $0xd9] sm:$0xff]  ;;  %v5903_v52 = vld [vmem:[#allocation2 + $0xe1] sm:$0xff] }
 0x40e   :  { %11322 = vmatmul.mubr.bf16.gmra.mrb[128].mxu1 %v24887_v5  ;;  %v5884_v5 = vld [vmem:[#allocation2 + $0x49] sm:$0xff] }
 0x40f   :  { %11325 = vmatprep.mubr.msk.bf16.mxu1 %vm24251_vm0, %v18714_v39 }
 0x410   :  { %10606 = vmatmul.mubr.bf16.gmra.mrb[40].mxu0 %v3157_v37  ;;  %v2914_v37 = vld [vmem:[#allocation2 + $0x4d] sm:$0xff] }
 0x411   :  { %10609 = vmatprep.mubr.msk.bf16.mxu0 %vm24251_vm0, %v18714_v39  ;;  %v2990_v28 = vpack.c.bf16 %v2914_v37, %v2913_v3  ;;  %v19214_v3 = vpack.c.bf16 %v5903_v52, %v5902_v32  ;;  %v19217_v37 = vld [vmem:[#allocation2] sm:$0xff] }
 0x416   :  { %11326 = vmatmul.mubr.bf16.gmra.mrb[132].mxu1 %v24888_v58  ;;  %v2915_v58 = vld [vmem:[#allocation2 + $0x55] sm:$0xff] }
 0x417   :  { %11329 = vmatprep.mubr.msk.bf16.mxu1 %vm24251_vm0, %v18714_v39 }
 0x418   :  { %10610 = vmatmul.mubr.bf16.gmra.mrb[44].mxu0 %v3158_v2  ;;  %v19143_v2 = vpack.c.bf16 %v5885_v43, %v5884_v5  ;;  %v2933_v5 = vld [vmem:[#allocation2 + $0xe5] sm:$0xff] }
 0x419   :  { %10613 = vmatprep.mubr.msk.bf16.mxu0 %vm24251_vm0, %v18714_v39  ;;  %v5904_v43 = vld [vmem:[#allocation2 + $0xe9] sm:$0xff] }
 0x41e   :  { %11330 = vmatmul.mubr.bf16.gmra.mrb[136].mxu1 %v24889_v49  ;;  %v2991_v49 = vpack.c.bf16 %v2916_v15, %v2915_v58 }
 0x41f   :  { %11333 = vmatprep.mubr.msk.bf16.mxu1 %vm24251_vm0, %v18714_v39 }
 0x420   :  { %10614 = vmatmul.mubr.bf16.gmra.mrb[48].mxu0 %v3159_v13  ;;  %v5887_v13 = vld [vmem:[#allocation2 + $0x61] sm:$0xff] }
 0x421   :  { %10617 = vmatprep.mubr.msk.bf16.mxu0 %vm24251_vm0, %v18714_v39  ;;  %v19150_v45 = vpack.c.bf16 %v5887_v13, %v5886_v48  ;;  %v2935_v48 = vld [vmem:[#allocation2 + $0xf5] sm:$0xff]  ;;  %v2936_v13 = vld [vmem:[#allocation2 + $0xfd] sm:$0xff] }
 0x426   :  { %11334 = vmatmul.mubr.bf16.gmra.mrb[140].mxu1 %v24890_v40  ;;  %v2918_v40 = vld [vmem:[#allocation2 + $0x6d] sm:$0xff] }
 0x427   :  { %11337 = vmatprep.mubr.msk.bf16.mxu1 %vm24251_vm0, %v18714_v39 }
 0x428   :  { %10618 = vmatmul.mubr.bf16.gmra.mrb[52].mxu0 %v3160_v61  ;;  %v2917_v61 = vld [vmem:[#allocation2 + $0x65] sm:$0xff] }
 0x429   :  { %10621 = vmatprep.mubr.msk.bf16.mxu0 %vm24251_vm0, %v18714_v39 }
 0x42e   :  { %11338 = vmatmul.mubr.bf16.gmra.mrb[144].mxu1 %v24891_v4  ;;  %v19161_v4 = vpack.c.bf16 %v5889_v60, %v5888_v56  ;;  %v13395_v56 = vld [vmem:[%s23140_s2 + $0x1b0] sm:$0xff]   ;;  %v2937_v60 = vld [vmem:[#allocation2 + $0x105] sm:$0xff] }
 0x42f   :  { %11341 = vmatprep.mubr.msk.bf16.mxu1 %vm24251_vm0, %v18714_v39 }
 0x430   :  { %10622 = vmatmul.mubr.bf16.gmra.mrb[56].mxu0 %v3161_v27  ;;  %v2992_v27 = vpack.c.bf16 %v2918_v40, %v2917_v61  ;;  %v3001_v61 = vpack.c.bf16 %v2936_v13, %v2935_v48 }
 0x431   :  { %10625 = vmatprep.mubr.msk.bf16.mxu0 %vm24251_vm0, %v18714_v39 }
 0x436   :  { %11342 = vmatmul.mubr.bf16.gmra.mrb[148].mxu1 %v5369_v1  ;;  %v19168_v1 = vpack.c.bf16 %v5891_v63, %v5890_v17 }
 0x437   :  { %11345 = vmatprep.mubr.msk.bf16.mxu1 %vm24251_vm0, %v18714_v39 }
 0x438   :  { %10626 = vmatmul.mubr.bf16.gmra.mrb[60].mxu0 %v3162_v23  ;;  %v2993_v23 = vpack.c.bf16 %v2920_v38, %v2919_v36  ;;  %v5908_v36 = vld [vmem:[#allocation2 + $0x109] sm:$0xff]  ;;  %v5909_v38 = vld [vmem:[#allocation2 + $0x111] sm:$0xff] }
 0x439   :  { %10629 = vmatprep.mubr.msk.bf16.mxu0 %vm24251_vm0, %v18714_v39  ;;  %v19241_v63 = vpack.c.bf16 %v5909_v38, %v5908_v36 }
 0x43e   :  { %11346 = vmatmul.mubr.bf16.gmra.mrb[152].mxu1 %v5370_v62  ;;  %v19175_v62 = vpack.c.bf16 %v5893_v29, %v5892_v54  ;;  %v5911_v54 = vld [vmem:[#allocation2 + $0x121] sm:$0xff] }
 0x43f   :  { %11349 = vmatprep.mubr.msk.bf16.mxu1 %vm24251_vm0, %v18714_v39 }
 0x440   :  { %10630 = vmatmul.mubr.bf16.gmra.mrb[64].mxu0 %v3163_v51  ;;  %v2994_v51 = vpack.c.bf16 %v2922_v18, %v2921_v57  ;;  %v2940_v57 = vld [vmem:[#allocation2 + $0x11d] sm:$0xff] }
 0x441   :  { %10633 = vmatprep.mubr.msk.bf16.mxu0 %vm24251_vm0, %v18714_v39  ;;  %v5910_v18 = vld [vmem:[#allocation2 + $0x119] sm:$0xff] }
 0x446   :  { %11350 = vmatmul.mubr.bf16.gmra.mrb[156].mxu1 %v5371_v55  ;;  %v2995_v55 = vpack.c.bf16 %v2924_v16, %v2923_v33  ;;  %v2941_v33 = vld [vmem:[#allocation2 + $0x125] sm:$0xff]  ;;  %v2942_v16 = vld [vmem:[#allocation2 + $0x12d] sm:$0xff] }
 0x447   :  { %11353 = vmatprep.mubr.msk.bf16.mxu1 %vm24251_vm0, %v18714_v39 }
 0x448   :  { %10634 = vmatmul.mubr.bf16.gmra.mrb[68].mxu0 %v3164_v50  ;;  %v5895_v50 = vld [vmem:[#allocation2 + $0xa1] sm:$0xff] }
 0x449   :  { %10653 = vmatprep.mubr.msk.bf16.mxu0 %vm24251_vm0, %v18714_v39  ;;  %v19182_v0 = vpack.c.bf16 %v5895_v50, %v5894_v11  ;;  %v5912_v11 = vld [vmem:[#allocation2 + $0x129] sm:$0xff]  ;;  %v5913_v50 = vld [vmem:[#allocation2 + $0x131] sm:$0xff] }
 0x44e   :  { %11354 = vmatmul.mubr.bf16.gmra.mrb[160].mxu1 %v5372_v8  ;;  %v5897_v8 = vld [vmem:[#allocation2 + $0xb1] sm:$0xff] }
 0x44f   :  { %11373 = vmatprep.mubr.msk.bf16.mxu1 %vm24251_vm0, %v18714_v39  ;;  %v19189_v35 = vpack.c.bf16 %v5897_v8, %v5896_v22  ;;  %v2944_v22 = vld [vmem:[#allocation2 + $0x13d] sm:$0xff] }
 0x450   :  { %10654 = vmatmul.mubr.bf16.vlgmr.msra.gmra.mrb[164].mxu0 %v2986_v25  ;;  %v2926_v25 = vld [vmem:[#allocation2 + $0xad] sm:$0xff]  ;;  %v5914_v8 = vld [vmem:[#allocation2 + $0x139] sm:$0xff] }
 0x451   :  { %10657 = vmatprep.mubr.msk.bf16.mxu0 %vm24251_vm0, %v18714_v39  ;;  %v2996_v10 = vpack.c.bf16 %v2926_v25, %v2925_v24  ;;  %v19255_v24 = vpack.c.bf16 %v5913_v50, %v5912_v11  ;;  %v2943_v25 = vld [vmem:[#allocation2 + $0x135] sm:$0xff] }
 0x452   :  { %v13403_v11 = vld [vmem:[%s23140_s2 + $0xb0] sm:$0xff]  }
 0x453   :  { %v2955_v50 = vld [vmem:[#allocation2 + $0x195] sm:$0xff] }
 0x456   :  { %11374 = vmatmul.mubr.bf16.vlgmr.msra.gmra.mrb[0].mxu1 %v5959_v46  ;;  %v5899_v46 = vld [vmem:[#allocation2 + $0xc1] sm:$0xff] }
 0x457   :  { %11538 = vmatpush3.bf16.msra.mxu1 %v13389_v7  ;;  %11377 = vmatprep.mubr.msk.bf16.mxu1 %vm24251_vm0, %v18714_v39  ;;  %v5898_v7 = vld [vmem:[#allocation2 + $0xb9] sm:$0xff] }
 0x458   :  { %10658 = vmatmul.mubr.bf16.gmra.mrb[168].mxu0 %v2987_v20  ;;  %11539 = vmatprep.subr.bf16.mxu1 %v18714_v39  ;;  %v2928_v20 = vld [vmem:[#allocation2 + $0xbd] sm:$0xff]  ;;  %v19200_v19 = vpack.c.bf16 %v5899_v46, %v5898_v7  ;;  %v2946_v7 = vld [vmem:[#allocation2 + $0x14d] sm:$0xff] }
 0x459   :  { %10661 = vmatprep.mubr.msk.bf16.mxu0 %vm24251_vm0, %v18714_v39  ;;  %v5916_v46 = vld [vmem:[#allocation2 + $0x149] sm:$0xff] }
 0x45b   :  { %11540 = vmatpush3.bf16.msra.mxu1 %v13390_v42  ;;  %v2997_v42 = vpack.c.bf16 %v2928_v20, %v2927_v26  ;;  %v2945_v20 = vld [vmem:[#allocation2 + $0x145] sm:$0xff] }
 0x45c   :  { %11541 = vmatprep.subr.bf16.mxu1 %v18714_v39 }
 0x45e   :  { %11378 = vmatmul.mubr.bf16.gmra.mrb[4].mxu1 %v19123_v14 }
 0x45f   :  { %11381 = vmatprep.mubr.msk.bf16.mxu1 %vm24251_vm0, %v18714_v39  ;;  %11542 = vmatpush3.bf16.msra.mxu1 %v13391_v34  ;;  %v2998_v34 = vpack.c.bf16 %v2930_v53, %v2929_v21  ;;  %v3006_v21 = vpack.c.bf16 %v2946_v7, %v2945_v20  ;;  %v2957_v20 = vld [vmem:[#allocation2 + $0x1a5] sm:$0xff]  ;;  %v2958_v7 = vld [vmem:[#allocation2 + $0x1ad] sm:$0xff] }
 0x460   :  { %10662 = vmatmul.mubr.bf16.gmra.mrb[172].mxu0 %v2988_v47  ;;  %11543 = vmatprep.subr.bf16.mxu1 %v18714_v39  ;;  %v5901_v47 = vld [vmem:[#allocation2 + $0xd1] sm:$0xff] }
 0x461   :  { %10665 = vmatprep.mubr.msk.bf16.mxu0 %vm24251_vm0, %v18714_v39 }
 0x463   :  { %11544 = vmatpush3.bf16.msra.mxu1 %v13392_v41  ;;  %v19207_v41 = vpack.c.bf16 %v5901_v47, %v5900_v30  ;;  %v13396_v30 = vld [vmem:[%s23140_s2 + $0x1b8] sm:$0xff]  }
 0x464   :  { %11545 = vmatprep.subr.bf16.mxu1 %v18714_v39  ;;  %v2947_v47 = vld [vmem:[#allocation2 + $0x155] sm:$0xff] }
 0x466   :  { %11382 = vmatmul.mubr.bf16.gmra.mrb[8].mxu1 %v19135_v44 }
 0x467   :  { %11385 = vmatprep.mubr.msk.bf16.mxu1 %vm24251_vm0, %v18714_v39  ;;  %11546 = vmatpush3.bf16.msra.mxu1 %v13393_v6  ;;  %v5907_v6 = vld [vmem:[#allocation2 + $0x101] sm:$0xff] }
 0x468   :  { %10666 = vmatmul.mubr.bf16.gmra.mrb[176].mxu0 %v2989_v9  ;;  %11547 = vmatprep.subr.bf16.mxu1 %v18714_v39  ;;  %v2999_v9 = vpack.c.bf16 %v2932_v31, %v2931_v12  ;;  %v5918_v12 = vld [vmem:[#allocation2 + $0x159] sm:$0xff]  ;;  %v5919_v31 = vld [vmem:[#allocation2 + $0x161] sm:$0xff] }
 0x469   :  { %10669 = vmatprep.mubr.msk.bf16.mxu0 %vm24251_vm0, %v18714_v39  ;;  %v19280_v52 = vpack.c.bf16 %v5919_v31, %v5918_v12  ;;  %v5930_v12 = vld [vmem:[#allocation2 + $0x1b9] sm:$0xff]  ;;  %v5931_v31 = vld [vmem:[#allocation2 + $0x1c1] sm:$0xff] }
 0x46b   :  { %11548 = vmatpush3.bf16.msra.mxu1 %v13394_v59  ;;  %v3005_v59 = vpack.c.bf16 %v2944_v22, %v2943_v25  ;;  %v13404_v25 = vld [vmem:[%s23140_s2 + $0xb8] sm:$0xff]  }
 0x46c   :  { %11549 = vmatprep.subr.bf16.mxu1 %v18714_v39  ;;  %v5926_v22 = vld [vmem:[#allocation2 + $0x199] sm:$0xff] }
 0x46e   :  { %11386 = vmatmul.mubr.bf16.gmra.mrb[12].mxu1 %v19143_v2 }
 0x46f   :  { %11389 = vmatprep.mubr.msk.bf16.mxu1 %vm24251_vm0, %v18714_v39  ;;  %11550 = vmatpush3.bf16.msra.mxu1 %v13395_v56  ;;  %v13400_v56 = vld [vmem:[%s23140_s2 + $0x98] sm:$0xff]  }
 0x470   :  { %10670 = vmatmul.mubr.bf16.gmra.mrb[180].mxu0 %v2990_v28  ;;  %v5905_v28 = vld [vmem:[#allocation2 + $0xf1] sm:$0xff]  ;;  %11551 = vmatprep.subr.bf16.mxu1 %v19217_v37 }
 0x471   :  { %10673 = vmatprep.mubr.msk.bf16.mxu0 %vm24251_vm0, %v18714_v39  ;;  %v19223_v15 = vpack.c.bf16 %v5905_v28, %v5904_v43  ;;  %v13398_v43 = vld [vmem:[%s23140_s2 + $0x88] sm:$0xff]  }
 0x472   :  { %v5920_v28 = vld [vmem:[#allocation2 + $0x169] sm:$0xff] }
 0x473   :  { %11552 = vmatpush3.bf16.msra.mxu1 %v13396_v30 }
 0x474   :  { %11717 = vmatprep.subr.bf16.mxu1 %v19217_v37 }
 0x476   :  { %11390 = vmatmul.mubr.bf16.gmra.mrb[16].mxu1 %v19150_v45 }
 0x477   :  { %11393 = vmatprep.mubr.msk.bf16.mxu1 %vm24251_vm0, %v18714_v39 }
 0x478   :  { %10674 = vmatmul.mubr.bf16.gmra.mrb[184].mxu0 %v2991_v49  ;;  %v5906_v49 = vld [vmem:[#allocation2 + $0xf9] sm:$0xff] }
 0x479   :  { %10677 = vmatprep.mubr.msk.bf16.mxu0 %vm24251_vm0, %v18714_v39  ;;  %v19230_v40 = vpack.c.bf16 %v5907_v6, %v5906_v49  ;;  %v13399_v49 = vld [vmem:[%s23140_s2 + $0x90] sm:$0xff]  }
 0x47a   :  { %v2951_v6 = vld [vmem:[#allocation2 + $0x175] sm:$0xff] }
 0x47e   :  { %11394 = vmatmul.mubr.bf16.gmra.mrb[20].mxu1 %v19161_v4 }
 0x47f   :  { %11397 = vmatprep.mubr.msk.bf16.mxu1 %vm24251_vm0, %v18714_v39 }
 0x480   :  { %10678 = vmatmul.mubr.bf16.gmra.mrb[188].mxu0 %v2992_v27  ;;  %v2938_v27 = vld [vmem:[#allocation2 + $0x10d] sm:$0xff] }
 0x481   :  { %10681 = vmatprep.mubr.msk.bf16.mxu0 %vm24251_vm0, %v18714_v39  ;;  %v3002_v17 = vpack.c.bf16 %v2938_v27, %v2937_v60  ;;  %v5922_v60 = vld [vmem:[#allocation2 + $0x179] sm:$0xff]  ;;  %v5923_v27 = vld [vmem:[#allocation2 + $0x181] sm:$0xff] }
 0x482   :  { %v19309_v38 = vpack.c.bf16 %v5923_v27, %v5922_v60 }
 0x486   :  { %11398 = vmatmul.mubr.bf16.gmra.mrb[24].mxu1 %v19168_v1 }
 0x487   :  { %11401 = vmatprep.mubr.msk.bf16.mxu1 %vm24251_vm0, %v18714_v39 }
 0x488   :  { %10682 = vmatmul.mubr.bf16.gmra.mrb[192].mxu0 %v2993_v23  ;;  %v2939_v23 = vld [vmem:[#allocation2 + $0x115] sm:$0xff] }
 0x489   :  { %10685 = vmatprep.mubr.msk.bf16.mxu0 %vm24251_vm0, %v18714_v39  ;;  %v3003_v29 = vpack.c.bf16 %v2940_v57, %v2939_v23  ;;  %v2953_v23 = vld [vmem:[#allocation2 + $0x185] sm:$0xff]  ;;  %v2954_v57 = vld [vmem:[#allocation2 + $0x18d] sm:$0xff] }
 0x48e   :  { %11402 = vmatmul.mubr.bf16.gmra.mrb[28].mxu1 %v19175_v62 }
 0x48f   :  { %11405 = vmatprep.mubr.msk.bf16.mxu1 %vm24251_vm0, %v18714_v39 }
 0x490   :  { %10686 = vmatmul.mubr.bf16.gmra.mrb[196].mxu0 %v2994_v51  ;;  %v19248_v51 = vpack.c.bf16 %v5911_v54, %v5910_v18  ;;  %v13402_v18 = vld [vmem:[%s23140_s2 + $0xa8] sm:$0xff]  }
 0x491   :  { %10689 = vmatprep.mubr.msk.bf16.mxu0 %vm24251_vm0, %v18714_v39  ;;  %v5924_v54 = vld [vmem:[#allocation2 + $0x189] sm:$0xff] }
 0x496   :  { %11406 = vmatmul.mubr.bf16.gmra.mrb[32].mxu1 %v19182_v0 }
 0x497   :  { %11409 = vmatprep.mubr.msk.bf16.mxu1 %vm24251_vm0, %v18714_v39 }
 0x498   :  { %10690 = vmatmul.mubr.bf16.gmra.mrb[200].mxu0 %v2995_v55  ;;  %v3004_v55 = vpack.c.bf16 %v2942_v16, %v2941_v33  ;;  %v3010_v33 = vpack.c.bf16 %v2954_v57, %v2953_v23  ;;  %v5936_v23 = vld [vmem:[#allocation2 + $0x1e9] sm:$0xff]  ;;  %v5937_v57 = vld [vmem:[#allocation2 + $0x1f1] sm:$0xff] }
 0x499   :  { %10693 = vmatprep.mubr.msk.bf16.mxu0 %vm24251_vm0, %v18714_v39 }
 0x49e   :  { %11410 = vmatmul.mubr.bf16.gmra.mrb[36].mxu1 %v19189_v35 }
 0x49f   :  { %11413 = vmatprep.mubr.msk.bf16.mxu1 %vm24251_vm0, %v18714_v39 }
 0x4a0   :  { %10694 = vmatmul.mubr.bf16.gmra.mrb[204].mxu0 %v2996_v10  ;;  %v5915_v10 = vld [vmem:[#allocation2 + $0x141] sm:$0xff] }
 0x4a1   :  { %10697 = vmatprep.mubr.msk.bf16.mxu0 %vm24251_vm0, %v18714_v39  ;;  %v19262_v26 = vpack.c.bf16 %v5915_v10, %v5914_v8  ;;  %v5927_v8 = vld [vmem:[#allocation2 + $0x1a1] sm:$0xff] }
 0x4a6   :  { %11414 = vmatmul.mubr.bf16.gmra.mrb[40].mxu1 %v19200_v19 }
 0x4a7   :  { %11417 = vmatprep.mubr.msk.bf16.mxu1 %vm24251_vm0, %v18714_v39 }
 0x4a8   :  { %10698 = vmatmul.mubr.bf16.gmra.mrb[208].mxu0 %v2997_v42  ;;  %v5917_v42 = vld [vmem:[#allocation2 + $0x151] sm:$0xff] }
 0x4a9   :  { %10701 = vmatprep.mubr.msk.bf16.mxu0 %vm24251_vm0, %v18714_v39  ;;  %v19269_v53 = vpack.c.bf16 %v5917_v42, %v5916_v46  ;;  %v5928_v46 = vld [vmem:[#allocation2 + $0x1a9] sm:$0xff]  ;;  %v5929_v42 = vld [vmem:[#allocation2 + $0x1b1] sm:$0xff] }
 0x4aa   :  { %v19347_v30 = vpack.c.bf16 %v5929_v42, %v5928_v46  ;;  %v2971_v42 = vld [vmem:[#allocation2 + $0x215] sm:$0xff] }
 0x4ae   :  { %11418 = vmatmul.mubr.bf16.gmra.mrb[44].mxu1 %v19207_v41 }
 0x4af   :  { %11421 = vmatprep.mubr.msk.bf16.mxu1 %vm24251_vm0, %v18714_v39 }
 0x4b0   :  { %10702 = vmatmul.mubr.bf16.gmra.mrb[212].mxu0 %v2998_v34  ;;  %v2948_v34 = vld [vmem:[#allocation2 + $0x15d] sm:$0xff] }
 0x4b1   :  { %10705 = vmatprep.mubr.msk.bf16.mxu0 %vm24251_vm0, %v18714_v39  ;;  %v2934_v39 = vld [vmem:[#allocation2 + $0xed] sm:$0xff]  ;;  %v3007_v32 = vpack.c.bf16 %v2948_v34, %v2947_v47  ;;  %v2959_v47 = vld [vmem:[#allocation2 + $0x1b5] sm:$0xff]  ;;  %v2960_v34 = vld [vmem:[#allocation2 + $0x1bd] sm:$0xff] }
 0x4b2   :  { %v3000_v58 = vpack.c.bf16 %v2934_v39, %v2933_v5  ;;  %v2949_v5 = vld [vmem:[#allocation2 + $0x165] sm:$0xff]  ;;  %v2950_v39 = vld [vmem:[#allocation2 + $0x16d] sm:$0xff] }
 0x4b3   :  { %v3008_v48 = vpack.c.bf16 %v2950_v39, %v2949_v5  ;;  %v2961_v5 = vld [vmem:[#allocation2 + $0x1c5] sm:$0xff]  ;;  %v2962_v39 = vld [vmem:[#allocation2 + $0x1cd] sm:$0xff] }
 0x4b6   :  { %11422 = vmatmul.mubr.bf16.gmra.mrb[48].mxu1 %v19214_v3 }
 0x4b7   :  { %11425 = vmatprep.mubr.msk.bf16.mxu1 %vm24251_vm0, %v19217_v37 }
 0x4b8   :  { %10706 = vmatmul.mubr.bf16.gmra.mrb[216].mxu0 %v2999_v9  ;;  %v13397_v9 = vld [vmem:[%s23140_s2 + $0x80] sm:$0xff]  }
 0x4b9   :  { %10709 = vmatprep.mubr.msk.bf16.mxu0 %vm24251_vm0, %v19217_v37  ;;  %10818 = vmatpush3.bf16.msra.mxu0 %v13397_v9  ;;  %v19354_v9 = vpack.c.bf16 %v5931_v31, %v5930_v12 }
 0x4ba   :  { %10819 = vmatprep.subr.bf16.mxu0 %v19217_v37 }
 0x4bd   :  { %10820 = vmatpush3.bf16.msra.mxu0 %v13398_v43  ;;  %v5932_v43 = vld [vmem:[#allocation2 + $0x1c9] sm:$0xff] }
 0x4be   :  { %11426 = vmatmul.mubr.bf16.gmra.mrb[52].mxu1 %v19223_v15  ;;  %10821 = vmatprep.subr.bf16.mxu0 %v19217_v37 }
 0x4bf   :  { %11429 = vmatprep.mubr.msk.bf16.mxu1 %vm24251_vm0, %v19217_v37 }
 0x4c0   :  { %10710 = vmatmul.mubr.bf16.gmra.mrb[220].mxu0 %v3000_v58  ;;  %v5921_v58 = vld [vmem:[#allocation2 + $0x171] sm:$0xff] }
 0x4c1   :  { %10713 = vmatprep.mubr.msk.bf16.mxu0 %vm24251_vm0, %v19217_v37  ;;  %v19294_v13 = vpack.c.bf16 %v5921_v58, %v5920_v28  ;;  %10822 = vmatpush3.bf16.msra.mxu0 %v13399_v49  ;;  %v5933_v28 = vld [vmem:[#allocation2 + $0x1d1] sm:$0xff]  ;;  %v3014_v58 = vpack.c.bf16 %v2962_v39, %v2961_v5  ;;  %v5944_v39 = vld [vmem:[#allocation2 + $0x229] sm:$0xff] }
 0x4c2   :  { %10823 = vmatprep.subr.bf16.mxu0 %v19217_v37  ;;  %v2963_v49 = vld [vmem:[#allocation2 + $0x1d5] sm:$0xff]  ;;  %v2974_v5 = vld [vmem:[#allocation2 + $0x22d] sm:$0xff] }
 0x4c5   :  { %10824 = vmatpush3.bf16.msra.mxu0 %v13400_v56  ;;  %v5935_v56 = vld [vmem:[#allocation2 + $0x1e1] sm:$0xff] }
 0x4c6   :  { %11430 = vmatmul.mubr.bf16.gmra.mrb[56].mxu1 %v19230_v40  ;;  %10825 = vmatprep.subr.bf16.mxu0 %v19217_v37 }
 0x4c7   :  { %11433 = vmatprep.mubr.msk.bf16.mxu1 %vm24251_vm0, %v19217_v37 }
 0x4c8   :  { %10714 = vmatmul.mubr.bf16.gmra.mrb[224].mxu0 %v3001_v61  ;;  %v2952_v61 = vld [vmem:[#allocation2 + $0x17d] sm:$0xff] }
 0x4c9   :  { %10717 = vmatprep.mubr.msk.bf16.mxu0 %vm24251_vm0, %v19217_v37  ;;  %v3009_v36 = vpack.c.bf16 %v2952_v61, %v2951_v6  ;;  %v2964_v6 = vld [vmem:[#allocation2 + $0x1dd] sm:$0xff] }
 0x4ca   :  { %v5934_v61 = vld [vmem:[#allocation2 + $0x1d9] sm:$0xff]  ;;  %v3015_v60 = vpack.c.bf16 %v2964_v6, %v2963_v49 }
 0x4cb   :  { %v19368_v27 = vpack.c.bf16 %v5935_v56, %v5934_v61  ;;  %v2975_v49 = vld [vmem:[#allocation2 + $0x235] sm:$0xff]  ;;  %v2976_v6 = vld [vmem:[#allocation2 + $0x23d] sm:$0xff] }
 0x4cc   :  { %v5946_v61 = vld [vmem:[#allocation2 + $0x239] sm:$0xff]  ;;  %v5947_v56 = vld [vmem:[#allocation2 + $0x241] sm:$0xff] }
 0x4ce   :  { %11434 = vmatmul.mubr.bf16.gmra.mrb[60].mxu1 %v19241_v63 }
 0x4cf   :  { %11437 = vmatprep.mubr.msk.bf16.mxu1 %vm24251_vm0, %v19217_v37 }
 0x4d0   :  { %10718 = vmatmul.mubr.bf16.gmra.mrb[228].mxu0 %v3002_v17  ;;  %v13401_v17 = vld [vmem:[%s23140_s2 + $0xa0] sm:$0xff]  }
 0x4d1   :  { %10721 = vmatprep.mubr.msk.bf16.mxu0 %vm24251_vm0, %v19217_v37  ;;  %10826 = vmatpush3.bf16.msra.mxu0 %v13401_v17  ;;  %v2966_v17 = vld [vmem:[#allocation2 + $0x1ed] sm:$0xff] }
 0x4d2   :  { %10827 = vmatprep.subr.bf16.mxu0 %v19217_v37 }
 0x4d5   :  { %10828 = vmatpush3.bf16.msra.mxu0 %v13402_v18 }
 0x4d6   :  { %11438 = vmatmul.mubr.bf16.gmra.mrb[64].mxu1 %v19248_v51  ;;  %10829 = vmatprep.subr.bf16.mxu0 %v19217_v37 }
 0x4d7   :  { %11441 = vmatprep.mubr.msk.bf16.mxu1 %vm24251_vm0, %v19217_v37 }
 0x4d8   :  { %10722 = vmatmul.mubr.bf16.gmra.mrb[232].mxu0 %v3003_v29  ;;  %v5925_v29 = vld [vmem:[#allocation2 + $0x191] sm:$0xff] }
 0x4d9   :  { %10725 = vmatprep.mubr.msk.bf16.mxu0 %vm24251_vm0, %v19217_v37  ;;  %v19324_v16 = vpack.c.bf16 %v5925_v29, %v5924_v54  ;;  %10830 = vmatpush3.bf16.msra.mxu0 %v13403_v11  ;;  %v19375_v54 = vpack.c.bf16 %v5937_v57, %v5936_v23  ;;  %v2967_v29 = vld [vmem:[#allocation2 + $0x1f5] sm:$0xff]  ;;  %v2978_v23 = vld [vmem:[#allocation2 + $0x24d] sm:$0xff] }
 0x4da   :  { %10831 = vmatprep.subr.bf16.mxu0 %v19217_v37  ;;  %v5938_v11 = vld [vmem:[#allocation2 + $0x1f9] sm:$0xff]  ;;  %v5948_v57 = vld [vmem:[#allocation2 + $0x249] sm:$0xff] }
 0x4dd   :  { %10832 = vmatpush3.bf16.msra.mxu0 %v13404_v25 }
 0x4de   :  { %11442 = vmatmul.mubr.bf16.gmra.mrb[68].mxu1 %v19255_v24  ;;  %10997 = vmatprep.subr.bf16.mxu0 %v19217_v37 }
 0x4df   :  { %11445 = vmatprep.mubr.msk.bf16.mxu1 %vm24251_vm0, %v19217_v37 }
 0x4e0   :  { %10726 = vmatmul.mubr.bf16.gmra.mrb[236].mxu0 %v3004_v55  ;;  %v2956_v55 = vld [vmem:[#allocation2 + $0x19d] sm:$0xff] }
 0x4e1   :  { %10729 = vmatprep.mubr.msk.bf16.mxu0 %vm24251_vm0, %v19217_v37  ;;  %v3011_v10 = vpack.c.bf16 %v2956_v55, %v2955_v50  ;;  %v5939_v50 = vld [vmem:[#allocation2 + $0x201] sm:$0xff] }
 0x4e2   :  { %v19382_v25 = vpack.c.bf16 %v5939_v50, %v5938_v11  ;;  %v2979_v11 = vld [vmem:[#allocation2 + $0x255] sm:$0xff]  ;;  %v2980_v50 = vld [vmem:[#allocation2 + $0x25d] sm:$0xff] }
 0x4e6   :  { %11446 = vmatmul.mubr.bf16.gmra.mrb[72].mxu1 %v19262_v26 }
 0x4e7   :  { %11449 = vmatprep.mubr.msk.bf16.mxu1 %vm24251_vm0, %v19217_v37 }
 0x4e8   :  { %10730 = vmatmul.mubr.bf16.gmra.mrb[240].mxu0 %v3005_v59  ;;  %v19339_v59 = vpack.c.bf16 %v5927_v8, %v5926_v22  ;;  %v2969_v22 = vld [vmem:[#allocation2 + $0x205] sm:$0xff]  ;;  %v2970_v8 = vld [vmem:[#allocation2 + $0x20d] sm:$0xff] }
 0x4e9   :  { %10733 = vmatprep.mubr.msk.bf16.mxu0 %vm24251_vm0, %v19217_v37 }
 0x4ee   :  { %11450 = vmatmul.mubr.bf16.gmra.mrb[76].mxu1 %v19269_v53 }
 0x4ef   :  { %11453 = vmatprep.mubr.msk.bf16.mxu1 %vm24251_vm0, %v19217_v37 }
 0x4f0   :  { %10734 = vmatmul.mubr.bf16.gmra.mrb[244].mxu0 %v3006_v21  ;;  %v3012_v21 = vpack.c.bf16 %v2958_v7, %v2957_v20  ;;  %v5941_v20 = vld [vmem:[#allocation2 + $0x211] sm:$0xff]  ;;  %v3018_v7 = vpack.c.bf16 %v2970_v8, %v2969_v22  ;;  %v5951_v22 = vld [vmem:[#allocation2 + $0x261] sm:$0xff]  ;;  %v3023_v8 = vpack.c.bf16 %v2980_v50, %v2979_v11 }
 0x4f1   :  { %10737 = vmatprep.mubr.msk.bf16.mxu0 %vm24251_vm0, %v19217_v37  ;;  %v3999_v11 = vld [vmem:[#allocation2 + $0x17] sm:$0xff]  ;;  %v4000_v50 = vld [vmem:[#allocation2 + $0x1f] sm:$0xff] }
 0x4f6   :  { %11454 = vmatmul.mubr.bf16.gmra.mrb[80].mxu1 %v19280_v52 }
 0x4f7   :  { %11457 = vmatprep.mubr.msk.bf16.mxu1 %vm24251_vm0, %v19217_v37 }
 0x4f8   :  { %10738 = vmatmul.mubr.bf16.gmra.mrb[248].mxu0 %v3007_v32  ;;  %v3013_v32 = vpack.c.bf16 %v2960_v34, %v2959_v47  ;;  %v5942_v47 = vld [vmem:[#allocation2 + $0x219] sm:$0xff]  ;;  %v5943_v34 = vld [vmem:[#allocation2 + $0x221] sm:$0xff] }
 0x4f9   :  { %10741 = vmatprep.mubr.msk.bf16.mxu0 %vm24251_vm0, %v19217_v37  ;;  %v19396_v31 = vpack.c.bf16 %v5943_v34, %v5942_v47 }
 0x4fe   :  { %11458 = vmatmul.mubr.bf16.gmra.mrb[84].mxu1 %v19294_v13 }
 0x4ff   :  { %11461 = vmatprep.mubr.msk.bf16.mxu1 %vm24251_vm0, %v19217_v37 }
 0x500   :  { %10742 = vmatmul.mubr.bf16.gmra.mrb[252].mxu0 %v3008_v48  ;;  %v19361_v48 = vpack.c.bf16 %v5933_v28, %v5932_v43  ;;  %v5945_v43 = vld [vmem:[#allocation2 + $0x231] sm:$0xff] }
 0x501   :  { %10745 = vmatprep.mubr.msk.bf16.mxu0 %vm24251_vm0, %v19217_v37 }
 0x506   :  { %11462 = vmatmul.mubr.bf16.gmra.mrb[88].mxu1 %v19309_v38 }
 0x507   :  { %11465 = vmatprep.mubr.msk.bf16.mxu1 %vm24251_vm0, %v19217_v37 }
 0x508   :  { %10746 = vmatmul.mubr.bf16.gmra.mrb[0].mxu0 %v3009_v36  ;;  %v2965_v36 = vld [vmem:[#allocation2 + $0x1e5] sm:$0xff] }
 0x509   :  { %10749 = vmatprep.mubr.msk.bf16.mxu0 %vm24251_vm0, %v19217_v37  ;;  %v3016_v18 = vpack.c.bf16 %v2966_v17, %v2965_v36  ;;  %v19410_v36 = vpack.c.bf16 %v5947_v56, %v5946_v61  ;;  %v2977_v17 = vld [vmem:[#allocation2 + $0x245] sm:$0xff]  ;;  %v5957_v61 = vld [vmem:[#allocation2 + $0x291] sm:$0xff] }
 0x50e   :  { %11466 = vmatmul.mubr.bf16.gmra.mrb[92].mxu1 %v19324_v16 }
 0x50f   :  { %11469 = vmatprep.mubr.msk.bf16.mxu1 %vm24251_vm0, %v19217_v37 }
 0x510   :  { %10750 = vmatmul.mubr.bf16.gmra.mrb[4].mxu0 %v3010_v33  ;;  %v2968_v33 = vld [vmem:[#allocation2 + $0x1fd] sm:$0xff] }
 0x511   :  { %10753 = vmatprep.mubr.msk.bf16.mxu0 %vm24251_vm0, %v19217_v37  ;;  %v3017_v55 = vpack.c.bf16 %v2968_v33, %v2967_v29  ;;  %v3022_v29 = vpack.c.bf16 %v2978_v23, %v2977_v17  ;;  %v3997_v17 = vld [vmem:[#allocation2 + $0x7] sm:$0xff]  ;;  %v3998_v23 = vld [vmem:[#allocation2 + $0xf] sm:$0xff] }
 0x516   :  { %11470 = vmatmul.mubr.bf16.gmra.mrb[96].mxu1 %v19339_v59 }
 0x517   :  { %11473 = vmatprep.mubr.msk.bf16.mxu1 %vm24251_vm0, %v19217_v37 }
 0x518   :  { %10754 = vmatmul.mubr.bf16.gmra.mrb[8].mxu0 %v3011_v10  ;;  %v5940_v10 = vld [vmem:[#allocation2 + $0x209] sm:$0xff] }
 0x519   :  { %10757 = vmatprep.mubr.msk.bf16.mxu0 %vm24251_vm0, %v19217_v37  ;;  %v19389_v46 = vpack.c.bf16 %v5941_v20, %v5940_v10  ;;  %v2981_v20 = vld [vmem:[#allocation2 + $0x265] sm:$0xff] }
 0x51e   :  { %11474 = vmatmul.mubr.bf16.gmra.mrb[100].mxu1 %v19347_v30 }
 0x51f   :  { %11477 = vmatprep.mubr.msk.bf16.mxu1 %vm24251_vm0, %v19217_v37 }
 0x520   :  { %10758 = vmatmul.mubr.bf16.gmra.mrb[12].mxu0 %v3012_v21  ;;  %v2972_v21 = vld [vmem:[#allocation2 + $0x21d] sm:$0xff] }
 0x521   :  { %10761 = vmatprep.mubr.msk.bf16.mxu0 %vm24251_vm0, %v19217_v37  ;;  %v3019_v12 = vpack.c.bf16 %v2972_v21, %v2971_v42  ;;  %v5952_v42 = vld [vmem:[#allocation2 + $0x269] sm:$0xff]  ;;  %v5953_v21 = vld [vmem:[#allocation2 + $0x271] sm:$0xff] }
 0x522   :  { %v19431_v34 = vpack.c.bf16 %v5953_v21, %v5952_v42  ;;  %v13408_v21 = vld [vmem:[%s23140_s2 + $0x1d8] sm:$0xff]  }
 0x526   :  { %11478 = vmatmul.mubr.bf16.gmra.mrb[104].mxu1 %v19354_v9 }
 0x527   :  { %11481 = vmatprep.mubr.msk.bf16.mxu1 %vm24251_vm0, %v19217_v37 }
 0x528   :  { %10762 = vmatmul.mubr.bf16.gmra.mrb[16].mxu0 %v3013_v32  ;;  %v2973_v32 = vld [vmem:[#allocation2 + $0x225] sm:$0xff] }
 0x529   :  { %10765 = vmatprep.mubr.msk.bf16.mxu0 %vm24251_vm0, %v19217_v37  ;;  %v3020_v28 = vpack.c.bf16 %v2974_v5, %v2973_v32  ;;  %v2984_v32 = vld [vmem:[#allocation2 + $0x27d] sm:$0xff] }
 0x52a   :  { %v5954_v5 = vld [vmem:[#allocation2 + $0x279] sm:$0xff] }
 0x52e   :  { %11482 = vmatmul.mubr.bf16.gmra.mrb[108].mxu1 %v19361_v48 }
 0x52f   :  { %11485 = vmatprep.mubr.msk.bf16.mxu1 %vm24251_vm0, %v19217_v37 }
 0x530   :  { %10766 = vmatmul.mubr.bf16.gmra.mrb[20].mxu0 %v3014_v58  ;;  %v19403_v58 = vpack.c.bf16 %v5945_v43, %v5944_v39  ;;  %v5955_v39 = vld [vmem:[#allocation2 + $0x281] sm:$0xff] }
 0x531   :  { %10769 = vmatprep.mubr.msk.bf16.mxu0 %vm24251_vm0, %v19217_v37 }
 0x536   :  { %11486 = vmatmul.mubr.bf16.gmra.mrb[112].mxu1 %v19368_v27 }
 0x537   :  { %11489 = vmatprep.mubr.msk.bf16.mxu1 %vm24251_vm0, %v19217_v37 }
 0x538   :  { %10770 = vmatmul.mubr.bf16.gmra.mrb[24].mxu0 %v3015_v60  ;;  %v3021_v60 = vpack.c.bf16 %v2976_v6, %v2975_v49  ;;  %v2985_v49 = vld [vmem:[#allocation2 + $0x285] sm:$0xff] }
 0x539   :  { %10773 = vmatprep.mubr.msk.bf16.mxu0 %vm24251_vm0, %v19217_v37  ;;  %v5956_v6 = vld [vmem:[#allocation2 + $0x289] sm:$0xff]  ;;  %v3026_v56 = vpack.c.bf16 %v2985_v49, %v2985_v49 }
 0x53e   :  { %11490 = vmatmul.mubr.bf16.gmra.mrb[116].mxu1 %v19375_v54 }
 0x53f   :  { %11493 = vmatprep.mubr.msk.bf16.mxu1 %vm24251_vm0, %v19217_v37 }
 0x540   :  { %10774 = vmatmul.mubr.bf16.gmra.mrb[28].mxu0 %v3016_v18  ;;  %v5949_v18 = vld [vmem:[#allocation2 + $0x251] sm:$0xff] }
 0x541   :  { %10777 = vmatprep.mubr.msk.bf16.mxu0 %vm24251_vm0, %v19217_v37  ;;  %v19417_v33 = vpack.c.bf16 %v5949_v18, %v5948_v57  ;;  %v4078_v57 = vpack.c.bf16 %v3998_v23, %v3997_v17  ;;  %v19452_v18 = vld [vmem:[#allocation2 + $0x299] sm:$0xff] }
 0x542   :  { %v4012_v17 = vld [vmem:[#allocation2 + $0x7f] sm:$0xff] }
 0x546   :  { %11494 = vmatmul.mubr.bf16.gmra.mrb[120].mxu1 %v19382_v25 }
 0x547   :  { %11497 = vmatprep.mubr.msk.bf16.mxu1 %vm24251_vm0, %v19217_v37 }
 0x548   :  { %10778 = vmatmul.mubr.bf16.gmra.mrb[32].mxu0 %v3017_v55  ;;  %v5950_v55 = vld [vmem:[#allocation2 + $0x259] sm:$0xff] }
 0x549   :  { %10781 = vmatprep.mubr.msk.bf16.mxu0 %vm24251_vm0, %v19217_v37  ;;  %v19424_v10 = vpack.c.bf16 %v5951_v22, %v5950_v55  ;;  %v19460_v55 = vpack.c.bf16 %v4000_v50, %v3999_v11  ;;  %v13405_v22 = vld [vmem:[%s23140_s2 + $0x1c0] sm:$0xff]  }
 0x54a   :  { %v4016_v11 = vld [vmem:[#allocation2 + $0x9f] sm:$0xff] }
 0x54e   :  { %11498 = vmatmul.mubr.bf16.gmra.mrb[124].mxu1 %v19389_v46 }
 0x54f   :  { %11501 = vmatprep.mubr.msk.bf16.mxu1 %vm24251_vm0, %v19217_v37 }
 0x550   :  { %10782 = vmatmul.mubr.bf16.gmra.mrb[36].mxu0 %v3018_v7  ;;  %v2982_v7 = vld [vmem:[#allocation2 + $0x26d] sm:$0xff] }
 0x551   :  { %10785 = vmatprep.mubr.msk.bf16.mxu0 %vm24251_vm0, %v19217_v37  ;;  %v3024_v47 = vpack.c.bf16 %v2982_v7, %v2981_v20  ;;  %v4001_v20 = vld [vmem:[#allocation2 + $0x27] sm:$0xff]  ;;  %v4002_v7 = vld [vmem:[#allocation2 + $0x2f] sm:$0xff] }
 0x552   :  { %v19475_v42 = vpack.c.bf16 %v4002_v7, %v4001_v20  ;;  %v4019_v20 = vld [vmem:[#allocation2 + $0xb7] sm:$0xff]  ;;  %v4020_v7 = vld [vmem:[#allocation2 + $0xbf] sm:$0xff] }
 0x556   :  { %11502 = vmatmul.mubr.bf16.gmra.mrb[128].mxu1 %v19396_v31 }
 0x557   :  { %11505 = vmatprep.mubr.msk.bf16.mxu1 %vm24251_vm0, %v19217_v37 }
 0x558   :  { %10786 = vmatmul.mubr.bf16.gmra.mrb[40].mxu0 %v3019_v12  ;;  %v2983_v12 = vld [vmem:[#allocation2 + $0x275] sm:$0xff] }
 0x559   :  { %10789 = vmatprep.mubr.msk.bf16.mxu0 %vm24251_vm0, %v19217_v37  ;;  %v3025_v43 = vpack.c.bf16 %v2984_v32, %v2983_v12  ;;  %v4004_v12 = vld [vmem:[#allocation2 + $0x3f] sm:$0xff] }
 0x55e   :  { %11506 = vmatmul.mubr.bf16.gmra.mrb[132].mxu1 %v19403_v58 }
 0x55f   :  { %11509 = vmatprep.mubr.msk.bf16.mxu1 %vm24251_vm0, %v19217_v37 }
 0x560   :  { %10790 = vmatmul.mubr.bf16.gmra.mrb[44].mxu0 %v3020_v28  ;;  %v19438_v28 = vpack.c.bf16 %v5955_v39, %v5954_v5  ;;  %v4006_v5 = vld [vmem:[#allocation2 + $0x4f] sm:$0xff] }
 0x561   :  { %10793 = vmatprep.mubr.msk.bf16.mxu0 %vm24251_vm0, %v19217_v37 }
 0x566   :  { %11510 = vmatmul.mubr.bf16.gmra.mrb[136].mxu1 %v19410_v36 }
 0x567   :  { %11513 = vmatprep.mubr.msk.bf16.mxu1 %vm24251_vm0, %v19217_v37 }
 0x568   :  { %10794 = vmatmul.mubr.bf16.gmra.mrb[48].mxu0 %v3021_v60  ;;  %v19445_v60 = vpack.c.bf16 %v5957_v61, %v5956_v6  ;;  %v4009_v6 = vld [vmem:[#allocation2 + $0x67] sm:$0xff]  ;;  %v4010_v61 = vld [vmem:[#allocation2 + $0x6f] sm:$0xff] }
 0x569   :  { %10797 = vmatprep.mubr.msk.bf16.mxu0 %vm24251_vm0, %v19217_v37 }
 0x56e   :  { %11514 = vmatmul.mubr.bf16.gmra.mrb[140].mxu1 %v19417_v33 }
 0x56f   :  { %11517 = vmatprep.mubr.msk.bf16.mxu1 %vm24251_vm0, %v19217_v37 }
 0x570   :  { %10798 = vmatmul.mubr.bf16.gmra.mrb[52].mxu0 %v3022_v29  ;;  %v5999_v29 = vpack.c.bf16 %v19452_v18, %v19452_v18 }
 0x571   :  { %10801 = vmatprep.mubr.msk.bf16.mxu0 %vm24251_vm0, %v19217_v37 }
 0x576   :  { %11518 = vmatmul.mubr.bf16.gmra.mrb[144].mxu1 %v19424_v10 }
 0x577   :  { %11521 = vmatprep.mubr.msk.bf16.mxu1 %vm24251_vm0, %v19217_v37 }
 0x578   :  { %10802 = vmatmul.mubr.bf16.gmra.mrb[56].mxu0 %v3023_v8  ;;  %v13406_v8 = vld [vmem:[%s23140_s2 + $0x1c8] sm:$0xff]  }
 0x579   :  { %10805 = vmatprep.mubr.msk.bf16.mxu0 %vm24251_vm0, %v19217_v37 }
 0x57e   :  { %11522 = vmatmul.mubr.bf16.gmra.mrb[148].mxu1 %v19431_v34 }
 0x57f   :  { %11525 = vmatprep.mubr.msk.bf16.mxu1 %vm24251_vm0, %v19217_v37 }
 0x580   :  { %10806 = vmatmul.mubr.bf16.gmra.mrb[60].mxu0 %v3024_v47  ;;  %v4003_v47 = vld [vmem:[#allocation2 + $0x37] sm:$0xff] }
 0x581   :  { %10809 = vmatprep.mubr.msk.bf16.mxu0 %vm24251_vm0, %v19217_v37  ;;  %v19491_v32 = vpack.c.bf16 %v4004_v12, %v4003_v47  ;;  %v4024_v12 = vld [vmem:[#allocation2 + $0xdf] sm:$0xff] }
 0x586   :  { %11526 = vmatmul.mubr.bf16.gmra.mrb[152].mxu1 %v19438_v28 }
 0x587   :  { %11529 = vmatprep.mubr.msk.bf16.mxu1 %vm24251_vm0, %v19217_v37 }
 0x588   :  { %10810 = vmatmul.mubr.bf16.gmra.mrb[64].mxu0 %v3025_v43  ;;  %v4008_v43 = vld [vmem:[#allocation2 + $0x5f] sm:$0xff] }
 0x589   :  { %10813 = vmatprep.mubr.msk.bf16.mxu0 %vm24251_vm0, %v19217_v37 }
 0x58e   :  { %11530 = vmatmul.mubr.bf16.gmra.mrb[156].mxu1 %v19445_v60 }
 0x58f   :  { %11533 = vmatprep.mubr.msk.bf16.mxu1 %vm24251_vm0, %v19217_v37 }
 0x590   :  { %10814 = vmatmul.mubr.bf16.gmra.mrb[68].mxu0 %v3026_v56  ;;  %v19520_v56 = vpack.c.bf16 %v4010_v61, %v4009_v6  ;;  %v4029_v6 = vld [vmem:[#allocation2 + $0x107] sm:$0xff]  ;;  %v4030_v61 = vld [vmem:[#allocation2 + $0x10f] sm:$0xff] }
 0x591   :  { %10833 = vmatprep.mubr.msk.bf16.mxu0 %vm24251_vm0, %v19217_v37 }
 0x596   :  { %11534 = vmatmul.mubr.bf16.gmra.mrb[160].mxu1 %v5999_v29 }
 0x597   :  { %11553 = vmatprep.mubr.msk.bf16.mxu1 %vm24251_vm0, %v19217_v37 }
 0x598   :  { %10834 = vmatmul.mubr.bf16.vlgmr.msra.gmra.mrb[164].mxu0 %v4078_v57  ;;  %v4014_v57 = vld [vmem:[#allocation2 + $0x8f] sm:$0xff] }
 0x599   :  { %10837 = vmatprep.mubr.msk.bf16.mxu0 %vm24251_vm0, %v19217_v37 }
 0x59e   :  { %11554 = vmatmul.mubr.bf16.vlgmr.msra.gmra.mrb[0].mxu1 %v19123_v14  ;;  %v13407_v14 = vld [vmem:[%s23140_s2 + $0x1d0] sm:$0xff]  }
 0x59f   :  { %11718 = vmatpush3.bf16.msra.mxu1 %v13405_v22  ;;  %11557 = vmatprep.mubr.msk.bf16.mxu1 %vm24251_vm0, %v19217_v37  ;;  %v4018_v22 = vld [vmem:[#allocation2 + $0xaf] sm:$0xff] }
 0x5a0   :  { %10838 = vmatmul.mubr.bf16.gmra.mrb[168].mxu0 %v19460_v55  ;;  %11719 = vmatprep.subr.bf16.mxu1 %v19217_v37 }
 0x5a1   :  { %10841 = vmatprep.mubr.msk.bf16.mxu0 %vm24251_vm0, %v19217_v37 }
 0x5a3   :  { %11720 = vmatpush3.bf16.msra.mxu1 %v13406_v8 }
 0x5a4   :  { %11721 = vmatprep.subr.bf16.mxu1 %v19217_v37 }
 0x5a6   :  { %11558 = vmatmul.mubr.bf16.gmra.mrb[4].mxu1 %v19135_v44  ;;  %v4005_v44 = vld [vmem:[#allocation2 + $0x47] sm:$0xff] }
 0x5a7   :  { %11561 = vmatprep.mubr.msk.bf16.mxu1 %vm24251_vm0, %v19217_v37  ;;  %11722 = vmatpush3.bf16.msra.mxu1 %v13407_v14  ;;  %v19500_v39 = vpack.c.bf16 %v4006_v5, %v4005_v44  ;;  %v19564_v14 = vpack.c.bf16 %v4020_v7, %v4019_v20  ;;  %v4026_v5 = vld [vmem:[#allocation2 + $0xef] sm:$0xff]  ;;  %v4039_v20 = vld [vmem:[#allocation2 + $0x157] sm:$0xff]  ;;  %v4040_v7 = vld [vmem:[#allocation2 + $0x15f] sm:$0xff] }
 0x5a8   :  { %10842 = vmatmul.mubr.bf16.gmra.mrb[172].mxu0 %v19475_v42  ;;  %11723 = vmatprep.subr.bf16.mxu1 %v19217_v37 }
 0x5a9   :  { %10845 = vmatprep.mubr.msk.bf16.mxu0 %vm24251_vm0, %v19217_v37 }
 0x5ab   :  { %11724 = vmatpush3.bf16.msra.mxu1 %v13408_v21  ;;  %v4022_v21 = vld [vmem:[#allocation2 + $0xcf] sm:$0xff] }
 0x5ac   :  { %11725 = vmatprep.subr.bf16.mxu1 %v19217_v37 }
 0x5ae   :  { %11562 = vmatmul.mubr.bf16.gmra.mrb[8].mxu1 %v19143_v2  ;;  %v4007_v2 = vld [vmem:[#allocation2 + $0x57] sm:$0xff] }
 0x5af   :  { %11565 = vmatprep.mubr.msk.bf16.mxu1 %vm24251_vm0, %v19217_v37  ;;  %v19508_v49 = vpack.c.bf16 %v4008_v43, %v4007_v2  ;;  %v4028_v43 = vld [vmem:[#allocation2 + $0xff] sm:$0xff] }
 0x5b0   :  { %10846 = vmatmul.mubr.bf16.gmra.mrb[176].mxu0 %v19491_v32 }
 0x5b1   :  { %10849 = vmatprep.mubr.msk.bf16.mxu0 %vm24251_vm0, %v19217_v37 }
 0x5b6   :  { %11566 = vmatmul.mubr.bf16.gmra.mrb[12].mxu1 %v19150_v45  ;;  %v13409_v45 = vld [vmem:[%s23140_s2 + $0x1e0] sm:$0xff]  }
 0x5b7   :  { %11569 = vmatprep.mubr.msk.bf16.mxu1 %vm24251_vm0, %v19217_v37  ;;  %11726 = vmatpush3.bf16.msra.mxu1 %v13409_v45 }
 0x5b8   :  { %10850 = vmatmul.mubr.bf16.gmra.mrb[180].mxu0 %v19500_v39  ;;  %11727 = vmatprep.subr.bf16.mxu1 %v19217_v37 }
 0x5b9   :  { %10853 = vmatprep.mubr.msk.bf16.mxu0 %vm24251_vm0, %v19217_v37 }
 0x5be   :  { %11570 = vmatmul.mubr.bf16.gmra.mrb[16].mxu1 %v19161_v4  ;;  %v4011_v4 = vld [vmem:[#allocation2 + $0x77] sm:$0xff] }
 0x5bf   :  { %11573 = vmatprep.mubr.msk.bf16.mxu1 %vm24251_vm0, %v19217_v37  ;;  %v19528_v23 = vpack.c.bf16 %v4012_v17, %v4011_v4  ;;  %v19608_v4 = vpack.c.bf16 %v4030_v61, %v4029_v6  ;;  %v4032_v17 = vld [vmem:[#allocation2 + $0x11f] sm:$0xff]  ;;  %v4045_v6 = vld [vmem:[#allocation2 + $0x187] sm:$0xff]  ;;  %v4046_v61 = vld [vmem:[#allocation2 + $0x18f] sm:$0xff] }
 0x5c0   :  { %10854 = vmatmul.mubr.bf16.gmra.mrb[184].mxu0 %v19508_v49 }
 0x5c1   :  { %10857 = vmatprep.mubr.msk.bf16.mxu0 %vm24251_vm0, %v19217_v37 }
 0x5c6   :  { %11574 = vmatmul.mubr.bf16.gmra.mrb[20].mxu1 %v19168_v1  ;;  %v4013_v1 = vld [vmem:[#allocation2 + $0x87] sm:$0xff] }
 0x5c7   :  { %11577 = vmatprep.mubr.msk.bf16.mxu1 %vm24251_vm0, %v19217_v37  ;;  %v19536_v29 = vpack.c.bf16 %v4014_v57, %v4013_v1  ;;  %v4034_v57 = vld [vmem:[#allocation2 + $0x12f] sm:$0xff] }
 0x5c8   :  { %10858 = vmatmul.mubr.bf16.gmra.mrb[188].mxu0 %v19520_v56 }
 0x5c9   :  { %10861 = vmatprep.mubr.msk.bf16.mxu0 %vm24251_vm0, %v19217_v37 }
 0x5ce   :  { %11578 = vmatmul.mubr.bf16.gmra.mrb[24].mxu1 %v19175_v62  ;;  %v4015_v62 = vld [vmem:[#allocation2 + $0x97] sm:$0xff] }
 0x5cf   :  { %11581 = vmatprep.mubr.msk.bf16.mxu1 %vm24251_vm0, %v19217_v37  ;;  %v19544_v50 = vpack.c.bf16 %v4016_v11, %v4015_v62  ;;  %v4036_v11 = vld [vmem:[#allocation2 + $0x13f] sm:$0xff] }
 0x5d0   :  { %10862 = vmatmul.mubr.bf16.gmra.mrb[192].mxu0 %v19528_v23 }
 0x5d1   :  { %10865 = vmatprep.mubr.msk.bf16.mxu0 %vm24251_vm0, %v19217_v37 }
 0x5d6   :  { %11582 = vmatmul.mubr.bf16.gmra.mrb[28].mxu1 %v19182_v0  ;;  %v4017_v0 = vld [vmem:[#allocation2 + $0xa7] sm:$0xff] }
 0x5d7   :  { %11585 = vmatprep.mubr.msk.bf16.mxu1 %vm24251_vm0, %v19217_v37  ;;  %v19552_v8 = vpack.c.bf16 %v4018_v22, %v4017_v0  ;;  %v4038_v22 = vld [vmem:[#allocation2 + $0x14f] sm:$0xff] }
 0x5d8   :  { %10866 = vmatmul.mubr.bf16.gmra.mrb[196].mxu0 %v19536_v29 }
 0x5d9   :  { %10869 = vmatprep.mubr.msk.bf16.mxu0 %vm24251_vm0, %v19217_v37 }
 0x5de   :  { %11586 = vmatmul.mubr.bf16.gmra.mrb[32].mxu1 %v19189_v35  ;;  %v13410_v35 = vld [vmem:[%s23140_s2 + $0x1e8] sm:$0xff]  }
 0x5df   :  { %11589 = vmatprep.mubr.msk.bf16.mxu1 %vm24251_vm0, %v19217_v37  ;;  %11728 = vmatpush3.bf16.msra.mxu1 %v13410_v35 }
 0x5e0   :  { %10870 = vmatmul.mubr.bf16.gmra.mrb[200].mxu0 %v19544_v50  ;;  %11729 = vmatprep.subr.bf16.mxu1 %v19217_v37 }
 0x5e1   :  { %10873 = vmatprep.mubr.msk.bf16.mxu0 %vm24251_vm0, %v19217_v37 }
 0x5e6   :  { %11590 = vmatmul.mubr.bf16.gmra.mrb[36].mxu1 %v19200_v19  ;;  %v4021_v19 = vld [vmem:[#allocation2 + $0xc7] sm:$0xff] }
 0x5e7   :  { %11593 = vmatprep.mubr.msk.bf16.mxu1 %vm24251_vm0, %v19217_v37  ;;  %v19572_v47 = vpack.c.bf16 %v4022_v21, %v4021_v19  ;;  %v19652_v19 = vpack.c.bf16 %v4040_v7, %v4039_v20  ;;  %v4041_v21 = vld [vmem:[#allocation2 + $0x167] sm:$0xff]  ;;  %v4054_v7 = vld [vmem:[#allocation2 + $0x1cf] sm:$0xff] }
 0x5e8   :  { %10874 = vmatmul.mubr.bf16.gmra.mrb[204].mxu0 %v19552_v8 }
 0x5e9   :  { %10877 = vmatprep.mubr.msk.bf16.mxu0 %vm24251_vm0, %v19217_v37 }
 0x5ee   :  { %11594 = vmatmul.mubr.bf16.gmra.mrb[40].mxu1 %v19207_v41  ;;  %v4023_v41 = vld [vmem:[#allocation2 + $0xd7] sm:$0xff] }
 0x5ef   :  { %11597 = vmatprep.mubr.msk.bf16.mxu1 %vm24251_vm0, %v19217_v37  ;;  %v19580_v44 = vpack.c.bf16 %v4024_v12, %v4023_v41  ;;  %v4042_v41 = vld [vmem:[#allocation2 + $0x16f] sm:$0xff] }
 0x5f0   :  { %10878 = vmatmul.mubr.bf16.gmra.mrb[208].mxu0 %v19564_v14  ;;  %v13414_v12 = vld [vmem:[%s23140_s2 + $0xc8] sm:$0xff]  }
 0x5f1   :  { %10881 = vmatprep.mubr.msk.bf16.mxu0 %vm24251_vm0, %v19217_v37 }
 0x5f6   :  { %11598 = vmatmul.mubr.bf16.gmra.mrb[44].mxu1 %v19214_v3  ;;  %v4025_v3 = vld [vmem:[#allocation2 + $0xe7] sm:$0xff] }
 0x5f7   :  { %11601 = vmatprep.mubr.msk.bf16.mxu1 %vm24251_vm0, %v19217_v37  ;;  %v19588_v2 = vpack.c.bf16 %v4026_v5, %v4025_v3  ;;  %v13415_v3 = vld [vmem:[%s23140_s2 + $0xd0] sm:$0xff]  }
 0x5f8   :  { %10882 = vmatmul.mubr.bf16.gmra.mrb[212].mxu0 %v19572_v47  ;;  %v4043_v5 = vld [vmem:[#allocation2 + $0x177] sm:$0xff] }
 0x5f9   :  { %10885 = vmatprep.mubr.msk.bf16.mxu0 %vm24251_vm0, %v19217_v37 }
 0x5fe   :  { %11602 = vmatmul.mubr.bf16.gmra.mrb[48].mxu1 %v19223_v15  ;;  %v4027_v15 = vld [vmem:[#allocation2 + $0xf7] sm:$0xff] }
 0x5ff   :  { %11605 = vmatprep.mubr.msk.bf16.mxu1 %vm24251_vm0, %v19217_v37  ;;  %v19596_v45 = vpack.c.bf16 %v4028_v43, %v4027_v15  ;;  %v4044_v15 = vld [vmem:[#allocation2 + $0x17f] sm:$0xff] }
 0x600   :  { %10886 = vmatmul.mubr.bf16.gmra.mrb[216].mxu0 %v19580_v44  ;;  %v13416_v43 = vld [vmem:[%s23140_s2 + $0xd8] sm:$0xff]  }
 0x601   :  { %10889 = vmatprep.mubr.msk.bf16.mxu0 %vm24251_vm0, %v19217_v37 }
 0x606   :  { %11606 = vmatmul.mubr.bf16.gmra.mrb[52].mxu1 %v19230_v40  ;;  %v13411_v40 = vld [vmem:[%s23140_s2 + $0x1f0] sm:$0xff]  }
 0x607   :  { %11609 = vmatprep.mubr.msk.bf16.mxu1 %vm24251_vm0, %v19217_v37  ;;  %11730 = vmatpush3.bf16.msra.mxu1 %v13411_v40  ;;  %v13417_v40 = vld [vmem:[%s23140_s2 + $0xe0] sm:$0xff]  }
 0x608   :  { %10890 = vmatmul.mubr.bf16.gmra.mrb[220].mxu0 %v19588_v2  ;;  %11731 = vmatprep.subr.bf16.mxu1 %v19217_v37 }
 0x609   :  { %10893 = vmatprep.mubr.msk.bf16.mxu0 %vm24251_vm0, %v19217_v37 }
 0x60e   :  { %11610 = vmatmul.mubr.bf16.gmra.mrb[56].mxu1 %v19241_v63  ;;  %v4031_v63 = vld [vmem:[#allocation2 + $0x117] sm:$0xff] }
 0x60f   :  { %11613 = vmatprep.mubr.msk.bf16.mxu1 %vm24251_vm0, %v19217_v37  ;;  %v19616_v1 = vpack.c.bf16 %v4032_v17, %v4031_v63  ;;  %v13418_v63 = vld [vmem:[%s23140_s2 + $0xe8] sm:$0xff]   ;;  %v19698_v17 = vld [vmem:[#allocation2] sm:$0xff] }
 0x610   :  { %10894 = vmatmul.mubr.bf16.gmra.mrb[224].mxu0 %v19596_v45 }
 0x611   :  { %10897 = vmatprep.mubr.msk.bf16.mxu0 %vm24251_vm0, %v19217_v37 }
 0x616   :  { %11614 = vmatmul.mubr.bf16.gmra.mrb[60].mxu1 %v19248_v51  ;;  %v4033_v51 = vld [vmem:[#allocation2 + $0x127] sm:$0xff] }
 0x617   :  { %11617 = vmatprep.mubr.msk.bf16.mxu1 %vm24251_vm0, %v19217_v37  ;;  %v19624_v62 = vpack.c.bf16 %v4034_v57, %v4033_v51  ;;  %v4047_v51 = vld [vmem:[#allocation2 + $0x197] sm:$0xff]  ;;  %v4048_v57 = vld [vmem:[#allocation2 + $0x19f] sm:$0xff] }
 0x618   :  { %10898 = vmatmul.mubr.bf16.gmra.mrb[228].mxu0 %v19608_v4 }
 0x619   :  { %10901 = vmatprep.mubr.msk.bf16.mxu0 %vm24251_vm0, %v19217_v37 }
 0x61e   :  { %11618 = vmatmul.mubr.bf16.gmra.mrb[64].mxu1 %v19255_v24  ;;  %v4035_v24 = vld [vmem:[#allocation2 + $0x137] sm:$0xff] }
 0x61f   :  { %11621 = vmatprep.mubr.msk.bf16.mxu1 %vm24251_vm0, %v19217_v37  ;;  %v19632_v0 = vpack.c.bf16 %v4036_v11, %v4035_v24  ;;  %v13420_v24 = vld [vmem:[%s23140_s2 + $0xf8] sm:$0xff]   ;;  %v4049_v11 = vld [vmem:[#allocation2 + $0x1a7] sm:$0xff] }
 0x620   :  { %10902 = vmatmul.mubr.bf16.gmra.mrb[232].mxu0 %v19616_v1 }
 0x621   :  { %10905 = vmatprep.mubr.msk.bf16.mxu0 %vm24251_vm0, %v19217_v37 }
 0x626   :  { %11622 = vmatmul.mubr.bf16.gmra.mrb[68].mxu1 %v19262_v26  ;;  %v4037_v26 = vld [vmem:[#allocation2 + $0x147] sm:$0xff] }
 0x627   :  { %11625 = vmatprep.mubr.msk.bf16.mxu1 %vm24251_vm0, %v19217_v37  ;;  %v19640_v35 = vpack.c.bf16 %v4038_v22, %v4037_v26  ;;  %v4050_v26 = vld [vmem:[#allocation2 + $0x1af] sm:$0xff] }
 0x628   :  { %10906 = vmatmul.mubr.bf16.gmra.mrb[236].mxu0 %v19624_v62  ;;  %v19725_v22 = vpack.c.bf16 %v4050_v26, %v4049_v11  ;;  %v4071_v26 = vld [vmem:[#allocation2 + $0x257] sm:$0xff] }
 0x629   :  { %10909 = vmatprep.mubr.msk.bf16.mxu0 %vm24251_vm0, %v19217_v37 }
 0x62e   :  { %11626 = vmatmul.mubr.bf16.gmra.mrb[72].mxu1 %v19269_v53  ;;  %v13412_v53 = vld [vmem:[%s23140_s2 + $0x1f8] sm:$0xff]  }
 0x62f   :  { %11629 = vmatprep.mubr.msk.bf16.mxu1 %vm24251_vm0, %v19217_v37  ;;  %11732 = vmatpush3.bf16.msra.mxu1 %v13412_v53  ;;  %v4052_v53 = vld [vmem:[#allocation2 + $0x1bf] sm:$0xff] }
 0x630   :  { %10910 = vmatmul.mubr.bf16.gmra.mrb[240].mxu0 %v19632_v0  ;;  %11897 = vmatprep.subr.bf16.mxu1 %v19217_v37 }
 0x631   :  { %10913 = vmatprep.mubr.msk.bf16.mxu0 %vm24251_vm0, %v19217_v37 }
 0x636   :  { %11630 = vmatmul.mubr.bf16.gmra.mrb[76].mxu1 %v19280_v52  ;;  %v13413_v52 = vld [vmem:[%s23140_s2 + $0xc0] sm:$0xff]  }
 0x637   :  { %11633 = vmatprep.mubr.msk.bf16.mxu1 %vm24251_vm0, %v19217_v37  ;;  %10998 = vmatpush3.bf16.msra.mxu0 %v13413_v52 }
 0x638   :  { %10914 = vmatmul.mubr.bf16.gmra.mrb[244].mxu0 %v19640_v35  ;;  %10999 = vmatprep.subr.bf16.mxu0 %v19217_v37 }
 0x639   :  { %10917 = vmatprep.mubr.msk.bf16.mxu0 %vm24251_vm0, %v19217_v37 }
 0x63b   :  { %11000 = vmatpush3.bf16.msra.mxu0 %v13414_v12  ;;  %v4058_v12 = vld [vmem:[#allocation2 + $0x1ef] sm:$0xff] }
 0x63c   :  { %11001 = vmatprep.subr.bf16.mxu0 %v19217_v37 }
 0x63e   :  { %11634 = vmatmul.mubr.bf16.gmra.mrb[80].mxu1 %v19294_v13  ;;  %v19667_v13 = vpack.c.bf16 %v4042_v41, %v4041_v21  ;;  %v4056_v21 = vld [vmem:[#allocation2 + $0x1df] sm:$0xff] }
 0x63f   :  { %11637 = vmatprep.mubr.msk.bf16.mxu1 %vm24251_vm0, %v19217_v37  ;;  %11002 = vmatpush3.bf16.msra.mxu0 %v13415_v3 }
 0x640   :  { %10918 = vmatmul.mubr.bf16.gmra.mrb[248].mxu0 %v19652_v19  ;;  %11003 = vmatprep.subr.bf16.mxu0 %v19217_v37 }
 0x641   :  { %10921 = vmatprep.mubr.msk.bf16.mxu0 %vm24251_vm0, %v19217_v37 }
 0x643   :  { %11004 = vmatpush3.bf16.msra.mxu0 %v13416_v43  ;;  %v4062_v43 = vld [vmem:[#allocation2 + $0x20f] sm:$0xff] }
 0x644   :  { %11005 = vmatprep.subr.bf16.mxu0 %v19217_v37 }
 0x646   :  { %11638 = vmatmul.mubr.bf16.gmra.mrb[84].mxu1 %v19309_v38  ;;  %v19683_v38 = vpack.c.bf16 %v4044_v15, %v4043_v5  ;;  %v4060_v5 = vld [vmem:[#allocation2 + $0x1ff] sm:$0xff] }
 0x647   :  { %11641 = vmatprep.mubr.msk.bf16.mxu1 %vm24251_vm0, %v19217_v37  ;;  %11006 = vmatpush3.bf16.msra.mxu0 %v13417_v40 }
 0x648   :  { %10922 = vmatmul.mubr.bf16.gmra.mrb[252].mxu0 %v19667_v13  ;;  %11007 = vmatprep.subr.bf16.mxu0 %v19698_v17 }
 0x649   :  { %10925 = vmatprep.mubr.msk.bf16.mxu0 %vm24251_vm0, %v19217_v37 }
 0x64b   :  { %11008 = vmatpush3.bf16.msra.mxu0 %v13418_v63  ;;  %v4066_v63 = vld [vmem:[#allocation2 + $0x22f] sm:$0xff] }
 0x64c   :  { %11009 = vmatprep.subr.bf16.mxu0 %v19698_v17 }
 0x64e   :  { %11642 = vmatmul.mubr.bf16.gmra.mrb[88].mxu1 %v19324_v16  ;;  %v19701_v16 = vpack.c.bf16 %v4046_v61, %v4045_v6  ;;  %v4064_v6 = vld [vmem:[#allocation2 + $0x21f] sm:$0xff] }
 0x64f   :  { %11645 = vmatprep.mubr.msk.bf16.mxu1 %vm24251_vm0, %v19217_v37 }
 0x650   :  { %10926 = vmatmul.mubr.bf16.gmra.mrb[0].mxu0 %v19683_v38 }
 0x651   :  { %10929 = vmatprep.mubr.msk.bf16.mxu0 %vm24251_vm0, %v19217_v37  ;;  %v13419_v37 = vld [vmem:[%s23140_s2 + $0xf0] sm:$0xff]  }
 0x652   :  { %11010 = vmatpush3.bf16.msra.mxu0 %v13419_v37 }
 0x653   :  { %11011 = vmatprep.subr.bf16.mxu0 %v19698_v17 }
 0x656   :  { %11646 = vmatmul.mubr.bf16.gmra.mrb[92].mxu1 %v19339_v59  ;;  %v19717_v59 = vpack.c.bf16 %v4048_v57, %v4047_v51  ;;  %11012 = vmatpush3.bf16.msra.mxu0 %v13420_v24  ;;  %v4068_v51 = vld [vmem:[#allocation2 + $0x23f] sm:$0xff]  ;;  %v4070_v24 = vld [vmem:[#allocation2 + $0x24f] sm:$0xff] }
 0x657   :  { %11649 = vmatprep.mubr.msk.bf16.mxu1 %vm24251_vm0, %v19698_v17 }
 0x658   :  { %10930 = vmatmul.mubr.bf16.gmra.mrb[4].mxu0 %v19701_v16 }
 0x659   :  { %10933 = vmatprep.mubr.msk.bf16.mxu0 %vm24251_vm0, %v19698_v17 }
 0x65e   :  { %11650 = vmatmul.mubr.bf16.gmra.mrb[96].mxu1 %v19347_v30  ;;  %v4051_v30 = vld [vmem:[#allocation2 + $0x1b7] sm:$0xff] }
 0x65f   :  { %11653 = vmatprep.mubr.msk.bf16.mxu1 %vm24251_vm0, %v19698_v17  ;;  %v19733_v20 = vpack.c.bf16 %v4052_v53, %v4051_v30  ;;  %v4073_v53 = vld [vmem:[#allocation2 + $0x267] sm:$0xff] }
 0x660   :  { %10934 = vmatmul.mubr.bf16.gmra.mrb[8].mxu0 %v19717_v59 }
 0x661   :  { %10937 = vmatprep.mubr.msk.bf16.mxu0 %vm24251_vm0, %v19698_v17 }
 0x666   :  { %11654 = vmatmul.mubr.bf16.gmra.mrb[100].mxu1 %v19354_v9  ;;  %v4053_v9 = vld [vmem:[#allocation2 + $0x1c7] sm:$0xff] }
 0x667   :  { %11657 = vmatprep.mubr.msk.bf16.mxu1 %vm24251_vm0, %v19698_v17  ;;  %v19741_v52 = vpack.c.bf16 %v4054_v7, %v4053_v9  ;;  %v4076_v7 = vld [vmem:[#allocation2 + $0x27f] sm:$0xff] }
 0x668   :  { %10938 = vmatmul.mubr.bf16.gmra.mrb[12].mxu0 %v19725_v22 }
 0x669   :  { %10941 = vmatprep.mubr.msk.bf16.mxu0 %vm24251_vm0, %v19698_v17 }
 0x66e   :  { %11658 = vmatmul.mubr.bf16.gmra.mrb[104].mxu1 %v19361_v48  ;;  %v4055_v48 = vld [vmem:[#allocation2 + $0x1d7] sm:$0xff] }
 0x66f   :  { %11661 = vmatprep.mubr.msk.bf16.mxu1 %vm24251_vm0, %v19698_v17  ;;  %v19749_v41 = vpack.c.bf16 %v4056_v21, %v4055_v48  ;;  %v6584_v21 = vld [vmem:[#allocation2 + $0x2a1] sm:$0xff] }
 0x670   :  { %10942 = vmatmul.mubr.bf16.gmra.mrb[16].mxu0 %v19733_v20 }
 0x671   :  { %10945 = vmatprep.mubr.msk.bf16.mxu0 %vm24251_vm0, %v19698_v17 }
 0x676   :  { %11662 = vmatmul.mubr.bf16.gmra.mrb[108].mxu1 %v19368_v27  ;;  %v4057_v27 = vld [vmem:[#allocation2 + $0x1e7] sm:$0xff] }
 0x677   :  { %11665 = vmatprep.mubr.msk.bf16.mxu1 %vm24251_vm0, %v19698_v17  ;;  %v19757_v3 = vpack.c.bf16 %v4058_v12, %v4057_v27  ;;  %v6625_v12 = vpack.c.bf16 %v6584_v21, %v19452_v18  ;;  %v7132_v18 = vld [vmem:[#allocation2 + $0x2a] sm:$0xff]  ;;  %v7147_v21 = vld [vmem:[#allocation2 + $0xa2] sm:$0xff] }
 0x678   :  { %10946 = vmatmul.mubr.bf16.gmra.mrb[20].mxu0 %v19741_v52 }
 0x679   :  { %10949 = vmatprep.mubr.msk.bf16.mxu0 %vm24251_vm0, %v19698_v17 }
 0x67e   :  { %11666 = vmatmul.mubr.bf16.gmra.mrb[112].mxu1 %v19375_v54  ;;  %v4059_v54 = vld [vmem:[#allocation2 + $0x1f7] sm:$0xff] }
 0x67f   :  { %11669 = vmatprep.mubr.msk.bf16.mxu1 %vm24251_vm0, %v19698_v17  ;;  %v19765_v15 = vpack.c.bf16 %v4060_v5, %v4059_v54  ;;  %v7133_v5 = vld [vmem:[#allocation2 + $0x32] sm:$0xff] }
 0x680   :  { %10950 = vmatmul.mubr.bf16.gmra.mrb[24].mxu0 %v19749_v41 }
 0x681   :  { %10953 = vmatprep.mubr.msk.bf16.mxu0 %vm24251_vm0, %v19698_v17 }
 0x686   :  { %11670 = vmatmul.mubr.bf16.gmra.mrb[116].mxu1 %v19382_v25  ;;  %v4061_v25 = vld [vmem:[#allocation2 + $0x207] sm:$0xff] }
 0x687   :  { %11673 = vmatprep.mubr.msk.bf16.mxu1 %vm24251_vm0, %v19698_v17  ;;  %v19773_v40 = vpack.c.bf16 %v4062_v43, %v4061_v25  ;;  %v13421_v25 = vld [vmem:[%s23140_s2 + $0x200] sm:$0xff]   ;;  %v7213_v43 = vpack.c.bf16 %v7133_v5, %v7132_v18  ;;  %v7153_v5 = vld [vmem:[#allocation2 + $0xd2] sm:$0xff] }
 0x688   :  { %10954 = vmatmul.mubr.bf16.gmra.mrb[28].mxu0 %v19757_v3 }
 0x689   :  { %10957 = vmatprep.mubr.msk.bf16.mxu0 %vm24251_vm0, %v19698_v17 }
 0x68e   :  { %11674 = vmatmul.mubr.bf16.gmra.mrb[120].mxu1 %v19389_v46  ;;  %v4063_v46 = vld [vmem:[#allocation2 + $0x217] sm:$0xff] }
 0x68f   :  { %11677 = vmatprep.mubr.msk.bf16.mxu1 %vm24251_vm0, %v19698_v17  ;;  %v19781_v61 = vpack.c.bf16 %v4064_v6, %v4063_v46  ;;  %v7134_v46 = vld [vmem:[#allocation2 + $0x3a] sm:$0xff]  ;;  %v7135_v6 = vld [vmem:[#allocation2 + $0x42] sm:$0xff] }
 0x690   :  { %10958 = vmatmul.mubr.bf16.gmra.mrb[32].mxu0 %v19765_v15 }
 0x691   :  { %10961 = vmatprep.mubr.msk.bf16.mxu0 %vm24251_vm0, %v19698_v17 }
 0x696   :  { %11678 = vmatmul.mubr.bf16.gmra.mrb[124].mxu1 %v19396_v31  ;;  %v4065_v31 = vld [vmem:[#allocation2 + $0x227] sm:$0xff] }
 0x697   :  { %11681 = vmatprep.mubr.msk.bf16.mxu1 %vm24251_vm0, %v19698_v17  ;;  %v19789_v37 = vpack.c.bf16 %v4066_v63, %v4065_v31  ;;  %v7214_v31 = vpack.c.bf16 %v7135_v6, %v7134_v46  ;;  %v13424_v63 = vld [vmem:[%s23140_s2 + $0x218] sm:$0xff]  }
 0x698   :  { %10962 = vmatmul.mubr.bf16.gmra.mrb[36].mxu0 %v19773_v40  ;;  %v7157_v6 = vld [vmem:[#allocation2 + $0xf2] sm:$0xff] }
 0x699   :  { %10965 = vmatprep.mubr.msk.bf16.mxu0 %vm24251_vm0, %v19698_v17 }
 0x69e   :  { %11682 = vmatmul.mubr.bf16.gmra.mrb[128].mxu1 %v19403_v58  ;;  %v4067_v58 = vld [vmem:[#allocation2 + $0x237] sm:$0xff] }
 0x69f   :  { %11685 = vmatprep.mubr.msk.bf16.mxu1 %vm24251_vm0, %v19698_v17  ;;  %v19797_v57 = vpack.c.bf16 %v4068_v51, %v4067_v58  ;;  %v7136_v58 = vld [vmem:[#allocation2 + $0x4a] sm:$0xff]  ;;  %v7137_v51 = vld [vmem:[#allocation2 + $0x52] sm:$0xff] }
 0x6a0   :  { %10966 = vmatmul.mubr.bf16.gmra.mrb[40].mxu0 %v19781_v61 }
 0x6a1   :  { %10969 = vmatprep.mubr.msk.bf16.mxu0 %vm24251_vm0, %v19698_v17 }
 0x6a6   :  { %11686 = vmatmul.mubr.bf16.gmra.mrb[132].mxu1 %v19410_v36  ;;  %v4069_v36 = vld [vmem:[#allocation2 + $0x247] sm:$0xff] }
 0x6a7   :  { %11689 = vmatprep.mubr.msk.bf16.mxu1 %vm24251_vm0, %v19698_v17  ;;  %v4114_v11 = vpack.c.bf16 %v4070_v24, %v4069_v36  ;;  %v7215_v36 = vpack.c.bf16 %v7137_v51, %v7136_v58  ;;  %v7139_v24 = vld [vmem:[#allocation2 + $0x62] sm:$0xff]  ;;  %v7161_v58 = vld [vmem:[#allocation2 + $0x112] sm:$0xff] }
 0x6a8   :  { %10970 = vmatmul.mubr.bf16.gmra.mrb[44].mxu0 %v19789_v37 }
 0x6a9   :  { %10973 = vmatprep.mubr.msk.bf16.mxu0 %vm24251_vm0, %v19698_v17 }
 0x6ae   :  { %11690 = vmatmul.mubr.bf16.gmra.mrb[136].mxu1 %v19417_v33  ;;  %v4072_v33 = vld [vmem:[#allocation2 + $0x25f] sm:$0xff] }
 0x6af   :  { %11693 = vmatprep.mubr.msk.bf16.mxu1 %vm24251_vm0, %v19698_v17  ;;  %v4115_v30 = vpack.c.bf16 %v4072_v33, %v4071_v26  ;;  %v7141_v26 = vld [vmem:[#allocation2 + $0x72] sm:$0xff] }
 0x6b0   :  { %10974 = vmatmul.mubr.bf16.gmra.mrb[48].mxu0 %v19797_v57 }
 0x6b1   :  { %10977 = vmatprep.mubr.msk.bf16.mxu0 %vm24251_vm0, %v19698_v17 }
 0x6b6   :  { %11694 = vmatmul.mubr.bf16.gmra.mrb[140].mxu1 %v19424_v10  ;;  %v4074_v10 = vld [vmem:[#allocation2 + $0x26f] sm:$0xff] }
 0x6b7   :  { %11697 = vmatprep.mubr.msk.bf16.mxu1 %vm24251_vm0, %v19698_v17  ;;  %v19815_v9 = vpack.c.bf16 %v4074_v10, %v4073_v53  ;;  %v7143_v53 = vld [vmem:[#allocation2 + $0x82] sm:$0xff] }
 0x6b8   :  { %10978 = vmatmul.mubr.bf16.gmra.mrb[52].mxu0 %v4114_v11 }
 0x6b9   :  { %10981 = vmatprep.mubr.msk.bf16.mxu0 %vm24251_vm0, %v19698_v17 }
 0x6be   :  { %11698 = vmatmul.mubr.bf16.gmra.mrb[144].mxu1 %v19431_v34  ;;  %v4075_v34 = vld [vmem:[#allocation2 + $0x277] sm:$0xff] }
 0x6bf   :  { %11701 = vmatprep.mubr.msk.bf16.mxu1 %vm24251_vm0, %v19698_v17  ;;  %v19823_v48 = vpack.c.bf16 %v4076_v7, %v4075_v34  ;;  %v7145_v34 = vld [vmem:[#allocation2 + $0x92] sm:$0xff] }
 0x6c0   :  { %10982 = vmatmul.mubr.bf16.gmra.mrb[56].mxu0 %v4115_v30  ;;  %v7142_v30 = vld [vmem:[#allocation2 + $0x7a] sm:$0xff] }
 0x6c1   :  { %10985 = vmatprep.mubr.msk.bf16.mxu0 %vm24251_vm0, %v19698_v17  ;;  %v7218_v10 = vpack.c.bf16 %v7143_v53, %v7142_v30  ;;  %v7171_v53 = vld [vmem:[#allocation2 + $0x162] sm:$0xff] }
 0x6c6   :  { %11702 = vmatmul.mubr.bf16.gmra.mrb[148].mxu1 %v19438_v28  ;;  %v19831_v28 = vld [vmem:[#allocation2 + $0x287] sm:$0xff] }
 0x6c7   :  { %11705 = vmatprep.mubr.msk.bf16.mxu1 %vm24251_vm0, %v19698_v17  ;;  %v4118_v27 = vpack.c.bf16 %v19831_v28, %v19831_v28 }
 0x6c8   :  { %10986 = vmatmul.mubr.bf16.gmra.mrb[60].mxu0 %v19815_v9 }
 0x6c9   :  { %10989 = vmatprep.mubr.msk.bf16.mxu0 %vm24251_vm0, %v19698_v17 }
 0x6ce   :  { %11706 = vmatmul.mubr.bf16.gmra.mrb[152].mxu1 %v19445_v60  ;;  %v6585_v60 = vld [vmem:[#allocation2 + $0x2a9] sm:$0xff] }
 0x6cf   :  { %11709 = vmatprep.mubr.msk.bf16.mxu1 %vm24251_vm0, %v19698_v17  ;;  %v6626_v54 = vpack.c.bf16 %v6585_v60, %v6585_v60 }
 0x6d0   :  { %10990 = vmatmul.mubr.bf16.gmra.mrb[64].mxu0 %v19823_v48 }
 0x6d1   :  { %10993 = vmatprep.mubr.msk.bf16.mxu0 %vm24251_vm0, %v19698_v17 }
 0x6d6   :  { %11710 = vmatmul.mubr.bf16.gmra.mrb[156].mxu1 %v6625_v12  ;;  %v7149_v12 = vld [vmem:[#allocation2 + $0xb2] sm:$0xff] }
 0x6d7   :  { %11713 = vmatprep.mubr.msk.bf16.mxu1 %vm24251_vm0, %v19698_v17 }
 0x6d8   :  { %10994 = vmatmul.mubr.bf16.gmra.mrb[68].mxu0 %v4118_v27 }
 0x6d9   :  { %11013 = vmatprep.mubr.msk.bf16.mxu0 %vm24251_vm0, %v19698_v17 }
 0x6de   :  { %11714 = vmatmul.mubr.bf16.gmra.mrb[160].mxu1 %v6626_v54  ;;  %v7151_v54 = vld [vmem:[#allocation2 + $0xc2] sm:$0xff] }
 0x6df   :  { %11733 = vmatprep.mubr.msk.bf16.mxu1 %vm24251_vm0, %v19698_v17 }
 0x6e0   :  { %11014 = vmatmul.mubr.bf16.vlgmr.msra.gmra.mrb[164].mxu0 %v19460_v55  ;;  %v13422_v55 = vld [vmem:[%s23140_s2 + $0x208] sm:$0xff]  }
 0x6e1   :  { %11017 = vmatprep.mubr.msk.bf16.mxu0 %vm24251_vm0, %v19698_v17 }
 0x6e6   :  { %11734 = vmatmul.mubr.bf16.vlgmr.msra.gmra.mrb[0].mxu1 %v7213_v43 }
 0x6e7   :  { %11898 = vmatpush3.bf16.msra.mxu1 %v13421_v25  ;;  %11737 = vmatprep.mubr.msk.bf16.mxu1 %vm24251_vm0, %v19698_v17  ;;  %v13426_v25 = vld [vmem:[%s23140_s2 + $0x228] sm:$0xff]  }
 0x6e8   :  { %11018 = vmatmul.mubr.bf16.gmra.mrb[168].mxu0 %v19475_v42  ;;  %11899 = vmatprep.subr.bf16.mxu1 %v19698_v17  ;;  %v13423_v42 = vld [vmem:[%s23140_s2 + $0x210] sm:$0xff]  }
 0x6e9   :  { %11021 = vmatprep.mubr.msk.bf16.mxu0 %vm24251_vm0, %v19698_v17 }
 0x6eb   :  { %11900 = vmatpush3.bf16.msra.mxu1 %v13422_v55  ;;  %v7155_v55 = vld [vmem:[#allocation2 + $0xe2] sm:$0xff] }
 0x6ec   :  { %11901 = vmatprep.subr.bf16.mxu1 %v19698_v17 }
 0x6ee   :  { %11738 = vmatmul.mubr.bf16.gmra.mrb[4].mxu1 %v7214_v31  ;;  %v7159_v31 = vld [vmem:[#allocation2 + $0x102] sm:$0xff] }
 0x6ef   :  { %11741 = vmatprep.mubr.msk.bf16.mxu1 %vm24251_vm0, %v19698_v17  ;;  %11902 = vmatpush3.bf16.msra.mxu1 %v13423_v42 }
 0x6f0   :  { %11022 = vmatmul.mubr.bf16.gmra.mrb[172].mxu0 %v19491_v32  ;;  %11903 = vmatprep.subr.bf16.mxu1 %v19698_v17  ;;  %v7138_v32 = vld [vmem:[#allocation2 + $0x5a] sm:$0xff] }
 0x6f1   :  { %11025 = vmatprep.mubr.msk.bf16.mxu0 %vm24251_vm0, %v19698_v17  ;;  %v7216_v11 = vpack.c.bf16 %v7139_v24, %v7138_v32  ;;  %v13427_v32 = vld [vmem:[%s23140_s2 + $0x230] sm:$0xff]  }
 0x6f3   :  { %11904 = vmatpush3.bf16.msra.mxu1 %v13424_v63 }
 0x6f4   :  { %11905 = vmatprep.subr.bf16.mxu1 %v19698_v17 }
 0x6f6   :  { %11742 = vmatmul.mubr.bf16.gmra.mrb[8].mxu1 %v7215_v36  ;;  %v7163_v36 = vld [vmem:[#allocation2 + $0x122] sm:$0xff] }
 0x6f7   :  { %11745 = vmatprep.mubr.msk.bf16.mxu1 %vm24251_vm0, %v19698_v17 }
 0x6f8   :  { %11026 = vmatmul.mubr.bf16.gmra.mrb[176].mxu0 %v19500_v39  ;;  %v7140_v39 = vld [vmem:[#allocation2 + $0x6a] sm:$0xff] }
 0x6f9   :  { %11029 = vmatprep.mubr.msk.bf16.mxu0 %vm24251_vm0, %v19698_v17  ;;  %v7217_v33 = vpack.c.bf16 %v7141_v26, %v7140_v39  ;;  %v7167_v26 = vld [vmem:[#allocation2 + $0x142] sm:$0xff] }
 0x6fe   :  { %11746 = vmatmul.mubr.bf16.gmra.mrb[12].mxu1 %v7216_v11  ;;  %v7165_v11 = vld [vmem:[#allocation2 + $0x132] sm:$0xff] }
 0x6ff   :  { %11749 = vmatprep.mubr.msk.bf16.mxu1 %vm24251_vm0, %v19698_v17 }
 0x700   :  { %11030 = vmatmul.mubr.bf16.gmra.mrb[180].mxu0 %v19508_v49  ;;  %v13425_v49 = vld [vmem:[%s23140_s2 + $0x220] sm:$0xff]  }
 0x701   :  { %11033 = vmatprep.mubr.msk.bf16.mxu0 %vm24251_vm0, %v19698_v17  ;;  %11906 = vmatpush3.bf16.msra.mxu1 %v13425_v49  ;;  %v7169_v49 = vld [vmem:[#allocation2 + $0x152] sm:$0xff] }
 0x702   :  { %11907 = vmatprep.subr.bf16.mxu1 %v19698_v17 }
 0x705   :  { %11908 = vmatpush3.bf16.msra.mxu1 %v13426_v25  ;;  %v7184_v25 = vld [vmem:[#allocation2 + $0x1ca] sm:$0xff] }
 0x706   :  { %11750 = vmatmul.mubr.bf16.gmra.mrb[16].mxu1 %v7217_v33  ;;  %11909 = vmatprep.subr.bf16.mxu1 %v19698_v17 }
 0x707   :  { %11753 = vmatprep.mubr.msk.bf16.mxu1 %vm24251_vm0, %v19698_v17 }
 0x708   :  { %11034 = vmatmul.mubr.bf16.gmra.mrb[184].mxu0 %v19520_v56  ;;  %v7144_v56 = vld [vmem:[#allocation2 + $0x8a] sm:$0xff] }
 0x709   :  { %11037 = vmatprep.mubr.msk.bf16.mxu0 %vm24251_vm0, %v19698_v17  ;;  %v7219_v7 = vpack.c.bf16 %v7145_v34, %v7144_v56  ;;  %11910 = vmatpush3.bf16.msra.mxu1 %v13427_v32  ;;  %v7173_v56 = vld [vmem:[#allocation2 + $0x172] sm:$0xff] }
 0x70a   :  { %11911 = vmatprep.subr.bf16.mxu1 %v19698_v17  ;;  %v13428_v34 = vld [vmem:[%s23140_s2 + $0x238] sm:$0xff]  }
 0x70d   :  { %11912 = vmatpush3.bf16.msra.mxu1 %v13428_v34 }
 0x70e   :  { %11754 = vmatmul.mubr.bf16.gmra.mrb[20].mxu1 %v7218_v10 }
 0x70f   :  { %11757 = vmatprep.mubr.msk.bf16.mxu1 %vm24251_vm0, %v19698_v17 }
 0x710   :  { %11038 = vmatmul.mubr.bf16.gmra.mrb[188].mxu0 %v19528_v23  ;;  %v7146_v23 = vld [vmem:[#allocation2 + $0x9a] sm:$0xff] }
 0x711   :  { %11041 = vmatprep.mubr.msk.bf16.mxu0 %vm24251_vm0, %v19698_v17  ;;  %v7220_v27 = vpack.c.bf16 %v7147_v21, %v7146_v23  ;;  %v7175_v23 = vld [vmem:[#allocation2 + $0x182] sm:$0xff] }
 0x716   :  { %11758 = vmatmul.mubr.bf16.gmra.mrb[24].mxu1 %v7219_v7 }
 0x717   :  { %11761 = vmatprep.mubr.msk.bf16.mxu1 %vm24251_vm0, %v19698_v17 }
 0x718   :  { %11042 = vmatmul.mubr.bf16.gmra.mrb[192].mxu0 %v19536_v29  ;;  %v7148_v29 = vld [vmem:[#allocation2 + $0xaa] sm:$0xff] }
 0x719   :  { %11045 = vmatprep.mubr.msk.bf16.mxu0 %vm24251_vm0, %v19698_v17  ;;  %v7221_v60 = vpack.c.bf16 %v7149_v12, %v7148_v29  ;;  %v7179_v12 = vld [vmem:[#allocation2 + $0x1a2] sm:$0xff] }
 0x71e   :  { %11762 = vmatmul.mubr.bf16.gmra.mrb[28].mxu1 %v7220_v27  ;;  %v7177_v27 = vld [vmem:[#allocation2 + $0x192] sm:$0xff] }
 0x71f   :  { %11765 = vmatprep.mubr.msk.bf16.mxu1 %vm24251_vm0, %v19698_v17 }
 0x720   :  { %11046 = vmatmul.mubr.bf16.gmra.mrb[196].mxu0 %v19544_v50  ;;  %v7150_v50 = vld [vmem:[#allocation2 + $0xba] sm:$0xff] }
 0x721   :  { %11049 = vmatprep.mubr.msk.bf16.mxu0 %vm24251_vm0, %v19698_v17  ;;  %v7222_v18 = vpack.c.bf16 %v7151_v54, %v7150_v50  ;;  %v7181_v50 = vld [vmem:[#allocation2 + $0x1b2] sm:$0xff] }
 0x726   :  { %11766 = vmatmul.mubr.bf16.gmra.mrb[32].mxu1 %v7221_v60 }
 0x727   :  { %11769 = vmatprep.mubr.msk.bf16.mxu1 %vm24251_vm0, %v19698_v17 }
 0x728   :  { %11050 = vmatmul.mubr.bf16.gmra.mrb[200].mxu0 %v19552_v8  ;;  %v7152_v8 = vld [vmem:[#allocation2 + $0xca] sm:$0xff] }
 0x729   :  { %11053 = vmatprep.mubr.msk.bf16.mxu0 %vm24251_vm0, %v19698_v17  ;;  %v7223_v43 = vpack.c.bf16 %v7153_v5, %v7152_v8 }
 0x72e   :  { %11770 = vmatmul.mubr.bf16.gmra.mrb[36].mxu1 %v7222_v18  ;;  %v7183_v18 = vld [vmem:[#allocation2 + $0x1c2] sm:$0xff] }
 0x72f   :  { %11773 = vmatprep.mubr.msk.bf16.mxu1 %vm24251_vm0, %v19698_v17 }
 0x730   :  { %11054 = vmatmul.mubr.bf16.gmra.mrb[204].mxu0 %v19564_v14  ;;  %v7154_v14 = vld [vmem:[#allocation2 + $0xda] sm:$0xff] }
 0x731   :  { %11057 = vmatprep.mubr.msk.bf16.mxu0 %vm24251_vm0, %v19698_v17  ;;  %v7224_v46 = vpack.c.bf16 %v7155_v55, %v7154_v14 }
 0x736   :  { %11774 = vmatmul.mubr.bf16.gmra.mrb[40].mxu1 %v7223_v43  ;;  %v7185_v43 = vld [vmem:[#allocation2 + $0x1d2] sm:$0xff] }
 0x737   :  { %11777 = vmatprep.mubr.msk.bf16.mxu1 %vm24251_vm0, %v19698_v17 }
 0x738   :  { %11058 = vmatmul.mubr.bf16.gmra.mrb[208].mxu0 %v19572_v47  ;;  %v7156_v47 = vld [vmem:[#allocation2 + $0xea] sm:$0xff] }
 0x739   :  { %11061 = vmatprep.mubr.msk.bf16.mxu0 %vm24251_vm0, %v19698_v17  ;;  %v7225_v42 = vpack.c.bf16 %v7157_v6, %v7156_v47  ;;  %v7186_v6 = vld [vmem:[#allocation2 + $0x1da] sm:$0xff] }
 0x73e   :  { %11778 = vmatmul.mubr.bf16.gmra.mrb[44].mxu1 %v7224_v46  ;;  %v7239_v46 = vpack.c.bf16 %v7185_v43, %v7184_v25  ;;  %v7200_v25 = vld [vmem:[#allocation2 + $0x24a] sm:$0xff]  ;;  %v7201_v43 = vld [vmem:[#allocation2 + $0x252] sm:$0xff] }
 0x73f   :  { %11781 = vmatprep.mubr.msk.bf16.mxu1 %vm24251_vm0, %v19698_v17 }
 0x740   :  { %11062 = vmatmul.mubr.bf16.gmra.mrb[212].mxu0 %v19580_v44  ;;  %v7158_v44 = vld [vmem:[#allocation2 + $0xfa] sm:$0xff] }
 0x741   :  { %11065 = vmatprep.mubr.msk.bf16.mxu0 %vm24251_vm0, %v19698_v17  ;;  %v7226_v63 = vpack.c.bf16 %v7159_v31, %v7158_v44 }
 0x746   :  { %11782 = vmatmul.mubr.bf16.gmra.mrb[48].mxu1 %v7225_v42  ;;  %v7187_v42 = vld [vmem:[#allocation2 + $0x1e2] sm:$0xff] }
 0x747   :  { %11785 = vmatprep.mubr.msk.bf16.mxu1 %vm24251_vm0, %v19698_v17 }
 0x748   :  { %11066 = vmatmul.mubr.bf16.gmra.mrb[216].mxu0 %v19588_v2  ;;  %v7160_v2 = vld [vmem:[#allocation2 + $0x10a] sm:$0xff] }
 0x749   :  { %11069 = vmatprep.mubr.msk.bf16.mxu0 %vm24251_vm0, %v19698_v17  ;;  %v7227_v51 = vpack.c.bf16 %v7161_v58, %v7160_v2  ;;  %v7188_v58 = vld [vmem:[#allocation2 + $0x1ea] sm:$0xff] }
 0x74e   :  { %11786 = vmatmul.mubr.bf16.gmra.mrb[52].mxu1 %v7226_v63  ;;  %v7240_v63 = vpack.c.bf16 %v7187_v42, %v7186_v6  ;;  %v7247_v6 = vpack.c.bf16 %v7201_v43, %v7200_v25  ;;  %v4696_v42 = vld [vmem:[#allocation2 + $0x257] sm:$0xff] }
 0x74f   :  { %11789 = vmatprep.mubr.msk.bf16.mxu1 %vm24251_vm0, %v19698_v17 }
 0x750   :  { %11070 = vmatmul.mubr.bf16.gmra.mrb[220].mxu0 %v19596_v45  ;;  %v7162_v45 = vld [vmem:[#allocation2 + $0x11a] sm:$0xff] }
 0x751   :  { %11073 = vmatprep.mubr.msk.bf16.mxu0 %vm24251_vm0, %v19698_v17  ;;  %v7228_v24 = vpack.c.bf16 %v7163_v36, %v7162_v45 }
 0x756   :  { %11790 = vmatmul.mubr.bf16.gmra.mrb[56].mxu1 %v7227_v51  ;;  %v7189_v51 = vld [vmem:[#allocation2 + $0x1f2] sm:$0xff] }
 0x757   :  { %11793 = vmatprep.mubr.msk.bf16.mxu1 %vm24251_vm0, %v19698_v17  ;;  %v7241_v32 = vpack.c.bf16 %v7189_v51, %v7188_v58  ;;  %v7203_v58 = vld [vmem:[#allocation2 + $0x262] sm:$0xff] }
 0x758   :  { %11074 = vmatmul.mubr.bf16.gmra.mrb[224].mxu0 %v19608_v4  ;;  %v7164_v4 = vld [vmem:[#allocation2 + $0x12a] sm:$0xff] }
 0x759   :  { %11077 = vmatprep.mubr.msk.bf16.mxu0 %vm24251_vm0, %v19698_v17  ;;  %v7229_v39 = vpack.c.bf16 %v7165_v11, %v7164_v4  ;;  %v7190_v4 = vld [vmem:[#allocation2 + $0x1fa] sm:$0xff]  ;;  %v7191_v11 = vld [vmem:[#allocation2 + $0x202] sm:$0xff] }
 0x75e   :  { %11794 = vmatmul.mubr.bf16.gmra.mrb[60].mxu1 %v7228_v24 }
 0x75f   :  { %11797 = vmatprep.mubr.msk.bf16.mxu1 %vm24251_vm0, %v19698_v17 }
 0x760   :  { %11078 = vmatmul.mubr.bf16.gmra.mrb[228].mxu0 %v19616_v1  ;;  %v7166_v1 = vld [vmem:[#allocation2 + $0x13a] sm:$0xff] }
 0x761   :  { %11081 = vmatprep.mubr.msk.bf16.mxu0 %vm24251_vm0, %v19698_v17  ;;  %v7230_v33 = vpack.c.bf16 %v7167_v26, %v7166_v1  ;;  %v7242_v26 = vpack.c.bf16 %v7191_v11, %v7190_v4 }
 0x766   :  { %11798 = vmatmul.mubr.bf16.gmra.mrb[64].mxu1 %v7229_v39 }
 0x767   :  { %11801 = vmatprep.mubr.msk.bf16.mxu1 %vm24251_vm0, %v19698_v17 }
 0x768   :  { %11082 = vmatmul.mubr.bf16.gmra.mrb[232].mxu0 %v19624_v62  ;;  %v7168_v62 = vld [vmem:[#allocation2 + $0x14a] sm:$0xff] }
 0x769   :  { %11085 = vmatprep.mubr.msk.bf16.mxu0 %vm24251_vm0, %v19698_v17  ;;  %v7231_v30 = vpack.c.bf16 %v7169_v49, %v7168_v62  ;;  %v7192_v62 = vld [vmem:[#allocation2 + $0x20a] sm:$0xff]  ;;  %v7193_v49 = vld [vmem:[#allocation2 + $0x212] sm:$0xff] }
 0x76e   :  { %11802 = vmatmul.mubr.bf16.gmra.mrb[68].mxu1 %v7230_v33 }
 0x76f   :  { %11805 = vmatprep.mubr.msk.bf16.mxu1 %vm24251_vm0, %v19698_v17 }
 0x770   :  { %11086 = vmatmul.mubr.bf16.gmra.mrb[236].mxu0 %v19632_v0  ;;  %v7170_v0 = vld [vmem:[#allocation2 + $0x15a] sm:$0xff] }
 0x771   :  { %11089 = vmatprep.mubr.msk.bf16.mxu0 %vm24251_vm0, %v19698_v17  ;;  %v7232_v10 = vpack.c.bf16 %v7171_v53, %v7170_v0  ;;  %v7243_v53 = vpack.c.bf16 %v7193_v49, %v7192_v62 }
 0x776   :  { %11806 = vmatmul.mubr.bf16.gmra.mrb[72].mxu1 %v7231_v30 }
 0x777   :  { %11809 = vmatprep.mubr.msk.bf16.mxu1 %vm24251_vm0, %v19698_v17 }
 0x778   :  { %11090 = vmatmul.mubr.bf16.gmra.mrb[240].mxu0 %v19640_v35  ;;  %v7172_v35 = vld [vmem:[#allocation2 + $0x16a] sm:$0xff] }
 0x779   :  { %11093 = vmatprep.mubr.msk.bf16.mxu0 %vm24251_vm0, %v19698_v17  ;;  %v7233_v7 = vpack.c.bf16 %v7173_v56, %v7172_v35  ;;  %v7194_v35 = vld [vmem:[#allocation2 + $0x21a] sm:$0xff]  ;;  %v7195_v56 = vld [vmem:[#allocation2 + $0x222] sm:$0xff] }
 0x77e   :  { %11810 = vmatmul.mubr.bf16.gmra.mrb[76].mxu1 %v7232_v10 }
 0x77f   :  { %11813 = vmatprep.mubr.msk.bf16.mxu1 %vm24251_vm0, %v19698_v17 }
 0x780   :  { %11094 = vmatmul.mubr.bf16.gmra.mrb[244].mxu0 %v19652_v19  ;;  %v7174_v19 = vld [vmem:[#allocation2 + $0x17a] sm:$0xff] }
 0x781   :  { %11097 = vmatprep.mubr.msk.bf16.mxu0 %vm24251_vm0, %v19698_v17  ;;  %v7234_v21 = vpack.c.bf16 %v7175_v23, %v7174_v19  ;;  %v7244_v19 = vpack.c.bf16 %v7195_v56, %v7194_v35  ;;  %v7207_v35 = vld [vmem:[#allocation2 + $0x282] sm:$0xff] }
 0x786   :  { %11814 = vmatmul.mubr.bf16.gmra.mrb[80].mxu1 %v7233_v7 }
 0x787   :  { %11817 = vmatprep.mubr.msk.bf16.mxu1 %vm24251_vm0, %v19698_v17 }
 0x788   :  { %11098 = vmatmul.mubr.bf16.gmra.mrb[248].mxu0 %v19667_v13  ;;  %v7176_v13 = vld [vmem:[#allocation2 + $0x18a] sm:$0xff] }
 0x789   :  { %11101 = vmatprep.mubr.msk.bf16.mxu0 %vm24251_vm0, %v19698_v17  ;;  %v7235_v29 = vpack.c.bf16 %v7177_v27, %v7176_v13  ;;  %v7197_v13 = vld [vmem:[#allocation2 + $0x232] sm:$0xff] }
 0x78e   :  { %11818 = vmatmul.mubr.bf16.gmra.mrb[84].mxu1 %v7234_v21  ;;  %v7196_v21 = vld [vmem:[#allocation2 + $0x22a] sm:$0xff] }
 0x78f   :  { %11821 = vmatprep.mubr.msk.bf16.mxu1 %vm24251_vm0, %v19698_v17 }
 0x790   :  { %11102 = vmatmul.mubr.bf16.gmra.mrb[252].mxu0 %v19683_v38  ;;  %v7178_v38 = vld [vmem:[#allocation2 + $0x19a] sm:$0xff] }
 0x791   :  { %11105 = vmatprep.mubr.msk.bf16.mxu0 %vm24251_vm0, %v19698_v17  ;;  %v7236_v60 = vpack.c.bf16 %v7179_v12, %v7178_v38  ;;  %v7245_v38 = vpack.c.bf16 %v7197_v13, %v7196_v21  ;;  %v7208_v13 = vld [vmem:[#allocation2 + $0x28a] sm:$0xff] }
 0x796   :  { %11822 = vmatmul.mubr.bf16.gmra.mrb[88].mxu1 %v7235_v29 }
 0x797   :  { %11825 = vmatprep.mubr.msk.bf16.mxu1 %vm24251_vm0, %v19698_v17 }
 0x798   :  { %11106 = vmatmul.mubr.bf16.gmra.mrb[0].mxu0 %v19701_v16  ;;  %v7180_v16 = vld [vmem:[#allocation2 + $0x1aa] sm:$0xff] }
 0x799   :  { %11109 = vmatprep.mubr.msk.bf16.mxu0 %vm24251_vm0, %v19698_v17  ;;  %v7237_v54 = vpack.c.bf16 %v7181_v50, %v7180_v16  ;;  %v7199_v16 = vld [vmem:[#allocation2 + $0x242] sm:$0xff] }
 0x79e   :  { %11826 = vmatmul.mubr.bf16.gmra.mrb[92].mxu1 %v7236_v60  ;;  %v7198_v60 = vld [vmem:[#allocation2 + $0x23a] sm:$0xff] }
 0x79f   :  { %11829 = vmatprep.mubr.msk.bf16.mxu1 %vm24251_vm0, %v19698_v17 }
 0x7a0   :  { %11110 = vmatmul.mubr.bf16.gmra.mrb[4].mxu0 %v19717_v59  ;;  %v7182_v59 = vld [vmem:[#allocation2 + $0x1ba] sm:$0xff] }
 0x7a1   :  { %11113 = vmatprep.mubr.msk.bf16.mxu0 %vm24251_vm0, %v19698_v17  ;;  %v7238_v8 = vpack.c.bf16 %v7183_v18, %v7182_v59  ;;  %v7246_v59 = vpack.c.bf16 %v7199_v16, %v7198_v60  ;;  %v4694_v18 = vld [vmem:[#allocation2 + $0x247] sm:$0xff] }
 0x7a6   :  { %11830 = vmatmul.mubr.bf16.gmra.mrb[96].mxu1 %v7237_v54 }
 0x7a7   :  { %11833 = vmatprep.mubr.msk.bf16.mxu1 %vm24251_vm0, %v19698_v17 }
 0x7a8   :  { %11114 = vmatmul.mubr.bf16.gmra.mrb[8].mxu0 %v19725_v22 }
 0x7a9   :  { %11117 = vmatprep.mubr.msk.bf16.mxu0 %vm24251_vm0, %v19698_v17 }
 0x7ae   :  { %11834 = vmatmul.mubr.bf16.gmra.mrb[100].mxu1 %v7238_v8  ;;  %v4695_v8 = vld [vmem:[#allocation2 + $0x24f] sm:$0xff] }
 0x7af   :  { %11837 = vmatprep.mubr.msk.bf16.mxu1 %vm24251_vm0, %v19698_v17 }
 0x7b0   :  { %11118 = vmatmul.mubr.bf16.gmra.mrb[12].mxu0 %v19733_v20 }
 0x7b1   :  { %11121 = vmatprep.mubr.msk.bf16.mxu0 %vm24251_vm0, %v19698_v17 }
 0x7b3   :  { %v20006_v22 = vpop.f32.mrb[164].mxu0 }
 0x7b4   :  { %v11015_v5 = vpop.f32.mrb[165].mxu0 }
 0x7b5   :  { %v20008_v14 = vpop.f32.mrb[166].mxu0 }
 0x7b6   :  { %v11016_v55 = vpop.f32.mrb[167].mxu0  ;;  %11838 = vmatmul.mubr.bf16.gmra.mrb[104].mxu1 %v7239_v46 }
 0x7b7   :  { %11841 = vmatprep.mubr.msk.bf16.mxu1 %vm24251_vm0, %v19698_v17 }
 0x7b8   :  { %11122 = vmatmul.mubr.bf16.gmra.mrb[16].mxu0 %v19741_v52 }
 0x7b9   :  { %11125 = vmatprep.mubr.msk.bf16.mxu0 %vm24251_vm0, %v19698_v17 }
 0x7bb   :  { %v20015_v20 = vpop.f32.mrb[168].mxu0 }
 0x7bc   :  { %v11019_v47 = vpop.f32.mrb[169].mxu0 }
 0x7bd   :  { %v20017_v44 = vpop.f32.mrb[170].mxu0  ;;  %v4740_v47 = vpack.c.bf16 %v4695_v8, %v4694_v18  ;;  %v7210_v18 = vld [vmem:[#allocation2 + $0x29a] sm:$0xff]  ;;  %v7211_v8 = vld [vmem:[#allocation2 + $0x2a2] sm:$0xff] }
 0x7be   :  { %v11020_v31 = vpop.f32.mrb[171].mxu0  ;;  %11842 = vmatmul.mubr.bf16.gmra.mrb[108].mxu1 %v7240_v63 }
 0x7bf   :  { %11845 = vmatprep.mubr.msk.bf16.mxu1 %vm24251_vm0, %v19698_v17  ;;  %v4697_v31 = vld [vmem:[#allocation2 + $0x25f] sm:$0xff] }
 0x7c0   :  { %11126 = vmatmul.mubr.bf16.gmra.mrb[20].mxu0 %v19749_v41 }
 0x7c1   :  { %11129 = vmatprep.mubr.msk.bf16.mxu0 %vm24251_vm0, %v19698_v17 }
 0x7c3   :  { %v20024_v52 = vpop.f32.mrb[172].mxu0 }
 0x7c4   :  { %v11023_v2 = vpop.f32.mrb[173].mxu0 }
 0x7c5   :  { %v20026_v45 = vpop.f32.mrb[174].mxu0  ;;  %v7202_v2 = vld [vmem:[#allocation2 + $0x25a] sm:$0xff] }
 0x7c6   :  { %v11024_v36 = vpop.f32.mrb[175].mxu0  ;;  %11846 = vmatmul.mubr.bf16.gmra.mrb[112].mxu1 %v7241_v32  ;;  %v4741_v32 = vpack.c.bf16 %v4697_v31, %v4696_v42 }
 0x7c7   :  { %11849 = vmatprep.mubr.msk.bf16.mxu1 %vm24251_vm0, %v19698_v17 }
 0x7c8   :  { %11130 = vmatmul.mubr.bf16.gmra.mrb[24].mxu0 %v19757_v3 }
 0x7c9   :  { %11133 = vmatprep.mubr.msk.bf16.mxu0 %vm24251_vm0, %v19698_v17 }
 0x7cb   :  { %v20033_v41 = vpop.f32.mrb[176].mxu0 }
 0x7cc   :  { %v11027_v24 = vpop.f32.mrb[177].mxu0 }
 0x7cd   :  { %v20035_v39 = vpop.f32.mrb[178].mxu0  ;;  %v7248_v24 = vpack.c.bf16 %v7203_v58, %v7202_v2 }
 0x7ce   :  { %v11028_v1 = vpop.f32.mrb[179].mxu0  ;;  %11850 = vmatmul.mubr.bf16.gmra.mrb[116].mxu1 %v7242_v26  ;;  %v7205_v26 = vld [vmem:[#allocation2 + $0x272] sm:$0xff] }
 0x7cf   :  { %11853 = vmatprep.mubr.msk.bf16.mxu1 %vm24251_vm0, %v19698_v17  ;;  %v7204_v1 = vld [vmem:[#allocation2 + $0x26a] sm:$0xff] }
 0x7d0   :  { %11134 = vmatmul.mubr.bf16.gmra.mrb[28].mxu0 %v19765_v15  ;;  %v7249_v49 = vpack.c.bf16 %v7205_v26, %v7204_v1  ;;  %v20137_v26 = vld [vmem:[#allocation2] sm:$0xff] }
 0x7d1   :  { %11137 = vmatprep.mubr.msk.bf16.mxu0 %vm24251_vm0, %v19698_v17 }
 0x7d3   :  { %v20042_v3 = vpop.f32.mrb[180].mxu0 }
 0x7d4   :  { %v11031_v33 = vpop.f32.mrb[181].mxu0 }
 0x7d5   :  { %v20044_v30 = vpop.f32.mrb[182].mxu0 }
 0x7d6   :  { %v11032_v0 = vpop.f32.mrb[183].mxu0  ;;  %11854 = vmatmul.mubr.bf16.gmra.mrb[120].mxu1 %v7243_v53 }
 0x7d7   :  { %11857 = vmatprep.mubr.msk.bf16.mxu1 %vm24251_vm0, %v19698_v17 }
 0x7d8   :  { %11138 = vmatmul.mubr.bf16.gmra.mrb[32].mxu0 %v19773_v40 }
 0x7d9   :  { %11141 = vmatprep.mubr.msk.bf16.mxu0 %vm24251_vm0, %v19698_v17 }
 0x7db   :  { %v20051_v15 = vpop.f32.mrb[184].mxu0 }
 0x7dc   :  { %v11035_v10 = vpop.f32.mrb[185].mxu0 }
 0x7dd   :  { %v20053_v34 = vpop.f32.mrb[186].mxu0  ;;  %v7206_v10 = vld [vmem:[#allocation2 + $0x27a] sm:$0xff] }
 0x7de   :  { %v11036_v7 = vpop.f32.mrb[187].mxu0  ;;  %11858 = vmatmul.mubr.bf16.gmra.mrb[124].mxu1 %v7244_v19  ;;  %v7250_v19 = vpack.c.bf16 %v7207_v35, %v7206_v10 }
 0x7df   :  { %11861 = vmatprep.mubr.msk.bf16.mxu1 %vm24251_vm0, %v19698_v17 }
 0x7e0   :  { %11142 = vmatmul.mubr.bf16.gmra.mrb[36].mxu0 %v19781_v61 }
 0x7e1   :  { %11145 = vmatprep.mubr.msk.bf16.mxu0 %vm24251_vm0, %v19698_v17 }
 0x7e3   :  { %v20060_v40 = vpop.f32.mrb[188].mxu0 }
 0x7e4   :  { %v11039_v23 = vpop.f32.mrb[189].mxu0 }
 0x7e5   :  { %v20062_v27 = vpop.f32.mrb[190].mxu0  ;;  %v4703_v23 = vld [vmem:[#allocation2 + $0x28f] sm:$0xff] }
 0x7e6   :  { %v11040_v29 = vpop.f32.mrb[191].mxu0  ;;  %11862 = vmatmul.mubr.bf16.gmra.mrb[128].mxu1 %v7245_v38  ;;  %v4744_v60 = vpack.c.bf16 %v4703_v23, %v19831_v28  ;;  %v7252_v28 = vpack.c.bf16 %v7211_v8, %v7210_v18  ;;  %v7766_v18 = vld [vmem:[#allocation2 + $0x63] sm:$0xff] }
 0x7e7   :  { %11865 = vmatprep.mubr.msk.bf16.mxu1 %vm24251_vm0, %v19698_v17  ;;  %v7209_v29 = vld [vmem:[#allocation2 + $0x292] sm:$0xff] }
 0x7e8   :  { %11146 = vmatmul.mubr.bf16.gmra.mrb[40].mxu0 %v19789_v37  ;;  %v7251_v16 = vpack.c.bf16 %v7209_v29, %v7208_v13  ;;  %v7764_v13 = vld [vmem:[#allocation2 + $0x53] sm:$0xff] }
 0x7e9   :  { %11149 = vmatprep.mubr.msk.bf16.mxu0 %vm24251_vm0, %v19698_v17 }
 0x7eb   :  { %v20069_v61 = vpop.f32.mrb[192].mxu0 }
 0x7ec   :  { %v11043_v12 = vpop.f32.mrb[193].mxu0 }
 0x7ed   :  { %v20071_v50 = vpop.f32.mrb[194].mxu0 }
 0x7ee   :  { %v11044_v54 = vpop.f32.mrb[195].mxu0  ;;  %11866 = vmatmul.mubr.bf16.gmra.mrb[132].mxu1 %v7246_v59 }
 0x7ef   :  { %11869 = vmatprep.mubr.msk.bf16.mxu1 %vm24251_vm0, %v19698_v17  ;;  %v4704_v54 = vld [vmem:[#allocation2 + $0x297] sm:$0xff] }
 0x7f0   :  { %11150 = vmatmul.mubr.bf16.gmra.mrb[44].mxu0 %v19797_v57  ;;  %v4745_v43 = vpack.c.bf16 %v4704_v54, %v4704_v54 }
 0x7f1   :  { %11153 = vmatprep.mubr.msk.bf16.mxu0 %vm24251_vm0, %v19698_v17 }
 0x7f3   :  { %v20078_v37 = vpop.f32.mrb[196].mxu0 }
 0x7f4   :  { %v11047_v5 = vpop.f32.mrb[197].mxu0 }
 0x7f5   :  { %v20080_v55 = vpop.f32.mrb[198].mxu0 }
 0x7f6   :  { %v11048_v46 = vpop.f32.mrb[199].mxu0  ;;  %11870 = vmatmul.mubr.bf16.gmra.mrb[136].mxu1 %v7247_v6 }
 0x7f7   :  { %11873 = vmatprep.mubr.msk.bf16.mxu1 %vm24251_vm0, %v19698_v17  ;;  %v7212_v46 = vld [vmem:[#allocation2 + $0x2aa] sm:$0xff] }
 0x7f8   :  { %11154 = vmatmul.mubr.bf16.gmra.mrb[48].mxu0 %v4740_v47  ;;  %v7253_v31 = vpack.c.bf16 %v7212_v46, %v7212_v46 }
 0x7f9   :  { %11157 = vmatprep.mubr.msk.bf16.mxu0 %vm24251_vm0, %v19698_v17 }
 0x7fb   :  { %v20086_v57 = vpop.f32.mrb[200].mxu0 }
 0x7fc   :  { %v11051_v63 = vpop.f32.mrb[201].mxu0 }
 0x7fd   :  { %v20088_v51 = vpop.f32.mrb[202].mxu0 }
 0x7fe   :  { %v11052_v36 = vpop.f32.mrb[203].mxu0  ;;  %11874 = vmatmul.mubr.bf16.gmra.mrb[140].mxu1 %v7248_v24 }
 0x7ff   :  { %11877 = vmatprep.mubr.msk.bf16.mxu1 %vm24251_vm0, %v19698_v17  ;;  %v7759_v36 = vld [vmem:[#allocation2 + $0x2b] sm:$0xff] }
 0x800   :  { %11158 = vmatmul.mubr.bf16.gmra.mrb[52].mxu0 %v4741_v32  ;;  %v7760_v32 = vld [vmem:[#allocation2 + $0x33] sm:$0xff] }
 0x801   :  { %11161 = vmatprep.mubr.msk.bf16.mxu0 %vm24251_vm0, %v19698_v17  ;;  %v7840_v1 = vpack.c.bf16 %v7760_v32, %v7759_v36 }
 0x803   :  { %v20094_v4 = vpop.f32.mrb[204].mxu0 }
 0x804   :  { %v11055_v11 = vpop.f32.mrb[205].mxu0 }
 0x805   :  { %v20096_v33 = vpop.f32.mrb[206].mxu0 }
 0x806   :  { %v11056_v62 = vpop.f32.mrb[207].mxu0  ;;  %11878 = vmatmul.mubr.bf16.gmra.mrb[144].mxu1 %v7249_v49 }
 0x807   :  { %11881 = vmatprep.mubr.msk.bf16.mxu1 %vm24251_vm0, %v19698_v17 }
 0x808   :  { %11162 = vmatmul.mubr.bf16.gmra.mrb[56].mxu0 %v19815_v9 }
 0x809   :  { %11165 = vmatprep.mubr.msk.bf16.mxu0 %vm24251_vm0, %v19698_v17 }
 0x80b   :  { %v20103_v0 = vpop.f32.mrb[208].mxu0 }
 0x80c   :  { %v11059_v53 = vpop.f32.mrb[209].mxu0 }
 0x80d   :  { %v20105_v56 = vpop.f32.mrb[210].mxu0  ;;  %v7761_v53 = vld [vmem:[#allocation2 + $0x3b] sm:$0xff] }
 0x80e   :  { %v11060_v7 = vpop.f32.mrb[211].mxu0  ;;  %11882 = vmatmul.mubr.bf16.gmra.mrb[148].mxu1 %v7250_v19 }
 0x80f   :  { %11885 = vmatprep.mubr.msk.bf16.mxu1 %vm24251_vm0, %v19698_v17 }
 0x810   :  { %11166 = vmatmul.mubr.bf16.gmra.mrb[60].mxu0 %v19823_v48 }
 0x811   :  { %11169 = vmatprep.mubr.msk.bf16.mxu0 %vm24251_vm0, %v19698_v17 }
 0x813   :  { %v20112_v9 = vpop.f32.mrb[212].mxu0 }
 0x814   :  { %v11063_v21 = vpop.f32.mrb[213].mxu0 }
 0x815   :  { %v20114_v38 = vpop.f32.mrb[214].mxu0  ;;  %v7763_v21 = vld [vmem:[#allocation2 + $0x4b] sm:$0xff] }
 0x816   :  { %v11064_v12 = vpop.f32.mrb[215].mxu0  ;;  %11886 = vmatmul.mubr.bf16.gmra.mrb[152].mxu1 %v7251_v16 }
 0x817   :  { %11889 = vmatprep.mubr.msk.bf16.mxu1 %vm24251_vm0, %v19698_v17 }
 0x818   :  { %11170 = vmatmul.mubr.bf16.gmra.mrb[64].mxu0 %v4744_v60  ;;  %v7842_v60 = vpack.c.bf16 %v7764_v13, %v7763_v21  ;;  %v7771_v21 = vld [vmem:[#allocation2 + $0x8b] sm:$0xff]  ;;  %v7772_v13 = vld [vmem:[#allocation2 + $0x93] sm:$0xff] }
 0x819   :  { %11173 = vmatprep.mubr.msk.bf16.mxu0 %vm24251_vm0, %v19698_v17 }
 0x81b   :  { %v20121_v48 = vpop.f32.mrb[216].mxu0 }
 0x81c   :  { %v11067_v59 = vpop.f32.mrb[217].mxu0 }
 0x81d   :  { %v20123_v5 = vpop.f32.mrb[218].mxu0  ;;  %v7765_v59 = vld [vmem:[#allocation2 + $0x5b] sm:$0xff] }
 0x81e   :  { %v11068_v25 = vpop.f32.mrb[219].mxu0  ;;  %11890 = vmatmul.mubr.bf16.gmra.mrb[156].mxu1 %v7252_v28 }
 0x81f   :  { %11893 = vmatprep.mubr.msk.bf16.mxu1 %vm24251_vm0, %v19698_v17 }
 0x820   :  { %11174 = vmatmul.mubr.bf16.gmra.mrb[68].mxu0 %v4745_v43  ;;  %v7843_v43 = vpack.c.bf16 %v7766_v18, %v7765_v59 }
 0x823   :  { %v20127_v47 = vpop.f32.mrb[220].mxu0 }
 0x824   :  { %v11071_v6 = vpop.f32.mrb[221].mxu0 }
 0x825   :  { %v20129_v42 = vpop.f32.mrb[222].mxu0  ;;  %v7767_v6 = vld [vmem:[#allocation2 + $0x6b] sm:$0xff] }
 0x826   :  { %v11072_v63 = vpop.f32.mrb[223].mxu0  ;;  %11894 = vmatmul.mubr.bf16.gmra.mrb[160].mxu1 %v7253_v31  ;;  %v7768_v31 = vld [vmem:[#allocation2 + $0x73] sm:$0xff] }
 0x827   :  { %11913 = vmatprep.mubr.msk.bf16.mxu1 %vm24251_vm0, %v19698_v17  ;;  %v7762_v17 = vld [vmem:[#allocation2 + $0x43] sm:$0xff]  ;;  %v7844_v36 = vpack.c.bf16 %v7768_v31, %v7767_v6 }
 0x828   :  { %v7841_v7 = vpack.c.bf16 %v7762_v17, %v7761_v53 }
 0x82b   :  { %v20133_v2 = vpop.f32.mrb[224].mxu0 }
 0x82c   :  { %v11075_v58 = vpop.f32.mrb[225].mxu0 }
 0x82d   :  { %v20135_v24 = vpop.f32.mrb[226].mxu0 }
 0x82e   :  { %v11076_v11 = vpop.f32.mrb[227].mxu0  ;;  %11914 = vmatmul.mubr.bf16.vlgmr.msra.gmra.mrb[0].mxu1 %v7840_v1  ;;  %v7769_v1 = vld [vmem:[#allocation2 + $0x7b] sm:$0xff] }
 0x82f   :  { %11917 = vmatprep.mubr.msk.bf16.mxu1 %vm24251_vm0, %v20137_v26 }
 0x833   :  { %v20141_v62 = vpop.f32.mrb[228].mxu0 }
 0x834   :  { %v11079_v49 = vpop.f32.mrb[229].mxu0 }
 0x835   :  { %v20143_v10 = vpop.f32.mrb[230].mxu0  ;;  %v7770_v49 = vld [vmem:[#allocation2 + $0x83] sm:$0xff] }
 0x836   :  { %v11080_v35 = vpop.f32.mrb[231].mxu0  ;;  %11918 = vmatmul.mubr.bf16.gmra.mrb[4].mxu1 %v7841_v7 }
 0x837   :  { %11921 = vmatprep.mubr.msk.bf16.mxu1 %vm24251_vm0, %v20137_v26  ;;  %v7845_v35 = vpack.c.bf16 %v7770_v49, %v7769_v1  ;;  %v7776_v1 = vld [vmem:[#allocation2 + $0xb3] sm:$0xff] }
 0x83b   :  { %v20147_v19 = vpop.f32.mrb[232].mxu0 }
 0x83c   :  { %v11083_v23 = vpop.f32.mrb[233].mxu0 }
 0x83d   :  { %v20149_v29 = vpop.f32.mrb[234].mxu0 }
 0x83e   :  { %v11084_v12 = vpop.f32.mrb[235].mxu0  ;;  %11922 = vmatmul.mubr.bf16.gmra.mrb[8].mxu1 %v7842_v60 }
 0x83f   :  { %11925 = vmatprep.mubr.msk.bf16.mxu1 %vm24251_vm0, %v20137_v26 }
 0x843   :  { %v20153_v16 = vpop.f32.mrb[236].mxu0 }
 0x844   :  { %v11087_v54 = vpop.f32.mrb[237].mxu0 }
 0x845   :  { %v20155_v8 = vpop.f32.mrb[238].mxu0  ;;  %v7846_v54 = vpack.c.bf16 %v7772_v13, %v7771_v21  ;;  %v7777_v13 = vld [vmem:[#allocation2 + $0xbb] sm:$0xff] }
 0x846   :  { %v11088_v25 = vpop.f32.mrb[239].mxu0  ;;  %11926 = vmatmul.mubr.bf16.gmra.mrb[12].mxu1 %v7843_v43  ;;  %v7774_v43 = vld [vmem:[#allocation2 + $0xa3] sm:$0xff] }
 0x847   :  { %11929 = vmatprep.mubr.msk.bf16.mxu1 %vm24251_vm0, %v20137_v26  ;;  %v7773_v25 = vld [vmem:[#allocation2 + $0x9b] sm:$0xff] }
 0x848   :  { %v7847_v31 = vpack.c.bf16 %v7774_v43, %v7773_v25 }
 0x84b   :  { %v20159_v28 = vpop.f32.mrb[240].mxu0 }
 0x84c   :  { %v11091_v46 = vpop.f32.mrb[241].mxu0 }
 0x84d   :  { %v20161_v63 = vpop.f32.mrb[242].mxu0 }
 0x84e   :  { %v11092_v58 = vpop.f32.mrb[243].mxu0  ;;  %11930 = vmatmul.mubr.bf16.gmra.mrb[16].mxu1 %v7844_v36 }
 0x84f   :  { %11933 = vmatprep.mubr.msk.bf16.mxu1 %vm24251_vm0, %v20137_v26 }
 0x853   :  { %v20165_v32 = vpop.f32.mrb[244].mxu0 }
 0x854   :  { %v11095_v11 = vpop.f32.mrb[245].mxu0 }
 0x855   :  { %v20167_v53 = vpop.f32.mrb[246].mxu0  ;;  %v7775_v11 = vld [vmem:[#allocation2 + $0xab] sm:$0xff] }
 0x856   :  { %v11096_v17 = vpop.f32.mrb[247].mxu0  ;;  %11934 = vmatmul.mubr.bf16.gmra.mrb[20].mxu1 %v7845_v35  ;;  %v7848_v35 = vpack.c.bf16 %v7776_v1, %v7775_v11 }
 0x857   :  { %11937 = vmatprep.mubr.msk.bf16.mxu1 %vm24251_vm0, %v20137_v26 }
 0x85b   :  { %v20171_v7 = vpop.f32.mrb[248].mxu0 }
 0x85c   :  { %v11099_v23 = vpop.f32.mrb[249].mxu0 }
 0x85d   :  { %v20173_v12 = vpop.f32.mrb[250].mxu0 }
 0x85e   :  { %24892 = vst [vmem:[#allocation37_spill] sm:$0xff] %v20173_v12  ;;  %v11100_v60 = vpop.f32.mrb[251].mxu0  ;;  %11938 = vmatmul.mubr.bf16.gmra.mrb[24].mxu1 %v7846_v54  ;;  %v24936_v12 = vld [vmem:[#allocation8_spill] sm:$0xff] }
 0x85f   :  { %11941 = vmatprep.mubr.msk.bf16.mxu1 %vm24251_vm0, %v20137_v26  ;;  %v7778_v60 = vld [vmem:[#allocation2 + $0xc3] sm:$0xff] }
 0x860   :  { %v7849_v25 = vpack.c.bf16 %v7778_v60, %v7777_v13  ;;  %v7781_v13 = vld [vmem:[#allocation2 + $0xdb] sm:$0xff]  ;;  %v7782_v60 = vld [vmem:[#allocation2 + $0xe3] sm:$0xff] }
 0x863   :  { %v20177_v59 = vpop.f32.mrb[252].mxu0 }
 0x864   :  { %24893 = vst [vmem:[#allocation38_spill] sm:$0xff] %v20177_v59  ;;  %v11103_v18 = vpop.f32.mrb[253].mxu0 }
 0x865   :  { %v20179_v46 = vpop.f32.mrb[254].mxu0 }
 0x866   :  { %24894 = vst [vmem:[#allocation40_spill] sm:$0xff] %v20179_v46  ;;  %v11104_v6 = vpop.f32.mrb[255].mxu0  ;;  %11942 = vmatmul.mubr.bf16.gmra.mrb[28].mxu1 %v7847_v31  ;;  %v7779_v31 = vld [vmem:[#allocation2 + $0xcb] sm:$0xff] }
 0x867   :  { %11945 = vmatprep.mubr.msk.bf16.mxu1 %vm24251_vm0, %v20137_v26 }
 0x86b   :  { %v20183_v58 = vpop.f32.mrb[0].mxu0 }
 0x86c   :  { %24895 = vst [vmem:[#allocation41_spill] sm:$0xff] %v20183_v58  ;;  %v11107_v36 = vpop.f32.mrb[1].mxu0 }
 0x86d   :  { %v20185_v49 = vpop.f32.mrb[2].mxu0  ;;  %v7780_v36 = vld [vmem:[#allocation2 + $0xd3] sm:$0xff] }
 0x86e   :  { %24896 = vst [vmem:[#allocation44_spill] sm:$0xff] %v20185_v49  ;;  %v11108_v17 = vpop.f32.mrb[3].mxu0  ;;  %11946 = vmatmul.mubr.bf16.gmra.mrb[32].mxu1 %v7848_v35  ;;  %v24935_v49 = vld [vmem:[#allocation7_spill] sm:$0xff] }
 0x86f   :  { %11949 = vmatprep.mubr.msk.bf16.mxu1 %vm24251_vm0, %v20137_v26  ;;  %v7850_v17 = vpack.c.bf16 %v7780_v36, %v7779_v31  ;;  %v7783_v36 = vld [vmem:[#allocation2 + $0xeb] sm:$0xff] }
 0x873   :  { %v20189_v23 = vpop.f32.mrb[4].mxu0 }
 0x874   :  { %24897 = vst [vmem:[#allocation45_spill] sm:$0xff] %v20189_v23  ;;  %v11111_v21 = vpop.f32.mrb[5].mxu0 }
 0x875   :  { %v20191_v54 = vpop.f32.mrb[6].mxu0 }
 0x876   :  { %24898 = vst [vmem:[#allocation47_spill] sm:$0xff] %v20191_v54  ;;  %v11112_v18 = vpop.f32.mrb[7].mxu0  ;;  %11950 = vmatmul.mubr.bf16.gmra.mrb[36].mxu1 %v7849_v25 }
 0x877   :  { %11953 = vmatprep.mubr.msk.bf16.mxu1 %vm24251_vm0, %v20137_v26 }
 0x87b   :  { %v20195_v43 = vpop.f32.mrb[8].mxu0 }
 0x87c   :  { %24899 = vst [vmem:[#allocation49_spill] sm:$0xff] %v20195_v43  ;;  %v11115_v6 = vpop.f32.mrb[9].mxu0  ;;  %v7851_v43 = vpack.c.bf16 %v7782_v60, %v7781_v13  ;;  %v7786_v60 = vld [vmem:[#allocation2 + $0x103] sm:$0xff] }
 0x87d   :  { %v20197_v11 = vpop.f32.mrb[10].mxu0 }
 0x87e   :  { %24900 = vst [vmem:[#allocation59_spill] sm:$0xff] %v20197_v11  ;;  %v11116_v1 = vpop.f32.mrb[11].mxu0  ;;  %11954 = vmatmul.mubr.bf16.gmra.mrb[40].mxu1 %v7850_v17 }
 0x87f   :  { %11957 = vmatprep.mubr.msk.bf16.mxu1 %vm24251_vm0, %v20137_v26  ;;  %v7784_v1 = vld [vmem:[#allocation2 + $0xf3] sm:$0xff] }
 0x883   :  { %v20201_v35 = vpop.f32.mrb[12].mxu0 }
 0x884   :  { %24901 = vst [vmem:[#allocation139_spill] sm:$0xff] %v20201_v35  ;;  %v11119_v21 = vpop.f32.mrb[13].mxu0  ;;  %v7852_v35 = vpack.c.bf16 %v7784_v1, %v7783_v36  ;;  %v7788_v36 = vld [vmem:[#allocation2 + $0x113] sm:$0xff] }
 0x885   :  { %v20203_v18 = vpop.f32.mrb[14].mxu0 }
 0x886   :  { %24902 = vst [vmem:[#allocation60_spill] sm:$0xff] %v20203_v18  ;;  %v11120_v25 = vpop.f32.mrb[15].mxu0  ;;  %11958 = vmatmul.mubr.bf16.gmra.mrb[44].mxu1 %v7851_v43  ;;  %v7785_v43 = vld [vmem:[#allocation2 + $0xfb] sm:$0xff] }
 0x887   :  { %11961 = vmatprep.mubr.msk.bf16.mxu1 %vm24251_vm0, %v20137_v26 }
 0x88b   :  { %v20207_v6 = vpop.f32.mrb[16].mxu0 }
 0x88c   :  { %24903 = vst [vmem:[#allocation64_spill] sm:$0xff] %v20207_v6  ;;  %v11123_v31 = vpop.f32.mrb[17].mxu0  ;;  %v7853_v6 = vpack.c.bf16 %v7786_v60, %v7785_v43  ;;  %v7790_v43 = vld [vmem:[#allocation2 + $0x123] sm:$0xff] }
 0x88d   :  { %v20209_v17 = vpop.f32.mrb[18].mxu0 }
 0x88e   :  { %24904 = vst [vmem:[#allocation65_spill] sm:$0xff] %v20209_v17  ;;  %v11124_v11 = vpop.f32.mrb[19].mxu0  ;;  %11962 = vmatmul.mubr.bf16.gmra.mrb[48].mxu1 %v7852_v35  ;;  %v7787_v35 = vld [vmem:[#allocation2 + $0x10b] sm:$0xff] }
 0x88f   :  { %11965 = vmatprep.mubr.msk.bf16.mxu1 %vm24251_vm0, %v20137_v26 }
 0x893   :  { %v20213_v21 = vpop.f32.mrb[20].mxu0 }
 0x894   :  { %24905 = vst [vmem:[#allocation67_spill] sm:$0xff] %v20213_v21  ;;  %v11127_v13 = vpop.f32.mrb[21].mxu0  ;;  %v7854_v21 = vpack.c.bf16 %v7788_v36, %v7787_v35  ;;  %v7792_v35 = vld [vmem:[#allocation2 + $0x133] sm:$0xff] }
 0x895   :  { %v20215_v25 = vpop.f32.mrb[22].mxu0 }
 0x896   :  { %24906 = vst [vmem:[#allocation68_spill] sm:$0xff] %v20215_v25  ;;  %v11128_v18 = vpop.f32.mrb[23].mxu0  ;;  %11966 = vmatmul.mubr.bf16.gmra.mrb[52].mxu1 %v7853_v6  ;;  %v7789_v6 = vld [vmem:[#allocation2 + $0x11b] sm:$0xff] }
 0x897   :  { %11969 = vmatprep.mubr.msk.bf16.mxu1 %vm24251_vm0, %v20137_v26 }
 0x89b   :  { %v20219_v31 = vpop.f32.mrb[24].mxu0 }
 0x89c   :  { %24907 = vst [vmem:[#allocation71_spill] sm:$0xff] %v20219_v31  ;;  %v11131_v11 = vpop.f32.mrb[25].mxu0  ;;  %v7855_v31 = vpack.c.bf16 %v7790_v43, %v7789_v6  ;;  %v7794_v6 = vld [vmem:[#allocation2 + $0x143] sm:$0xff] }
 0x89d   :  { %v20221_v1 = vpop.f32.mrb[26].mxu0 }
 0x89e   :  { %24908 = vst [vmem:[#allocation74_spill] sm:$0xff] %v20221_v1  ;;  %v11132_v17 = vpop.f32.mrb[27].mxu0  ;;  %11970 = vmatmul.mubr.bf16.gmra.mrb[56].mxu1 %v7854_v21  ;;  %v7791_v21 = vld [vmem:[#allocation2 + $0x12b] sm:$0xff] }
 0x89f   :  { %11973 = vmatprep.mubr.msk.bf16.mxu1 %vm24251_vm0, %v20137_v26 }
 0x8a3   :  { %v20225_v13 = vpop.f32.mrb[28].mxu0 }
 0x8a4   :  { %24909 = vst [vmem:[#allocation83_spill] sm:$0xff] %v20225_v13  ;;  %v11135_v18 = vpop.f32.mrb[29].mxu0  ;;  %v7856_v13 = vpack.c.bf16 %v7792_v35, %v7791_v21  ;;  %v7796_v21 = vld [vmem:[#allocation2 + $0x153] sm:$0xff] }
 0x8a5   :  { %v20227_v60 = vpop.f32.mrb[30].mxu0 }
 0x8a6   :  { %24910 = vst [vmem:[#allocation86_spill] sm:$0xff] %v20227_v60  ;;  %v11136_v25 = vpop.f32.mrb[31].mxu0  ;;  %11974 = vmatmul.mubr.bf16.gmra.mrb[60].mxu1 %v7855_v31  ;;  %v7793_v31 = vld [vmem:[#allocation2 + $0x13b] sm:$0xff] }
 0x8a7   :  { %11977 = vmatprep.mubr.msk.bf16.mxu1 %vm24251_vm0, %v20137_v26 }
 0x8ab   :  { %v20231_v11 = vpop.f32.mrb[32].mxu0 }
 0x8ac   :  { %24911 = vst [vmem:[#allocation98_spill] sm:$0xff] %v20231_v11  ;;  %v11139_v17 = vpop.f32.mrb[33].mxu0  ;;  %v7857_v11 = vpack.c.bf16 %v7794_v6, %v7793_v31  ;;  %v7798_v31 = vld [vmem:[#allocation2 + $0x163] sm:$0xff] }
 0x8ad   :  { %v20233_v36 = vpop.f32.mrb[34].mxu0 }
 0x8ae   :  { %24912 = vst [vmem:[#allocation100_spill] sm:$0xff] %v20233_v36  ;;  %v11140_v1 = vpop.f32.mrb[35].mxu0  ;;  %11978 = vmatmul.mubr.bf16.gmra.mrb[64].mxu1 %v7856_v13  ;;  %v7795_v13 = vld [vmem:[#allocation2 + $0x14b] sm:$0xff] }
 0x8af   :  { %11981 = vmatprep.mubr.msk.bf16.mxu1 %vm24251_vm0, %v20137_v26 }
 0x8b3   :  { %v20237_v18 = vpop.f32.mrb[36].mxu0 }
 0x8b4   :  { %24913 = vst [vmem:[#allocation101_spill] sm:$0xff] %v20237_v18  ;;  %v11143_v25 = vpop.f32.mrb[37].mxu0  ;;  %v7858_v18 = vpack.c.bf16 %v7796_v21, %v7795_v13  ;;  %v7800_v13 = vld [vmem:[#allocation2 + $0x173] sm:$0xff] }
 0x8b5   :  { %v20239_v43 = vpop.f32.mrb[38].mxu0 }
 0x8b6   :  { %24914 = vst [vmem:[#allocation52_spill] sm:$0xff] %v20239_v43  ;;  %v11144_v60 = vpop.f32.mrb[39].mxu0  ;;  %11982 = vmatmul.mubr.bf16.gmra.mrb[68].mxu1 %v7857_v11  ;;  %v7797_v11 = vld [vmem:[#allocation2 + $0x15b] sm:$0xff] }
 0x8b7   :  { %11985 = vmatprep.mubr.msk.bf16.mxu1 %vm24251_vm0, %v20137_v26 }
 0x8bb   :  { %v20243_v17 = vpop.f32.mrb[40].mxu0 }
 0x8bc   :  { %24915 = vst [vmem:[#allocation53_spill] sm:$0xff] %v20243_v17  ;;  %v11147_v1 = vpop.f32.mrb[41].mxu0  ;;  %v7859_v17 = vpack.c.bf16 %v7798_v31, %v7797_v11  ;;  %v7802_v11 = vld [vmem:[#allocation2 + $0x183] sm:$0xff] }
 0x8bd   :  { %v20245_v35 = vpop.f32.mrb[42].mxu0 }
 0x8be   :  { %24916 = vst [vmem:[#allocation56_spill] sm:$0xff] %v20245_v35  ;;  %v11148_v36 = vpop.f32.mrb[43].mxu0  ;;  %11986 = vmatmul.mubr.bf16.gmra.mrb[72].mxu1 %v7858_v18  ;;  %v7799_v18 = vld [vmem:[#allocation2 + $0x16b] sm:$0xff] }
 0x8bf   :  { %11989 = vmatprep.mubr.msk.bf16.mxu1 %vm24251_vm0, %v20137_v26 }
 0x8c3   :  { %v20249_v25 = vpop.f32.mrb[44].mxu0 }
 0x8c4   :  { %24917 = vst [vmem:[#allocation111_spill] sm:$0xff] %v20249_v25  ;;  %v11151_v60 = vpop.f32.mrb[45].mxu0  ;;  %v7860_v25 = vpack.c.bf16 %v7800_v13, %v7799_v18  ;;  %v7804_v18 = vld [vmem:[#allocation2 + $0x193] sm:$0xff] }
 0x8c5   :  { %v20251_v6 = vpop.f32.mrb[46].mxu0 }
 0x8c6   :  { %24918 = vst [vmem:[#allocation113_spill] sm:$0xff] %v20251_v6  ;;  %v11152_v43 = vpop.f32.mrb[47].mxu0  ;;  %11990 = vmatmul.mubr.bf16.gmra.mrb[76].mxu1 %v7859_v17  ;;  %v7801_v17 = vld [vmem:[#allocation2 + $0x17b] sm:$0xff] }
 0x8c7   :  { %11993 = vmatprep.mubr.msk.bf16.mxu1 %vm24251_vm0, %v20137_v26 }
 0x8cb   :  { %v20255_v1 = vpop.f32.mrb[48].mxu0 }
 0x8cc   :  { %24919 = vst [vmem:[#allocation117_spill] sm:$0xff] %v20255_v1  ;;  %v11155_v36 = vpop.f32.mrb[49].mxu0  ;;  %v7861_v1 = vpack.c.bf16 %v7802_v11, %v7801_v17  ;;  %v7806_v17 = vld [vmem:[#allocation2 + $0x1a3] sm:$0xff] }
 0x8cd   :  { %v20257_v21 = vpop.f32.mrb[50].mxu0 }
 0x8ce   :  { %24920 = vst [vmem:[#allocation118_spill] sm:$0xff] %v20257_v21  ;;  %v11156_v35 = vpop.f32.mrb[51].mxu0  ;;  %11994 = vmatmul.mubr.bf16.gmra.mrb[80].mxu1 %v7860_v25  ;;  %v7803_v25 = vld [vmem:[#allocation2 + $0x18b] sm:$0xff] }
 0x8cf   :  { %11997 = vmatprep.mubr.msk.bf16.mxu1 %vm24251_vm0, %v20137_v26 }
 0x8d3   :  { %v20261_v60 = vpop.f32.mrb[52].mxu0 }
 0x8d4   :  { %24921 = vst [vmem:[#allocation120_spill] sm:$0xff] %v20261_v60  ;;  %v11159_v43 = vpop.f32.mrb[53].mxu0  ;;  %v7862_v60 = vpack.c.bf16 %v7804_v18, %v7803_v25  ;;  %v7808_v25 = vld [vmem:[#allocation2 + $0x1b3] sm:$0xff] }
 0x8d5   :  { %v20263_v31 = vpop.f32.mrb[54].mxu0 }
 0x8d6   :  { %24922 = vst [vmem:[#allocation103_spill] sm:$0xff] %v20263_v31  ;;  %v11160_v6 = vpop.f32.mrb[55].mxu0  ;;  %11998 = vmatmul.mubr.bf16.gmra.mrb[84].mxu1 %v7861_v1  ;;  %v7805_v1 = vld [vmem:[#allocation2 + $0x19b] sm:$0xff] }
 0x8d7   :  { %12001 = vmatprep.mubr.msk.bf16.mxu1 %vm24251_vm0, %v20137_v26 }
 0x8db   :  { %v20267_v36 = vpop.f32.mrb[56].mxu0 }
 0x8dc   :  { %24923 = vst [vmem:[#allocation108_spill] sm:$0xff] %v20267_v36  ;;  %v11163_v35 = vpop.f32.mrb[57].mxu0  ;;  %v7863_v36 = vpack.c.bf16 %v7806_v17, %v7805_v1  ;;  %v7810_v1 = vld [vmem:[#allocation2 + $0x1c3] sm:$0xff] }
 0x8dd   :  { %v20269_v13 = vpop.f32.mrb[58].mxu0 }
 0x8de   :  { %24924 = vst [vmem:[#allocation138_spill] sm:$0xff] %v20269_v13  ;;  %v11164_v21 = vpop.f32.mrb[59].mxu0  ;;  %12002 = vmatmul.mubr.bf16.gmra.mrb[88].mxu1 %v7862_v60  ;;  %v7807_v60 = vld [vmem:[#allocation2 + $0x1ab] sm:$0xff] }
 0x8df   :  { %12005 = vmatprep.mubr.msk.bf16.mxu1 %vm24251_vm0, %v20137_v26 }
 0x8e3   :  { %v20273_v43 = vpop.f32.mrb[60].mxu0 }
 0x8e4   :  { %24925 = vst [vmem:[#allocation26_spill] sm:$0xff] %v20273_v43  ;;  %v11167_v6 = vpop.f32.mrb[61].mxu0  ;;  %v7864_v43 = vpack.c.bf16 %v7808_v25, %v7807_v60  ;;  %v7813_v60 = vld [vmem:[#allocation2 + $0x1db] sm:$0xff]  ;;  %v7814_v25 = vld [vmem:[#allocation2 + $0x1e3] sm:$0xff] }
 0x8e5   :  { %v20275_v11 = vpop.f32.mrb[62].mxu0 }
 0x8e6   :  { %24926 = vst [vmem:[#allocation27_spill] sm:$0xff] %v20275_v11  ;;  %v11168_v31 = vpop.f32.mrb[63].mxu0  ;;  %12006 = vmatmul.mubr.bf16.gmra.mrb[92].mxu1 %v7863_v36  ;;  %v7809_v36 = vld [vmem:[#allocation2 + $0x1bb] sm:$0xff] }
 0x8e7   :  { %12009 = vmatprep.mubr.msk.bf16.mxu1 %vm24251_vm0, %v20137_v26  ;;  %v7865_v54 = vpack.c.bf16 %v7810_v1, %v7809_v36  ;;  %v7867_v1 = vpack.c.bf16 %v7814_v25, %v7813_v60  ;;  %v7817_v25 = vld [vmem:[#allocation2 + $0x1fb] sm:$0xff] }
 0x8eb   :  { %v20279_v35 = vpop.f32.mrb[64].mxu0 }
 0x8ec   :  { %24927 = vst [vmem:[#allocation28_spill] sm:$0xff] %v20279_v35  ;;  %v11171_v21 = vpop.f32.mrb[65].mxu0 }
 0x8ed   :  { %v20281_v18 = vpop.f32.mrb[66].mxu0  ;;  %v7811_v21 = vld [vmem:[#allocation2 + $0x1cb] sm:$0xff] }
 0x8ee   :  { %24928 = vst [vmem:[#allocation29_spill] sm:$0xff] %v20281_v18  ;;  %v11172_v13 = vpop.f32.mrb[67].mxu0  ;;  %12010 = vmatmul.mubr.bf16.gmra.mrb[96].mxu1 %v7864_v43  ;;  %v7812_v18 = vld [vmem:[#allocation2 + $0x1d3] sm:$0xff] }
 0x8ef   :  { %12013 = vmatprep.mubr.msk.bf16.mxu1 %vm24251_vm0, %v20137_v26  ;;  %v7866_v13 = vpack.c.bf16 %v7812_v18, %v7811_v21  ;;  %v7815_v21 = vld [vmem:[#allocation2 + $0x1eb] sm:$0xff] }
 0x8f3   :  { %v20285_v6 = vpop.f32.mrb[68].mxu0 }
 0x8f4   :  { %24929 = vst [vmem:[#allocation33_spill] sm:$0xff] %v20285_v6  ;;  %v11175_v31 = vpop.f32.mrb[69].mxu0 }
 0x8f5   :  { %v5167_v17 = vpop.f32.mrb[70].mxu0 }
 0x8f6   :  { %v11176_v11 = vpop.f32.mrb[71].mxu0  ;;  %12014 = vmatmul.mubr.bf16.gmra.mrb[100].mxu1 %v7865_v54 }
 0x8f7   :  { %12017 = vmatprep.mubr.msk.bf16.mxu1 %vm24251_vm0, %v20137_v26 }
 0x8fe   :  { %12018 = vmatmul.mubr.bf16.gmra.mrb[104].mxu1 %v7866_v13  ;;  %v7816_v13 = vld [vmem:[#allocation2 + $0x1f3] sm:$0xff] }
 0x8ff   :  { %12021 = vmatprep.mubr.msk.bf16.mxu1 %vm24251_vm0, %v20137_v26 }
 0x901   :  { %v7979_v43 = vpop.f32.mrb[0].mxu1 }
 0x902   :  { %v20292_v31 = vadd.f32 %v7979_v43, %v20006_v22  ;;  %v11915_v17 = vpop.f32.mrb[1].mxu1 }
 0x903   :  { %v7982_v11 = vpop.f32.mrb[2].mxu1 }
 0x904   :  { %v20295_v54 = vadd.f32 %v7982_v11, %v20008_v14  ;;  %v11916_v36 = vpop.f32.mrb[3].mxu1  ;;  %v7868_v14 = vpack.c.bf16 %v7816_v13, %v7815_v21  ;;  %v7818_v11 = vld [vmem:[#allocation2 + $0x203] sm:$0xff]  ;;  %v7819_v13 = vld [vmem:[#allocation2 + $0x20b] sm:$0xff] }
 0x906   :  { %24930 = vst [vmem:[#allocation35_spill] sm:$0xff] %v20295_v54  ;;  %12022 = vmatmul.mubr.bf16.gmra.mrb[108].mxu1 %v7867_v1 }
 0x907   :  { %12025 = vmatprep.mubr.msk.bf16.mxu1 %vm24251_vm0, %v20137_v26 }
 0x909   :  { %v7987_v18 = vpop.f32.mrb[4].mxu1 }
 0x90a   :  { %v20300_v6 = vadd.f32 %v7987_v18, %v20015_v20  ;;  %v11919_v35 = vpop.f32.mrb[5].mxu1 }
 0x90b   :  { %v7990_v22 = vpop.f32.mrb[6].mxu1 }
 0x90c   :  { %v20303_v43 = vadd.f32 %v7990_v22, %v20017_v44  ;;  %v11920_v17 = vpop.f32.mrb[7].mxu1  ;;  %v7869_v44 = vpack.c.bf16 %v7818_v11, %v7817_v25  ;;  %v7820_v22 = vld [vmem:[#allocation2 + $0x213] sm:$0xff]  ;;  %v7821_v11 = vld [vmem:[#allocation2 + $0x21b] sm:$0xff] }
 0x90e   :  { %12026 = vmatmul.mubr.bf16.gmra.mrb[112].mxu1 %v7868_v14  ;;  %v8389_v58 = vmul.f32 %v20303_v43, %v24935_v49 }
 0x90f   :  { %12029 = vmatprep.mubr.msk.bf16.mxu1 %vm24251_vm0, %v20137_v26 }
 0x911   :  { %v7995_v60 = vpop.f32.mrb[8].mxu1 }
 0x912   :  { %v20308_v36 = vadd.f32 %v7995_v60, %v20024_v52  ;;  %v11923_v1 = vpop.f32.mrb[9].mxu1 }
 0x913   :  { %v7998_v20 = vpop.f32.mrb[10].mxu1 }
 0x914   :  { %24931 = vst [vmem:[#allocation85_spill] sm:$0xff] %v20308_v36  ;;  %v20311_v35 = vadd.f32 %v7998_v20, %v20026_v45  ;;  %v11924_v18 = vpop.f32.mrb[11].mxu1  ;;  %v7870_v45 = vpack.c.bf16 %v7820_v22, %v7819_v13  ;;  %v7822_v20 = vld [vmem:[#allocation2 + $0x223] sm:$0xff]  ;;  %v7823_v22 = vld [vmem:[#allocation2 + $0x22b] sm:$0xff] }
 0x916   :  { %12030 = vmatmul.mubr.bf16.gmra.mrb[116].mxu1 %v7869_v44 }
 0x917   :  { %12033 = vmatprep.mubr.msk.bf16.mxu1 %vm24251_vm0, %v20137_v26 }
 0x919   :  { %v8003_v21 = vpop.f32.mrb[12].mxu1 }
 0x91a   :  { %v20316_v17 = vadd.f32 %v8003_v21, %v20033_v41  ;;  %v11927_v14 = vpop.f32.mrb[13].mxu1 }
 0x91b   :  { %v8006_v52 = vpop.f32.mrb[14].mxu1 }
 0x91c   :  { %v20319_v60 = vadd.f32 %v8006_v52, %v20035_v39  ;;  %v11928_v1 = vpop.f32.mrb[15].mxu1  ;;  %v7871_v39 = vpack.c.bf16 %v7822_v20, %v7821_v11  ;;  %v7824_v52 = vld [vmem:[#allocation2 + $0x233] sm:$0xff]  ;;  %v7825_v20 = vld [vmem:[#allocation2 + $0x23b] sm:$0xff] }
 0x91e   :  { %12034 = vmatmul.mubr.bf16.gmra.mrb[120].mxu1 %v7870_v45 }
 0x91f   :  { %12037 = vmatprep.mubr.msk.bf16.mxu1 %vm24251_vm0, %v20137_v26 }
 0x921   :  { %v8011_v25 = vpop.f32.mrb[16].mxu1 }
 0x922   :  { %v20324_v18 = vadd.f32 %v8011_v25, %v20042_v3  ;;  %v11931_v44 = vpop.f32.mrb[17].mxu1 }
 0x923   :  { %v8014_v41 = vpop.f32.mrb[18].mxu1 }
 0x924   :  { %v20327_v21 = vadd.f32 %v8014_v41, %v20044_v30  ;;  %v11932_v14 = vpop.f32.mrb[19].mxu1  ;;  %v7872_v30 = vpack.c.bf16 %v7824_v52, %v7823_v22  ;;  %v7826_v41 = vld [vmem:[#allocation2 + $0x243] sm:$0xff]  ;;  %v7827_v52 = vld [vmem:[#allocation2 + $0x24b] sm:$0xff] }
 0x926   :  { %12038 = vmatmul.mubr.bf16.gmra.mrb[124].mxu1 %v7871_v39 }
 0x927   :  { %12041 = vmatprep.mubr.msk.bf16.mxu1 %vm24251_vm0, %v20137_v26 }
 0x929   :  { %v8019_v13 = vpop.f32.mrb[20].mxu1 }
 0x92a   :  { %v20332_v1 = vadd.f32 %v8019_v13, %v20051_v15  ;;  %v11935_v45 = vpop.f32.mrb[21].mxu1 }
 0x92b   :  { %v8022_v3 = vpop.f32.mrb[22].mxu1 }
 0x92c   :  { %v20335_v25 = vadd.f32 %v8022_v3, %v20053_v34  ;;  %v11936_v44 = vpop.f32.mrb[23].mxu1  ;;  %v7873_v34 = vpack.c.bf16 %v7826_v41, %v7825_v20  ;;  %v7828_v3 = vld [vmem:[#allocation2 + $0x253] sm:$0xff]  ;;  %v7829_v41 = vld [vmem:[#allocation2 + $0x25b] sm:$0xff] }
 0x92e   :  { %12042 = vmatmul.mubr.bf16.gmra.mrb[128].mxu1 %v7872_v30 }
 0x92f   :  { %12045 = vmatprep.mubr.msk.bf16.mxu1 %vm24251_vm0, %v20137_v26 }
 0x931   :  { %v8027_v11 = vpop.f32.mrb[24].mxu1 }
 0x932   :  { %v20340_v14 = vadd.f32 %v8027_v11, %v20060_v40  ;;  %v11939_v39 = vpop.f32.mrb[25].mxu1 }
 0x933   :  { %v8030_v15 = vpop.f32.mrb[26].mxu1 }
 0x934   :  { %v20343_v13 = vadd.f32 %v8030_v15, %v20062_v27  ;;  %v11940_v45 = vpop.f32.mrb[27].mxu1  ;;  %v7874_v27 = vpack.c.bf16 %v7828_v3, %v7827_v52  ;;  %v7830_v15 = vld [vmem:[#allocation2 + $0x263] sm:$0xff]  ;;  %v7831_v3 = vld [vmem:[#allocation2 + $0x26b] sm:$0xff] }
 0x936   :  { %12046 = vmatmul.mubr.bf16.gmra.mrb[132].mxu1 %v7873_v34 }
 0x937   :  { %12049 = vmatprep.mubr.msk.bf16.mxu1 %vm24251_vm0, %v20137_v26 }
 0x939   :  { %v8035_v22 = vpop.f32.mrb[28].mxu1 }
 0x93a   :  { %v20348_v44 = vadd.f32 %v8035_v22, %v20069_v61  ;;  %v11943_v30 = vpop.f32.mrb[29].mxu1 }
 0x93b   :  { %v8038_v40 = vpop.f32.mrb[30].mxu1 }
 0x93c   :  { %v20351_v11 = vadd.f32 %v8038_v40, %v20071_v50  ;;  %v11944_v39 = vpop.f32.mrb[31].mxu1  ;;  %v7875_v50 = vpack.c.bf16 %v7830_v15, %v7829_v41  ;;  %v7832_v40 = vld [vmem:[#allocation2 + $0x273] sm:$0xff]  ;;  %v24933_v15 = vld [vmem:[#allocation4_spill] sm:$0xff] }
 0x93e   :  { %12050 = vmatmul.mubr.bf16.gmra.mrb[136].mxu1 %v7874_v27 }
 0x93f   :  { %12053 = vmatprep.mubr.msk.bf16.mxu1 %vm24251_vm0, %v20137_v26 }
 0x941   :  { %v8043_v20 = vpop.f32.mrb[32].mxu1 }
 0x942   :  { %v20356_v45 = vadd.f32 %v8043_v20, %v20078_v37  ;;  %v11947_v34 = vpop.f32.mrb[33].mxu1 }
 0x943   :  { %v8046_v61 = vpop.f32.mrb[34].mxu1 }
 0x944   :  { %v20359_v22 = vadd.f32 %v8046_v61, %v20080_v55  ;;  %v11948_v30 = vpop.f32.mrb[35].mxu1  ;;  %v7876_v55 = vpack.c.bf16 %v7832_v40, %v7831_v3  ;;  %v24932_v61 = vld [vmem:[#allocation5_spill] sm:$0xff] }
 0x945   :  { %v8387_v41 = vmul.f32 %v20295_v54, %v24932_v61  ;;  %v8386_v30 = vmul.f32 %v20292_v31, %v24933_v15 }
 0x946   :  { %12054 = vmatmul.mubr.bf16.gmra.mrb[140].mxu1 %v7875_v50  ;;  %v24934_v50 = vld [vmem:[#allocation6_spill] sm:$0xff] }
 0x947   :  { %12057 = vmatprep.mubr.msk.bf16.mxu1 %vm24251_vm0, %v20137_v26  ;;  %v8467_v61 = vadd.f32 %v8387_v41, %v8386_v30 }
 0x949   :  { %v8051_v52 = vpop.f32.mrb[36].mxu1 }
 0x94a   :  { %v20364_v39 = vadd.f32 %v8051_v52, %v20086_v57  ;;  %v11951_v27 = vpop.f32.mrb[37].mxu1  ;;  %v8388_v57 = vmul.f32 %v20300_v6, %v24934_v50  ;;  %v7833_v52 = vld [vmem:[#allocation2 + $0x27b] sm:$0xff] }
 0x94b   :  { %v8054_v37 = vpop.f32.mrb[38].mxu1  ;;  %v7834_v27 = vld [vmem:[#allocation2 + $0x283] sm:$0xff] }
 0x94c   :  { %v20367_v20 = vadd.f32 %v8054_v37, %v20088_v51  ;;  %v11952_v34 = vpop.f32.mrb[39].mxu1  ;;  %v8555_v51 = vmul.f32 %v20295_v54, %v8387_v41  ;;  %v8554_v37 = vmul.f32 %v20292_v31, %v8386_v30  ;;  %v8556_v15 = vmul.f32 %v20300_v6, %v8388_v57  ;;  %v7835_v30 = vld [vmem:[#allocation2 + $0x28b] sm:$0xff] }
 0x94d   :  { %v8468_v54 = vadd.f32 %v8467_v61, %v8388_v57  ;;  %v8557_v41 = vmul.f32 %v20303_v43, %v8389_v58 }
 0x94e   :  { %12058 = vmatmul.mubr.bf16.gmra.mrb[144].mxu1 %v7876_v55  ;;  %v7877_v55 = vpack.c.bf16 %v7834_v27, %v7833_v52  ;;  %v8635_v59 = vadd.f32 %v8555_v51, %v8554_v37  ;;  %v7836_v52 = vld [vmem:[#allocation2 + $0x293] sm:$0xff] }
 0x94f   :  { %12061 = vmatprep.mubr.msk.bf16.mxu1 %vm24251_vm0, %v20137_v26  ;;  %v8469_v49 = vadd.f32 %v8468_v54, %v8389_v58  ;;  %v7878_v37 = vpack.c.bf16 %v7836_v52, %v7835_v30  ;;  %v24939_v30 = vld [vmem:[#allocation11_spill] sm:$0xff]  ;;  %v7838_v52 = vld [vmem:[#allocation2 + $0x2a3] sm:$0xff] }
 0x951   :  { %v8059_v23 = vpop.f32.mrb[40].mxu1 }
 0x952   :  { %v20379_v3 = vadd.f32 %v8059_v23, %v20094_v4  ;;  %v11955_v40 = vpop.f32.mrb[41].mxu1  ;;  %v8390_v4 = vmul.f32 %v20308_v36, %v24936_v12  ;;  %v8636_v23 = vadd.f32 %v8635_v59, %v8556_v15  ;;  %v24938_v59 = vld [vmem:[#allocation10_spill] sm:$0xff] }
 0x953   :  { %v8062_v34 = vpop.f32.mrb[42].mxu1  ;;  %v24937_v40 = vld [vmem:[#allocation9_spill] sm:$0xff]  ;;  %v8392_v61 = vmul.f32 %v20316_v17, %v24938_v59 }
 0x954   :  { %v20386_v50 = vadd.f32 %v8062_v34, %v20096_v33  ;;  %v11956_v46 = vpop.f32.mrb[43].mxu1  ;;  %v8558_v33 = vmul.f32 %v20308_v36, %v8390_v4  ;;  %v8637_v34 = vadd.f32 %v8636_v23, %v8557_v41  ;;  %v7837_v41 = vld [vmem:[#allocation2 + $0x29b] sm:$0xff] }
 0x955   :  { %v8391_v46 = vmul.f32 %v20311_v35, %v24937_v40  ;;  %v24940_v40 = vld [vmem:[#allocation12_spill] sm:$0xff] }
 0x956   :  { %12062 = vmatmul.mubr.bf16.gmra.mrb[148].mxu1 %v7877_v55  ;;  %v8470_v55 = vadd.f32 %v8469_v49, %v8390_v4  ;;  %v8638_v54 = vadd.f32 %v8637_v34, %v8558_v33  ;;  %v8393_v4 = vmul.f32 %v20319_v60, %v24939_v30  ;;  %v8394_v33 = vmul.f32 %v20324_v18, %v24940_v40 }
 0x957   :  { %12065 = vmatprep.mubr.msk.bf16.mxu1 %vm24251_vm0, %v20137_v26  ;;  %v8559_v36 = vmul.f32 %v20311_v35, %v8391_v46 }
 0x959   :  { %v8067_v27 = vpop.f32.mrb[44].mxu1  ;;  %v8639_v49 = vadd.f32 %v8638_v54, %v8559_v36  ;;  %v8562_v36 = vmul.f32 %v20324_v18, %v8394_v33 }
 0x95a   :  { %v20397_v57 = vadd.f32 %v8067_v27, %v20103_v0  ;;  %v11959_v12 = vpop.f32.mrb[45].mxu1  ;;  %v8471_v0 = vadd.f32 %v8470_v55, %v8391_v46  ;;  %v8560_v27 = vmul.f32 %v20316_v17, %v8392_v61  ;;  %v8561_v46 = vmul.f32 %v20319_v60, %v8393_v4 }
 0x95b   :  { %v8070_v51 = vpop.f32.mrb[46].mxu1 }
 0x95c   :  { %v20402_v15 = vadd.f32 %v8070_v51, %v20105_v56  ;;  %v11960_v58 = vpop.f32.mrb[47].mxu1  ;;  %v8472_v56 = vadd.f32 %v8471_v0, %v8392_v61  ;;  %v8640_v34 = vadd.f32 %v8639_v49, %v8560_v27  ;;  %v24941_v61 = vld [vmem:[#allocation13_spill] sm:$0xff] }
 0x95d   :  { %v7879_v58 = vpack.c.bf16 %v7838_v52, %v7837_v41  ;;  %v8395_v54 = vmul.f32 %v20327_v21, %v24941_v61 }
 0x95e   :  { %12066 = vmatmul.mubr.bf16.gmra.mrb[152].mxu1 %v7878_v37  ;;  %v8473_v30 = vadd.f32 %v8472_v56, %v8393_v4  ;;  %v8641_v0 = vadd.f32 %v8640_v34, %v8561_v46 }
 0x95f   :  { %12069 = vmatprep.mubr.msk.bf16.mxu1 %vm24251_vm0, %v20137_v26  ;;  %v8563_v41 = vmul.f32 %v20327_v21, %v8395_v54 }
 0x960   :  { %v8474_v27 = vadd.f32 %v8473_v30, %v8394_v33  ;;  %v8642_v40 = vadd.f32 %v8641_v0, %v8562_v36  ;;  %v24944_v36 = vld [vmem:[#allocation16_spill] sm:$0xff] }
 0x961   :  { %v8075_v23 = vpop.f32.mrb[48].mxu1  ;;  %v8398_v61 = vmul.f32 %v20340_v14, %v24944_v36 }
 0x962   :  { %v20413_v12 = vadd.f32 %v8075_v23, %v20112_v9  ;;  %v11963_v51 = vpop.f32.mrb[49].mxu1  ;;  %v7839_v9 = vld [vmem:[#allocation2 + $0x2ab] sm:$0xff] }
 0x963   :  { %v8078_v37 = vpop.f32.mrb[50].mxu1  ;;  %v24942_v23 = vld [vmem:[#allocation14_spill] sm:$0xff]  ;;  %v7880_v56 = vpack.c.bf16 %v7839_v9, %v7839_v9 }
 0x964   :  { %v20417_v55 = vadd.f32 %v8078_v37, %v20114_v38  ;;  %v11964_v59 = vpop.f32.mrb[51].mxu1  ;;  %v8396_v49 = vmul.f32 %v20332_v1, %v24942_v23  ;;  %v8475_v37 = vadd.f32 %v8474_v27, %v8395_v54  ;;  %v8566_v27 = vmul.f32 %v20340_v14, %v8398_v61  ;;  %v24945_v23 = vld [vmem:[#allocation17_spill] sm:$0xff] }
 0x966   :  { %12070 = vmatmul.mubr.bf16.gmra.mrb[156].mxu1 %v7879_v58  ;;  %v8564_v59 = vmul.f32 %v20332_v1, %v8396_v49  ;;  %v8643_v58 = vadd.f32 %v8642_v40, %v8563_v41  ;;  %v8476_v30 = vadd.f32 %v8475_v37, %v8396_v49 }
 0x967   :  { %12073 = vmatprep.mubr.msk.bf16.mxu1 %vm24251_vm0, %v20137_v26  ;;  %v24943_v26 = vld [vmem:[#allocation15_spill] sm:$0xff] }
 0x968   :  { %v8397_v34 = vmul.f32 %v20335_v25, %v24943_v26 }
 0x969   :  { %v8083_v38 = vpop.f32.mrb[52].mxu1 }
 0x96a   :  { %v20428_v4 = vadd.f32 %v8083_v38, %v20121_v48  ;;  %v11967_v52 = vpop.f32.mrb[53].mxu1  ;;  %v8644_v48 = vadd.f32 %v8643_v58, %v8564_v59  ;;  %v8565_v9 = vmul.f32 %v20335_v25, %v8397_v34  ;;  %v8477_v54 = vadd.f32 %v8476_v30, %v8397_v34  ;;  %v24947_v30 = vld [vmem:[#allocation19_spill] sm:$0xff] }
 0x96b   :  { %v8086_v51 = vpop.f32.mrb[54].mxu1  ;;  %v8399_v38 = vmul.f32 %v20343_v13, %v24945_v23 }
 0x96c   :  { %v20434_v33 = vadd.f32 %v8086_v51, %v20123_v5  ;;  %v11968_v46 = vpop.f32.mrb[55].mxu1  ;;  %v8645_v49 = vadd.f32 %v8644_v48, %v8565_v9  ;;  %v8478_v41 = vadd.f32 %v8477_v54, %v8398_v61  ;;  %v24946_v51 = vld [vmem:[#allocation18_spill] sm:$0xff]  ;;  %v24948_v61 = vld [vmem:[#allocation20_spill] sm:$0xff] }
 0x96d   :  { %v8567_v34 = vmul.f32 %v20343_v13, %v8399_v38  ;;  %v8402_v9 = vmul.f32 %v20356_v45, %v24948_v61  ;;  %v24951_v61 = vld [vmem:[#allocation23_spill] sm:$0xff] }
 0x96e   :  { %12074 = vmatmul.mubr.bf16.gmra.mrb[160].mxu1 %v7880_v56  ;;  %v8400_v56 = vmul.f32 %v20348_v44, %v24946_v51  ;;  %v8646_v26 = vadd.f32 %v8645_v49, %v8566_v27  ;;  %v8479_v46 = vadd.f32 %v8478_v41, %v8399_v38  ;;  %v24949_v51 = vld [vmem:[#allocation21_spill] sm:$0xff] }
 0x96f   :  { %v8570_v41 = vmul.f32 %v20356_v45, %v8402_v9 }
 0x970   :  { %v8568_v58 = vmul.f32 %v20348_v44, %v8400_v56  ;;  %v8480_v48 = vadd.f32 %v8479_v46, %v8400_v56  ;;  %v8403_v56 = vmul.f32 %v20359_v22, %v24949_v51 }
 0x971   :  { %v8091_v0 = vpop.f32.mrb[56].mxu1 }
 0x972   :  { %v20443_v5 = vadd.f32 %v8091_v0, %v20127_v47  ;;  %v11971_v52 = vpop.f32.mrb[57].mxu1  ;;  %v8401_v47 = vmul.f32 %v20351_v11, %v24947_v30  ;;  %v8647_v0 = vadd.f32 %v8646_v26, %v8567_v34  ;;  %v24950_v34 = vld [vmem:[#allocation22_spill] sm:$0xff] }
 0x973   :  { %v8094_v40 = vpop.f32.mrb[58].mxu1 }
 0x974   :  { %v20448_v37 = vadd.f32 %v8094_v40, %v20129_v42  ;;  %v11972_v59 = vpop.f32.mrb[59].mxu1  ;;  %v8648_v27 = vadd.f32 %v8647_v0, %v8568_v58  ;;  %v8569_v52 = vmul.f32 %v20351_v11, %v8401_v47  ;;  %v8481_v49 = vadd.f32 %v8480_v48, %v8401_v47 }
 0x975   :  { %v8571_v58 = vmul.f32 %v20359_v22, %v8403_v56 }
 0x976   :  { %v8649_v59 = vadd.f32 %v8648_v27, %v8569_v52  ;;  %v8482_v26 = vadd.f32 %v8481_v49, %v8402_v9 }
 0x978   :  { %v8650_v30 = vadd.f32 %v8649_v59, %v8570_v41  ;;  %v8483_v47 = vadd.f32 %v8482_v26, %v8403_v56  ;;  %v24954_v26 = vld [vmem:[#allocation25_spill] sm:$0xff] }
 0x979   :  { %v8099_v36 = vpop.f32.mrb[60].mxu1 }
 0x97a   :  { %v20457_v54 = vadd.f32 %v8099_v36, %v20133_v2  ;;  %v11975_v42 = vpop.f32.mrb[61].mxu1  ;;  %v8404_v2 = vmul.f32 %v20364_v39, %v24950_v34  ;;  %v8651_v27 = vadd.f32 %v8650_v30, %v8571_v58  ;;  %v8407_v34 = vmul.f32 %v20386_v50, %v24954_v26  ;;  %v24956_v58 = vld [vmem:[#allocation30_spill] sm:$0xff] }
 0x97b   :  { %v8102_v23 = vpop.f32.mrb[62].mxu1  ;;  %v8405_v42 = vmul.f32 %v20367_v20, %v24951_v61 }
 0x97c   :  { %v20461_v38 = vadd.f32 %v8102_v23, %v20135_v24  ;;  %v11976_v40 = vpop.f32.mrb[63].mxu1  ;;  %v8572_v48 = vmul.f32 %v20364_v39, %v8404_v2  ;;  %v8484_v52 = vadd.f32 %v8483_v47, %v8404_v2 }
 0x97d   :  { %v24953_v40 = vld [vmem:[#allocation24_spill] sm:$0xff] }
 0x97e   :  { %v8406_v49 = vmul.f32 %v20379_v3, %v24953_v40  ;;  %v8652_v41 = vadd.f32 %v8651_v27, %v8572_v48  ;;  %v8485_v59 = vadd.f32 %v8484_v52, %v8405_v42  ;;  %v24957_v52 = vld [vmem:[#allocation31_spill] sm:$0xff] }
 0x980   :  { %v8574_v56 = vmul.f32 %v20379_v3, %v8406_v49  ;;  %v8486_v2 = vadd.f32 %v8485_v59, %v8406_v49  ;;  %v24958_v49 = vld [vmem:[#allocation32_spill] sm:$0xff] }
 0x981   :  { %v8107_v46 = vpop.f32.mrb[64].mxu1 }
 0x982   :  { %v20470_v36 = vadd.f32 %v8107_v46, %v20141_v62  ;;  %v11979_v24 = vpop.f32.mrb[65].mxu1  ;;  %v8573_v62 = vmul.f32 %v20367_v20, %v8405_v42  ;;  %v8575_v42 = vmul.f32 %v20386_v50, %v8407_v34 }
 0x983   :  { %v8110_v0 = vpop.f32.mrb[66].mxu1 }
 0x984   :  { %v20476_v9 = vadd.f32 %v8110_v0, %v20143_v10  ;;  %v11980_v23 = vpop.f32.mrb[67].mxu1  ;;  %v8653_v30 = vadd.f32 %v8652_v41, %v8573_v62  ;;  %v8408_v0 = vmul.f32 %v20397_v57, %v24956_v58  ;;  %v8410_v62 = vmul.f32 %v20413_v12, %v24958_v49  ;;  %v24960_v58 = vld [vmem:[#allocation34_spill] sm:$0xff]  ;;  %v24963_v49 = vld [vmem:[#allocation39_spill] sm:$0xff] }
 0x985   :  { %v8487_v23 = vadd.f32 %v8486_v2, %v8407_v34 }
 0x986   :  { %24952 = vst [vmem:[#allocation91_spill] sm:$0xff] %v20476_v9  ;;  %v8654_v61 = vadd.f32 %v8653_v30, %v8574_v56  ;;  %v8576_v27 = vmul.f32 %v20397_v57, %v8408_v0  ;;  %v8578_v2 = vmul.f32 %v20413_v12, %v8410_v62 }
 0x987   :  { %v8488_v41 = vadd.f32 %v8487_v23, %v8408_v0  ;;  %v8411_v0 = vmul.f32 %v20417_v55, %v24960_v58 }
 0x989   :  { %v8115_v51 = vpop.f32.mrb[68].mxu1 }
 0x98a   :  { %v20485_v46 = vadd.f32 %v8115_v51, %v20147_v19  ;;  %v11983_v10 = vpop.f32.mrb[69].mxu1  ;;  %v8409_v19 = vmul.f32 %v20402_v15, %v24957_v52  ;;  %v8655_v51 = vadd.f32 %v8654_v61, %v8575_v42  ;;  %v24961_v42 = vld [vmem:[#allocation36_spill] sm:$0xff] }
 0x98b   :  { %v8118_v24 = vpop.f32.mrb[70].mxu1 }
 0x98c   :  { %24955 = vst [vmem:[#allocation90_spill] sm:$0xff] %v20485_v46  ;;  %v20490_v47 = vadd.f32 %v8118_v24, %v20149_v29  ;;  %v11984_v48 = vpop.f32.mrb[71].mxu1  ;;  %v8656_v56 = vadd.f32 %v8655_v51, %v8576_v27  ;;  %v8577_v10 = vmul.f32 %v20402_v15, %v8409_v19  ;;  %v8489_v30 = vadd.f32 %v8488_v41, %v8409_v19 }
 0x98d   :  { %v8579_v27 = vmul.f32 %v20417_v55, %v8411_v0 }
 0x98e   :  { %v8657_v48 = vadd.f32 %v8656_v56, %v8577_v10  ;;  %v8490_v61 = vadd.f32 %v8489_v30, %v8410_v62 }
 0x990   :  { %v8658_v52 = vadd.f32 %v8657_v48, %v8578_v2  ;;  %v8491_v19 = vadd.f32 %v8490_v61, %v8411_v0  ;;  %v24966_v61 = vld [vmem:[#allocation43_spill] sm:$0xff] }
 0x991   :  { %v8123_v40 = vpop.f32.mrb[72].mxu1 }
 0x992   :  { %v20499_v59 = vadd.f32 %v8123_v40, %v20153_v16  ;;  %v11987_v29 = vpop.f32.mrb[73].mxu1  ;;  %v8412_v16 = vmul.f32 %v20428_v4, %v24961_v42  ;;  %v8659_v56 = vadd.f32 %v8658_v52, %v8579_v27  ;;  %v8415_v42 = vmul.f32 %v20448_v37, %v24966_v61  ;;  %v24968_v27 = vld [vmem:[#allocation46_spill] sm:$0xff] }
 0x993   :  { %v8126_v26 = vpop.f32.mrb[74].mxu1  ;;  %v8413_v29 = vmul.f32 %v20434_v33, %v24963_v49 }
 0x994   :  { %24959 = vst [vmem:[#allocation93_spill] sm:$0xff] %v20499_v59  ;;  %v20503_v34 = vadd.f32 %v8126_v26, %v20155_v8  ;;  %v11988_v24 = vpop.f32.mrb[75].mxu1  ;;  %v8580_v41 = vmul.f32 %v20428_v4, %v8412_v16  ;;  %v8492_v10 = vadd.f32 %v8491_v19, %v8412_v16 }
 0x995   :  { %v24965_v24 = vld [vmem:[#allocation42_spill] sm:$0xff] }
 0x996   :  { %v8414_v30 = vmul.f32 %v20443_v5, %v24965_v24  ;;  %v8660_v2 = vadd.f32 %v8659_v56, %v8580_v41  ;;  %v8493_v48 = vadd.f32 %v8492_v10, %v8413_v29  ;;  %v24970_v10 = vld [vmem:[#allocation48_spill] sm:$0xff] }
 0x998   :  { %v8582_v0 = vmul.f32 %v20443_v5, %v8414_v30  ;;  %v8494_v16 = vadd.f32 %v8493_v48, %v8414_v30  ;;  %v24971_v30 = vld [vmem:[#allocation50_spill] sm:$0xff] }
 0x999   :  { %v8131_v23 = vpop.f32.mrb[76].mxu1 }
 0x99a   :  { %v20512_v40 = vadd.f32 %v8131_v23, %v20159_v28  ;;  %v11991_v8 = vpop.f32.mrb[77].mxu1  ;;  %v8581_v28 = vmul.f32 %v20434_v33, %v8413_v29  ;;  %v8583_v29 = vmul.f32 %v20448_v37, %v8415_v42 }
 0x99b   :  { %v8134_v51 = vpop.f32.mrb[78].mxu1 }
 0x99c   :  { %24962 = vst [vmem:[#allocation92_spill] sm:$0xff] %v20512_v40  ;;  %v20518_v62 = vadd.f32 %v8134_v51, %v20161_v63  ;;  %v11992_v26 = vpop.f32.mrb[79].mxu1  ;;  %v8661_v52 = vadd.f32 %v8660_v2, %v8581_v28  ;;  %v8416_v51 = vmul.f32 %v20457_v54, %v24968_v27  ;;  %v8418_v28 = vmul.f32 %v20470_v36, %v24971_v30 }
 0x99d   :  { %v8495_v26 = vadd.f32 %v8494_v16, %v8415_v42  ;;  %v24973_v42 = vld [vmem:[#allocation37_spill] sm:$0xff] }
 0x99e   :  { %24964 = vst [vmem:[#allocation97_spill] sm:$0xff] %v20518_v62  ;;  %v8662_v49 = vadd.f32 %v8661_v52, %v8582_v0  ;;  %v8584_v56 = vmul.f32 %v20457_v54, %v8416_v51  ;;  %v8586_v27 = vmul.f32 %v20470_v36, %v8418_v28 }
 0x99f   :  { %v8496_v2 = vadd.f32 %v8495_v26, %v8416_v51  ;;  %v24975_v26 = vld [vmem:[#allocation54_spill] sm:$0xff] }
 0x9a1   :  { %v8139_v58 = vpop.f32.mrb[80].mxu1 }
 0x9a2   :  { %v20527_v23 = vadd.f32 %v8139_v58, %v20165_v32  ;;  %v11995_v63 = vpop.f32.mrb[81].mxu1  ;;  %v8417_v32 = vmul.f32 %v20461_v38, %v24970_v10  ;;  %v8663_v58 = vadd.f32 %v8662_v49, %v8583_v29 }
 0x9a3   :  { %v8142_v8 = vpop.f32.mrb[82].mxu1 }
 0x9a4   :  { %24967 = vst [vmem:[#allocation123_spill] sm:$0xff] %v20527_v23  ;;  %v20532_v19 = vadd.f32 %v8142_v8, %v20167_v53  ;;  %v11996_v41 = vpop.f32.mrb[83].mxu1  ;;  %v8664_v0 = vadd.f32 %v8663_v58, %v8584_v56  ;;  %v8585_v63 = vmul.f32 %v20461_v38, %v8417_v32  ;;  %v8497_v16 = vadd.f32 %v8496_v2, %v8417_v32  ;;  %v24976_v58 = vld [vmem:[#allocation38_spill] sm:$0xff] }
 0x9a5   :  { %v24974_v41 = vld [vmem:[#allocation51_spill] sm:$0xff] }
 0x9a6   :  { %24969 = vst [vmem:[#allocation121_spill] sm:$0xff] %v20532_v19  ;;  %v8419_v51 = vmul.f32 %v20476_v9, %v24974_v41  ;;  %v8665_v49 = vadd.f32 %v8664_v0, %v8585_v63  ;;  %v8498_v29 = vadd.f32 %v8497_v16, %v8418_v28  ;;  %v24979_v0 = vld [vmem:[#allocation40_spill] sm:$0xff] }
 0x9a8   :  { %v8587_v56 = vmul.f32 %v20476_v9, %v8419_v51  ;;  %v8499_v32 = vadd.f32 %v8498_v29, %v8419_v51  ;;  %v24981_v29 = vld [vmem:[#allocation61_spill] sm:$0xff] }
 0x9a9   :  { %v8147_v24 = vpop.f32.mrb[84].mxu1 }
 0x9aa   :  { %v20541_v48 = vadd.f32 %v8147_v24, %v20171_v7  ;;  %v11999_v53 = vpop.f32.mrb[85].mxu1  ;;  %v8420_v7 = vmul.f32 %v20485_v46, %v24975_v26  ;;  %v8666_v24 = vadd.f32 %v8665_v49, %v8586_v27  ;;  %v24980_v27 = vld [vmem:[#allocation58_spill] sm:$0xff] }
 0x9ab   :  { %v8150_v61 = vpop.f32.mrb[86].mxu1  ;;  %v8422_v49 = vmul.f32 %v20499_v59, %v24980_v27 }
 0x9ac   :  { %24972 = vst [vmem:[#allocation70_spill] sm:$0xff] %v20541_v48  ;;  %v20545_v8 = vadd.f32 %v8150_v61, %v24973_v42  ;;  %v12000_v52 = vpop.f32.mrb[87].mxu1  ;;  %v8588_v2 = vmul.f32 %v20485_v46, %v8420_v7  ;;  %v24978_v42 = vld [vmem:[#allocation55_spill] sm:$0xff]  ;;  %v8667_v16 = vadd.f32 %v8666_v24, %v8587_v56  ;;  %v8500_v41 = vadd.f32 %v8499_v32, %v8420_v7  ;;  %v24984_v56 = vld [vmem:[#allocation62_spill] sm:$0xff] }
 0x9ad   :  { %v8421_v52 = vmul.f32 %v20490_v47, %v24978_v42  ;;  %v8590_v51 = vmul.f32 %v20499_v59, %v8422_v49  ;;  %v8423_v46 = vmul.f32 %v20503_v34, %v24981_v29  ;;  %v24982_v42 = vld [vmem:[#allocation41_spill] sm:$0xff]  ;;  %v8424_v32 = vmul.f32 %v20512_v40, %v24984_v56  ;;  %v24987_v59 = vld [vmem:[#allocation63_spill] sm:$0xff] }
 0x9ae   :  { %v8668_v26 = vadd.f32 %v8667_v16, %v8588_v2  ;;  %v24985_v2 = vld [vmem:[#allocation44_spill] sm:$0xff] }
 0x9af   :  { %v8592_v29 = vmul.f32 %v20512_v40, %v8424_v32 }
 0x9b1   :  { %v8155_v10 = vpop.f32.mrb[88].mxu1 }
 0x9b2   :  { %v20554_v30 = vadd.f32 %v8155_v10, %v24976_v58  ;;  %v12003_v53 = vpop.f32.mrb[89].mxu1  ;;  %v8589_v10 = vmul.f32 %v20490_v47, %v8421_v52 }
 0x9b3   :  { %v8158_v61 = vpop.f32.mrb[90].mxu1  ;;  %v8501_v53 = vadd.f32 %v8500_v41, %v8421_v52  ;;  %v8591_v41 = vmul.f32 %v20503_v34, %v8423_v46 }
 0x9b4   :  { %24977 = vst [vmem:[#allocation57_spill] sm:$0xff] %v20554_v30  ;;  %v20560_v28 = vadd.f32 %v8158_v61, %v24979_v0  ;;  %v12004_v63 = vpop.f32.mrb[91].mxu1  ;;  %v8669_v24 = vadd.f32 %v8668_v26, %v8589_v10 }
 0x9b5   :  { %v8502_v7 = vadd.f32 %v8501_v53, %v8422_v49  ;;  %v24988_v49 = vld [vmem:[#allocation66_spill] sm:$0xff]  ;;  %v24989_v53 = vld [vmem:[#allocation45_spill] sm:$0xff] }
 0x9b6   :  { %v8670_v52 = vadd.f32 %v8669_v24, %v8590_v51  ;;  %v8426_v10 = vmul.f32 %v20527_v23, %v24988_v49  ;;  %v24994_v49 = vld [vmem:[#allocation72_spill] sm:$0xff] }
 0x9b7   :  { %v8503_v27 = vadd.f32 %v8502_v7, %v8423_v46  ;;  %v24991_v46 = vld [vmem:[#allocation47_spill] sm:$0xff] }
 0x9b9   :  { %v8163_v58 = vpop.f32.mrb[92].mxu1  ;;  %v8504_v26 = vadd.f32 %v8503_v27, %v8424_v32 }
 0x9ba   :  { %v20569_v9 = vadd.f32 %v8163_v58, %v24982_v42  ;;  %v12007_v61 = vpop.f32.mrb[93].mxu1  ;;  %v8425_v58 = vmul.f32 %v20518_v62, %v24987_v59  ;;  %v8594_v59 = vmul.f32 %v20527_v23, %v8426_v10 }
 0x9bb   :  { %v8166_v0 = vpop.f32.mrb[94].mxu1  ;;  %v8671_v61 = vadd.f32 %v8670_v52, %v8591_v41  ;;  %v24993_v52 = vld [vmem:[#allocation69_spill] sm:$0xff] }
 0x9bc   :  { %24983 = vst [vmem:[#allocation76_spill] sm:$0xff] %v20569_v9  ;;  %v20574_v63 = vadd.f32 %v8166_v0, %v24985_v2  ;;  %v12008_v16 = vpop.f32.mrb[95].mxu1  ;;  %v8593_v24 = vmul.f32 %v20518_v62, %v8425_v58  ;;  %v8505_v40 = vadd.f32 %v8504_v26, %v8425_v58  ;;  %v8427_v32 = vmul.f32 %v20532_v19, %v24993_v52 }
 0x9bd   :  { %v8672_v51 = vadd.f32 %v8671_v61, %v8592_v29  ;;  %v24995_v61 = vld [vmem:[#allocation49_spill] sm:$0xff] }
 0x9be   :  { %24986 = vst [vmem:[#allocation75_spill] sm:$0xff] %v20574_v63  ;;  %v8506_v27 = vadd.f32 %v8505_v40, %v8426_v10  ;;  %v8595_v29 = vmul.f32 %v20532_v19, %v8427_v32 }
 0x9bf   :  { %v8673_v41 = vadd.f32 %v8672_v51, %v8593_v24  ;;  %v24998_v51 = vld [vmem:[#allocation59_spill] sm:$0xff] }
 0x9c0   :  { %v8507_v58 = vadd.f32 %v8506_v27, %v8427_v32  ;;  %v25001_v27 = vld [vmem:[#allocation79_spill] sm:$0xff] }
 0x9c1   :  { %v8171_v42 = vpop.f32.mrb[96].mxu1 }
 0x9c2   :  { %v20583_v56 = vadd.f32 %v8171_v42, %v24989_v53  ;;  %v12011_v0 = vpop.f32.mrb[97].mxu1  ;;  %v8428_v42 = vmul.f32 %v20541_v48, %v24994_v49 }
 0x9c3   :  { %v8174_v2 = vpop.f32.mrb[98].mxu1  ;;  %v8674_v0 = vadd.f32 %v8673_v41, %v8594_v59  ;;  %v25000_v59 = vld [vmem:[#allocation78_spill] sm:$0xff] }
 0x9c4   :  { %24990 = vst [vmem:[#allocation82_spill] sm:$0xff] %v20583_v56  ;;  %v20587_v7 = vadd.f32 %v8174_v2, %v24991_v46  ;;  %v12012_v16 = vpop.f32.mrb[99].mxu1  ;;  %v8596_v26 = vmul.f32 %v20541_v48, %v8428_v42  ;;  %v8508_v49 = vadd.f32 %v8507_v58, %v8428_v42  ;;  %v8430_v41 = vmul.f32 %v20554_v30, %v25000_v59 }
 0x9c5   :  { %v24997_v16 = vld [vmem:[#allocation73_spill] sm:$0xff]  ;;  %v8675_v24 = vadd.f32 %v8674_v0, %v8595_v29  ;;  %v8431_v48 = vmul.f32 %v20560_v28, %v25001_v27  ;;  %v25004_v29 = vld [vmem:[#allocation80_spill] sm:$0xff] }
 0x9c6   :  { %24992 = vst [vmem:[#allocation77_spill] sm:$0xff] %v20587_v7  ;;  %v8429_v52 = vmul.f32 %v20545_v8, %v24997_v16  ;;  %v8598_v32 = vmul.f32 %v20554_v30, %v8430_v41  ;;  %v25002_v16 = vld [vmem:[#allocation139_spill] sm:$0xff]  ;;  %v8432_v58 = vmul.f32 %v20569_v9, %v25004_v29  ;;  %v25007_v30 = vld [vmem:[#allocation81_spill] sm:$0xff] }
 0x9c7   :  { %v8676_v19 = vadd.f32 %v8675_v24, %v8596_v26  ;;  %v25005_v26 = vld [vmem:[#allocation60_spill] sm:$0xff] }
 0x9c8   :  { %v8600_v27 = vmul.f32 %v20569_v9, %v8432_v58 }
 0x9c9   :  { %v8179_v53 = vpop.f32.mrb[100].mxu1 }
 0x9ca   :  { %v20596_v62 = vadd.f32 %v8179_v53, %v24995_v61  ;;  %v12015_v2 = vpop.f32.mrb[101].mxu1  ;;  %v8597_v53 = vmul.f32 %v20545_v8, %v8429_v52 }
 0x9cb   :  { %v8182_v46 = vpop.f32.mrb[102].mxu1  ;;  %v8509_v2 = vadd.f32 %v8508_v49, %v8429_v52  ;;  %v8599_v49 = vmul.f32 %v20560_v28, %v8431_v48 }
 0x9cc   :  { %24996 = vst [vmem:[#allocation104_spill] sm:$0xff] %v20596_v62  ;;  %v20602_v40 = vadd.f32 %v8182_v46, %v24998_v51  ;;  %v12016_v10 = vpop.f32.mrb[103].mxu1  ;;  %v8677_v0 = vadd.f32 %v8676_v19, %v8597_v53 }
 0x9cd   :  { %v8510_v42 = vadd.f32 %v8509_v2, %v8430_v41  ;;  %v25008_v41 = vld [vmem:[#allocation84_spill] sm:$0xff] }
 0x9ce   :  { %24999 = vst [vmem:[#allocation107_spill] sm:$0xff] %v20602_v40  ;;  %v8678_v52 = vadd.f32 %v8677_v0, %v8598_v32  ;;  %v8434_v53 = vmul.f32 %v20583_v56, %v25008_v41  ;;  %v25009_v2 = vld [vmem:[#allocation64_spill] sm:$0xff] }
 0x9cf   :  { %v8511_v59 = vadd.f32 %v8510_v42, %v8431_v48  ;;  %v25011_v48 = vld [vmem:[#allocation65_spill] sm:$0xff]  ;;  %v25014_v41 = vld [vmem:[#allocation88_spill] sm:$0xff] }
 0x9d1   :  { %v8187_v61 = vpop.f32.mrb[104].mxu1  ;;  %v8512_v19 = vadd.f32 %v8511_v59, %v8432_v58 }
 0x9d2   :  { %v20611_v23 = vadd.f32 %v8187_v61, %v25002_v16  ;;  %v12019_v46 = vpop.f32.mrb[105].mxu1  ;;  %v8433_v61 = vmul.f32 %v20574_v63, %v25007_v30  ;;  %v8602_v30 = vmul.f32 %v20583_v56, %v8434_v53 }
 0x9d3   :  { %v8190_v51 = vpop.f32.mrb[106].mxu1  ;;  %v8679_v46 = vadd.f32 %v8678_v52, %v8599_v49  ;;  %v25013_v52 = vld [vmem:[#allocation87_spill] sm:$0xff] }
 0x9d4   :  { %25003 = vst [vmem:[#allocation5_spill] sm:$0xff] %v20611_v23  ;;  %v20616_v10 = vadd.f32 %v8190_v51, %v25005_v26  ;;  %v12020_v24 = vpop.f32.mrb[107].mxu1  ;;  %v8601_v0 = vmul.f32 %v20574_v63, %v8433_v61  ;;  %v8513_v9 = vadd.f32 %v8512_v19, %v8433_v61  ;;  %v8435_v58 = vmul.f32 %v20587_v7, %v25013_v52 }
 0x9d5   :  { %v8680_v32 = vadd.f32 %v8679_v46, %v8600_v27  ;;  %v25015_v46 = vld [vmem:[#allocation67_spill] sm:$0xff] }
 0x9d6   :  { %25006 = vst [vmem:[#allocation4_spill] sm:$0xff] %v20616_v10  ;;  %v8514_v59 = vadd.f32 %v8513_v9, %v8434_v53  ;;  %v8603_v27 = vmul.f32 %v20587_v7, %v8435_v58 }
 0x9d7   :  { %v8681_v49 = vadd.f32 %v8680_v32, %v8601_v0  ;;  %v25018_v32 = vld [vmem:[#allocation68_spill] sm:$0xff] }
 0x9d8   :  { %v8515_v61 = vadd.f32 %v8514_v59, %v8435_v58  ;;  %v25021_v59 = vld [vmem:[#allocation95_spill] sm:$0xff] }
 0x9d9   :  { %v8195_v16 = vpop.f32.mrb[108].mxu1 }
 0x9da   :  { %v20625_v29 = vadd.f32 %v8195_v16, %v25009_v2  ;;  %v12023_v51 = vpop.f32.mrb[109].mxu1  ;;  %v8436_v16 = vmul.f32 %v20596_v62, %v25014_v41 }
 0x9db   :  { %v8198_v26 = vpop.f32.mrb[110].mxu1  ;;  %v8682_v51 = vadd.f32 %v8681_v49, %v8602_v30  ;;  %v25020_v30 = vld [vmem:[#allocation94_spill] sm:$0xff] }
 0x9dc   :  { %25010 = vst [vmem:[#allocation6_spill] sm:$0xff] %v20625_v29  ;;  %v20629_v42 = vadd.f32 %v8198_v26, %v25011_v48  ;;  %v12024_v24 = vpop.f32.mrb[111].mxu1  ;;  %v8604_v19 = vmul.f32 %v20596_v62, %v8436_v16  ;;  %v8516_v41 = vadd.f32 %v8515_v61, %v8436_v16  ;;  %v8438_v49 = vmul.f32 %v20611_v23, %v25020_v30 }
 0x9dd   :  { %v25017_v24 = vld [vmem:[#allocation89_spill] sm:$0xff]  ;;  %v8683_v0 = vadd.f32 %v8682_v51, %v8603_v27  ;;  %v8439_v62 = vmul.f32 %v20616_v10, %v25021_v59  ;;  %v25024_v27 = vld [vmem:[#allocation96_spill] sm:$0xff] }
 0x9de   :  { %25012 = vst [vmem:[#allocation7_spill] sm:$0xff] %v20629_v42  ;;  %v8437_v52 = vmul.f32 %v20602_v40, %v25017_v24  ;;  %v8606_v58 = vmul.f32 %v20611_v23, %v8438_v49  ;;  %v25022_v24 = vld [vmem:[#allocation71_spill] sm:$0xff]  ;;  %v8440_v61 = vmul.f32 %v20625_v29, %v25024_v27 }
 0x9df   :  { %v8684_v7 = vadd.f32 %v8683_v0, %v8604_v19  ;;  %v25025_v19 = vld [vmem:[#allocation74_spill] sm:$0xff]  ;;  %v25027_v23 = vld [vmem:[#allocation99_spill] sm:$0xff] }
 0x9e0   :  { %v8608_v59 = vmul.f32 %v20625_v29, %v8440_v61 }
 0x9e1   :  { %v8203_v2 = vpop.f32.mrb[112].mxu1 }
 0x9e2   :  { %v20638_v63 = vadd.f32 %v8203_v2, %v25015_v46  ;;  %v12027_v26 = vpop.f32.mrb[113].mxu1  ;;  %v8605_v2 = vmul.f32 %v20602_v40, %v8437_v52 }
 0x9e3   :  { %v8206_v48 = vpop.f32.mrb[114].mxu1  ;;  %v8517_v26 = vadd.f32 %v8516_v41, %v8437_v52  ;;  %v8607_v41 = vmul.f32 %v20616_v10, %v8439_v62 }
 0x9e4   :  { %25016 = vst [vmem:[#allocation8_spill] sm:$0xff] %v20638_v63  ;;  %v20644_v9 = vadd.f32 %v8206_v48, %v25018_v32  ;;  %v12028_v53 = vpop.f32.mrb[115].mxu1  ;;  %v8685_v51 = vadd.f32 %v8684_v7, %v8605_v2 }
 0x9e5   :  { %v8518_v16 = vadd.f32 %v8517_v26, %v8438_v49  ;;  %v25028_v49 = vld [vmem:[#allocation102_spill] sm:$0xff]  ;;  %v25029_v26 = vld [vmem:[#allocation83_spill] sm:$0xff] }
 0x9e6   :  { %25019 = vst [vmem:[#allocation9_spill] sm:$0xff] %v20644_v9  ;;  %v8686_v52 = vadd.f32 %v8685_v51, %v8606_v58  ;;  %v8442_v2 = vmul.f32 %v20638_v63, %v25028_v49  ;;  %v25034_v49 = vld [vmem:[#allocation106_spill] sm:$0xff] }
 0x9e7   :  { %v8519_v30 = vadd.f32 %v8518_v16, %v8439_v62  ;;  %v25031_v62 = vld [vmem:[#allocation86_spill] sm:$0xff] }
 0x9e9   :  { %v8211_v46 = vpop.f32.mrb[116].mxu1  ;;  %v8520_v7 = vadd.f32 %v8519_v30, %v8440_v61 }
 0x9ea   :  { %v20653_v56 = vadd.f32 %v8211_v46, %v25022_v24  ;;  %v12031_v48 = vpop.f32.mrb[117].mxu1  ;;  %v8441_v46 = vmul.f32 %v20629_v42, %v25027_v23  ;;  %v8610_v23 = vmul.f32 %v20638_v63, %v8442_v2 }
 0x9eb   :  { %v8214_v32 = vpop.f32.mrb[118].mxu1  ;;  %v8687_v48 = vadd.f32 %v8686_v52, %v8607_v41  ;;  %v25033_v52 = vld [vmem:[#allocation105_spill] sm:$0xff] }
 0x9ec   :  { %25023 = vst [vmem:[#allocation10_spill] sm:$0xff] %v20653_v56  ;;  %v20658_v53 = vadd.f32 %v8214_v32, %v25025_v19  ;;  %v12032_v0 = vpop.f32.mrb[119].mxu1  ;;  %v8609_v51 = vmul.f32 %v20629_v42, %v8441_v46  ;;  %v8521_v29 = vadd.f32 %v8520_v7, %v8441_v46  ;;  %v8443_v61 = vmul.f32 %v20644_v9, %v25033_v52 }
 0x9ed   :  { %v8688_v58 = vadd.f32 %v8687_v48, %v8608_v59  ;;  %v25035_v48 = vld [vmem:[#allocation98_spill] sm:$0xff] }
 0x9ee   :  { %25026 = vst [vmem:[#allocation11_spill] sm:$0xff] %v20658_v53  ;;  %v8522_v30 = vadd.f32 %v8521_v29, %v8442_v2  ;;  %v8611_v59 = vmul.f32 %v20644_v9, %v8443_v61 }
 0x9ef   :  { %v8689_v41 = vadd.f32 %v8688_v58, %v8609_v51  ;;  %v25038_v58 = vld [vmem:[#allocation100_spill] sm:$0xff] }
 0x9f0   :  { %v8523_v46 = vadd.f32 %v8522_v30, %v8443_v61  ;;  %v25041_v30 = vld [vmem:[#allocation112_spill] sm:$0xff] }
 0x9f1   :  { %v8219_v24 = vpop.f32.mrb[120].mxu1 }
 0x9f2   :  { %v20667_v27 = vadd.f32 %v8219_v24, %v25029_v26  ;;  %v12035_v32 = vpop.f32.mrb[121].mxu1  ;;  %v8444_v24 = vmul.f32 %v20653_v56, %v25034_v49 }
 0x9f3   :  { %v8222_v19 = vpop.f32.mrb[122].mxu1  ;;  %v8690_v32 = vadd.f32 %v8689_v41, %v8610_v23  ;;  %v25040_v23 = vld [vmem:[#allocation110_spill] sm:$0xff] }
 0x9f4   :  { %25030 = vst [vmem:[#allocation12_spill] sm:$0xff] %v20667_v27  ;;  %v20671_v16 = vadd.f32 %v8222_v19, %v25031_v62  ;;  %v12036_v0 = vpop.f32.mrb[123].mxu1  ;;  %v8612_v7 = vmul.f32 %v20653_v56, %v8444_v24  ;;  %v8524_v49 = vadd.f32 %v8523_v46, %v8444_v24  ;;  %v8446_v41 = vmul.f32 %v20667_v27, %v25040_v23 }
 0x9f5   :  { %v25037_v0 = vld [vmem:[#allocation109_spill] sm:$0xff]  ;;  %v8691_v51 = vadd.f32 %v8690_v32, %v8611_v59  ;;  %v25044_v59 = vld [vmem:[#allocation114_spill] sm:$0xff] }
 0x9f6   :  { %25032 = vst [vmem:[#allocation13_spill] sm:$0xff] %v20671_v16  ;;  %v8445_v52 = vmul.f32 %v20658_v53, %v25037_v0  ;;  %v8614_v61 = vmul.f32 %v20667_v27, %v8446_v41  ;;  %v8447_v56 = vmul.f32 %v20671_v16, %v25041_v30  ;;  %v25042_v0 = vld [vmem:[#allocation101_spill] sm:$0xff]  ;;  %v25047_v27 = vld [vmem:[#allocation115_spill] sm:$0xff] }
 0x9f7   :  { %v8692_v9 = vadd.f32 %v8691_v51, %v8612_v7  ;;  %v25045_v7 = vld [vmem:[#allocation52_spill] sm:$0xff] }
 0x9f9   :  { %v8227_v26 = vpop.f32.mrb[124].mxu1 }
 0x9fa   :  { %v20680_v42 = vadd.f32 %v8227_v26, %v25035_v48  ;;  %v12039_v19 = vpop.f32.mrb[125].mxu1  ;;  %v8613_v26 = vmul.f32 %v20658_v53, %v8445_v52 }
 0x9fb   :  { %v8230_v62 = vpop.f32.mrb[126].mxu1  ;;  %v8525_v19 = vadd.f32 %v8524_v49, %v8445_v52  ;;  %v8615_v49 = vmul.f32 %v20671_v16, %v8447_v56  ;;  %v25095_v16 = vld [vmem:[#allocation3_spill] sm:$0xff] }
 0x9fc   :  { %25036 = vst [vmem:[#allocation14_spill] sm:$0xff] %v20680_v42  ;;  %v20686_v29 = vadd.f32 %v8230_v62, %v25038_v58  ;;  %v12040_v2 = vpop.f32.mrb[127].mxu1  ;;  %v8693_v32 = vadd.f32 %v8692_v9, %v8613_v26  ;;  %v8448_v46 = vmul.f32 %v20680_v42, %v25044_v59 }
 0x9fd   :  { %v8526_v24 = vadd.f32 %v8525_v19, %v8446_v41  ;;  %v25048_v41 = vld [vmem:[#allocation116_spill] sm:$0xff]  ;;  %v25049_v19 = vld [vmem:[#allocation53_spill] sm:$0xff] }
 0x9fe   :  { %25039 = vst [vmem:[#allocation15_spill] sm:$0xff] %v20686_v29  ;;  %v8694_v52 = vadd.f32 %v8693_v32, %v8614_v61  ;;  %v8616_v30 = vmul.f32 %v20680_v42, %v8448_v46 }
 0x9ff   :  { %v8527_v23 = vadd.f32 %v8526_v24, %v8447_v56  ;;  %v25051_v56 = vld [vmem:[#allocation56_spill] sm:$0xff] }
 0xa01   :  { %v8235_v48 = vpop.f32.mrb[128].mxu1  ;;  %v8528_v9 = vadd.f32 %v8527_v23, %v8448_v46 }
 0xa02   :  { %v20695_v63 = vadd.f32 %v8235_v48, %v25042_v0  ;;  %v12043_v62 = vpop.f32.mrb[129].mxu1  ;;  %v8449_v48 = vmul.f32 %v20686_v29, %v25047_v27 }
 0xa03   :  { %v8238_v58 = vpop.f32.mrb[130].mxu1  ;;  %v8695_v62 = vadd.f32 %v8694_v52, %v8615_v49  ;;  %v25053_v52 = vld [vmem:[#allocation119_spill] sm:$0xff] }
 0xa04   :  { %25043 = vst [vmem:[#allocation16_spill] sm:$0xff] %v20695_v63  ;;  %v20700_v2 = vadd.f32 %v8238_v58, %v25045_v7  ;;  %v12044_v51 = vpop.f32.mrb[131].mxu1  ;;  %v8450_v26 = vmul.f32 %v20695_v63, %v25048_v41  ;;  %v8617_v32 = vmul.f32 %v20686_v29, %v8449_v48  ;;  %v8529_v42 = vadd.f32 %v8528_v9, %v8449_v48  ;;  %v25054_v41 = vld [vmem:[#allocation122_spill] sm:$0xff] }
 0xa05   :  { %v8696_v61 = vadd.f32 %v8695_v62, %v8616_v30  ;;  %v25055_v62 = vld [vmem:[#allocation111_spill] sm:$0xff] }
 0xa06   :  { %25046 = vst [vmem:[#allocation17_spill] sm:$0xff] %v20700_v2  ;;  %v8618_v27 = vmul.f32 %v20695_v63, %v8450_v26  ;;  %v8451_v46 = vmul.f32 %v20700_v2, %v25053_v52  ;;  %v8530_v23 = vadd.f32 %v8529_v42, %v8450_v26 }
 0xa07   :  { %v8697_v49 = vadd.f32 %v8696_v61, %v8617_v32  ;;  %v25058_v61 = vld [vmem:[#allocation113_spill] sm:$0xff] }
 0xa08   :  { %v8619_v30 = vmul.f32 %v20700_v2, %v8451_v46  ;;  %v8531_v48 = vadd.f32 %v8530_v23, %v8451_v46  ;;  %v25061_v23 = vld [vmem:[#allocation126_spill] sm:$0xff] }
 0xa09   :  { %v8243_v0 = vpop.f32.mrb[132].mxu1 }
 0xa0a   :  { %v20709_v59 = vadd.f32 %v8243_v0, %v25049_v19  ;;  %v12047_v58 = vpop.f32.mrb[133].mxu1 }
 0xa0b   :  { %v8246_v7 = vpop.f32.mrb[134].mxu1  ;;  %v8698_v58 = vadd.f32 %v8697_v49, %v8618_v27  ;;  %v25060_v27 = vld [vmem:[#allocation125_spill] sm:$0xff] }
 0xa0c   :  { %25050 = vst [vmem:[#allocation18_spill] sm:$0xff] %v20709_v59  ;;  %v20713_v24 = vadd.f32 %v8246_v7, %v25051_v56  ;;  %v12048_v51 = vpop.f32.mrb[135].mxu1  ;;  %v8452_v0 = vmul.f32 %v20709_v59, %v25054_v41 }
 0xa0d   :  { %v25057_v51 = vld [vmem:[#allocation124_spill] sm:$0xff]  ;;  %v8699_v32 = vadd.f32 %v8698_v58, %v8619_v30  ;;  %v25064_v30 = vld [vmem:[#allocation127_spill] sm:$0xff] }
 0xa0e   :  { %25052 = vst [vmem:[#allocation19_spill] sm:$0xff] %v20713_v24  ;;  %v8620_v9 = vmul.f32 %v20709_v59, %v8452_v0  ;;  %v8453_v52 = vmul.f32 %v20713_v24, %v25057_v51  ;;  %v8532_v41 = vadd.f32 %v8531_v48, %v8452_v0  ;;  %v25062_v51 = vld [vmem:[#allocation117_spill] sm:$0xff] }
 0xa10   :  { %v8700_v2 = vadd.f32 %v8699_v32, %v8620_v9  ;;  %v25065_v9 = vld [vmem:[#allocation118_spill] sm:$0xff] }
 0xa11   :  { %v8251_v19 = vpop.f32.mrb[136].mxu1 }
 0xa12   :  { %v20722_v29 = vadd.f32 %v8251_v19, %v25055_v62  ;;  %v12051_v7 = vpop.f32.mrb[137].mxu1  ;;  %v8621_v19 = vmul.f32 %v20713_v24, %v8453_v52 }
 0xa13   :  { %v8254_v56 = vpop.f32.mrb[138].mxu1  ;;  %v8533_v7 = vadd.f32 %v8532_v41, %v8453_v52 }
 0xa14   :  { %25056 = vst [vmem:[#allocation20_spill] sm:$0xff] %v20722_v29  ;;  %v20728_v42 = vadd.f32 %v8254_v56, %v25058_v61  ;;  %v12052_v26 = vpop.f32.mrb[139].mxu1  ;;  %v8454_v49 = vmul.f32 %v20722_v29, %v25060_v27  ;;  %v8701_v58 = vadd.f32 %v8700_v2, %v8621_v19 }
 0xa15   :  { %v25169_v10 = vld [vmem:[#allocation19_spill] sm:$0xff] }
 0xa16   :  { %25059 = vst [vmem:[#allocation21_spill] sm:$0xff] %v20728_v42  ;;  %v8622_v46 = vmul.f32 %v20722_v29, %v8454_v49  ;;  %v8455_v59 = vmul.f32 %v20728_v42, %v25061_v23  ;;  %v8534_v0 = vadd.f32 %v8533_v7, %v8454_v49  ;;  %v25067_v29 = vld [vmem:[#allocation128_spill] sm:$0xff] }
 0xa17   :  { %v25068_v49 = vld [vmem:[#allocation120_spill] sm:$0xff] }
 0xa18   :  { %v8702_v52 = vadd.f32 %v8701_v58, %v8622_v46  ;;  %v8623_v41 = vmul.f32 %v20728_v42, %v8455_v59  ;;  %v8535_v27 = vadd.f32 %v8534_v0, %v8455_v59  ;;  %v25070_v46 = vld [vmem:[#allocation129_spill] sm:$0xff]  ;;  %v25071_v59 = vld [vmem:[#allocation103_spill] sm:$0xff] }
 0xa19   :  { %v8259_v62 = vpop.f32.mrb[140].mxu1 }
 0xa1a   :  { %v20737_v63 = vadd.f32 %v8259_v62, %v25062_v51  ;;  %v12055_v56 = vpop.f32.mrb[141].mxu1 }
 0xa1b   :  { %v8262_v61 = vpop.f32.mrb[142].mxu1  ;;  %v8703_v56 = vadd.f32 %v8702_v52, %v8623_v41  ;;  %v25073_v52 = vld [vmem:[#allocation130_spill] sm:$0xff] }
 0xa1c   :  { %25063 = vst [vmem:[#allocation22_spill] sm:$0xff] %v20737_v63  ;;  %v8456_v48 = vmul.f32 %v20737_v63, %v25064_v30  ;;  %v20742_v26 = vadd.f32 %v8262_v61, %v25065_v9  ;;  %v12056_v32 = vpop.f32.mrb[143].mxu1 }
 0xa1e   :  { %25066 = vst [vmem:[#allocation23_spill] sm:$0xff] %v20742_v26  ;;  %v8624_v23 = vmul.f32 %v20737_v63, %v8456_v48  ;;  %v8457_v62 = vmul.f32 %v20742_v26, %v25067_v29  ;;  %v8536_v2 = vadd.f32 %v8535_v27, %v8456_v48 }
 0xa20   :  { %v8704_v61 = vadd.f32 %v8703_v56, %v8624_v23  ;;  %v8625_v9 = vmul.f32 %v20742_v26, %v8457_v62  ;;  %v8537_v63 = vadd.f32 %v8536_v2, %v8457_v62  ;;  %v25074_v56 = vld [vmem:[#allocation108_spill] sm:$0xff]  ;;  %v25077_v2 = vld [vmem:[#allocation138_spill] sm:$0xff] }
 0xa21   :  { %v8267_v51 = vpop.f32.mrb[144].mxu1 }
 0xa22   :  { %v20749_v19 = vadd.f32 %v8267_v51, %v25068_v49  ;;  %v12059_v7 = vpop.f32.mrb[145].mxu1  ;;  %v8705_v41 = vadd.f32 %v8704_v61, %v8625_v9  ;;  %v25079_v9 = vld [vmem:[#allocation132_spill] sm:$0xff] }
 0xa23   :  { %v8270_v30 = vpop.f32.mrb[146].mxu1 }
 0xa24   :  { %25069 = vst [vmem:[#allocation24_spill] sm:$0xff] %v20749_v19  ;;  %v8458_v58 = vmul.f32 %v20749_v19, %v25070_v46  ;;  %v20755_v0 = vadd.f32 %v8270_v30, %v25071_v59  ;;  %v12060_v32 = vpop.f32.mrb[147].mxu1  ;;  %v25076_v59 = vld [vmem:[#allocation131_spill] sm:$0xff] }
 0xa26   :  { %25072 = vst [vmem:[#allocation25_spill] sm:$0xff] %v20755_v0  ;;  %v8626_v29 = vmul.f32 %v20749_v19, %v8458_v58  ;;  %v8459_v48 = vmul.f32 %v20755_v0, %v25073_v52  ;;  %v8538_v27 = vadd.f32 %v8537_v63, %v8458_v58 }
 0xa28   :  { %v8706_v49 = vadd.f32 %v8705_v41, %v8626_v29  ;;  %v8627_v23 = vmul.f32 %v20755_v0, %v8459_v48  ;;  %v8539_v30 = vadd.f32 %v8538_v27, %v8459_v48  ;;  %v25080_v27 = vld [vmem:[#allocation26_spill] sm:$0xff] }
 0xa29   :  { %v8275_v51 = vpop.f32.mrb[148].mxu1 }
 0xa2a   :  { %v20762_v7 = vadd.f32 %v8275_v51, %v25074_v56  ;;  %v12063_v46 = vpop.f32.mrb[149].mxu1  ;;  %v8707_v52 = vadd.f32 %v8706_v49, %v8627_v23  ;;  %v25083_v49 = vld [vmem:[#allocation27_spill] sm:$0xff] }
 0xa2b   :  { %v8278_v26 = vpop.f32.mrb[150].mxu1  ;;  %v25174_v40 = vld [vmem:[#allocation24_spill] sm:$0xff] }
 0xa2c   :  { %25075 = vst [vmem:[#allocation30_spill] sm:$0xff] %v20762_v7  ;;  %v8460_v62 = vmul.f32 %v20762_v7, %v25076_v59  ;;  %v20767_v32 = vadd.f32 %v8278_v26, %v25077_v2  ;;  %v12064_v19 = vpop.f32.mrb[151].mxu1  ;;  %v25082_v2 = vld [vmem:[#allocation133_spill] sm:$0xff] }
 0xa2e   :  { %25078 = vst [vmem:[#allocation31_spill] sm:$0xff] %v20767_v32  ;;  %v8540_v61 = vadd.f32 %v8539_v30, %v8460_v62  ;;  %v8628_v63 = vmul.f32 %v20762_v7, %v8460_v62  ;;  %v8461_v58 = vmul.f32 %v20767_v32, %v25079_v9 }
 0xa30   :  { %v8708_v29 = vadd.f32 %v8707_v52, %v8628_v63  ;;  %v8541_v41 = vadd.f32 %v8540_v61, %v8461_v58  ;;  %v8629_v51 = vmul.f32 %v20767_v32, %v8461_v58  ;;  %v25085_v61 = vld [vmem:[#allocation134_spill] sm:$0xff]  ;;  %v25175_v32 = vld [vmem:[#allocation25_spill] sm:$0xff] }
 0xa31   :  { %v8283_v56 = vpop.f32.mrb[152].mxu1 }
 0xa32   :  { %v8709_v48 = vadd.f32 %v8708_v29, %v8629_v51  ;;  %v20774_v46 = vadd.f32 %v8283_v56, %v25080_v27  ;;  %v12067_v59 = vpop.f32.mrb[153].mxu1  ;;  %v25086_v27 = vld [vmem:[#allocation28_spill] sm:$0xff] }
 0xa33   :  { %v8286_v26 = vpop.f32.mrb[154].mxu1 }
 0xa34   :  { %25081 = vst [vmem:[#allocation32_spill] sm:$0xff] %v20774_v46  ;;  %v8462_v19 = vmul.f32 %v20774_v46, %v25082_v2  ;;  %v20779_v23 = vadd.f32 %v8286_v26, %v25083_v49  ;;  %v12068_v30 = vpop.f32.mrb[155].mxu1  ;;  %v25088_v26 = vld [vmem:[#allocation135_spill] sm:$0xff] }
 0xa36   :  { %25084 = vst [vmem:[#allocation34_spill] sm:$0xff] %v20779_v23  ;;  %v8542_v62 = vadd.f32 %v8541_v41, %v8462_v19  ;;  %v8630_v52 = vmul.f32 %v20774_v46, %v8462_v19  ;;  %v8463_v63 = vmul.f32 %v20779_v23, %v25085_v61  ;;  %v25089_v41 = vld [vmem:[#allocation29_spill] sm:$0xff] }
 0xa38   :  { %v8710_v9 = vadd.f32 %v8709_v48, %v8630_v52  ;;  %v8543_v58 = vadd.f32 %v8542_v62, %v8463_v63  ;;  %v8631_v29 = vmul.f32 %v20779_v23, %v8463_v63  ;;  %v25091_v62 = vld [vmem:[#allocation136_spill] sm:$0xff]  ;;  %v25172_v23 = vld [vmem:[#allocation22_spill] sm:$0xff] }
 0xa39   :  { %v8291_v51 = vpop.f32.mrb[156].mxu1 }
 0xa3a   :  { %v8711_v56 = vadd.f32 %v8710_v9, %v8631_v29  ;;  %v20786_v59 = vadd.f32 %v8291_v51, %v25086_v27  ;;  %v12071_v2 = vpop.f32.mrb[157].mxu1  ;;  %v25092_v27 = vld [vmem:[#allocation33_spill] sm:$0xff] }
 0xa3b   :  { %v8294_v0 = vpop.f32.mrb[158].mxu1 }
 0xa3c   :  { %25087 = vst [vmem:[#allocation36_spill] sm:$0xff] %v20786_v59  ;;  %v8464_v49 = vmul.f32 %v20786_v59, %v25088_v26  ;;  %v20791_v30 = vadd.f32 %v8294_v0, %v25089_v41  ;;  %v12072_v19 = vpop.f32.mrb[159].mxu1  ;;  %v25094_v0 = vld [vmem:[#allocation137_spill] sm:$0xff] }
 0xa3e   :  { %25090 = vst [vmem:[#allocation39_spill] sm:$0xff] %v20791_v30  ;;  %v8544_v42 = vadd.f32 %v8543_v58, %v8464_v49  ;;  %v8632_v48 = vmul.f32 %v20786_v59, %v8464_v49  ;;  %v8465_v52 = vmul.f32 %v20791_v30, %v25091_v62  ;;  %v8890_v62 = vsub.s32 2, %v25095_v16  ;;  %v25171_v59 = vld [vmem:[#allocation21_spill] sm:$0xff] }
 0xa40   :  { %v8712_v61 = vadd.f32 %v8711_v56, %v8632_v48  ;;  %v8545_v63 = vadd.f32 %v8544_v42, %v8465_v52  ;;  %v8633_v9 = vmul.f32 %v20791_v30, %v8465_v52  ;;  %v8975_v42 = vsub.s32 3, %v25095_v16  ;;  %v20808_v52 = vld [vmem:[%s23139_s0] sm:$0xff]   ;;  %v20823_v16 = vld [vmem:[%s23139_s0 + $0x18] sm:$0xff]  }
 0xa41   :  { %v8299_v29 = vpop.f32.mrb[160].mxu1  ;;  %25096 = vst [vmem:[#allocation43_spill] sm:$0xff] %v20808_v52  ;;  %25099 = vst [vmem:[#allocation50_spill] sm:$0xff] %v20823_v16 }
 0xa42   :  { %v8713_v51 = vadd.f32 %v8712_v61, %v8633_v9  ;;  %v20798_v2 = vadd.f32 %v8299_v29, %v25092_v27  ;;  %v12075_v26 = vpop.f32.mrb[161].mxu1  ;;  %v20818_v9 = vld [vmem:[%s23139_s0 + $0x10] sm:$0xff]   ;;  %v13441_v29 = vld [vmem:[%s23141_s3] sm:$0xff] }
 0xa43   :  { %v8302_v24 = vpop.f32.mrb[162].mxu1  ;;  %25098 = vst [vmem:[#allocation48_spill] sm:$0xff] %v20818_v9  ;;  %v20830_v27 = vrot.slane %v13441_v29, %v8975_v42  ;;  %v20848_v42 = vld [vmem:[%s23139_s0 + $0x30] sm:$0xff]  }
 0xa44   :  { %25093 = vst [vmem:[#allocation42_spill] sm:$0xff] %v20798_v2  ;;  %v8466_v41 = vmul.f32 %v20798_v2, %v25094_v0  ;;  %v12076_v58 = vpop.f32.mrb[163].mxu1  ;;  %v20813_v24 = vld [vmem:[%s23139_s0 + $0x8] sm:$0xff]   ;;  %v20836_v0 = vld [vmem:[%s23139_s0 + $0x20] sm:$0xff]   ;;  %25104 = vst [vmem:[#allocation55_spill] sm:$0xff] %v20848_v42 }
 0xa45   :  { %25097 = vst [vmem:[#allocation46_spill] sm:$0xff] %v20813_v24  ;;  %25101 = vst [vmem:[#allocation51_spill] sm:$0xff] %v20830_v27  ;;  %v20878_v27 = vld [vmem:[%s23139_s0 + $0x50] sm:$0xff]   ;;  %v20899_v24 = vld [vmem:[%s23139_s0 + $0x68] sm:$0xff]  }
 0xa46   :  { %v8546_v19 = vadd.f32 %v8545_v63, %v8466_v41  ;;  %v8634_v49 = vmul.f32 %v20798_v2, %v8466_v41  ;;  %25102 = vst [vmem:[#allocation54_spill] sm:$0xff] %v20836_v0  ;;  %25108 = vst [vmem:[#allocation41_spill] sm:$0xff] %v20878_v27  ;;  %v20920_v0 = vld [vmem:[%s23139_s0 + $0x80] sm:$0xff]  }
 0xa47   :  { %25111 = vst [vmem:[#allocation63_spill] sm:$0xff] %v20899_v24  ;;  %25114 = vst [vmem:[#allocation47_spill] sm:$0xff] %v20920_v0  ;;  %v21041_v24 = vld [vmem:[%s23139_s0 + $0x100] sm:$0xff]   ;;  %v21055_v0 = vld [vmem:[%s23139_s0 + $0x110] sm:$0xff]  }
 0xa48   :  { %v8547_v56 = vrot.slane %v8546_v19, 4  ;;  %v8714_v48 = vadd.f32 %v8713_v51, %v8634_v49  ;;  %v20828_v51 = vrot.slane %v13441_v29, %v8890_v62  ;;  %v20843_v62 = vld [vmem:[%s23139_s0 + $0x28] sm:$0xff]   ;;  %v20857_v49 = vld [vmem:[%s23139_s0 + $0x38] sm:$0xff]   ;;  %25130 = vst [vmem:[#allocation88_spill] sm:$0xff] %v21041_v24  ;;  %25132 = vst [vmem:[#allocation89_spill] sm:$0xff] %v21055_v0 }
 0xa49   :  { %25103 = vst [vmem:[#allocation38_spill] sm:$0xff] %v20843_v62  ;;  %25105 = vst [vmem:[#allocation40_spill] sm:$0xff] %v20857_v49  ;;  %v20929_v29 = vld [vmem:[%s23139_s0 + $0x88] sm:$0xff]   ;;  %v20943_v49 = vld [vmem:[%s23139_s0 + $0x98] sm:$0xff]  }
 0xa4a   :  { %v8548_v61 = vadd.f32 %v8547_v56, %v8546_v19  ;;  %v8715_v63 = vrot.slane %v8714_v48, 4  ;;  %25100 = vst [vmem:[#allocation37_spill] sm:$0xff] %v20828_v51  ;;  %v20864_v56 = vld [vmem:[%s23139_s0 + $0x40] sm:$0xff]   ;;  %25115 = vst [vmem:[#allocation69_spill] sm:$0xff] %v20929_v29  ;;  %v20990_v29 = vld [vmem:[%s23139_s0 + $0xc8] sm:$0xff]  }
 0xa4b   :  { %25106 = vst [vmem:[#allocation58_spill] sm:$0xff] %v20864_v56  ;;  %25117 = vst [vmem:[#allocation49_spill] sm:$0xff] %v20943_v49  ;;  %v21004_v49 = vld [vmem:[%s23139_s0 + $0xd8] sm:$0xff]   ;;  %v25145_v27 = vld [vmem:[#allocation92_spill] sm:$0xff] }
 0xa4c   :  { %v8549_v41 = vrot.slane %v8548_v61, 2  ;;  %v8716_v58 = vadd.f32 %v8715_v63, %v8714_v48  ;;  %v20869_v63 = vld [vmem:[%s23139_s0 + $0x48] sm:$0xff]   ;;  %v20885_v48 = vld [vmem:[%s23139_s0 + $0x58] sm:$0xff]   ;;  %25123 = vst [vmem:[#allocation80_spill] sm:$0xff] %v20990_v29  ;;  %25125 = vst [vmem:[#allocation81_spill] sm:$0xff] %v21004_v49 }
 0xa4d   :  { %25107 = vst [vmem:[#allocation61_spill] sm:$0xff] %v20869_v63  ;;  %25109 = vst [vmem:[#allocation62_spill] sm:$0xff] %v20885_v48  ;;  %v21046_v29 = vld [vmem:[%s23139_s0 + $0x108] sm:$0xff]   ;;  %v21060_v49 = vld [vmem:[%s23139_s0 + $0x118] sm:$0xff]  }
 0xa4e   :  { %v8550_v19 = vadd.f32 %v8549_v41, %v8548_v61  ;;  %v8717_v26 = vrot.slane %v8716_v58, 2  ;;  %v20890_v41 = vld [vmem:[%s23139_s0 + $0x60] sm:$0xff]   ;;  %v20906_v61 = vld [vmem:[%s23139_s0 + $0x70] sm:$0xff]   ;;  %25131 = vst [vmem:[#allocation67_spill] sm:$0xff] %v21046_v29  ;;  %25133 = vst [vmem:[#allocation68_spill] sm:$0xff] %v21060_v49 }
 0xa4f   :  { %25110 = vst [vmem:[#allocation44_spill] sm:$0xff] %v20890_v41  ;;  %25112 = vst [vmem:[#allocation66_spill] sm:$0xff] %v20906_v61  ;;  %v20985_v41 = vld [vmem:[%s23139_s0 + $0xc0] sm:$0xff]   ;;  %v20999_v61 = vld [vmem:[%s23139_s0 + $0xd0] sm:$0xff]  }
 0xa50   :  { %v8551_v52 = vrot.slane %v8550_v19, 1  ;;  %v8718_v16 = vadd.f32 %v8717_v26, %v8716_v58  ;;  %v20911_v58 = vld [vmem:[%s23139_s0 + $0x78] sm:$0xff]   ;;  %25122 = vst [vmem:[#allocation139_spill] sm:$0xff] %v20985_v41  ;;  %25124 = vst [vmem:[#allocation60_spill] sm:$0xff] %v20999_v61  ;;  %v25144_v48 = vld [vmem:[#allocation93_spill] sm:$0xff] }
 0xa51   :  { %25113 = vst [vmem:[#allocation45_spill] sm:$0xff] %v20911_v58  ;;  %v20975_v58 = vld [vmem:[%s23139_s0 + $0xb8] sm:$0xff]   ;;  %v25146_v41 = vld [vmem:[#allocation97_spill] sm:$0xff]  ;;  %v25149_v24 = vld [vmem:[#allocation70_spill] sm:$0xff] }
 0xa52   :  { %v8552_v9 = vadd.f32 %v8551_v52, %v8550_v19  ;;  %v8719_v42 = vrot.slane %v8718_v16, 1  ;;  %v20934_v19 = vld [vmem:[%s23139_s0 + $0x90] sm:$0xff]   ;;  %25121 = vst [vmem:[#allocation79_spill] sm:$0xff] %v20975_v58  ;;  %v21032_v58 = vld [vmem:[%s23139_s0 + $0xf8] sm:$0xff]   ;;  %v25148_v29 = vld [vmem:[#allocation121_spill] sm:$0xff] }
 0xa53   :  { %25116 = vst [vmem:[#allocation72_spill] sm:$0xff] %v20934_v19  ;;  %v20970_v52 = vld [vmem:[%s23139_s0 + $0xb0] sm:$0xff]   ;;  %25129 = vst [vmem:[#allocation87_spill] sm:$0xff] %v21032_v58  ;;  %v21069_v19 = vld [vmem:[%s23139_s0 + $0x120] sm:$0xff]  }
 0xa54   :  { %v20922_v62 = vmul.f32 0.001953125, %v8552_v9  ;;  %v8720_v63 = vadd.f32 %v8719_v42, %v8718_v16  ;;  %v20956_v16 = vld [vmem:[%s23139_s0 + $0xa0] sm:$0xff]   ;;  %v20961_v42 = vld [vmem:[%s23139_s0 + $0xa8] sm:$0xff]   ;;  %25120 = vst [vmem:[#allocation78_spill] sm:$0xff] %v20970_v52  ;;  %25134 = vst [vmem:[#allocation94_spill] sm:$0xff] %v21069_v19 }
 0xa55   :  { %25118 = vst [vmem:[#allocation73_spill] sm:$0xff] %v20956_v16  ;;  %25119 = vst [vmem:[#allocation59_spill] sm:$0xff] %v20961_v42  ;;  %v21013_v9 = vld [vmem:[%s23139_s0 + $0xe0] sm:$0xff]   ;;  %v21018_v42 = vld [vmem:[%s23139_s0 + $0xe8] sm:$0xff]  }
 0xa56   :  { %v20945_v56 = vmul.f32 0.001953125, %v8720_v63  ;;  %v20949_v26 = vmul.f32 %v20922_v62, %v20922_v62  ;;  %25126 = vst [vmem:[#allocation84_spill] sm:$0xff] %v21013_v9  ;;  %25127 = vst [vmem:[#allocation64_spill] sm:$0xff] %v21018_v42  ;;  %v21027_v63 = vld [vmem:[%s23139_s0 + $0xf0] sm:$0xff]   ;;  %v21074_v42 = vld [vmem:[%s23139_s0 + $0x128] sm:$0xff]   ;;  %v25176_v7 = vsub.f32 %v20292_v31, %v20922_v62  ;;  %v25178_v51 = vsub.f32 %v20300_v6, %v20922_v62 }
 0xa57   :  { %25128 = vst [vmem:[#allocation65_spill] sm:$0xff] %v21027_v63  ;;  %25135 = vst [vmem:[#allocation95_spill] sm:$0xff] %v21074_v42  ;;  %v21083_v16 = vld [vmem:[%s23139_s0 + $0x130] sm:$0xff]   ;;  %v21088_v58 = vld [vmem:[%s23139_s0 + $0x138] sm:$0xff]   ;;  %v25179_v2 = vsub.f32 %v20303_v43, %v20922_v62 }
 0xa58   :  { %25136 = vst [vmem:[#allocation71_spill] sm:$0xff] %v21083_v16  ;;  %25137 = vst [vmem:[#allocation96_spill] sm:$0xff] %v21088_v58  ;;  %v21097_v52 = vld [vmem:[%s23139_s0 + $0x140] sm:$0xf]  ;;  %v25139_v0 = vld [vmem:[#allocation35_spill] sm:$0xff]  ;;  %v25141_v61 = vsub.f32 %v20945_v56, %v20949_v26 }
 0xa59   :  { %25138 = vst [vmem:[#allocation74_spill] sm:$0xff] %v21097_v52  ;;  %v25140_v9 = vld [vmem:[#allocation85_spill] sm:$0xff]  ;;  %v25142_v56 = vld [vmem:[#allocation91_spill] sm:$0xff]  ;;  %v25143_v26 = vld [vmem:[#allocation90_spill] sm:$0xff]  ;;  %v25177_v42 = vsub.f32 %v25139_v0, %v20922_v62 }
 0xa5a   :  { %v8805_v49 = vadd.f32 1e-05, %v25141_v61  ;;  %v25150_v63 = vld [vmem:[#allocation57_spill] sm:$0xff]  ;;  %v25151_v16 = vld [vmem:[#allocation76_spill] sm:$0xff]  ;;  %v25152_v61 = vld [vmem:[#allocation75_spill] sm:$0xff] }
 0xa5b   :  { %v25165_v19 = vld [vmem:[#allocation15_spill] sm:$0xff] }
 0xa5c   :  { %13431 = vrsqrt.f32 %v8805_v49  ;;  %v25147_v49 = vld [vmem:[#allocation123_spill] sm:$0xff] }
 0xa5d   :  { %v25173_v52 = vld [vmem:[#allocation23_spill] sm:$0xff] }
 0xa66   :  { %v21265_v58 = vpop.eup %13431 }
 0xa67   :  { %v21279_v30 = vmul.f32 %v21265_v58, %v25176_v7  ;;  %v21285_v46 = vmul.f32 %v21265_v58, %v25177_v42  ;;  %v21291_v53 = vmul.f32 %v21265_v58, %v25178_v51  ;;  %v21297_v31 = vmul.f32 %v21265_v58, %v25179_v2 }
 0xa68   :  { %v25180_v7 = vsub.f32 %v25140_v9, %v20922_v62  ;;  %v25181_v42 = vsub.f32 %v20311_v35, %v20922_v62  ;;  %v25182_v51 = vsub.f32 %v20316_v17, %v20922_v62  ;;  %v25183_v2 = vsub.f32 %v20319_v60, %v20922_v62 }
 0xa6a   :  { %v21303_v0 = vmul.f32 %v21265_v58, %v25180_v7  ;;  %v21309_v6 = vmul.f32 %v21265_v58, %v25181_v42  ;;  %v21315_v43 = vmul.f32 %v21265_v58, %v25182_v51  ;;  %v21321_v9 = vmul.f32 %v21265_v58, %v25183_v2 }
 0xa6b   :  { %v25184_v7 = vsub.f32 %v20324_v18, %v20922_v62  ;;  %v25185_v42 = vsub.f32 %v20327_v21, %v20922_v62  ;;  %v25186_v51 = vsub.f32 %v20332_v1, %v20922_v62  ;;  %v25187_v2 = vsub.f32 %v20335_v25, %v20922_v62 }
 0xa6d   :  { %v21327_v35 = vmul.f32 %v21265_v58, %v25184_v7  ;;  %v21333_v17 = vmul.f32 %v21265_v58, %v25185_v42  ;;  %v21339_v60 = vmul.f32 %v21265_v58, %v25186_v51  ;;  %v21345_v18 = vmul.f32 %v21265_v58, %v25187_v2 }
 0xa6e   :  { %v25188_v7 = vsub.f32 %v20340_v14, %v20922_v62  ;;  %v25189_v42 = vsub.f32 %v20343_v13, %v20922_v62  ;;  %v25190_v51 = vsub.f32 %v20348_v44, %v20922_v62  ;;  %v25191_v2 = vsub.f32 %v20351_v11, %v20922_v62 }
 0xa70   :  { %v21351_v21 = vmul.f32 %v21265_v58, %v25188_v7  ;;  %v21357_v1 = vmul.f32 %v21265_v58, %v25189_v42  ;;  %v21363_v25 = vmul.f32 %v21265_v58, %v25190_v51  ;;  %v21369_v14 = vmul.f32 %v21265_v58, %v25191_v2 }
 0xa71   :  { %v25192_v7 = vsub.f32 %v20356_v45, %v20922_v62  ;;  %v25193_v42 = vsub.f32 %v20359_v22, %v20922_v62  ;;  %v25194_v51 = vsub.f32 %v20364_v39, %v20922_v62  ;;  %v25195_v2 = vsub.f32 %v20367_v20, %v20922_v62 }
 0xa73   :  { %v21375_v13 = vmul.f32 %v21265_v58, %v25192_v7  ;;  %v21381_v44 = vmul.f32 %v21265_v58, %v25193_v42  ;;  %v21387_v11 = vmul.f32 %v21265_v58, %v25194_v51  ;;  %v21393_v45 = vmul.f32 %v21265_v58, %v25195_v2 }
 0xa74   :  { %v25196_v7 = vsub.f32 %v20379_v3, %v20922_v62  ;;  %v25197_v42 = vsub.f32 %v20386_v50, %v20922_v62  ;;  %v25198_v51 = vsub.f32 %v20397_v57, %v20922_v62  ;;  %v25199_v2 = vsub.f32 %v20402_v15, %v20922_v62 }
 0xa76   :  { %v21399_v22 = vmul.f32 %v21265_v58, %v25196_v7  ;;  %v21405_v39 = vmul.f32 %v21265_v58, %v25197_v42  ;;  %v21411_v20 = vmul.f32 %v21265_v58, %v25198_v51  ;;  %v21417_v3 = vmul.f32 %v21265_v58, %v25199_v2 }
 0xa77   :  { %v25200_v7 = vsub.f32 %v20413_v12, %v20922_v62  ;;  %v25201_v42 = vsub.f32 %v20417_v55, %v20922_v62  ;;  %v25202_v51 = vsub.f32 %v20428_v4, %v20922_v62  ;;  %v25203_v2 = vsub.f32 %v20434_v33, %v20922_v62 }
 0xa79   :  { %v21423_v50 = vmul.f32 %v21265_v58, %v25200_v7  ;;  %v21429_v57 = vmul.f32 %v21265_v58, %v25201_v42  ;;  %v21435_v15 = vmul.f32 %v21265_v58, %v25202_v51  ;;  %v21441_v12 = vmul.f32 %v21265_v58, %v25203_v2 }
 0xa7a   :  { %v25204_v7 = vsub.f32 %v20443_v5, %v20922_v62  ;;  %v25205_v42 = vsub.f32 %v20448_v37, %v20922_v62  ;;  %v25206_v51 = vsub.f32 %v20457_v54, %v20922_v62  ;;  %v25207_v2 = vsub.f32 %v20461_v38, %v20922_v62 }
 0xa7c   :  { %v21447_v55 = vmul.f32 %v21265_v58, %v25204_v7  ;;  %v21453_v4 = vmul.f32 %v21265_v58, %v25205_v42  ;;  %v21459_v33 = vmul.f32 %v21265_v58, %v25206_v51  ;;  %v21465_v5 = vmul.f32 %v21265_v58, %v25207_v2 }
 0xa7d   :  { %v25208_v7 = vsub.f32 %v20470_v36, %v20922_v62  ;;  %v25209_v42 = vsub.f32 %v25142_v56, %v20922_v62  ;;  %v25210_v51 = vsub.f32 %v25143_v26, %v20922_v62  ;;  %v25211_v2 = vsub.f32 %v20490_v47, %v20922_v62 }
 0xa7f   :  { %v21471_v37 = vmul.f32 %v21265_v58, %v25208_v7  ;;  %v21477_v54 = vmul.f32 %v21265_v58, %v25209_v42  ;;  %v21483_v38 = vmul.f32 %v21265_v58, %v25210_v51  ;;  %v21489_v36 = vmul.f32 %v21265_v58, %v25211_v2 }
 0xa80   :  { %v25212_v7 = vsub.f32 %v25144_v48, %v20922_v62  ;;  %v25213_v42 = vsub.f32 %v20503_v34, %v20922_v62  ;;  %v25214_v51 = vsub.f32 %v25145_v27, %v20922_v62  ;;  %v25215_v2 = vsub.f32 %v25146_v41, %v20922_v62 }
 0xa82   :  { %v21495_v56 = vmul.f32 %v21265_v58, %v25212_v7  ;;  %v21501_v26 = vmul.f32 %v21265_v58, %v25213_v42  ;;  %v21507_v47 = vmul.f32 %v21265_v58, %v25214_v51  ;;  %v21513_v48 = vmul.f32 %v21265_v58, %v25215_v2 }
 0xa83   :  { %v25216_v7 = vsub.f32 %v25147_v49, %v20922_v62  ;;  %v25217_v42 = vsub.f32 %v25148_v29, %v20922_v62  ;;  %v25218_v51 = vsub.f32 %v25149_v24, %v20922_v62  ;;  %v25219_v2 = vsub.f32 %v20545_v8, %v20922_v62 }
 0xa85   :  { %v21519_v34 = vmul.f32 %v21265_v58, %v25216_v7  ;;  %v21525_v27 = vmul.f32 %v21265_v58, %v25217_v42  ;;  %v21531_v41 = vmul.f32 %v21265_v58, %v25218_v51  ;;  %v21537_v49 = vmul.f32 %v21265_v58, %v25219_v2 }
 0xa86   :  { %v25220_v7 = vsub.f32 %v25150_v63, %v20922_v62  ;;  %v25222_v42 = vsub.f32 %v20560_v28, %v20922_v62  ;;  %v25224_v51 = vsub.f32 %v25151_v16, %v20922_v62  ;;  %v25226_v2 = vsub.f32 %v25152_v61, %v20922_v62 }
 0xa88   :  { %v21543_v29 = vmul.f32 %v21265_v58, %v25220_v7  ;;  %v21549_v24 = vmul.f32 %v21265_v58, %v25222_v42  ;;  %v21555_v8 = vmul.f32 %v21265_v58, %v25224_v51  ;;  %v21561_v63 = vmul.f32 %v21265_v58, %v25226_v2  ;;  %v25228_v7 = vld [vmem:[#allocation82_spill] sm:$0xff]  ;;  %v25231_v42 = vld [vmem:[#allocation77_spill] sm:$0xff]  ;;  %v25234_v51 = vld [vmem:[#allocation104_spill] sm:$0xff] }
 0xa89   :  { %v25237_v2 = vld [vmem:[#allocation107_spill] sm:$0xff] }
 0xa8a   :  { %25221 = vst [vmem:[#allocation99_spill] sm:$0xff] %v21543_v29  ;;  %25223 = vst [vmem:[#allocation102_spill] sm:$0xff] %v21549_v24  ;;  %v25229_v29 = vsub.f32 %v25228_v7, %v20922_v62  ;;  %v25232_v24 = vsub.f32 %v25231_v42, %v20922_v62 }
 0xa8b   :  { %25225 = vst [vmem:[#allocation83_spill] sm:$0xff] %v21555_v8  ;;  %25227 = vst [vmem:[#allocation86_spill] sm:$0xff] %v21561_v63  ;;  %v25235_v8 = vsub.f32 %v25234_v51, %v20922_v62  ;;  %v25238_v63 = vsub.f32 %v25237_v2, %v20922_v62 }
 0xa8c   :  { %v21567_v28 = vmul.f32 %v21265_v58, %v25229_v29  ;;  %v21573_v16 = vmul.f32 %v21265_v58, %v25232_v24  ;;  %v25240_v29 = vld [vmem:[#allocation5_spill] sm:$0xff]  ;;  %v25243_v24 = vld [vmem:[#allocation4_spill] sm:$0xff] }
 0xa8d   :  { %v21579_v61 = vmul.f32 %v21265_v58, %v25235_v8  ;;  %v21585_v7 = vmul.f32 %v21265_v58, %v25238_v63  ;;  %v25246_v8 = vld [vmem:[#allocation6_spill] sm:$0xff]  ;;  %v25249_v63 = vld [vmem:[#allocation7_spill] sm:$0xff] }
 0xa8e   :  { %25230 = vst [vmem:[#allocation105_spill] sm:$0xff] %v21567_v28  ;;  %25233 = vst [vmem:[#allocation106_spill] sm:$0xff] %v21573_v16  ;;  %v25241_v28 = vsub.f32 %v25240_v29, %v20922_v62  ;;  %v25244_v16 = vsub.f32 %v25243_v24, %v20922_v62 }
 0xa8f   :  { %25236 = vst [vmem:[#allocation98_spill] sm:$0xff] %v21579_v61  ;;  %25239 = vst [vmem:[#allocation109_spill] sm:$0xff] %v21585_v7  ;;  %v25247_v61 = vsub.f32 %v25246_v8, %v20922_v62  ;;  %v25250_v7 = vsub.f32 %v25249_v63, %v20922_v62 }
 0xa90   :  { %v21591_v42 = vmul.f32 %v21265_v58, %v25241_v28  ;;  %v21597_v51 = vmul.f32 %v21265_v58, %v25244_v16  ;;  %v25252_v28 = vld [vmem:[#allocation8_spill] sm:$0xff]  ;;  %v25255_v16 = vld [vmem:[#allocation9_spill] sm:$0xff] }
 0xa91   :  { %v21603_v2 = vmul.f32 %v21265_v58, %v25247_v61  ;;  %v21609_v29 = vmul.f32 %v21265_v58, %v25250_v7  ;;  %v25258_v61 = vld [vmem:[#allocation10_spill] sm:$0xff]  ;;  %v25261_v7 = vld [vmem:[#allocation11_spill] sm:$0xff] }
 0xa92   :  { %25242 = vst [vmem:[#allocation100_spill] sm:$0xff] %v21591_v42  ;;  %25245 = vst [vmem:[#allocation110_spill] sm:$0xff] %v21597_v51  ;;  %v25253_v42 = vsub.f32 %v25252_v28, %v20922_v62  ;;  %v25256_v51 = vsub.f32 %v25255_v16, %v20922_v62 }
 0xa93   :  { %25248 = vst [vmem:[#allocation112_spill] sm:$0xff] %v21603_v2  ;;  %25251 = vst [vmem:[#allocation101_spill] sm:$0xff] %v21609_v29  ;;  %v25259_v2 = vsub.f32 %v25258_v61, %v20922_v62  ;;  %v25262_v29 = vsub.f32 %v25261_v7, %v20922_v62 }
 0xa94   :  { %v21615_v24 = vmul.f32 %v21265_v58, %v25253_v42  ;;  %v21621_v8 = vmul.f32 %v21265_v58, %v25256_v51  ;;  %v25263_v42 = vld [vmem:[#allocation12_spill] sm:$0xff]  ;;  %v25266_v51 = vld [vmem:[#allocation13_spill] sm:$0xff] }
 0xa95   :  { %v21627_v63 = vmul.f32 %v21265_v58, %v25259_v2  ;;  %v21633_v28 = vmul.f32 %v21265_v58, %v25262_v29  ;;  %v25269_v2 = vld [vmem:[#allocation14_spill] sm:$0xff]  ;;  %v25272_v29 = vsub.f32 %v25165_v19, %v20922_v62 }
 0xa96   :  { %25254 = vst [vmem:[#allocation114_spill] sm:$0xff] %v21615_v24  ;;  %25257 = vst [vmem:[#allocation52_spill] sm:$0xff] %v21621_v8  ;;  %v25264_v24 = vsub.f32 %v25263_v42, %v20922_v62  ;;  %v25267_v8 = vsub.f32 %v25266_v51, %v20922_v62 }
 0xa97   :  { %25260 = vst [vmem:[#allocation115_spill] sm:$0xff] %v21627_v63  ;;  %v25270_v63 = vsub.f32 %v25269_v2, %v20922_v62  ;;  %v21657_v42 = vmul.f32 %v21265_v58, %v25272_v29  ;;  %v25280_v29 = vsub.f32 %v25169_v10, %v20922_v62 }
 0xa98   :  { %v21639_v16 = vmul.f32 %v21265_v58, %v25264_v24  ;;  %v21645_v61 = vmul.f32 %v21265_v58, %v25267_v8  ;;  %v25273_v24 = vld [vmem:[#allocation16_spill] sm:$0xff]  ;;  %v25276_v8 = vld [vmem:[#allocation17_spill] sm:$0xff] }
 0xa99   :  { %v21651_v7 = vmul.f32 %v21265_v58, %v25270_v63  ;;  %v25278_v63 = vld [vmem:[#allocation18_spill] sm:$0xff] }
 0xa9a   :  { %25265 = vst [vmem:[#allocation116_spill] sm:$0xff] %v21639_v16  ;;  %25268 = vst [vmem:[#allocation53_spill] sm:$0xff] %v21645_v61  ;;  %v25274_v16 = vsub.f32 %v25273_v24, %v20922_v62  ;;  %v25277_v61 = vsub.f32 %v25276_v8, %v20922_v62  ;;  %v21681_v24 = vmul.f32 %v21265_v58, %v25280_v29 }
 0xa9b   :  { %25271 = vst [vmem:[#allocation56_spill] sm:$0xff] %v21651_v7  ;;  %v25279_v7 = vsub.f32 %v25278_v63, %v20922_v62  ;;  %v25286_v29 = vsub.f32 %v25173_v52, %v20922_v62 }
 0xa9c   :  { %v21663_v51 = vmul.f32 %v21265_v58, %v25274_v16  ;;  %v21669_v2 = vmul.f32 %v21265_v58, %v25277_v61  ;;  %v25281_v16 = vld [vmem:[#allocation20_spill] sm:$0xff]  ;;  %v25283_v61 = vsub.f32 %v25171_v59, %v20922_v62 }
 0xa9d   :  { %v21675_v19 = vmul.f32 %v21265_v58, %v25279_v7  ;;  %v25284_v7 = vsub.f32 %v25172_v23, %v20922_v62 }
 0xa9e   :  { %25275 = vst [vmem:[#allocation119_spill] sm:$0xff] %v21663_v51  ;;  %v25282_v51 = vsub.f32 %v25281_v16, %v20922_v62  ;;  %v21693_v63 = vmul.f32 %v21265_v58, %v25283_v61  ;;  %v21705_v16 = vmul.f32 %v21265_v58, %v25286_v29  ;;  %v25290_v61 = vsub.f32 %v25175_v32, %v20922_v62  ;;  %v25295_v29 = vld [vmem:[#allocation31_spill] sm:$0xff] }
 0xa9f   :  { %v21699_v10 = vmul.f32 %v21265_v58, %v25284_v7  ;;  %v25292_v7 = vld [vmem:[#allocation30_spill] sm:$0xff] }
 0xaa0   :  { %v21687_v8 = vmul.f32 %v21265_v58, %v25282_v51  ;;  %25287 = vst [vmem:[#allocation111_spill] sm:$0xff] %v21705_v16  ;;  %v25288_v51 = vsub.f32 %v25174_v40, %v20922_v62  ;;  %v21717_v23 = vmul.f32 %v21265_v58, %v25290_v61  ;;  %v25296_v16 = vsub.f32 %v25295_v29, %v20922_v62  ;;  %v25301_v61 = vld [vmem:[#allocation34_spill] sm:$0xff] }
 0xaa1   :  { %25285 = vst [vmem:[#allocation122_spill] sm:$0xff] %v21699_v10  ;;  %v25293_v10 = vsub.f32 %v25292_v7, %v20922_v62 }
 0xaa2   :  { %v21711_v59 = vmul.f32 %v21265_v58, %v25288_v51  ;;  %25291 = vst [vmem:[#allocation113_spill] sm:$0xff] %v21717_v23  ;;  %v21729_v40 = vmul.f32 %v21265_v58, %v25296_v16  ;;  %v25298_v51 = vld [vmem:[#allocation32_spill] sm:$0xff]  ;;  %v25302_v23 = vsub.f32 %v25301_v61, %v20922_v62  ;;  %v25306_v16 = vld [vmem:[#allocation39_spill] sm:$0xff] }
 0xaa3   :  { %v21723_v52 = vmul.f32 %v21265_v58, %v25293_v10  ;;  %v25304_v10 = vld [vmem:[#allocation36_spill] sm:$0xff] }
 0xaa4   :  { %25289 = vst [vmem:[#allocation124_spill] sm:$0xff] %v21711_v59  ;;  %25297 = vst [vmem:[#allocation126_spill] sm:$0xff] %v21729_v40  ;;  %v25299_v59 = vsub.f32 %v25298_v51, %v20922_v62  ;;  %v21741_v7 = vmul.f32 %v21265_v58, %v25302_v23  ;;  %v25307_v40 = vsub.f32 %v25306_v16, %v20922_v62  ;;  %v25310_v23 = vld [vmem:[#allocation37_spill] sm:$0xff]  ;;  %v25317_v16 = vld [vmem:[#allocation83_spill] sm:$0xff] }
 0xaa5   :  { %25294 = vst [vmem:[#allocation125_spill] sm:$0xff] %v21723_v52  ;;  %v25305_v52 = vsub.f32 %v25304_v10, %v20922_v62  ;;  %v21771_v10 = vmul.f32 %v25310_v23, %v21291_v53  ;;  %v21791_v53 = vmul.f32 %v25310_v23, %v21321_v9  ;;  %v21815_v9 = vmul.f32 %v25310_v23, %v21357_v1 }
 0xaa6   :  { %v21735_v32 = vmul.f32 %v21265_v58, %v25299_v59  ;;  %25303 = vst [vmem:[#allocation127_spill] sm:$0xff] %v21741_v7  ;;  %v21753_v51 = vmul.f32 %v21265_v58, %v25307_v40  ;;  %v25308_v59 = vld [vmem:[#allocation42_spill] sm:$0xff]  ;;  %v21763_v7 = vmul.f32 %v25310_v23, %v21279_v30  ;;  %v21775_v40 = vmul.f32 %v25310_v23, %v21297_v31 }
 0xaa7   :  { %v21747_v29 = vmul.f32 %v21265_v58, %v25305_v52  ;;  %v21767_v52 = vmul.f32 %v25310_v23, %v21285_v46  ;;  %v21783_v30 = vmul.f32 %v25310_v23, %v21309_v6  ;;  %v21787_v46 = vmul.f32 %v25310_v23, %v21315_v43 }
 0xaa8   :  { %25300 = vst [vmem:[#allocation117_spill] sm:$0xff] %v21735_v32  ;;  %v25309_v32 = vsub.f32 %v25308_v59, %v20922_v62  ;;  %v21779_v62 = vmul.f32 %v25310_v23, %v21303_v0  ;;  %v21799_v31 = vmul.f32 %v25310_v23, %v21333_v17  ;;  %v21803_v0 = vmul.f32 %v25310_v23, %v21339_v60  ;;  %v25319_v59 = vld [vmem:[#allocation86_spill] sm:$0xff] }
 0xaa9   :  { %v21807_v6 = vmul.f32 %v25310_v23, %v21345_v18  ;;  %v21811_v43 = vmul.f32 %v25310_v23, %v21351_v21  ;;  %v21823_v17 = vmul.f32 %v25310_v23, %v21369_v14  ;;  %v21827_v60 = vmul.f32 %v25310_v23, %v21375_v13 }
 0xaaa   :  { %v21759_v61 = vmul.f32 %v21265_v58, %v25309_v32  ;;  %v21795_v58 = vmul.f32 %v25310_v23, %v21327_v35  ;;  %v21819_v35 = vmul.f32 %v25310_v23, %v21363_v25  ;;  %v21831_v18 = vmul.f32 %v25310_v23, %v21381_v44  ;;  %v25315_v32 = vld [vmem:[#allocation102_spill] sm:$0xff] }
 0xaab   :  { %v21835_v21 = vmul.f32 %v25310_v23, %v21387_v11  ;;  %v21839_v1 = vmul.f32 %v25310_v23, %v21393_v45  ;;  %v21843_v25 = vmul.f32 %v25310_v23, %v21399_v22  ;;  %v21847_v14 = vmul.f32 %v25310_v23, %v21405_v39 }
 0xaac   :  { %v21851_v13 = vmul.f32 %v25310_v23, %v21411_v20  ;;  %v21855_v44 = vmul.f32 %v25310_v23, %v21417_v3  ;;  %v21859_v11 = vmul.f32 %v25310_v23, %v21423_v50  ;;  %v21863_v45 = vmul.f32 %v25310_v23, %v21429_v57 }
 0xaad   :  { %v21867_v22 = vmul.f32 %v25310_v23, %v21435_v15  ;;  %v21871_v39 = vmul.f32 %v25310_v23, %v21441_v12  ;;  %v21875_v20 = vmul.f32 %v25310_v23, %v21447_v55  ;;  %v21879_v3 = vmul.f32 %v25310_v23, %v21453_v4 }
 0xaae   :  { %v21883_v50 = vmul.f32 %v25310_v23, %v21459_v33  ;;  %v21887_v57 = vmul.f32 %v25310_v23, %v21465_v5  ;;  %v21891_v15 = vmul.f32 %v25310_v23, %v21471_v37  ;;  %v21895_v12 = vmul.f32 %v25310_v23, %v21477_v54 }
 0xaaf   :  { %v21899_v55 = vmul.f32 %v25310_v23, %v21483_v38  ;;  %v21903_v4 = vmul.f32 %v25310_v23, %v21489_v36  ;;  %v21907_v33 = vmul.f32 %v25310_v23, %v21495_v56  ;;  %v21911_v5 = vmul.f32 %v25310_v23, %v21501_v26 }
 0xab0   :  { %v21915_v37 = vmul.f32 %v25310_v23, %v21507_v47  ;;  %v21919_v54 = vmul.f32 %v25310_v23, %v21513_v48  ;;  %v21923_v38 = vmul.f32 %v25310_v23, %v21519_v34  ;;  %v21927_v36 = vmul.f32 %v25310_v23, %v21525_v27  ;;  %v25313_v47 = vld [vmem:[#allocation99_spill] sm:$0xff] }
 0xab1   :  { %v21931_v56 = vmul.f32 %v25310_v23, %v21531_v41  ;;  %v21935_v26 = vmul.f32 %v25310_v23, %v21537_v49  ;;  %v21939_v48 = vmul.f32 %v25310_v23, %v25313_v47  ;;  %v21943_v34 = vmul.f32 %v25310_v23, %v25315_v32 }
 0xab2   :  { %v21947_v27 = vmul.f32 %v25310_v23, %v25317_v16  ;;  %v21951_v41 = vmul.f32 %v25310_v23, %v25319_v59 }
 0xab3   :  { %25311 = vst [vmem:[#allocation118_spill] sm:$0xff] %v21931_v56  ;;  %25312 = vst [vmem:[#allocation128_spill] sm:$0xff] %v21935_v26  ;;  %v25321_v56 = vld [vmem:[#allocation105_spill] sm:$0xff]  ;;  %v25323_v26 = vld [vmem:[#allocation106_spill] sm:$0xff] }
 0xab4   :  { %25314 = vst [vmem:[#allocation120_spill] sm:$0xff] %v21939_v48  ;;  %25316 = vst [vmem:[#allocation129_spill] sm:$0xff] %v21943_v34  ;;  %v21955_v49 = vmul.f32 %v25310_v23, %v25321_v56  ;;  %v21959_v47 = vmul.f32 %v25310_v23, %v25323_v26  ;;  %v25325_v48 = vld [vmem:[#allocation98_spill] sm:$0xff]  ;;  %v25327_v34 = vld [vmem:[#allocation109_spill] sm:$0xff] }
 0xab5   :  { %25318 = vst [vmem:[#allocation103_spill] sm:$0xff] %v21947_v27  ;;  %25320 = vst [vmem:[#allocation130_spill] sm:$0xff] %v21951_v41  ;;  %v21963_v32 = vmul.f32 %v25310_v23, %v25325_v48  ;;  %v21967_v16 = vmul.f32 %v25310_v23, %v25327_v34  ;;  %v25329_v27 = vld [vmem:[#allocation100_spill] sm:$0xff]  ;;  %v25331_v41 = vld [vmem:[#allocation110_spill] sm:$0xff] }
 0xab6   :  { %25322 = vst [vmem:[#allocation108_spill] sm:$0xff] %v21955_v49  ;;  %25324 = vst [vmem:[#allocation131_spill] sm:$0xff] %v21959_v47  ;;  %v21971_v59 = vmul.f32 %v25310_v23, %v25329_v27  ;;  %v21975_v56 = vmul.f32 %v25310_v23, %v25331_v41  ;;  %v25332_v49 = vld [vmem:[#allocation112_spill] sm:$0xff]  ;;  %v25334_v47 = vld [vmem:[#allocation101_spill] sm:$0xff] }
 0xab7   :  { %25326 = vst [vmem:[#allocation138_spill] sm:$0xff] %v21963_v32  ;;  %25328 = vst [vmem:[#allocation132_spill] sm:$0xff] %v21967_v16  ;;  %v21979_v26 = vmul.f32 %v25310_v23, %v25332_v49  ;;  %v21983_v48 = vmul.f32 %v25310_v23, %v25334_v47  ;;  %v25336_v32 = vld [vmem:[#allocation114_spill] sm:$0xff]  ;;  %v25338_v16 = vld [vmem:[#allocation52_spill] sm:$0xff]  ;;  %v21999_v49 = vmul.f32 %v25310_v23, %v21633_v28 }
 0xab8   :  { %25330 = vst [vmem:[#allocation26_spill] sm:$0xff] %v21971_v59  ;;  %v21987_v34 = vmul.f32 %v25310_v23, %v25336_v32  ;;  %v21991_v27 = vmul.f32 %v25310_v23, %v25338_v16  ;;  %v25339_v59 = vld [vmem:[#allocation115_spill] sm:$0xff] }
 0xab9   :  { %25333 = vst [vmem:[#allocation133_spill] sm:$0xff] %v21979_v26  ;;  %25335 = vst [vmem:[#allocation27_spill] sm:$0xff] %v21983_v48  ;;  %v21995_v41 = vmul.f32 %v25310_v23, %v25339_v59  ;;  %v25341_v26 = vld [vmem:[#allocation116_spill] sm:$0xff]  ;;  %v25342_v48 = vld [vmem:[#allocation53_spill] sm:$0xff]  ;;  %v22015_v59 = vmul.f32 %v25310_v23, %v21657_v42  ;;  %v22035_v42 = vmul.f32 %v25310_v23, %v21687_v8 }
 0xaba   :  { %25337 = vst [vmem:[#allocation134_spill] sm:$0xff] %v21987_v34  ;;  %v22003_v47 = vmul.f32 %v25310_v23, %v25341_v26  ;;  %v22007_v32 = vmul.f32 %v25310_v23, %v25342_v48  ;;  %v25343_v34 = vld [vmem:[#allocation56_spill] sm:$0xff]  ;;  %v22023_v26 = vmul.f32 %v25310_v23, %v21669_v2  ;;  %v22027_v48 = vmul.f32 %v25310_v23, %v21675_v19 }
 0xabb   :  { %25340 = vst [vmem:[#allocation28_spill] sm:$0xff] %v21995_v41  ;;  %v22011_v16 = vmul.f32 %v25310_v23, %v25343_v34  ;;  %v25344_v41 = vld [vmem:[#allocation119_spill] sm:$0xff]  ;;  %v22031_v34 = vmul.f32 %v25310_v23, %v21681_v24  ;;  %25349 = vst [vmem:[#allocation137_spill] sm:$0xff] %v22035_v42  ;;  %v25357_v42 = vld [vmem:[#allocation125_spill] sm:$0xff] }
 0xabc   :  { %v22019_v28 = vmul.f32 %v25310_v23, %v25344_v41  ;;  %25346 = vst [vmem:[#allocation29_spill] sm:$0xff] %v22023_v26  ;;  %25347 = vst [vmem:[#allocation136_spill] sm:$0xff] %v22027_v48  ;;  %v22039_v41 = vmul.f32 %v25310_v23, %v21693_v63  ;;  %v25353_v26 = vld [vmem:[#allocation111_spill] sm:$0xff]  ;;  %v25355_v48 = vld [vmem:[#allocation124_spill] sm:$0xff]  ;;  %v22059_v63 = vmul.f32 %v25310_v23, %v25357_v42 }
 0xabd   :  { %25348 = vst [vmem:[#allocation33_spill] sm:$0xff] %v22031_v34  ;;  %v22047_v19 = vmul.f32 %v25310_v23, %v25353_v26  ;;  %v22051_v24 = vmul.f32 %v25310_v23, %v25355_v48  ;;  %v25356_v34 = vld [vmem:[#allocation113_spill] sm:$0xff]  ;;  %v22079_v42 = vmul.f32 %v25310_v23, %v21753_v51 }
 0xabe   :  { %25345 = vst [vmem:[#allocation135_spill] sm:$0xff] %v22019_v28  ;;  %25350 = vst [vmem:[#allocation3_spill] sm:$0xff] %v22039_v41  ;;  %v25351_v28 = vld [vmem:[#allocation122_spill] sm:$0xff]  ;;  %v22055_v8 = vmul.f32 %v25310_v23, %v25356_v34  ;;  %v22075_v34 = vmul.f32 %v25310_v23, %v21747_v29 }
 0xabf   :  { %v22043_v2 = vmul.f32 %v25310_v23, %v25351_v28  ;;  %25354 = vst [vmem:[#allocation85_spill] sm:$0xff] %v22047_v19  ;;  %v25358_v41 = vld [vmem:[#allocation126_spill] sm:$0xff]  ;;  %v25361_v19 = vld [vmem:[#allocation127_spill] sm:$0xff] }
 0xac0   :  { %v22063_v28 = vmul.f32 %v25310_v23, %v25358_v41  ;;  %v22071_v48 = vmul.f32 %v25310_v23, %v25361_v19  ;;  %v22083_v41 = vmul.f32 %v25310_v23, %v21759_v61 }
 0xac1   :  { %25352 = vst [vmem:[#allocation35_spill] sm:$0xff] %v22043_v2  ;;  %v25360_v2 = vld [vmem:[#allocation117_spill] sm:$0xff] }
 0xac2   :  { %25359 = vst [vmem:[#allocation91_spill] sm:$0xff] %v22063_v28  ;;  %v22067_v26 = vmul.f32 %v25310_v23, %v25360_v2  ;;  %v25362_v28 = vld [vmem:[#allocation51_spill] sm:$0xff] }
 0xac3   :  { %v22087_v2 = vadd.f32 %v25362_v28, %v21763_v7  ;;  %v22091_v19 = vadd.f32 %v25362_v28, %v21767_v52  ;;  %v22095_v29 = vadd.f32 %v25362_v28, %v21771_v10  ;;  %v22099_v51 = vadd.f32 %v25362_v28, %v21775_v40 }
 0xac4   :  { %v22103_v61 = vadd.f32 %v25362_v28, %v21779_v62  ;;  %v22107_v7 = vadd.f32 %v25362_v28, %v21783_v30  ;;  %v22111_v23 = vadd.f32 %v25362_v28, %v21787_v46  ;;  %v22115_v52 = vadd.f32 %v25362_v28, %v21791_v53 }
 0xac5   :  { %v22119_v10 = vadd.f32 %v25362_v28, %v21795_v58  ;;  %v22123_v40 = vadd.f32 %v25362_v28, %v21799_v31  ;;  %v22127_v62 = vadd.f32 %v25362_v28, %v21803_v0  ;;  %v22131_v30 = vadd.f32 %v25362_v28, %v21807_v6 }
 0xac6   :  { %v22135_v46 = vadd.f32 %v25362_v28, %v21811_v43  ;;  %v22139_v53 = vadd.f32 %v25362_v28, %v21815_v9  ;;  %v22143_v58 = vadd.f32 %v25362_v28, %v21819_v35  ;;  %v22147_v31 = vadd.f32 %v25362_v28, %v21823_v17 }
 0xac7   :  { %v22151_v0 = vadd.f32 %v25362_v28, %v21827_v60  ;;  %v22155_v6 = vadd.f32 %v25362_v28, %v21831_v18  ;;  %v22159_v43 = vadd.f32 %v25362_v28, %v21835_v21  ;;  %v22163_v9 = vadd.f32 %v25362_v28, %v21839_v1 }
 0xac8   :  { %v22167_v35 = vadd.f32 %v25362_v28, %v21843_v25  ;;  %v22171_v17 = vadd.f32 %v25362_v28, %v21847_v14  ;;  %v22175_v60 = vadd.f32 %v25362_v28, %v21851_v13  ;;  %v22179_v18 = vadd.f32 %v25362_v28, %v21855_v44 }
 0xac9   :  { %v22183_v21 = vadd.f32 %v25362_v28, %v21859_v11  ;;  %v22187_v1 = vadd.f32 %v25362_v28, %v21863_v45  ;;  %v22191_v25 = vadd.f32 %v25362_v28, %v21867_v22  ;;  %v22195_v14 = vadd.f32 %v25362_v28, %v21871_v39 }
 0xaca   :  { %v22199_v13 = vadd.f32 %v25362_v28, %v21875_v20  ;;  %v22203_v44 = vadd.f32 %v25362_v28, %v21879_v3  ;;  %v22207_v11 = vadd.f32 %v25362_v28, %v21883_v50  ;;  %v22211_v45 = vadd.f32 %v25362_v28, %v21887_v57 }
 0xacb   :  { %v22215_v22 = vadd.f32 %v25362_v28, %v21891_v15  ;;  %v22219_v39 = vadd.f32 %v25362_v28, %v21895_v12  ;;  %v22223_v20 = vadd.f32 %v25362_v28, %v21899_v55  ;;  %v22227_v3 = vadd.f32 %v25362_v28, %v21903_v4 }
 0xacc   :  { %v22231_v50 = vadd.f32 %v25362_v28, %v21907_v33  ;;  %v22235_v57 = vadd.f32 %v25362_v28, %v21911_v5  ;;  %v22239_v15 = vadd.f32 %v25362_v28, %v21915_v37  ;;  %v22243_v12 = vadd.f32 %v25362_v28, %v21919_v54  ;;  %v25368_v33 = vld [vmem:[#allocation118_spill] sm:$0xff] }
 0xacd   :  { %v22247_v55 = vadd.f32 %v25362_v28, %v21923_v38  ;;  %v22251_v4 = vadd.f32 %v25362_v28, %v21927_v36  ;;  %v22255_v5 = vadd.f32 %v25362_v28, %v25368_v33 }
 0xace   :  { %25363 = vst [vmem:[#allocation90_spill] sm:$0xff] %v22235_v57  ;;  %25364 = vst [vmem:[#allocation93_spill] sm:$0xff] %v22239_v15  ;;  %v25370_v57 = vld [vmem:[#allocation128_spill] sm:$0xff] }
 0xacf   :  { %25365 = vst [vmem:[#allocation92_spill] sm:$0xff] %v22243_v12  ;;  %25366 = vst [vmem:[#allocation97_spill] sm:$0xff] %v22247_v55  ;;  %v22259_v37 = vadd.f32 %v25362_v28, %v25370_v57  ;;  %v25372_v15 = vld [vmem:[#allocation120_spill] sm:$0xff]  ;;  %v25374_v12 = vld [vmem:[#allocation129_spill] sm:$0xff] }
 0xad0   :  { %25367 = vst [vmem:[#allocation123_spill] sm:$0xff] %v22251_v4  ;;  %25369 = vst [vmem:[#allocation121_spill] sm:$0xff] %v22255_v5  ;;  %v22263_v54 = vadd.f32 %v25362_v28, %v25372_v15  ;;  %v22267_v38 = vadd.f32 %v25362_v28, %v25374_v12  ;;  %v25376_v55 = vld [vmem:[#allocation103_spill] sm:$0xff]  ;;  %v25378_v4 = vld [vmem:[#allocation130_spill] sm:$0xff] }
 0xad1   :  { %25371 = vst [vmem:[#allocation70_spill] sm:$0xff] %v22259_v37  ;;  %v22271_v36 = vadd.f32 %v25362_v28, %v25376_v55  ;;  %v22275_v33 = vadd.f32 %v25362_v28, %v25378_v4  ;;  %v25379_v5 = vld [vmem:[#allocation108_spill] sm:$0xff]  ;;  %v25381_v37 = vld [vmem:[#allocation131_spill] sm:$0xff] }
 0xad2   :  { %25373 = vst [vmem:[#allocation57_spill] sm:$0xff] %v22263_v54  ;;  %25375 = vst [vmem:[#allocation76_spill] sm:$0xff] %v22267_v38  ;;  %v22279_v57 = vadd.f32 %v25362_v28, %v25379_v5  ;;  %v22283_v15 = vadd.f32 %v25362_v28, %v25381_v37  ;;  %v25383_v54 = vld [vmem:[#allocation138_spill] sm:$0xff]  ;;  %v25385_v38 = vld [vmem:[#allocation132_spill] sm:$0xff]  ;;  %v22299_v5 = vadd.f32 %v25362_v28, %v21975_v56 }
 0xad3   :  { %25377 = vst [vmem:[#allocation75_spill] sm:$0xff] %v22271_v36  ;;  %v22287_v12 = vadd.f32 %v25362_v28, %v25383_v54  ;;  %v22291_v55 = vadd.f32 %v25362_v28, %v25385_v38  ;;  %v25386_v36 = vld [vmem:[#allocation26_spill] sm:$0xff] }
 0xad4   :  { %25380 = vst [vmem:[#allocation15_spill] sm:$0xff] %v22279_v57  ;;  %25382 = vst [vmem:[#allocation19_spill] sm:$0xff] %v22283_v15  ;;  %v22295_v4 = vadd.f32 %v25362_v28, %v25386_v36  ;;  %v25388_v57 = vld [vmem:[#allocation133_spill] sm:$0xff]  ;;  %v25389_v15 = vld [vmem:[#allocation27_spill] sm:$0xff]  ;;  %v22315_v36 = vadd.f32 %v25362_v28, %v21991_v27  ;;  %v22335_v27 = vadd.f32 %v25362_v28, %v22011_v16 }
 0xad5   :  { %25384 = vst [vmem:[#allocation21_spill] sm:$0xff] %v22287_v12  ;;  %v22303_v37 = vadd.f32 %v25362_v28, %v25388_v57  ;;  %v22307_v54 = vadd.f32 %v25362_v28, %v25389_v15  ;;  %v25390_v12 = vld [vmem:[#allocation134_spill] sm:$0xff]  ;;  %v22323_v57 = vadd.f32 %v25362_v28, %v21999_v49  ;;  %v22327_v15 = vadd.f32 %v25362_v28, %v22003_v47 }
 0xad6   :  { %25387 = vst [vmem:[#allocation22_spill] sm:$0xff] %v22295_v4  ;;  %v22311_v38 = vadd.f32 %v25362_v28, %v25390_v12  ;;  %v25391_v4 = vld [vmem:[#allocation28_spill] sm:$0xff]  ;;  %v22331_v12 = vadd.f32 %v25362_v28, %v22007_v32  ;;  %25396 = vst [vmem:[#allocation77_spill] sm:$0xff] %v22335_v27  ;;  %v25404_v27 = vld [vmem:[#allocation137_spill] sm:$0xff] }
 0xad7   :  { %v22319_v56 = vadd.f32 %v25362_v28, %v25391_v4  ;;  %25393 = vst [vmem:[#allocation24_spill] sm:$0xff] %v22323_v57  ;;  %25394 = vst [vmem:[#allocation25_spill] sm:$0xff] %v22327_v15  ;;  %v22339_v4 = vadd.f32 %v25362_v28, %v22015_v59  ;;  %v25400_v57 = vld [vmem:[#allocation29_spill] sm:$0xff]  ;;  %v25402_v15 = vld [vmem:[#allocation136_spill] sm:$0xff]  ;;  %v22359_v59 = vadd.f32 %v25362_v28, %v25404_v27 }
 0xad8   :  { %25395 = vst [vmem:[#allocation82_spill] sm:$0xff] %v22331_v12  ;;  %v22347_v47 = vadd.f32 %v25362_v28, %v25400_v57  ;;  %v22351_v32 = vadd.f32 %v25362_v28, %v25402_v15  ;;  %v25403_v12 = vld [vmem:[#allocation33_spill] sm:$0xff]  ;;  %v22379_v27 = vadd.f32 %v25362_v28, %v22055_v8  ;;  %v22399_v8 = vadd.f32 %v25362_v28, %v22075_v34  ;;  %v25419_v34 = vld [vmem:[#allocation46_spill] sm:$0xff] }
 0xad9   :  { %25392 = vst [vmem:[#allocation23_spill] sm:$0xff] %v22319_v56  ;;  %25397 = vst [vmem:[#allocation104_spill] sm:$0xff] %v22339_v4  ;;  %v25398_v56 = vld [vmem:[#allocation135_spill] sm:$0xff]  ;;  %v22355_v16 = vadd.f32 %v25362_v28, %v25403_v12  ;;  %v22375_v12 = vadd.f32 %v25362_v28, %v22051_v24  ;;  %v22395_v24 = vadd.f32 %v25362_v28, %v22071_v48 }
 0xada   :  { %v22343_v49 = vadd.f32 %v25362_v28, %v25398_v56  ;;  %25401 = vst [vmem:[#allocation5_spill] sm:$0xff] %v22347_v47  ;;  %v25405_v4 = vld [vmem:[#allocation3_spill] sm:$0xff]  ;;  %v25408_v47 = vld [vmem:[#allocation85_spill] sm:$0xff]  ;;  %25414 = vst [vmem:[#allocation10_spill] sm:$0xff] %v22399_v8  ;;  %v25420_v8 = vunpack.c.l.bf16 %v25419_v34 }
 0xadb   :  { %v22363_v56 = vadd.f32 %v25362_v28, %v25405_v4  ;;  %v22371_v15 = vadd.f32 %v25362_v28, %v25408_v47  ;;  %v22383_v4 = vadd.f32 %v25362_v28, %v22059_v63  ;;  %v22391_v47 = vadd.f32 %v25362_v28, %v22067_v26  ;;  %25413 = vst [vmem:[#allocation9_spill] sm:$0xff] %v22395_v24 }
 0xadc   :  { %25399 = vst [vmem:[#allocation107_spill] sm:$0xff] %v22343_v49  ;;  %v25407_v49 = vld [vmem:[#allocation35_spill] sm:$0xff]  ;;  %v22403_v63 = vadd.f32 %v25362_v28, %v22079_v42  ;;  %v25421_v42 = vunpack.c.h.bf16 %v25419_v34  ;;  %v25428_v34 = vld [vmem:[#allocation54_spill] sm:$0xff] }
 0xadd   :  { %25406 = vst [vmem:[#allocation4_spill] sm:$0xff] %v22363_v56  ;;  %v22367_v57 = vadd.f32 %v25362_v28, %v25407_v49  ;;  %25409 = vst [vmem:[#allocation6_spill] sm:$0xff] %v22383_v4  ;;  %v25410_v56 = vld [vmem:[#allocation91_spill] sm:$0xff]  ;;  %v22422_v4 = vadd.f32 %v25420_v8, %v22095_v29 }
 0xade   :  { %v22387_v49 = vadd.f32 %v25362_v28, %v25410_v56  ;;  %25412 = vst [vmem:[#allocation8_spill] sm:$0xff] %v22391_v47  ;;  %v22407_v56 = vadd.f32 %v25362_v28, %v22083_v41  ;;  %v22427_v28 = vadd.f32 %v25421_v42, %v22099_v51  ;;  %v25422_v41 = vld [vmem:[#allocation48_spill] sm:$0xff]  ;;  %v25429_v42 = vunpack.c.l.bf16 %v25428_v34 }
 0xae0   :  { %25411 = vst [vmem:[#allocation7_spill] sm:$0xff] %v22387_v49  ;;  %25415 = vst [vmem:[#allocation11_spill] sm:$0xff] %v22407_v56  ;;  %v25416_v49 = vld [vmem:[#allocation43_spill] sm:$0xff]  ;;  %v25423_v56 = vunpack.c.l.bf16 %v25422_v41 }
 0xae1   :  { %v25417_v26 = vunpack.c.l.bf16 %v25416_v49  ;;  %v25418_v48 = vunpack.c.h.bf16 %v25416_v49  ;;  %v25424_v49 = vunpack.c.h.bf16 %v25422_v41  ;;  %v25431_v41 = vld [vmem:[#allocation38_spill] sm:$0xff] }
 0xae3   :  { %v22412_v47 = vadd.f32 %v25417_v26, %v22087_v2  ;;  %v22417_v24 = vadd.f32 %v25418_v48, %v22091_v19  ;;  %v22432_v2 = vadd.f32 %v25423_v56, %v22103_v61  ;;  %v22437_v19 = vadd.f32 %v25424_v49, %v22107_v7  ;;  %v25425_v26 = vld [vmem:[#allocation50_spill] sm:$0xff] }
 0xae4   :  { %v25426_v48 = vunpack.c.l.bf16 %v25425_v26  ;;  %v25427_v8 = vunpack.c.h.bf16 %v25425_v26  ;;  %v22452_v61 = vadd.f32 %v25429_v42, %v22119_v10  ;;  %v25430_v56 = vunpack.c.h.bf16 %v25428_v34  ;;  %v25437_v42 = vld [vmem:[#allocation40_spill] sm:$0xff] }
 0xae5   :  { %v25432_v49 = vunpack.c.l.bf16 %v25431_v41  ;;  %v25433_v26 = vunpack.c.h.bf16 %v25431_v41  ;;  %v25439_v41 = vunpack.c.h.bf16 %v25437_v42 }
 0xae6   :  { %v22442_v29 = vadd.f32 %v25426_v48, %v22111_v23  ;;  %v22447_v51 = vadd.f32 %v25427_v8, %v22115_v52  ;;  %v22457_v7 = vadd.f32 %v25430_v56, %v22123_v40  ;;  %v25434_v48 = vld [vmem:[#allocation55_spill] sm:$0xff]  ;;  %v25438_v56 = vunpack.c.l.bf16 %v25437_v42 }
 0xae7   :  { %v22462_v23 = vadd.f32 %v25432_v49, %v22127_v62  ;;  %v22467_v52 = vadd.f32 %v25433_v26, %v22131_v30  ;;  %v25435_v8 = vunpack.c.l.bf16 %v25434_v48  ;;  %v25436_v34 = vunpack.c.h.bf16 %v25434_v48  ;;  %v25440_v49 = vld [vmem:[#allocation58_spill] sm:$0xff] }
 0xae8   :  { %v22482_v62 = vadd.f32 %v25438_v56, %v22143_v58  ;;  %v22487_v30 = vadd.f32 %v25439_v41, %v22147_v31  ;;  %v25441_v26 = vunpack.c.l.bf16 %v25440_v49  ;;  %v25442_v48 = vunpack.c.h.bf16 %v25440_v49  ;;  %v25446_v56 = vld [vmem:[#allocation41_spill] sm:$0xff] }
 0xae9   :  { %v22472_v10 = vadd.f32 %v25435_v8, %v22135_v46  ;;  %v22477_v40 = vadd.f32 %v25436_v34, %v22139_v53  ;;  %v25443_v8 = vld [vmem:[#allocation61_spill] sm:$0xff]  ;;  %v25447_v41 = vunpack.c.l.bf16 %v25446_v56  ;;  %v25448_v49 = vunpack.c.h.bf16 %v25446_v56 }
 0xaea   :  { %v22492_v46 = vadd.f32 %v25441_v26, %v22151_v0  ;;  %v22497_v53 = vadd.f32 %v25442_v48, %v22155_v6  ;;  %v25444_v34 = vunpack.c.l.bf16 %v25443_v8  ;;  %v25445_v42 = vunpack.c.h.bf16 %v25443_v8  ;;  %v25449_v26 = vld [vmem:[#allocation62_spill] sm:$0xff] }
 0xaeb   :  { %v22512_v0 = vadd.f32 %v25447_v41, %v22167_v35  ;;  %v22517_v6 = vadd.f32 %v25448_v49, %v22171_v17  ;;  %v25450_v48 = vunpack.c.l.bf16 %v25449_v26  ;;  %v25451_v8 = vunpack.c.h.bf16 %v25449_v26  ;;  %v25455_v41 = vld [vmem:[#allocation63_spill] sm:$0xff] }
 0xaec   :  { %v22502_v58 = vadd.f32 %v25444_v34, %v22159_v43  ;;  %v22507_v31 = vadd.f32 %v25445_v42, %v22163_v9  ;;  %v25452_v34 = vld [vmem:[#allocation44_spill] sm:$0xff]  ;;  %v25456_v49 = vunpack.c.l.bf16 %v25455_v41  ;;  %v25457_v26 = vunpack.c.h.bf16 %v25455_v41 }
 0xaed   :  { %v22522_v43 = vadd.f32 %v25450_v48, %v22175_v60  ;;  %v22527_v9 = vadd.f32 %v25451_v8, %v22179_v18  ;;  %v25453_v42 = vunpack.c.l.bf16 %v25452_v34  ;;  %v25454_v56 = vunpack.c.h.bf16 %v25452_v34  ;;  %v25458_v48 = vld [vmem:[#allocation66_spill] sm:$0xff] }
 0xaee   :  { %v22542_v60 = vadd.f32 %v25456_v49, %v22191_v25  ;;  %v22547_v18 = vadd.f32 %v25457_v26, %v22195_v14  ;;  %v25459_v8 = vunpack.c.l.bf16 %v25458_v48  ;;  %v25460_v34 = vunpack.c.h.bf16 %v25458_v48  ;;  %v25464_v49 = vld [vmem:[#allocation47_spill] sm:$0xff] }
 0xaef   :  { %v22532_v35 = vadd.f32 %v25453_v42, %v22183_v21  ;;  %v22537_v17 = vadd.f32 %v25454_v56, %v22187_v1  ;;  %v25461_v42 = vld [vmem:[#allocation45_spill] sm:$0xff]  ;;  %v25465_v26 = vunpack.c.l.bf16 %v25464_v49  ;;  %v25467_v48 = vunpack.c.h.bf16 %v25464_v49 }
 0xaf0   :  { %v22552_v21 = vadd.f32 %v25459_v8, %v22199_v13  ;;  %v22557_v1 = vadd.f32 %v25460_v34, %v22203_v44  ;;  %v25462_v56 = vunpack.c.l.bf16 %v25461_v42  ;;  %v25463_v41 = vunpack.c.h.bf16 %v25461_v42  ;;  %v25469_v8 = vld [vmem:[#allocation69_spill] sm:$0xff] }
 0xaf1   :  { %v22572_v13 = vadd.f32 %v25465_v26, %v22215_v22  ;;  %v22577_v44 = vadd.f32 %v25467_v48, %v22219_v39  ;;  %v25470_v34 = vunpack.c.l.bf16 %v25469_v8  ;;  %v25472_v42 = vunpack.c.h.bf16 %v25469_v8  ;;  %v25477_v26 = vld [vmem:[#allocation90_spill] sm:$0xff]  ;;  %v25480_v48 = vld [vmem:[#allocation93_spill] sm:$0xff] }
 0xaf2   :  { %v22562_v25 = vadd.f32 %v25462_v56, %v22207_v11  ;;  %v22567_v14 = vadd.f32 %v25463_v41, %v22211_v45  ;;  %v25474_v56 = vld [vmem:[#allocation72_spill] sm:$0xff] }
 0xaf3   :  { %25466 = vst [vmem:[#allocation12_spill] sm:$0xff] %v22572_v13  ;;  %25468 = vst [vmem:[#allocation13_spill] sm:$0xff] %v22577_v44  ;;  %v22582_v11 = vadd.f32 %v25470_v34, %v22223_v20  ;;  %v22587_v45 = vadd.f32 %v25472_v42, %v22227_v3  ;;  %v25475_v41 = vunpack.c.l.bf16 %v25474_v56  ;;  %v25478_v49 = vunpack.c.h.bf16 %v25474_v56  ;;  %v25481_v44 = vld [vmem:[#allocation49_spill] sm:$0xff]  ;;  %v25484_v34 = vld [vmem:[#allocation92_spill] sm:$0xff] }
 0xaf4   :  { %v25482_v13 = vunpack.c.l.bf16 %v25481_v44  ;;  %v25485_v8 = vunpack.c.h.bf16 %v25481_v44  ;;  %v25487_v42 = vld [vmem:[#allocation97_spill] sm:$0xff] }
 0xaf5   :  { %25471 = vst [vmem:[#allocation14_spill] sm:$0xff] %v22582_v11  ;;  %25473 = vst [vmem:[#allocation16_spill] sm:$0xff] %v22587_v45  ;;  %v22592_v22 = vadd.f32 %v25475_v41, %v22231_v50  ;;  %v22597_v39 = vadd.f32 %v25478_v49, %v25477_v26  ;;  %v25488_v45 = vld [vmem:[#allocation73_spill] sm:$0xff]  ;;  %v25491_v41 = vld [vmem:[#allocation123_spill] sm:$0xff] }
 0xaf6   :  { %v22602_v20 = vadd.f32 %v25482_v13, %v25480_v48  ;;  %v22607_v3 = vadd.f32 %v25485_v8, %v25484_v34  ;;  %v25489_v11 = vunpack.c.l.bf16 %v25488_v45  ;;  %v25492_v56 = vunpack.c.h.bf16 %v25488_v45  ;;  %v25494_v49 = vld [vmem:[#allocation121_spill] sm:$0xff]  ;;  %v25497_v48 = vld [vmem:[#allocation70_spill] sm:$0xff] }
 0xaf7   :  { %25476 = vst [vmem:[#allocation17_spill] sm:$0xff] %v22592_v22  ;;  %25479 = vst [vmem:[#allocation18_spill] sm:$0xff] %v22597_v39  ;;  %v25495_v39 = vld [vmem:[#allocation59_spill] sm:$0xff]  ;;  %v25500_v8 = vld [vmem:[#allocation57_spill] sm:$0xff] }
 0xaf8   :  { %25483 = vst [vmem:[#allocation20_spill] sm:$0xff] %v22602_v20  ;;  %25486 = vst [vmem:[#allocation30_spill] sm:$0xff] %v22607_v3  ;;  %v22612_v50 = vadd.f32 %v25489_v11, %v25487_v42  ;;  %v22617_v26 = vadd.f32 %v25492_v56, %v25491_v41  ;;  %v25496_v22 = vunpack.c.l.bf16 %v25495_v39  ;;  %v25498_v44 = vunpack.c.h.bf16 %v25495_v39  ;;  %v25501_v3 = vld [vmem:[#allocation78_spill] sm:$0xff]  ;;  %v25504_v42 = vld [vmem:[#allocation76_spill] sm:$0xff] }
 0xaf9   :  { %v25502_v20 = vunpack.c.l.bf16 %v25501_v3  ;;  %v25505_v45 = vunpack.c.h.bf16 %v25501_v3  ;;  %v25507_v56 = vld [vmem:[#allocation75_spill] sm:$0xff] }
 0xafa   :  { %25490 = vst [vmem:[#allocation31_spill] sm:$0xff] %v22612_v50  ;;  %25493 = vst [vmem:[#allocation32_spill] sm:$0xff] %v22617_v26  ;;  %v22622_v13 = vadd.f32 %v25496_v22, %v25494_v49  ;;  %v22627_v34 = vadd.f32 %v25498_v44, %v25497_v48  ;;  %v25508_v26 = vld [vmem:[#allocation79_spill] sm:$0xff] }
 0xafb   :  { %v22632_v11 = vadd.f32 %v25502_v20, %v25500_v8  ;;  %v22637_v41 = vadd.f32 %v25505_v45, %v25504_v42  ;;  %v25509_v50 = vunpack.c.l.bf16 %v25508_v26  ;;  %v25510_v39 = vunpack.c.h.bf16 %v25508_v26  ;;  %v25512_v48 = vld [vmem:[#allocation15_spill] sm:$0xff]  ;;  %v25517_v45 = vld [vmem:[#allocation21_spill] sm:$0xff] }
 0xafc   :  { %25499 = vst [vmem:[#allocation34_spill] sm:$0xff] %v22627_v34  ;;  %v25513_v44 = vld [vmem:[#allocation139_spill] sm:$0xff] }
 0xafd   :  { %25503 = vst [vmem:[#allocation36_spill] sm:$0xff] %v22632_v11  ;;  %25506 = vst [vmem:[#allocation39_spill] sm:$0xff] %v22637_v41  ;;  %v22642_v22 = vadd.f32 %v25509_v50, %v25507_v56  ;;  %v22647_v49 = vadd.f32 %v25510_v39, %v22275_v33  ;;  %v25514_v34 = vunpack.c.l.bf16 %v25513_v44  ;;  %v25515_v8 = vld [vmem:[#allocation19_spill] sm:$0xff]  ;;  %v25516_v3 = vunpack.c.h.bf16 %v25513_v44  ;;  %v25518_v41 = vld [vmem:[#allocation80_spill] sm:$0xff] }
 0xafe   :  { %v25519_v11 = vunpack.c.l.bf16 %v25518_v41  ;;  %v25520_v26 = vunpack.c.h.bf16 %v25518_v41  ;;  %v25521_v56 = vld [vmem:[#allocation22_spill] sm:$0xff]  ;;  %v25522_v39 = vld [vmem:[#allocation60_spill] sm:$0xff] }
 0xaff   :  { %25511 = vst [vmem:[#allocation42_spill] sm:$0xff] %v22647_v49  ;;  %v22652_v20 = vadd.f32 %v25514_v34, %v25512_v48  ;;  %v22657_v42 = vadd.f32 %v25516_v3, %v25515_v8  ;;  %v25523_v49 = vunpack.c.l.bf16 %v25522_v39  ;;  %v25524_v48 = vunpack.c.h.bf16 %v25522_v39  ;;  %v25526_v8 = vld [vmem:[#allocation81_spill] sm:$0xff]  ;;  %v25536_v39 = vld [vmem:[#allocation23_spill] sm:$0xff] }
 0xb00   :  { %v22662_v50 = vadd.f32 %v25519_v11, %v25517_v45  ;;  %v22667_v33 = vadd.f32 %v25520_v26, %v22291_v55  ;;  %v25527_v3 = vunpack.c.l.bf16 %v25526_v8  ;;  %v25529_v41 = vunpack.c.h.bf16 %v25526_v8  ;;  %v25531_v45 = vld [vmem:[#allocation84_spill] sm:$0xff] }
 0xb01   :  { %v22672_v34 = vadd.f32 %v25523_v49, %v25521_v56  ;;  %v22677_v44 = vadd.f32 %v25524_v48, %v22299_v5  ;;  %v25532_v26 = vunpack.c.l.bf16 %v25531_v45  ;;  %v25534_v56 = vunpack.c.h.bf16 %v25531_v45  ;;  %v25537_v48 = vld [vmem:[#allocation64_spill] sm:$0xff] }
 0xb02   :  { %v22682_v11 = vadd.f32 %v25527_v3, %v22303_v37  ;;  %v22687_v55 = vadd.f32 %v25529_v41, %v22307_v54  ;;  %v25540_v3 = vld [vmem:[#allocation24_spill] sm:$0xff]  ;;  %v25541_v8 = vunpack.c.h.bf16 %v25537_v48  ;;  %v25543_v41 = vld [vmem:[#allocation25_spill] sm:$0xff] }
 0xb03   :  { %25525 = vst [vmem:[#allocation37_spill] sm:$0xff] %v22677_v44  ;;  %v22692_v49 = vadd.f32 %v25532_v26, %v22311_v38  ;;  %v22697_v5 = vadd.f32 %v25534_v56, %v22315_v36  ;;  %v25538_v44 = vunpack.c.l.bf16 %v25537_v48  ;;  %v25546_v26 = vld [vmem:[#allocation82_spill] sm:$0xff]  ;;  %v25549_v56 = vld [vmem:[#allocation77_spill] sm:$0xff] }
 0xb04   :  { %25528 = vst [vmem:[#allocation99_spill] sm:$0xff] %v22682_v11  ;;  %25530 = vst [vmem:[#allocation102_spill] sm:$0xff] %v22687_v55  ;;  %v22707_v54 = vadd.f32 %v25541_v8, %v25540_v3  ;;  %v25544_v55 = vld [vmem:[#allocation65_spill] sm:$0xff]  ;;  %v25554_v8 = vld [vmem:[#allocation107_spill] sm:$0xff] }
 0xb05   :  { %25533 = vst [vmem:[#allocation83_spill] sm:$0xff] %v22692_v49  ;;  %25535 = vst [vmem:[#allocation86_spill] sm:$0xff] %v22697_v5  ;;  %v22702_v37 = vadd.f32 %v25538_v44, %v25536_v39  ;;  %v25545_v11 = vunpack.c.l.bf16 %v25544_v55  ;;  %v25547_v45 = vunpack.c.h.bf16 %v25544_v55  ;;  %v25550_v5 = vld [vmem:[#allocation87_spill] sm:$0xff]  ;;  %v25552_v39 = vld [vmem:[#allocation104_spill] sm:$0xff] }
 0xb06   :  { %25542 = vst [vmem:[#allocation106_spill] sm:$0xff] %v22707_v54  ;;  %v25551_v49 = vunpack.c.l.bf16 %v25550_v5  ;;  %v25553_v48 = vunpack.c.h.bf16 %v25550_v5  ;;  %v25555_v54 = vld [vmem:[#allocation88_spill] sm:$0xff] }
 0xb07   :  { %25539 = vst [vmem:[#allocation105_spill] sm:$0xff] %v22702_v37  ;;  %v22712_v38 = vadd.f32 %v25545_v11, %v25543_v41  ;;  %v22717_v36 = vadd.f32 %v25547_v45, %v25546_v26  ;;  %v25556_v37 = vunpack.c.l.bf16 %v25555_v54  ;;  %v25557_v41 = vld [vmem:[#allocation5_spill] sm:$0xff]  ;;  %v25558_v55 = vunpack.c.h.bf16 %v25555_v54  ;;  %v25560_v45 = vld [vmem:[#allocation67_spill] sm:$0xff] }
 0xb08   :  { %v22722_v44 = vadd.f32 %v25551_v49, %v25549_v56  ;;  %v22727_v3 = vadd.f32 %v25553_v48, %v25552_v39  ;;  %v25562_v5 = vunpack.c.h.bf16 %v25560_v45  ;;  %v25563_v39 = vld [vmem:[#allocation89_spill] sm:$0xff] }
 0xb09   :  { %25548 = vst [vmem:[#allocation98_spill] sm:$0xff] %v22717_v36  ;;  %v22732_v11 = vadd.f32 %v25556_v37, %v25554_v8  ;;  %v22737_v26 = vadd.f32 %v25558_v55, %v25557_v41  ;;  %v25561_v36 = vunpack.c.l.bf16 %v25560_v45  ;;  %v25564_v48 = vunpack.c.l.bf16 %v25563_v39  ;;  %v25565_v8 = vld [vmem:[#allocation4_spill] sm:$0xff]  ;;  %v25573_v45 = vld [vmem:[#allocation94_spill] sm:$0xff] }
 0xb0a   :  { %v22747_v56 = vadd.f32 %v25562_v5, %v22355_v16  ;;  %v25566_v54 = vunpack.c.h.bf16 %v25563_v39  ;;  %v25568_v55 = vld [vmem:[#allocation68_spill] sm:$0xff]  ;;  %v25574_v5 = vunpack.c.l.bf16 %v25573_v45  ;;  %v25576_v39 = vunpack.c.h.bf16 %v25573_v45 }
 0xb0b   :  { %25559 = vst [vmem:[#allocation109_spill] sm:$0xff] %v22737_v26  ;;  %v22742_v49 = vadd.f32 %v25561_v36, %v22351_v32  ;;  %v22752_v37 = vadd.f32 %v25564_v48, %v22359_v59  ;;  %v25569_v26 = vunpack.c.l.bf16 %v25568_v55  ;;  %v25571_v36 = vunpack.c.h.bf16 %v25568_v55 }
 0xb0c   :  { %v22757_v41 = vadd.f32 %v25566_v54, %v25565_v8  ;;  %v22772_v59 = vadd.f32 %v25574_v5, %v22375_v12  ;;  %v22777_v48 = vadd.f32 %v25576_v39, %v22379_v27  ;;  %v25578_v8 = vld [vmem:[#allocation6_spill] sm:$0xff]  ;;  %v25579_v54 = vld [vmem:[#allocation95_spill] sm:$0xff]  ;;  %v25587_v5 = vld [vmem:[#allocation9_spill] sm:$0xff] }
 0xb0d   :  { %v22762_v32 = vadd.f32 %v25569_v26, %v22367_v57  ;;  %v22767_v16 = vadd.f32 %v25571_v36, %v22371_v15  ;;  %v25581_v26 = vld [vmem:[#allocation7_spill] sm:$0xff]  ;;  %v25582_v55 = vunpack.c.h.bf16 %v25579_v54  ;;  %v25584_v36 = vld [vmem:[#allocation8_spill] sm:$0xff]  ;;  %v25589_v39 = vld [vmem:[#allocation10_spill] sm:$0xff] }
 0xb0e   :  { %25567 = vst [vmem:[#allocation100_spill] sm:$0xff] %v22757_v41  ;;  %25575 = vst [vmem:[#allocation101_spill] sm:$0xff] %v22772_v59  ;;  %v25580_v41 = vunpack.c.l.bf16 %v25579_v54 }
 0xb0f   :  { %25570 = vst [vmem:[#allocation110_spill] sm:$0xff] %v22762_v32  ;;  %25572 = vst [vmem:[#allocation112_spill] sm:$0xff] %v22767_v16  ;;  %v22787_v15 = vadd.f32 %v25582_v55, %v25581_v26  ;;  %v25585_v16 = vld [vmem:[#allocation71_spill] sm:$0xff]  ;;  %v25594_v55 = vld [vmem:[#allocation74_spill] sm:$0xff] }
 0xb10   :  { %25577 = vst [vmem:[#allocation114_spill] sm:$0xff] %v22777_v48  ;;  %v22782_v57 = vadd.f32 %v25580_v41, %v25578_v8  ;;  %v25586_v32 = vunpack.c.l.bf16 %v25585_v16  ;;  %v25588_v45 = vunpack.c.h.bf16 %v25585_v16  ;;  %v25590_v48 = vld [vmem:[#allocation96_spill] sm:$0xff]  ;;  %v25593_v26 = vld [vmem:[#allocation11_spill] sm:$0xff]  ;;  %v9302_v16 = vmax.f32 %v22417_v24, 0.0 }
 0xb11   :  { %25583 = vst [vmem:[#allocation52_spill] sm:$0xff] %v22787_v15  ;;  %v25591_v59 = vunpack.c.l.bf16 %v25590_v48  ;;  %v25592_v8 = vunpack.c.h.bf16 %v25590_v48  ;;  %v25595_v15 = vunpack.c.l.bf16 %v25594_v55  ;;  %v9308_v48 = vmax.f32 %v22447_v51, 0.0 }
 0xb12   :  { %v22792_v12 = vadd.f32 %v25586_v32, %v25584_v36  ;;  %v22797_v27 = vadd.f32 %v25588_v45, %v25587_v5  ;;  %v9301_v36 = vmax.f32 %v22412_v47, 0.0  ;;  %v9303_v5 = vmax.f32 %v22422_v4, 0.0  ;;  %9383 = vst [vmem:[%s23142_s4 + $0x8] sm:$0xff] %v9302_v16 }
 0xb13   :  { %v22802_v41 = vadd.f32 %v25591_v59, %v25589_v39  ;;  %v22807_v54 = vadd.f32 %v25592_v8, %v22403_v63  ;;  %v22812_v32 = vadd.f32 %v25595_v15, %v25593_v26  ;;  %v9304_v45 = vmax.f32 %v22427_v28, 0.0  ;;  %9389 = vst [vmem:[%s23142_s4 + $0x38] sm:$0xff] %v9308_v48  ;;  %v25601_v26 = vld [vmem:[#allocation18_spill] sm:$0xff] }
 0xb14   :  { %v9305_v59 = vmax.f32 %v22432_v2, 0.0  ;;  %v9306_v39 = vmax.f32 %v22437_v19, 0.0  ;;  %v9307_v63 = vmax.f32 %v22442_v29, 0.0  ;;  %v9309_v8 = vmax.f32 %v22452_v61, 0.0  ;;  %9382 = vst [vmem:[%s23142_s4] sm:$0xff] %v9301_v36  ;;  %9384 = vst [vmem:[%s23142_s4 + $0x10] sm:$0xff] %v9303_v5  ;;  %v25602_v36 = vld [vmem:[#allocation20_spill] sm:$0xff] }
 0xb15   :  { %v9310_v15 = vmax.f32 %v22457_v7, 0.0  ;;  %v9311_v47 = vmax.f32 %v22462_v23, 0.0  ;;  %v9312_v24 = vmax.f32 %v22467_v52, 0.0  ;;  %9385 = vst [vmem:[%s23142_s4 + $0x18] sm:$0xff] %v9304_v45  ;;  %v9313_v4 = vmax.f32 %v22472_v10, 0.0  ;;  %v25603_v5 = vld [vmem:[#allocation30_spill] sm:$0xff] }
 0xb16   :  { %v9314_v28 = vmax.f32 %v22477_v40, 0.0  ;;  %v9315_v2 = vmax.f32 %v22482_v62, 0.0  ;;  %v9316_v19 = vmax.f32 %v22487_v30, 0.0  ;;  %9386 = vst [vmem:[%s23142_s4 + $0x20] sm:$0xff] %v9305_v59  ;;  %9387 = vst [vmem:[%s23142_s4 + $0x28] sm:$0xff] %v9306_v39  ;;  %v9317_v29 = vmax.f32 %v22492_v46, 0.0 }
 0xb17   :  { %9388 = vst [vmem:[%s23142_s4 + $0x30] sm:$0xff] %v9307_v63  ;;  %v9318_v51 = vmax.f32 %v22497_v53, 0.0  ;;  %v9319_v61 = vmax.f32 %v22502_v58, 0.0  ;;  %v9320_v7 = vmax.f32 %v22507_v31, 0.0  ;;  %9390 = vst [vmem:[%s23142_s4 + $0x40] sm:$0xff] %v9309_v8  ;;  %v9321_v23 = vmax.f32 %v22512_v0, 0.0 }
 0xb18   :  { %9391 = vst [vmem:[%s23142_s4 + $0x48] sm:$0xff] %v9310_v15  ;;  %9392 = vst [vmem:[%s23142_s4 + $0x50] sm:$0xff] %v9311_v47  ;;  %v9322_v52 = vmax.f32 %v22517_v6, 0.0  ;;  %v9323_v10 = vmax.f32 %v22522_v43, 0.0  ;;  %v9324_v40 = vmax.f32 %v22527_v9, 0.0  ;;  %v9325_v62 = vmax.f32 %v22532_v35, 0.0 }
 0xb19   :  { %9393 = vst [vmem:[%s23142_s4 + $0x58] sm:$0xff] %v9312_v24  ;;  %9394 = vst [vmem:[%s23142_s4 + $0x60] sm:$0xff] %v9313_v4  ;;  %v9326_v30 = vmax.f32 %v22537_v17, 0.0  ;;  %v9327_v46 = vmax.f32 %v22542_v60, 0.0  ;;  %v9328_v53 = vmax.f32 %v22547_v18, 0.0  ;;  %v9329_v58 = vmax.f32 %v22552_v21, 0.0 }
 0xb1a   :  { %9395 = vst [vmem:[%s23142_s4 + $0x68] sm:$0xff] %v9314_v28  ;;  %9396 = vst [vmem:[%s23142_s4 + $0x70] sm:$0xff] %v9315_v2  ;;  %v9330_v31 = vmax.f32 %v22557_v1, 0.0  ;;  %v9331_v0 = vmax.f32 %v22562_v25, 0.0  ;;  %v9332_v6 = vmax.f32 %v22567_v14, 0.0  ;;  %v25596_v43 = vld [vmem:[#allocation12_spill] sm:$0xff] }
 0xb1b   :  { %9397 = vst [vmem:[%s23142_s4 + $0x78] sm:$0xff] %v9316_v19  ;;  %9398 = vst [vmem:[%s23142_s4 + $0x80] sm:$0xff] %v9317_v29  ;;  %v9333_v9 = vmax.f32 %v25596_v43, 0.0  ;;  %v25597_v35 = vld [vmem:[#allocation13_spill] sm:$0xff]  ;;  %v25598_v60 = vld [vmem:[#allocation14_spill] sm:$0xff]  ;;  %v9338_v55 = vmax.f32 %v25601_v26, 0.0 }
 0xb1c   :  { %9399 = vst [vmem:[%s23142_s4 + $0x88] sm:$0xff] %v9318_v51  ;;  %9400 = vst [vmem:[%s23142_s4 + $0x90] sm:$0xff] %v9319_v61  ;;  %v9334_v17 = vmax.f32 %v25597_v35, 0.0  ;;  %v9335_v18 = vmax.f32 %v25598_v60, 0.0  ;;  %v25599_v21 = vld [vmem:[#allocation16_spill] sm:$0xff]  ;;  %v25600_v25 = vld [vmem:[#allocation17_spill] sm:$0xff] }
 0xb1d   :  { %9401 = vst [vmem:[%s23142_s4 + $0x98] sm:$0xff] %v9320_v7  ;;  %9402 = vst [vmem:[%s23142_s4 + $0xa0] sm:$0xff] %v9321_v23  ;;  %v9336_v1 = vmax.f32 %v25599_v21, 0.0  ;;  %v9337_v14 = vmax.f32 %v25600_v25, 0.0  ;;  %v9339_v16 = vmax.f32 %v25602_v36, 0.0  ;;  %v9340_v45 = vmax.f32 %v25603_v5, 0.0 }
 0xb1e   :  { %9403 = vst [vmem:[%s23142_s4 + $0xa8] sm:$0xff] %v9322_v52  ;;  %9404 = vst [vmem:[%s23142_s4 + $0xb0] sm:$0xff] %v9323_v10  ;;  %v25604_v59 = vld [vmem:[#allocation31_spill] sm:$0xff]  ;;  %v25605_v63 = vld [vmem:[#allocation32_spill] sm:$0xff]  ;;  %v9343_v8 = vmax.f32 %v22622_v13, 0.0  ;;  %v9347_v2 = vmax.f32 %v22642_v22, 0.0 }
 0xb1f   :  { %9405 = vst [vmem:[%s23142_s4 + $0xb8] sm:$0xff] %v9324_v40  ;;  %9406 = vst [vmem:[%s23142_s4 + $0xc0] sm:$0xff] %v9325_v62  ;;  %v9341_v39 = vmax.f32 %v25604_v59, 0.0  ;;  %v9342_v48 = vmax.f32 %v25605_v63, 0.0  ;;  %v25606_v15 = vld [vmem:[#allocation34_spill] sm:$0xff]  ;;  %v25607_v24 = vld [vmem:[#allocation36_spill] sm:$0xff] }
 0xb20   :  { %9407 = vst [vmem:[%s23142_s4 + $0xc8] sm:$0xff] %v9326_v30  ;;  %9408 = vst [vmem:[%s23142_s4 + $0xd0] sm:$0xff] %v9327_v46  ;;  %v9344_v47 = vmax.f32 %v25606_v15, 0.0  ;;  %v9345_v13 = vmax.f32 %v25607_v24, 0.0  ;;  %v25608_v4 = vld [vmem:[#allocation39_spill] sm:$0xff]  ;;  %v25609_v19 = vld [vmem:[#allocation42_spill] sm:$0xff] }
 0xb21   :  { %9409 = vst [vmem:[%s23142_s4 + $0xd8] sm:$0xff] %v9328_v53  ;;  %9410 = vst [vmem:[%s23142_s4 + $0xe0] sm:$0xff] %v9329_v58  ;;  %v9346_v28 = vmax.f32 %v25608_v4, 0.0  ;;  %v9348_v29 = vmax.f32 %v25609_v19, 0.0  ;;  %v9349_v22 = vmax.f32 %v22652_v20, 0.0  ;;  %v9350_v51 = vmax.f32 %v22657_v42, 0.0 }
 0xb22   :  { %9411 = vst [vmem:[%s23142_s4 + $0xe8] sm:$0xff] %v9330_v31  ;;  %9412 = vst [vmem:[%s23142_s4 + $0xf0] sm:$0xff] %v9331_v0  ;;  %v9351_v61 = vmax.f32 %v22662_v50, 0.0  ;;  %v9352_v7 = vmax.f32 %v22667_v33, 0.0  ;;  %v9353_v20 = vmax.f32 %v22672_v34, 0.0  ;;  %v25610_v42 = vld [vmem:[#allocation37_spill] sm:$0xff] }
 0xb23   :  { %9413 = vst [vmem:[%s23142_s4 + $0xf8] sm:$0xff] %v9332_v6  ;;  %9414 = vst [vmem:[%s23142_s4 + $0x100] sm:$0xff] %v9333_v9  ;;  %v9354_v50 = vmax.f32 %v25610_v42, 0.0  ;;  %v25611_v33 = vld [vmem:[#allocation99_spill] sm:$0xff]  ;;  %v25612_v52 = vld [vmem:[#allocation102_spill] sm:$0xff]  ;;  %v9361_v0 = vmax.f32 %v22712_v38, 0.0 }
 0xb24   :  { %9415 = vst [vmem:[%s23142_s4 + $0x108] sm:$0xff] %v9334_v17  ;;  %9416 = vst [vmem:[%s23142_s4 + $0x110] sm:$0xff] %v9335_v18  ;;  %v9355_v23 = vmax.f32 %v25611_v33, 0.0  ;;  %v9356_v10 = vmax.f32 %v25612_v52, 0.0  ;;  %v25613_v34 = vld [vmem:[#allocation83_spill] sm:$0xff]  ;;  %v25614_v62 = vld [vmem:[#allocation86_spill] sm:$0xff] }
 0xb25   :  { %9417 = vst [vmem:[%s23142_s4 + $0x118] sm:$0xff] %v9336_v1  ;;  %9418 = vst [vmem:[%s23142_s4 + $0x120] sm:$0xff] %v9337_v14  ;;  %v9357_v40 = vmax.f32 %v25613_v34, 0.0  ;;  %v9358_v30 = vmax.f32 %v25614_v62, 0.0  ;;  %v25615_v46 = vld [vmem:[#allocation105_spill] sm:$0xff]  ;;  %v25616_v58 = vld [vmem:[#allocation106_spill] sm:$0xff] }
 0xb26   :  { %9419 = vst [vmem:[%s23142_s4 + $0x128] sm:$0xff] %v9338_v55  ;;  %9420 = vst [vmem:[%s23142_s4 + $0x130] sm:$0xff] %v9339_v16  ;;  %v9359_v53 = vmax.f32 %v25615_v46, 0.0  ;;  %v9360_v31 = vmax.f32 %v25616_v58, 0.0  ;;  %v25617_v6 = vld [vmem:[#allocation98_spill] sm:$0xff]  ;;  %v9363_v9 = vmax.f32 %v22722_v44, 0.0 }
 0xb27   :  { %9421 = vst [vmem:[%s23142_s4 + $0x138] sm:$0xff] %v9340_v45  ;;  %9422 = vst [vmem:[%s23142_s4 + $0x140] sm:$0xff] %v9341_v39  ;;  %v9362_v43 = vmax.f32 %v25617_v6, 0.0  ;;  %v9364_v35 = vmax.f32 %v22727_v3, 0.0  ;;  %v9365_v38 = vmax.f32 %v22732_v11, 0.0  ;;  %v25618_v44 = vld [vmem:[#allocation109_spill] sm:$0xff] }
 0xb28   :  { %9423 = vst [vmem:[%s23142_s4 + $0x148] sm:$0xff] %v9342_v48  ;;  %9424 = vst [vmem:[%s23142_s4 + $0x150] sm:$0xff] %v9343_v8  ;;  %v9366_v3 = vmax.f32 %v25618_v44, 0.0  ;;  %v9367_v17 = vmax.f32 %v22742_v49, 0.0  ;;  %v9368_v60 = vmax.f32 %v22747_v56, 0.0  ;;  %v9369_v11 = vmax.f32 %v22752_v37, 0.0 }
 0xb29   :  { %9425 = vst [vmem:[%s23142_s4 + $0x158] sm:$0xff] %v9344_v47  ;;  %9426 = vst [vmem:[%s23142_s4 + $0x160] sm:$0xff] %v9345_v13  ;;  %v25619_v49 = vld [vmem:[#allocation100_spill] sm:$0xff]  ;;  %v25620_v18 = vld [vmem:[#allocation110_spill] sm:$0xff]  ;;  %v9375_v36 = vmax.f32 %v22782_v57, 0.0  ;;  %v9377_v57 = vmax.f32 %v22792_v12, 0.0 }
 0xb2a   :  { %9427 = vst [vmem:[%s23142_s4 + $0x168] sm:$0xff] %v9346_v28  ;;  %9428 = vst [vmem:[%s23142_s4 + $0x170] sm:$0xff] %v9347_v2  ;;  %v9370_v56 = vmax.f32 %v25619_v49, 0.0  ;;  %v9371_v21 = vmax.f32 %v25620_v18, 0.0  ;;  %v25621_v1 = vld [vmem:[#allocation112_spill] sm:$0xff]  ;;  %v25622_v37 = vld [vmem:[#allocation101_spill] sm:$0xff] }
 0xb2b   :  { %9429 = vst [vmem:[%s23142_s4 + $0x178] sm:$0xff] %v9348_v29  ;;  %9430 = vst [vmem:[%s23142_s4 + $0x180] sm:$0xff] %v9349_v22  ;;  %v9372_v25 = vmax.f32 %v25621_v1, 0.0  ;;  %v9373_v14 = vmax.f32 %v25622_v37, 0.0  ;;  %v25623_v26 = vld [vmem:[#allocation114_spill] sm:$0xff]  ;;  %v25624_v16 = vld [vmem:[#allocation52_spill] sm:$0xff] }
 0xb2c   :  { %9431 = vst [vmem:[%s23142_s4 + $0x188] sm:$0xff] %v9350_v51  ;;  %9432 = vst [vmem:[%s23142_s4 + $0x190] sm:$0xff] %v9351_v61  ;;  %v9374_v55 = vmax.f32 %v25623_v26, 0.0  ;;  %v9376_v5 = vmax.f32 %v25624_v16, 0.0  ;;  %v9378_v45 = vmax.f32 %v22797_v27, 0.0  ;;  %v9379_v59 = vmax.f32 %v22802_v41, 0.0 }
 0xb2d   :  { %9433 = vst [vmem:[%s23142_s4 + $0x198] sm:$0xff] %v9352_v7  ;;  %9434 = vst [vmem:[%s23142_s4 + $0x1a0] sm:$0xff] %v9353_v20  ;;  %v9380_v39 = vmax.f32 %v22807_v54, 0.0  ;;  %v9381_v12 = vmax.f32 %v22812_v32, 0.0 }
 0xb2e   :  { %9435 = vst [vmem:[%s23142_s4 + $0x1a8] sm:$0xff] %v9354_v50  ;;  %9436 = vst [vmem:[%s23142_s4 + $0x1b0] sm:$0xff] %v9355_v23 }
 0xb2f   :  { %9437 = vst [vmem:[%s23142_s4 + $0x1b8] sm:$0xff] %v9356_v10  ;;  %9438 = vst [vmem:[%s23142_s4 + $0x1c0] sm:$0xff] %v9357_v40 }
 0xb30   :  { %9439 = vst [vmem:[%s23142_s4 + $0x1c8] sm:$0xff] %v9358_v30  ;;  %9440 = vst [vmem:[%s23142_s4 + $0x1d0] sm:$0xff] %v9359_v53 }
 0xb31   :  { %9441 = vst [vmem:[%s23142_s4 + $0x1d8] sm:$0xff] %v9360_v31  ;;  %9442 = vst [vmem:[%s23142_s4 + $0x1e0] sm:$0xff] %v9361_v0 }
 0xb32   :  { %9443 = vst [vmem:[%s23142_s4 + $0x1e8] sm:$0xff] %v9362_v43  ;;  %9444 = vst [vmem:[%s23142_s4 + $0x1f0] sm:$0xff] %v9363_v9 }
 0xb33   :  { %9445 = vst [vmem:[%s23142_s4 + $0x1f8] sm:$0xff] %v9364_v35  ;;  %9446 = vst [vmem:[%s23142_s4 + $0x200] sm:$0xff] %v9365_v38 }
 0xb34   :  { %9447 = vst [vmem:[%s23142_s4 + $0x208] sm:$0xff] %v9366_v3  ;;  %9448 = vst [vmem:[%s23142_s4 + $0x210] sm:$0xff] %v9367_v17 }
 0xb35   :  { %9449 = vst [vmem:[%s23142_s4 + $0x218] sm:$0xff] %v9368_v60  ;;  %9450 = vst [vmem:[%s23142_s4 + $0x220] sm:$0xff] %v9369_v11 }
 0xb36   :  { %9451 = vst [vmem:[%s23142_s4 + $0x228] sm:$0xff] %v9370_v56  ;;  %9452 = vst [vmem:[%s23142_s4 + $0x230] sm:$0xff] %v9371_v21 }
 0xb37   :  { %9453 = vst [vmem:[%s23142_s4 + $0x238] sm:$0xff] %v9372_v25  ;;  %9454 = vst [vmem:[%s23142_s4 + $0x240] sm:$0xff] %v9373_v14 }
 0xb38   :  { %9455 = vst [vmem:[%s23142_s4 + $0x248] sm:$0xff] %v9374_v55  ;;  %9456 = vst [vmem:[%s23142_s4 + $0x250] sm:$0xff] %v9375_v36 }
 0xb39   :  { %9457 = vst [vmem:[%s23142_s4 + $0x258] sm:$0xff] %v9376_v5  ;;  %9458 = vst [vmem:[%s23142_s4 + $0x260] sm:$0xff] %v9377_v57 }
 0xb3a   :  { %9459 = vst [vmem:[%s23142_s4 + $0x268] sm:$0xff] %v9378_v45  ;;  %9460 = vst [vmem:[%s23142_s4 + $0x270] sm:$0xff] %v9379_v59 }
 0xb3b   :  { %9461 = vst [vmem:[%s23142_s4 + $0x278] sm:$0xff] %v9380_v39  ;;  %9462 = vst [vmem:[%s23142_s4 + $0x280] sm:$0xff] %v9381_v12 }

</bundles_post_ra>
